<compile_context>
chip_gen: v7x
topology: tpu7x:2x2x1
jax: 0.10.0
libtpu: 0.0.40
codegen_flags: <defaults>
</compile_context>

<pallas_src>
import functools

import jax
import jax.numpy as jnp
from jax import lax
from jax.experimental import pallas as pl
from jax.experimental.pallas import tpu as pltpu

LANE = 128   # channel padding (lane dim): lane-dense stores + MXU-friendly K/N
NSUB = 8     # batch entries packed per grid block (sublane dim of every tile)


# ----------------------------------------------------------------------------
# Fused 5-stage kernel
# ----------------------------------------------------------------------------
def _make_backbone_kernel(o1):
    """o1 = spatial size of the stage-1 output (input spatial // 2)."""

    def kernel(patches_ref, w1_ref, b1_ref,
               w2_ref, b2_ref, w3_ref, b3_ref,
               w4_ref, b4_ref, w5_ref, b5_ref,
               s3_ref, s4_ref, s5_ref,
               p2_ref, p3_ref, p4_ref, p5_ref):
        # ---- stage 1: one lane-dense MXU matmul on pre-packed im2col patches.
        p = patches_ref[0]                                    # (o1*o1*8, 128) bf16
        acc = jnp.dot(p, w1_ref[...], preferred_element_type=jnp.float32)
        y = jnp.maximum(acc + b1_ref[...], 0.0)               # f32
        y = y.reshape(o1, o1, NSUB, LANE)

        stages = ((w2_ref, b2_ref, p2_ref, None),
                  (w3_ref, b3_ref, p3_ref, s3_ref),
                  (w4_ref, b4_ref, p4_ref, s4_ref),
                  (w5_ref, b5_ref, p5_ref, s5_ref))

        for w_ref, b_ref, plane, out_ref in stages:
            i_sp = y.shape[0]          # input spatial extent (always even here)
            o_sp = i_sp // 2           # output spatial extent

            # Parity-split, zero-padded planes of this stage's input:
            #   plane[qr*2+qc, a, b] = x_pad[2a+qr, 2b+qc]
            # Built from free leading-dim reshapes/slices + contiguous VMEM
            # stores, so every 3x3/stride-2 tap below is a contiguous slice
            # (no strided loads, no HBM im2col blow-up).
            ysplit = y.reshape(o_sp, 2, i_sp, NSUB, LANE)
            y_er = ysplit[:, 0]                               # even input rows
            y_or = ysplit[:, 1]                               # odd  input rows

            def _colsplit(t):
                t = t.reshape(o_sp, o_sp, 2, NSUB, LANE)
                return t[:, :, 0], t[:, :, 1]

            y_ee, y_eo = _colsplit(y_er)
            y_oe, y_oo = _colsplit(y_or)

            plane[...] = jnp.zeros_like(plane)
            plane[3, 0:o_sp, 0:o_sp, :, :] = y_ee
            plane[2, 0:o_sp, 1:o_sp + 1, :, :] = y_eo
            plane[1, 1:o_sp + 1, 0:o_sp, :, :] = y_oe
            plane[0, 1:o_sp + 1, 1:o_sp + 1, :, :] = y_oo

            # 3x3 stride-2 conv == 9 accumulated (M,128)x(128,128) MXU matmuls.
            acc = jnp.zeros((o_sp * o_sp * NSUB, LANE), jnp.float32)
            for kh in range(3):
                for kw in range(3):
                    q = (kh % 2) * 2 + (kw % 2)
                    dh, dw = kh // 2, kw // 2
                    tap = plane[q, dh:dh + o_sp, dw:dw + o_sp, :, :]
                    tap = tap.reshape(o_sp * o_sp * NSUB, LANE).astype(jnp.bfloat16)
                    acc = acc + jnp.dot(tap, w_ref[kh * 3 + kw],
                                        preferred_element_type=jnp.float32)

            y = jnp.maximum(acc + b_ref[...], 0.0)            # f32 bias + ReLU
            y = y.reshape(o_sp, o_sp, NSUB, LANE)
            if out_ref is not None:
                out_ref[0] = y                                # lane-dense store

    return kernel


# ----------------------------------------------------------------------------
# Wrapper glue (tiny XLA ops): stage-1 im2col, weight packing, output unpack
# ----------------------------------------------------------------------------
def _prep_stage1_weight(w, b):
    c_out, c_in = w.shape[0], w.shape[1]
    wm = jnp.transpose(w, (2, 3, 1, 0)).reshape(9 * c_in, c_out)   # (kh,kw,cin) rows
    wm = jnp.pad(wm, ((0, LANE - 9 * c_in), (0, LANE - c_out)))
    bm = jnp.pad(b, (0, LANE - c_out)).reshape(1, LANE)
    return wm.astype(jnp.bfloat16), bm.astype(jnp.float32)


def _prep_stage_weight(w, b):
    c_out, c_in = w.shape[0], w.shape[1]
    wt = jnp.transpose(w, (2, 3, 1, 0))                            # (3, 3, cin, cout)
    wt = jnp.pad(wt, ((0, 0), (0, 0), (0, LANE - c_in), (0, LANE - c_out)))
    wt = wt.reshape(9, LANE, LANE)
    bm = jnp.pad(b, (0, LANE - c_out)).reshape(1, LANE)
    return wt.astype(jnp.bfloat16), bm.astype(jnp.float32)


def _stage1_patches(x_nchw, nbs, o1):
    """im2col for stage 1 only (9*Cin <= 128 cols), rows ordered (oh, ow, n8)."""
    n, c_in, h, w = x_nchw.shape
    x = jnp.transpose(x_nchw, (0, 2, 3, 1))                        # NHWC
    x = jnp.pad(x, ((0, nbs - n), (1, 1), (1, 1), (0, 0)))
    taps = [x[:, kh:kh + 2 * o1:2, kw:kw + 2 * o1:2, :]
            for kh in range(3) for kw in range(3)]
    p = jnp.stack(taps, axis=3).reshape(nbs, o1, o1, 9 * c_in)
    p = jnp.pad(p, ((0, 0), (0, 0), (0, 0), (0, LANE - 9 * c_in)))
    p = p.reshape(nbs // NSUB, NSUB, o1, o1, LANE)
    p = jnp.transpose(p, (0, 2, 3, 1, 4))                          # (nb, o1, o1, 8, 128)
    return p.reshape(nbs // NSUB, o1 * o1 * NSUB, LANE).astype(jnp.bfloat16)


def _backbone_pallas(x_nchw, params):
    n, c_in, h, w = x_nchw.shape
    if h != w or h % 32 != 0:
        raise ValueError("spatial size must be square and divisible by 32")
    if 9 * c_in > LANE or max(wb[0].shape[0] for wb in params) > LANE:
        # TODO(synk): support Cin/Cout > 128 via K/N blocking inside the kernel.
        raise ValueError("channel counts beyond 128 lanes not supported")

    o1, o3, o4, o5 = h // 2, h // 8, h // 16, h // 32
    nb = pl.cdiv(n, NSUB)
    nbs = nb * NSUB

    patches = _stage1_patches(x_nchw, nbs, o1)
    w1, b1 = _prep_stage1_weight(*params[0])
    w2, b2 = _prep_stage_weight(*params[1])
    w3, b3 = _prep_stage_weight(*params[2])
    w4, b4 = _prep_stage_weight(*params[3])
    w5, b5 = _prep_stage_weight(*params[4])

    def _resident(shape):
        return pl.BlockSpec(shape, lambda i: (0,) * len(shape))

    in_specs = [
        pl.BlockSpec((1, o1 * o1 * NSUB, LANE), lambda i: (i, 0, 0)),   # patches
        _resident((LANE, LANE)), _resident((1, LANE)),                  # w1, b1
        _resident((9, LANE, LANE)), _resident((1, LANE)),               # w2, b2
        _resident((9, LANE, LANE)), _resident((1, LANE)),               # w3, b3
        _resident((9, LANE, LANE)), _resident((1, LANE)),               # w4, b4
        _resident((9, LANE, LANE)), _resident((1, LANE)),               # w5, b5
    ]
    out_specs = [
        pl.BlockSpec((1, o3, o3, NSUB, LANE), lambda i: (i, 0, 0, 0, 0)),
        pl.BlockSpec((1, o4, o4, NSUB, LANE), lambda i: (i, 0, 0, 0, 0)),
        pl.BlockSpec((1, o5, o5, NSUB, LANE), lambda i: (i, 0, 0, 0, 0)),
    ]
    out_shape = (
        jax.ShapeDtypeStruct((nb, o3, o3, NSUB, LANE), jnp.float32),
        jax.ShapeDtypeStruct((nb, o4, o4, NSUB, LANE), jnp.float32),
        jax.ShapeDtypeStruct((nb, o5, o5, NSUB, LANE), jnp.float32),
    )
    # parity-plane scratch for the inputs of stages 2..5
    scratch_shapes = [
        pltpu.VMEM((4, s // 2 + 1, s // 2 + 1, NSUB, LANE), jnp.float32)
        for s in (o1, o1 // 2, o1 // 4, o1 // 8)
    ]

    return pl.pallas_call(
        _make_backbone_kernel(o1),
        out_shape=out_shape,
        grid_spec=pltpu.PrefetchScalarGridSpec(
            num_scalar_prefetch=0,
            grid=(nb,),
            in_specs=in_specs,
            out_specs=out_specs,
            scratch_shapes=scratch_shapes),
        compiler_params=pltpu.CompilerParams(
            dimension_semantics=("parallel",),
            vmem_limit_bytes=32 * 1024 * 1024),
    )(patches, w1, b1, w2, b2, w3, b3, w4, b4, w5, b5)


def _unpack_nchw(o, n, c_out):
    nb, oh, ow = o.shape[0], o.shape[1], o.shape[2]
    t = jnp.transpose(o, (0, 3, 4, 1, 2)).reshape(nb * NSUB, LANE, oh, ow)
    return t[:n, :c_out]


# ----------------------------------------------------------------------------
# Backbone adapter (matches the PyTorch module's forward contract)
# ----------------------------------------------------------------------------
class BackbonePallas:
    n_stage = 5
    n_output = 3

    def __init__(self, in_channels, channels, key):
        if len(channels) != BackbonePallas.n_stage:
            raise RuntimeError(
                'expects n stage == %s got %s' % (BackbonePallas.n_stage, len(channels)))
        self.out_channels = tuple(channels)
        self.feature_type = 'tri_stage_fpn'
        self.params = []
        c_prev = in_channels
        for i, c_out in enumerate(channels):
            kw_key, kb_key = jax.random.split(jax.random.fold_in(key, i))
            fan_in = c_prev * 3 * 3
            std = (2.0 / fan_in) ** 0.5            # Kaiming init for ReLU
            wgt = std * jax.random.normal(kw_key, (c_out, c_prev, 3, 3), jnp.float32)
            bias = 0.01 * jax.random.normal(kb_key, (c_out,), jnp.float32)
            self.params.append((wgt, bias))
            c_prev = c_out

    @functools.partial(jax.jit, static_argnums=0)
    def __call__(self, x_nchw):
        n = x_nchw.shape[0]
        o3, o4, o5 = _backbone_pallas(x_nchw, self.params)
        s3 = _unpack_nchw(o3, n, self.out_channels[2])
        s4 = _unpack_nchw(o4, n, self.out_channels[3])
        s5 = _unpack_nchw(o5, n, self.out_channels[4])
        return s3, s4, s5


# Plain-JAX reference (lax conv) mirroring the kernel's dtype path:
# bf16 matmul operands, f32 accumulation / bias / ReLU, f32 activations.
def _reference(x_nchw, params):
    x = x_nchw
    feats = []
    for (w, b) in params:
        y = lax.conv_general_dilated(
            x.astype(jnp.bfloat16), w.astype(jnp.bfloat16),
            window_strides=(2, 2), padding=((1, 1), (1, 1)),
            dimension_numbers=('NCHW', 'OIHW', 'NCHW'),
            preferred_element_type=jnp.float32)
        x = jnp.maximum(y + b.reshape(1, -1, 1, 1), 0.0)
        feats.append(x)
    return feats[2], feats[3], feats[4]


if __name__ == "__main__":
    key = jax.random.PRNGKey(0)
    k_x, k_p = jax.random.split(key)

    # small NCHW input: batch=2, channels=4, spatial=32 (5 stride-2 stages)
    x = jax.random.normal(k_x, (2, 4, 32, 32), jnp.float32)

    backbone = BackbonePallas(in_channels=4, channels=(8, 16, 32, 64, 128), key=k_p)

    s3, s4, s5 = backbone(x)
    jax.block_until_ready((s3, s4, s5))

    assert s3.shape == (2, 32, 4, 4), s3.shape
    assert s4.shape == (2, 64, 2, 2), s4.shape
    assert s5.shape == (2, 128, 1, 1), s5.shape

    r3, r4, r5 = _reference(x, backbone.params)
    for got, ref in ((s3, r3), (s4, r4), (s5, r5)):
        assert jnp.allclose(got, ref, rtol=1e-2, atol=1e-2), \
            float(jnp.max(jnp.abs(got - ref)))

    print("KERNEL_OK")
</pallas_src>

<mosaic_0001>
module attributes {stable_mosaic.version = 11 : i64} {
  func.func @kernel(%arg0: i32, %arg1: memref<1x2048x128xbf16, #tpu.memory_space<vmem>>, %arg2: memref<128x128xbf16, #tpu.memory_space<vmem>>, %arg3: memref<1x128xf32, #tpu.memory_space<vmem>>, %arg4: memref<9x128x128xbf16, #tpu.memory_space<vmem>>, %arg5: memref<1x128xf32, #tpu.memory_space<vmem>>, %arg6: memref<9x128x128xbf16, #tpu.memory_space<vmem>>, %arg7: memref<1x128xf32, #tpu.memory_space<vmem>>, %arg8: memref<9x128x128xbf16, #tpu.memory_space<vmem>>, %arg9: memref<1x128xf32, #tpu.memory_space<vmem>>, %arg10: memref<9x128x128xbf16, #tpu.memory_space<vmem>>, %arg11: memref<1x128xf32, #tpu.memory_space<vmem>>, %arg12: memref<1x4x4x8x128xf32, #tpu.memory_space<vmem>>, %arg13: memref<1x2x2x8x128xf32, #tpu.memory_space<vmem>>, %arg14: memref<1x1x1x8x128xf32, #tpu.memory_space<vmem>>, %arg15: memref<4x9x9x8x128xf32, #tpu.memory_space<vmem>>, %arg16: memref<4x5x5x8x128xf32, #tpu.memory_space<vmem>>, %arg17: memref<4x3x3x8x128xf32, #tpu.memory_space<vmem>>, %arg18: memref<4x2x2x8x128xf32, #tpu.memory_space<vmem>>) attributes {dimension_semantics = [#tpu.dimension_semantics<parallel>], iteration_bounds = array<i64: 1>, scalar_prefetch = 0 : i64, scratch_operands = 4 : i64, tpu.core_type = #tpu.core_type<tc>, window_params = [{transform_indices = @transform_0, window_bounds = array<i64: 1, 2048, 128>}, {pipeline_mode = #tpu.pipeline_mode<synchronous>, transform_indices = @transform_1, window_bounds = array<i64: 128, 128>}, {pipeline_mode = #tpu.pipeline_mode<synchronous>, transform_indices = @transform_2, window_bounds = array<i64: 1, 128>}, {pipeline_mode = #tpu.pipeline_mode<synchronous>, transform_indices = @transform_3, window_bounds = array<i64: 9, 128, 128>}, {pipeline_mode = #tpu.pipeline_mode<synchronous>, transform_indices = @transform_4, window_bounds = array<i64: 1, 128>}, {pipeline_mode = #tpu.pipeline_mode<synchronous>, transform_indices = @transform_5, window_bounds = array<i64: 9, 128, 128>}, {pipeline_mode = #tpu.pipeline_mode<synchronous>, transform_indices = @transform_6, window_bounds = array<i64: 1, 128>}, {pipeline_mode = #tpu.pipeline_mode<synchronous>, transform_indices = @transform_7, window_bounds = array<i64: 9, 128, 128>}, {pipeline_mode = #tpu.pipeline_mode<synchronous>, transform_indices = @transform_8, window_bounds = array<i64: 1, 128>}, {pipeline_mode = #tpu.pipeline_mode<synchronous>, transform_indices = @transform_9, window_bounds = array<i64: 9, 128, 128>}, {pipeline_mode = #tpu.pipeline_mode<synchronous>, transform_indices = @transform_10, window_bounds = array<i64: 1, 128>}, {transform_indices = @transform_11, window_bounds = array<i64: 1, 4, 4, 8, 128>}, {transform_indices = @transform_12, window_bounds = array<i64: 1, 2, 2, 8, 128>}, {transform_indices = @transform_13, window_bounds = array<i64: 1, 1, 1, 8, 128>}]} {
    %c0 = arith.constant 0 : index
    %c0_0 = arith.constant 0 : index
    %c0_1 = arith.constant 0 : index
    %0 = vector.load %arg1[%c0, %c0_0, %c0_1] : memref<1x2048x128xbf16, #tpu.memory_space<vmem>>, vector<1x2048x128xbf16>
    %1 = vector.shape_cast %0 : vector<1x2048x128xbf16> to vector<2048x128xbf16>
    %c0_2 = arith.constant 0 : index
    %c0_3 = arith.constant 0 : index
    %2 = vector.load %arg2[%c0_2, %c0_3] : memref<128x128xbf16, #tpu.memory_space<vmem>>, vector<128x128xbf16>
    %cst = arith.constant dense<0.000000e+00> : vector<2048x128xf32>
    %3 = tpu.matmul %1, %2, %cst {dimension_numbers = #tpu.dot_dimension_numbers<[1], [0], [0], [1], [0, 0, 1, 1], [], []>} : vector<2048x128xbf16>, vector<128x128xbf16>, vector<2048x128xf32> -> vector<2048x128xf32>
    %c0_4 = arith.constant 0 : index
    %c0_5 = arith.constant 0 : index
    %4 = vector.load %arg3[%c0_4, %c0_5] : memref<1x128xf32, #tpu.memory_space<vmem>>, vector<1x128xf32>
    %5 = vector.broadcast %4 : vector<1x128xf32> to vector<2048x128xf32>
    %6 = arith.addf %3, %5 : vector<2048x128xf32>
    %cst_6 = arith.constant 0.000000e+00 : f32
    %7 = vector.broadcast %cst_6 : f32 to vector<2048x128xf32>
    %8 = arith.maximumf %6, %7 : vector<2048x128xf32>
    %9 = vector.shape_cast %8 : vector<2048x128xf32> to vector<16x16x8x128xf32>
    %10 = vector.shape_cast %9 : vector<16x16x8x128xf32> to vector<8x2x16x8x128xf32>
    %11 = vector.extract_strided_slice %10 {offsets = [0, 0, 0, 0, 0], sizes = [8, 1, 16, 8, 128], strides = [1, 1, 1, 1, 1]} : vector<8x2x16x8x128xf32> to vector<8x1x16x8x128xf32>
    %12 = vector.shape_cast %11 : vector<8x1x16x8x128xf32> to vector<8x16x8x128xf32>
    %13 = vector.extract_strided_slice %10 {offsets = [0, 1, 0, 0, 0], sizes = [8, 1, 16, 8, 128], strides = [1, 1, 1, 1, 1]} : vector<8x2x16x8x128xf32> to vector<8x1x16x8x128xf32>
    %14 = vector.shape_cast %13 : vector<8x1x16x8x128xf32> to vector<8x16x8x128xf32>
    %15 = vector.shape_cast %12 : vector<8x16x8x128xf32> to vector<8x8x2x8x128xf32>
    %16 = vector.extract_strided_slice %15 {offsets = [0, 0, 0, 0, 0], sizes = [8, 8, 1, 8, 128], strides = [1, 1, 1, 1, 1]} : vector<8x8x2x8x128xf32> to vector<8x8x1x8x128xf32>
    %17 = vector.shape_cast %16 : vector<8x8x1x8x128xf32> to vector<8x8x8x128xf32>
    %18 = vector.extract_strided_slice %15 {offsets = [0, 0, 1, 0, 0], sizes = [8, 8, 1, 8, 128], strides = [1, 1, 1, 1, 1]} : vector<8x8x2x8x128xf32> to vector<8x8x1x8x128xf32>
    %19 = vector.shape_cast %18 : vector<8x8x1x8x128xf32> to vector<8x8x8x128xf32>
    %20 = vector.shape_cast %14 : vector<8x16x8x128xf32> to vector<8x8x2x8x128xf32>
    %21 = vector.extract_strided_slice %20 {offsets = [0, 0, 0, 0, 0], sizes = [8, 8, 1, 8, 128], strides = [1, 1, 1, 1, 1]} : vector<8x8x2x8x128xf32> to vector<8x8x1x8x128xf32>
    %22 = vector.shape_cast %21 : vector<8x8x1x8x128xf32> to vector<8x8x8x128xf32>
    %23 = vector.extract_strided_slice %20 {offsets = [0, 0, 1, 0, 0], sizes = [8, 8, 1, 8, 128], strides = [1, 1, 1, 1, 1]} : vector<8x8x2x8x128xf32> to vector<8x8x1x8x128xf32>
    %24 = vector.shape_cast %23 : vector<8x8x1x8x128xf32> to vector<8x8x8x128xf32>
    %cst_7 = arith.constant 0.000000e+00 : f32
    %25 = vector.broadcast %cst_7 : f32 to vector<4x9x9x8x128xf32>
    %c0_8 = arith.constant 0 : index
    %c0_9 = arith.constant 0 : index
    %c0_10 = arith.constant 0 : index
    %c0_11 = arith.constant 0 : index
    %c0_12 = arith.constant 0 : index
    %26 = vector.load %arg15[%c0_8, %c0_9, %c0_10, %c0_11, %c0_12] : memref<4x9x9x8x128xf32, #tpu.memory_space<vmem>>, vector<4x9x9x8x128xf32>
    tpu.vector_store %arg15[%c0_8, %c0_9, %c0_10, %c0_11, %c0_12], %25 {strides = array<i32>} : memref<4x9x9x8x128xf32, #tpu.memory_space<vmem>>, vector<4x9x9x8x128xf32>,
    %c3 = arith.constant 3 : index
    %c0_13 = arith.constant 0 : index
    %c0_14 = arith.constant 0 : index
    %c0_15 = arith.constant 0 : index
    %c0_16 = arith.constant 0 : index
    %27 = vector.load %arg15[%c3, %c0_13, %c0_14, %c0_15, %c0_16] : memref<4x9x9x8x128xf32, #tpu.memory_space<vmem>>, vector<1x8x8x8x128xf32>
    %28 = vector.shape_cast %27 : vector<1x8x8x8x128xf32> to vector<8x8x8x128xf32>
    %29 = vector.shape_cast %17 : vector<8x8x8x128xf32> to vector<1x8x8x8x128xf32>
    tpu.vector_store %arg15[%c3, %c0_13, %c0_14, %c0_15, %c0_16], %29 {strides = array<i32>} : memref<4x9x9x8x128xf32, #tpu.memory_space<vmem>>, vector<1x8x8x8x128xf32>,
    %c2 = arith.constant 2 : index
    %c0_17 = arith.constant 0 : index
    %c1 = arith.constant 1 : index
    %c0_18 = arith.constant 0 : index
    %c0_19 = arith.constant 0 : index
    %30 = vector.load %arg15[%c2, %c0_17, %c1, %c0_18, %c0_19] : memref<4x9x9x8x128xf32, #tpu.memory_space<vmem>>, vector<1x8x8x8x128xf32>
    %31 = vector.shape_cast %30 : vector<1x8x8x8x128xf32> to vector<8x8x8x128xf32>
    %32 = vector.shape_cast %19 : vector<8x8x8x128xf32> to vector<1x8x8x8x128xf32>
    tpu.vector_store %arg15[%c2, %c0_17, %c1, %c0_18, %c0_19], %32 {strides = array<i32>} : memref<4x9x9x8x128xf32, #tpu.memory_space<vmem>>, vector<1x8x8x8x128xf32>,
    %c1_20 = arith.constant 1 : index
    %c1_21 = arith.constant 1 : index
    %c0_22 = arith.constant 0 : index
    %c0_23 = arith.constant 0 : index
    %c0_24 = arith.constant 0 : index
    %33 = vector.load %arg15[%c1_20, %c1_21, %c0_22, %c0_23, %c0_24] : memref<4x9x9x8x128xf32, #tpu.memory_space<vmem>>, vector<1x8x8x8x128xf32>
    %34 = vector.shape_cast %33 : vector<1x8x8x8x128xf32> to vector<8x8x8x128xf32>
    %35 = vector.shape_cast %22 : vector<8x8x8x128xf32> to vector<1x8x8x8x128xf32>
    tpu.vector_store %arg15[%c1_20, %c1_21, %c0_22, %c0_23, %c0_24], %35 {strides = array<i32>} : memref<4x9x9x8x128xf32, #tpu.memory_space<vmem>>, vector<1x8x8x8x128xf32>,
    %c0_25 = arith.constant 0 : index
    %c1_26 = arith.constant 1 : index
    %c1_27 = arith.constant 1 : index
    %c0_28 = arith.constant 0 : index
    %c0_29 = arith.constant 0 : index
    %36 = vector.load %arg15[%c0_25, %c1_26, %c1_27, %c0_28, %c0_29] : memref<4x9x9x8x128xf32, #tpu.memory_space<vmem>>, vector<1x8x8x8x128xf32>
    %37 = vector.shape_cast %36 : vector<1x8x8x8x128xf32> to vector<8x8x8x128xf32>
    %38 = vector.shape_cast %24 : vector<8x8x8x128xf32> to vector<1x8x8x8x128xf32>
    tpu.vector_store %arg15[%c0_25, %c1_26, %c1_27, %c0_28, %c0_29], %38 {strides = array<i32>} : memref<4x9x9x8x128xf32, #tpu.memory_space<vmem>>, vector<1x8x8x8x128xf32>,
    %cst_30 = arith.constant 0.000000e+00 : f32
    %39 = vector.broadcast %cst_30 : f32 to vector<512x128xf32>
    %c0_31 = arith.constant 0 : index
    %c0_32 = arith.constant 0 : index
    %c0_33 = arith.constant 0 : index
    %c0_34 = arith.constant 0 : index
    %c0_35 = arith.constant 0 : index
    %40 = vector.load %arg15[%c0_31, %c0_32, %c0_33, %c0_34, %c0_35] : memref<4x9x9x8x128xf32, #tpu.memory_space<vmem>>, vector<1x8x8x8x128xf32>
    %41 = vector.shape_cast %40 : vector<1x8x8x8x128xf32> to vector<8x8x8x128xf32>
    %42 = vector.shape_cast %41 : vector<8x8x8x128xf32> to vector<512x128xf32>
    %43 = arith.truncf %42 : vector<512x128xf32> to vector<512x128xbf16>
    %c0_36 = arith.constant 0 : index
    %c0_37 = arith.constant 0 : index
    %c0_38 = arith.constant 0 : index
    %44 = vector.load %arg4[%c0_36, %c0_37, %c0_38] : memref<9x128x128xbf16, #tpu.memory_space<vmem>>, vector<1x128x128xbf16>
    %45 = vector.shape_cast %44 : vector<1x128x128xbf16> to vector<128x128xbf16>
    %cst_39 = arith.constant dense<0.000000e+00> : vector<512x128xf32>
    %46 = tpu.matmul %43, %45, %cst_39 {dimension_numbers = #tpu.dot_dimension_numbers<[1], [0], [0], [1], [0, 0, 1, 1], [], []>} : vector<512x128xbf16>, vector<128x128xbf16>, vector<512x128xf32> -> vector<512x128xf32>
    %47 = arith.addf %39, %46 : vector<512x128xf32>
    %c1_40 = arith.constant 1 : index
    %c0_41 = arith.constant 0 : index
    %c0_42 = arith.constant 0 : index
    %c0_43 = arith.constant 0 : index
    %c0_44 = arith.constant 0 : index
    %48 = vector.load %arg15[%c1_40, %c0_41, %c0_42, %c0_43, %c0_44] : memref<4x9x9x8x128xf32, #tpu.memory_space<vmem>>, vector<1x8x8x8x128xf32>
    %49 = vector.shape_cast %48 : vector<1x8x8x8x128xf32> to vector<8x8x8x128xf32>
    %50 = vector.shape_cast %49 : vector<8x8x8x128xf32> to vector<512x128xf32>
    %51 = arith.truncf %50 : vector<512x128xf32> to vector<512x128xbf16>
    %c1_45 = arith.constant 1 : index
    %c0_46 = arith.constant 0 : index
    %c0_47 = arith.constant 0 : index
    %52 = vector.load %arg4[%c1_45, %c0_46, %c0_47] : memref<9x128x128xbf16, #tpu.memory_space<vmem>>, vector<1x128x128xbf16>
    %53 = vector.shape_cast %52 : vector<1x128x128xbf16> to vector<128x128xbf16>
    %cst_48 = arith.constant dense<0.000000e+00> : vector<512x128xf32>
    %54 = tpu.matmul %51, %53, %cst_48 {dimension_numbers = #tpu.dot_dimension_numbers<[1], [0], [0], [1], [0, 0, 1, 1], [], []>} : vector<512x128xbf16>, vector<128x128xbf16>, vector<512x128xf32> -> vector<512x128xf32>
    %55 = arith.addf %47, %54 : vector<512x128xf32>
    %c0_49 = arith.constant 0 : index
    %c0_50 = arith.constant 0 : index
    %c1_51 = arith.constant 1 : index
    %c0_52 = arith.constant 0 : index
    %c0_53 = arith.constant 0 : index
    %56 = vector.load %arg15[%c0_49, %c0_50, %c1_51, %c0_52, %c0_53] : memref<4x9x9x8x128xf32, #tpu.memory_space<vmem>>, vector<1x8x8x8x128xf32>
    %57 = vector.shape_cast %56 : vector<1x8x8x8x128xf32> to vector<8x8x8x128xf32>
    %58 = vector.shape_cast %57 : vector<8x8x8x128xf32> to vector<512x128xf32>
    %59 = arith.truncf %58 : vector<512x128xf32> to vector<512x128xbf16>
    %c2_54 = arith.constant 2 : index
    %c0_55 = arith.constant 0 : index
    %c0_56 = arith.constant 0 : index
    %60 = vector.load %arg4[%c2_54, %c0_55, %c0_56] : memref<9x128x128xbf16, #tpu.memory_space<vmem>>, vector<1x128x128xbf16>
    %61 = vector.shape_cast %60 : vector<1x128x128xbf16> to vector<128x128xbf16>
    %cst_57 = arith.constant dense<0.000000e+00> : vector<512x128xf32>
    %62 = tpu.matmul %59, %61, %cst_57 {dimension_numbers = #tpu.dot_dimension_numbers<[1], [0], [0], [1], [0, 0, 1, 1], [], []>} : vector<512x128xbf16>, vector<128x128xbf16>, vector<512x128xf32> -> vector<512x128xf32>
    %63 = arith.addf %55, %62 : vector<512x128xf32>
    %c2_58 = arith.constant 2 : index
    %c0_59 = arith.constant 0 : index
    %c0_60 = arith.constant 0 : index
    %c0_61 = arith.constant 0 : index
    %c0_62 = arith.constant 0 : index
    %64 = vector.load %arg15[%c2_58, %c0_59, %c0_60, %c0_61, %c0_62] : memref<4x9x9x8x128xf32, #tpu.memory_space<vmem>>, vector<1x8x8x8x128xf32>
    %65 = vector.shape_cast %64 : vector<1x8x8x8x128xf32> to vector<8x8x8x128xf32>
    %66 = vector.shape_cast %65 : vector<8x8x8x128xf32> to vector<512x128xf32>
    %67 = arith.truncf %66 : vector<512x128xf32> to vector<512x128xbf16>
    %c3_63 = arith.constant 3 : index
    %c0_64 = arith.constant 0 : index
    %c0_65 = arith.constant 0 : index
    %68 = vector.load %arg4[%c3_63, %c0_64, %c0_65] : memref<9x128x128xbf16, #tpu.memory_space<vmem>>, vector<1x128x128xbf16>
    %69 = vector.shape_cast %68 : vector<1x128x128xbf16> to vector<128x128xbf16>
    %cst_66 = arith.constant dense<0.000000e+00> : vector<512x128xf32>
    %70 = tpu.matmul %67, %69, %cst_66 {dimension_numbers = #tpu.dot_dimension_numbers<[1], [0], [0], [1], [0, 0, 1, 1], [], []>} : vector<512x128xbf16>, vector<128x128xbf16>, vector<512x128xf32> -> vector<512x128xf32>
    %71 = arith.addf %63, %70 : vector<512x128xf32>
    %c3_67 = arith.constant 3 : index
    %c0_68 = arith.constant 0 : index
    %c0_69 = arith.constant 0 : index
    %c0_70 = arith.constant 0 : index
    %c0_71 = arith.constant 0 : index
    %72 = vector.load %arg15[%c3_67, %c0_68, %c0_69, %c0_70, %c0_71] : memref<4x9x9x8x128xf32, #tpu.memory_space<vmem>>, vector<1x8x8x8x128xf32>
    %73 = vector.shape_cast %72 : vector<1x8x8x8x128xf32> to vector<8x8x8x128xf32>
    %74 = vector.shape_cast %73 : vector<8x8x8x128xf32> to vector<512x128xf32>
    %75 = arith.truncf %74 : vector<512x128xf32> to vector<512x128xbf16>
    %c4 = arith.constant 4 : index
    %c0_72 = arith.constant 0 : index
    %c0_73 = arith.constant 0 : index
    %76 = vector.load %arg4[%c4, %c0_72, %c0_73] : memref<9x128x128xbf16, #tpu.memory_space<vmem>>, vector<1x128x128xbf16>
    %77 = vector.shape_cast %76 : vector<1x128x128xbf16> to vector<128x128xbf16>
    %cst_74 = arith.constant dense<0.000000e+00> : vector<512x128xf32>
    %78 = tpu.matmul %75, %77, %cst_74 {dimension_numbers = #tpu.dot_dimension_numbers<[1], [0], [0], [1], [0, 0, 1, 1], [], []>} : vector<512x128xbf16>, vector<128x128xbf16>, vector<512x128xf32> -> vector<512x128xf32>
    %79 = arith.addf %71, %78 : vector<512x128xf32>
    %c2_75 = arith.constant 2 : index
    %c0_76 = arith.constant 0 : index
    %c1_77 = arith.constant 1 : index
    %c0_78 = arith.constant 0 : index
    %c0_79 = arith.constant 0 : index
    %80 = vector.load %arg15[%c2_75, %c0_76, %c1_77, %c0_78, %c0_79] : memref<4x9x9x8x128xf32, #tpu.memory_space<vmem>>, vector<1x8x8x8x128xf32>
    %81 = vector.shape_cast %80 : vector<1x8x8x8x128xf32> to vector<8x8x8x128xf32>
    %82 = vector.shape_cast %81 : vector<8x8x8x128xf32> to vector<512x128xf32>
    %83 = arith.truncf %82 : vector<512x128xf32> to vector<512x128xbf16>
    %c5 = arith.constant 5 : index
    %c0_80 = arith.constant 0 : index
    %c0_81 = arith.constant 0 : index
    %84 = vector.load %arg4[%c5, %c0_80, %c0_81] : memref<9x128x128xbf16, #tpu.memory_space<vmem>>, vector<1x128x128xbf16>
    %85 = vector.shape_cast %84 : vector<1x128x128xbf16> to vector<128x128xbf16>
    %cst_82 = arith.constant dense<0.000000e+00> : vector<512x128xf32>
    %86 = tpu.matmul %83, %85, %cst_82 {dimension_numbers = #tpu.dot_dimension_numbers<[1], [0], [0], [1], [0, 0, 1, 1], [], []>} : vector<512x128xbf16>, vector<128x128xbf16>, vector<512x128xf32> -> vector<512x128xf32>
    %87 = arith.addf %79, %86 : vector<512x128xf32>
    %c0_83 = arith.constant 0 : index
    %c1_84 = arith.constant 1 : index
    %c0_85 = arith.constant 0 : index
    %c0_86 = arith.constant 0 : index
    %c0_87 = arith.constant 0 : index
    %88 = vector.load %arg15[%c0_83, %c1_84, %c0_85, %c0_86, %c0_87] : memref<4x9x9x8x128xf32, #tpu.memory_space<vmem>>, vector<1x8x8x8x128xf32>
    %89 = vector.shape_cast %88 : vector<1x8x8x8x128xf32> to vector<8x8x8x128xf32>
    %90 = vector.shape_cast %89 : vector<8x8x8x128xf32> to vector<512x128xf32>
    %91 = arith.truncf %90 : vector<512x128xf32> to vector<512x128xbf16>
    %c6 = arith.constant 6 : index
    %c0_88 = arith.constant 0 : index
    %c0_89 = arith.constant 0 : index
    %92 = vector.load %arg4[%c6, %c0_88, %c0_89] : memref<9x128x128xbf16, #tpu.memory_space<vmem>>, vector<1x128x128xbf16>
    %93 = vector.shape_cast %92 : vector<1x128x128xbf16> to vector<128x128xbf16>
    %cst_90 = arith.constant dense<0.000000e+00> : vector<512x128xf32>
    %94 = tpu.matmul %91, %93, %cst_90 {dimension_numbers = #tpu.dot_dimension_numbers<[1], [0], [0], [1], [0, 0, 1, 1], [], []>} : vector<512x128xbf16>, vector<128x128xbf16>, vector<512x128xf32> -> vector<512x128xf32>
    %95 = arith.addf %87, %94 : vector<512x128xf32>
    %c1_91 = arith.constant 1 : index
    %c1_92 = arith.constant 1 : index
    %c0_93 = arith.constant 0 : index
    %c0_94 = arith.constant 0 : index
    %c0_95 = arith.constant 0 : index
    %96 = vector.load %arg15[%c1_91, %c1_92, %c0_93, %c0_94, %c0_95] : memref<4x9x9x8x128xf32, #tpu.memory_space<vmem>>, vector<1x8x8x8x128xf32>
    %97 = vector.shape_cast %96 : vector<1x8x8x8x128xf32> to vector<8x8x8x128xf32>
    %98 = vector.shape_cast %97 : vector<8x8x8x128xf32> to vector<512x128xf32>
    %99 = arith.truncf %98 : vector<512x128xf32> to vector<512x128xbf16>
    %c7 = arith.constant 7 : index
    %c0_96 = arith.constant 0 : index
    %c0_97 = arith.constant 0 : index
    %100 = vector.load %arg4[%c7, %c0_96, %c0_97] : memref<9x128x128xbf16, #tpu.memory_space<vmem>>, vector<1x128x128xbf16>
    %101 = vector.shape_cast %100 : vector<1x128x128xbf16> to vector<128x128xbf16>
    %cst_98 = arith.constant dense<0.000000e+00> : vector<512x128xf32>
    %102 = tpu.matmul %99, %101, %cst_98 {dimension_numbers = #tpu.dot_dimension_numbers<[1], [0], [0], [1], [0, 0, 1, 1], [], []>} : vector<512x128xbf16>, vector<128x128xbf16>, vector<512x128xf32> -> vector<512x128xf32>
    %103 = arith.addf %95, %102 : vector<512x128xf32>
    %c0_99 = arith.constant 0 : index
    %c1_100 = arith.constant 1 : index
    %c1_101 = arith.constant 1 : index
    %c0_102 = arith.constant 0 : index
    %c0_103 = arith.constant 0 : index
    %104 = vector.load %arg15[%c0_99, %c1_100, %c1_101, %c0_102, %c0_103] : memref<4x9x9x8x128xf32, #tpu.memory_space<vmem>>, vector<1x8x8x8x128xf32>
    %105 = vector.shape_cast %104 : vector<1x8x8x8x128xf32> to vector<8x8x8x128xf32>
    %106 = vector.shape_cast %105 : vector<8x8x8x128xf32> to vector<512x128xf32>
    %107 = arith.truncf %106 : vector<512x128xf32> to vector<512x128xbf16>
    %c8 = arith.constant 8 : index
    %c0_104 = arith.constant 0 : index
    %c0_105 = arith.constant 0 : index
    %108 = vector.load %arg4[%c8, %c0_104, %c0_105] : memref<9x128x128xbf16, #tpu.memory_space<vmem>>, vector<1x128x128xbf16>
    %109 = vector.shape_cast %108 : vector<1x128x128xbf16> to vector<128x128xbf16>
    %cst_106 = arith.constant dense<0.000000e+00> : vector<512x128xf32>
    %110 = tpu.matmul %107, %109, %cst_106 {dimension_numbers = #tpu.dot_dimension_numbers<[1], [0], [0], [1], [0, 0, 1, 1], [], []>} : vector<512x128xbf16>, vector<128x128xbf16>, vector<512x128xf32> -> vector<512x128xf32>
    %111 = arith.addf %103, %110 : vector<512x128xf32>
    %c0_107 = arith.constant 0 : index
    %c0_108 = arith.constant 0 : index
    %112 = vector.load %arg5[%c0_107, %c0_108] : memref<1x128xf32, #tpu.memory_space<vmem>>, vector<1x128xf32>
    %113 = vector.broadcast %112 : vector<1x128xf32> to vector<512x128xf32>
    %114 = arith.addf %111, %113 : vector<512x128xf32>
    %cst_109 = arith.constant 0.000000e+00 : f32
    %115 = vector.broadcast %cst_109 : f32 to vector<512x128xf32>
    %116 = arith.maximumf %114, %115 : vector<512x128xf32>
    %117 = vector.shape_cast %116 : vector<512x128xf32> to vector<8x8x8x128xf32>
    %118 = vector.shape_cast %117 : vector<8x8x8x128xf32> to vector<4x2x8x8x128xf32>
    %119 = vector.extract_strided_slice %118 {offsets = [0, 0, 0, 0, 0], sizes = [4, 1, 8, 8, 128], strides = [1, 1, 1, 1, 1]} : vector<4x2x8x8x128xf32> to vector<4x1x8x8x128xf32>
    %120 = vector.shape_cast %119 : vector<4x1x8x8x128xf32> to vector<4x8x8x128xf32>
    %121 = vector.extract_strided_slice %118 {offsets = [0, 1, 0, 0, 0], sizes = [4, 1, 8, 8, 128], strides = [1, 1, 1, 1, 1]} : vector<4x2x8x8x128xf32> to vector<4x1x8x8x128xf32>
    %122 = vector.shape_cast %121 : vector<4x1x8x8x128xf32> to vector<4x8x8x128xf32>
    %123 = vector.shape_cast %120 : vector<4x8x8x128xf32> to vector<4x4x2x8x128xf32>
    %124 = vector.extract_strided_slice %123 {offsets = [0, 0, 0, 0, 0], sizes = [4, 4, 1, 8, 128], strides = [1, 1, 1, 1, 1]} : vector<4x4x2x8x128xf32> to vector<4x4x1x8x128xf32>
    %125 = vector.shape_cast %124 : vector<4x4x1x8x128xf32> to vector<4x4x8x128xf32>
    %126 = vector.extract_strided_slice %123 {offsets = [0, 0, 1, 0, 0], sizes = [4, 4, 1, 8, 128], strides = [1, 1, 1, 1, 1]} : vector<4x4x2x8x128xf32> to vector<4x4x1x8x128xf32>
    %127 = vector.shape_cast %126 : vector<4x4x1x8x128xf32> to vector<4x4x8x128xf32>
    %128 = vector.shape_cast %122 : vector<4x8x8x128xf32> to vector<4x4x2x8x128xf32>
    %129 = vector.extract_strided_slice %128 {offsets = [0, 0, 0, 0, 0], sizes = [4, 4, 1, 8, 128], strides = [1, 1, 1, 1, 1]} : vector<4x4x2x8x128xf32> to vector<4x4x1x8x128xf32>
    %130 = vector.shape_cast %129 : vector<4x4x1x8x128xf32> to vector<4x4x8x128xf32>
    %131 = vector.extract_strided_slice %128 {offsets = [0, 0, 1, 0, 0], sizes = [4, 4, 1, 8, 128], strides = [1, 1, 1, 1, 1]} : vector<4x4x2x8x128xf32> to vector<4x4x1x8x128xf32>
    %132 = vector.shape_cast %131 : vector<4x4x1x8x128xf32> to vector<4x4x8x128xf32>
    %cst_110 = arith.constant 0.000000e+00 : f32
    %133 = vector.broadcast %cst_110 : f32 to vector<4x5x5x8x128xf32>
    %c0_111 = arith.constant 0 : index
    %c0_112 = arith.constant 0 : index
    %c0_113 = arith.constant 0 : index
    %c0_114 = arith.constant 0 : index
    %c0_115 = arith.constant 0 : index
    %134 = vector.load %arg16[%c0_111, %c0_112, %c0_113, %c0_114, %c0_115] : memref<4x5x5x8x128xf32, #tpu.memory_space<vmem>>, vector<4x5x5x8x128xf32>
    tpu.vector_store %arg16[%c0_111, %c0_112, %c0_113, %c0_114, %c0_115], %133 {strides = array<i32>} : memref<4x5x5x8x128xf32, #tpu.memory_space<vmem>>, vector<4x5x5x8x128xf32>,
    %c3_116 = arith.constant 3 : index
    %c0_117 = arith.constant 0 : index
    %c0_118 = arith.constant 0 : index
    %c0_119 = arith.constant 0 : index
    %c0_120 = arith.constant 0 : index
    %135 = vector.load %arg16[%c3_116, %c0_117, %c0_118, %c0_119, %c0_120] : memref<4x5x5x8x128xf32, #tpu.memory_space<vmem>>, vector<1x4x4x8x128xf32>
    %136 = vector.shape_cast %135 : vector<1x4x4x8x128xf32> to vector<4x4x8x128xf32>
    %137 = vector.shape_cast %125 : vector<4x4x8x128xf32> to vector<1x4x4x8x128xf32>
    tpu.vector_store %arg16[%c3_116, %c0_117, %c0_118, %c0_119, %c0_120], %137 {strides = array<i32>} : memref<4x5x5x8x128xf32, #tpu.memory_space<vmem>>, vector<1x4x4x8x128xf32>,
    %c2_121 = arith.constant 2 : index
    %c0_122 = arith.constant 0 : index
    %c1_123 = arith.constant 1 : index
    %c0_124 = arith.constant 0 : index
    %c0_125 = arith.constant 0 : index
    %138 = vector.load %arg16[%c2_121, %c0_122, %c1_123, %c0_124, %c0_125] : memref<4x5x5x8x128xf32, #tpu.memory_space<vmem>>, vector<1x4x4x8x128xf32>
    %139 = vector.shape_cast %138 : vector<1x4x4x8x128xf32> to vector<4x4x8x128xf32>
    %140 = vector.shape_cast %127 : vector<4x4x8x128xf32> to vector<1x4x4x8x128xf32>
    tpu.vector_store %arg16[%c2_121, %c0_122, %c1_123, %c0_124, %c0_125], %140 {strides = array<i32>} : memref<4x5x5x8x128xf32, #tpu.memory_space<vmem>>, vector<1x4x4x8x128xf32>,
    %c1_126 = arith.constant 1 : index
    %c1_127 = arith.constant 1 : index
    %c0_128 = arith.constant 0 : index
    %c0_129 = arith.constant 0 : index
    %c0_130 = arith.constant 0 : index
    %141 = vector.load %arg16[%c1_126, %c1_127, %c0_128, %c0_129, %c0_130] : memref<4x5x5x8x128xf32, #tpu.memory_space<vmem>>, vector<1x4x4x8x128xf32>
    %142 = vector.shape_cast %141 : vector<1x4x4x8x128xf32> to vector<4x4x8x128xf32>
    %143 = vector.shape_cast %130 : vector<4x4x8x128xf32> to vector<1x4x4x8x128xf32>
    tpu.vector_store %arg16[%c1_126, %c1_127, %c0_128, %c0_129, %c0_130], %143 {strides = array<i32>} : memref<4x5x5x8x128xf32, #tpu.memory_space<vmem>>, vector<1x4x4x8x128xf32>,
    %c0_131 = arith.constant 0 : index
    %c1_132 = arith.constant 1 : index
    %c1_133 = arith.constant 1 : index
    %c0_134 = arith.constant 0 : index
    %c0_135 = arith.constant 0 : index
    %144 = vector.load %arg16[%c0_131, %c1_132, %c1_133, %c0_134, %c0_135] : memref<4x5x5x8x128xf32, #tpu.memory_space<vmem>>, vector<1x4x4x8x128xf32>
    %145 = vector.shape_cast %144 : vector<1x4x4x8x128xf32> to vector<4x4x8x128xf32>
    %146 = vector.shape_cast %132 : vector<4x4x8x128xf32> to vector<1x4x4x8x128xf32>
    tpu.vector_store %arg16[%c0_131, %c1_132, %c1_133, %c0_134, %c0_135], %146 {strides = array<i32>} : memref<4x5x5x8x128xf32, #tpu.memory_space<vmem>>, vector<1x4x4x8x128xf32>,
    %cst_136 = arith.constant 0.000000e+00 : f32
    %147 = vector.broadcast %cst_136 : f32 to vector<128x128xf32>
    %c0_137 = arith.constant 0 : index
    %c0_138 = arith.constant 0 : index
    %c0_139 = arith.constant 0 : index
    %c0_140 = arith.constant 0 : index
    %c0_141 = arith.constant 0 : index
    %148 = vector.load %arg16[%c0_137, %c0_138, %c0_139, %c0_140, %c0_141] : memref<4x5x5x8x128xf32, #tpu.memory_space<vmem>>, vector<1x4x4x8x128xf32>
    %149 = vector.shape_cast %148 : vector<1x4x4x8x128xf32> to vector<4x4x8x128xf32>
    %150 = vector.shape_cast %149 : vector<4x4x8x128xf32> to vector<128x128xf32>
    %151 = arith.truncf %150 : vector<128x128xf32> to vector<128x128xbf16>
    %c0_142 = arith.constant 0 : index
    %c0_143 = arith.constant 0 : index
    %c0_144 = arith.constant 0 : index
    %152 = vector.load %arg6[%c0_142, %c0_143, %c0_144] : memref<9x128x128xbf16, #tpu.memory_space<vmem>>, vector<1x128x128xbf16>
    %153 = vector.shape_cast %152 : vector<1x128x128xbf16> to vector<128x128xbf16>
    %cst_145 = arith.constant dense<0.000000e+00> : vector<128x128xf32>
    %154 = tpu.matmul %151, %153, %cst_145 {dimension_numbers = #tpu.dot_dimension_numbers<[1], [0], [0], [1], [0, 0, 1, 1], [], []>} : vector<128x128xbf16>, vector<128x128xbf16>, vector<128x128xf32> -> vector<128x128xf32>
    %155 = arith.addf %147, %154 : vector<128x128xf32>
    %c1_146 = arith.constant 1 : index
    %c0_147 = arith.constant 0 : index
    %c0_148 = arith.constant 0 : index
    %c0_149 = arith.constant 0 : index
    %c0_150 = arith.constant 0 : index
    %156 = vector.load %arg16[%c1_146, %c0_147, %c0_148, %c0_149, %c0_150] : memref<4x5x5x8x128xf32, #tpu.memory_space<vmem>>, vector<1x4x4x8x128xf32>
    %157 = vector.shape_cast %156 : vector<1x4x4x8x128xf32> to vector<4x4x8x128xf32>
    %158 = vector.shape_cast %157 : vector<4x4x8x128xf32> to vector<128x128xf32>
    %159 = arith.truncf %158 : vector<128x128xf32> to vector<128x128xbf16>
    %c1_151 = arith.constant 1 : index
    %c0_152 = arith.constant 0 : index
    %c0_153 = arith.constant 0 : index
    %160 = vector.load %arg6[%c1_151, %c0_152, %c0_153] : memref<9x128x128xbf16, #tpu.memory_space<vmem>>, vector<1x128x128xbf16>
    %161 = vector.shape_cast %160 : vector<1x128x128xbf16> to vector<128x128xbf16>
    %cst_154 = arith.constant dense<0.000000e+00> : vector<128x128xf32>
    %162 = tpu.matmul %159, %161, %cst_154 {dimension_numbers = #tpu.dot_dimension_numbers<[1], [0], [0], [1], [0, 0, 1, 1], [], []>} : vector<128x128xbf16>, vector<128x128xbf16>, vector<128x128xf32> -> vector<128x128xf32>
    %163 = arith.addf %155, %162 : vector<128x128xf32>
    %c0_155 = arith.constant 0 : index
    %c0_156 = arith.constant 0 : index
    %c1_157 = arith.constant 1 : index
    %c0_158 = arith.constant 0 : index
    %c0_159 = arith.constant 0 : index
    %164 = vector.load %arg16[%c0_155, %c0_156, %c1_157, %c0_158, %c0_159] : memref<4x5x5x8x128xf32, #tpu.memory_space<vmem>>, vector<1x4x4x8x128xf32>
    %165 = vector.shape_cast %164 : vector<1x4x4x8x128xf32> to vector<4x4x8x128xf32>
    %166 = vector.shape_cast %165 : vector<4x4x8x128xf32> to vector<128x128xf32>
    %167 = arith.truncf %166 : vector<128x128xf32> to vector<128x128xbf16>
    %c2_160 = arith.constant 2 : index
    %c0_161 = arith.constant 0 : index
    %c0_162 = arith.constant 0 : index
    %168 = vector.load %arg6[%c2_160, %c0_161, %c0_162] : memref<9x128x128xbf16, #tpu.memory_space<vmem>>, vector<1x128x128xbf16>
    %169 = vector.shape_cast %168 : vector<1x128x128xbf16> to vector<128x128xbf16>
    %cst_163 = arith.constant dense<0.000000e+00> : vector<128x128xf32>
    %170 = tpu.matmul %167, %169, %cst_163 {dimension_numbers = #tpu.dot_dimension_numbers<[1], [0], [0], [1], [0, 0, 1, 1], [], []>} : vector<128x128xbf16>, vector<128x128xbf16>, vector<128x128xf32> -> vector<128x128xf32>
    %171 = arith.addf %163, %170 : vector<128x128xf32>
    %c2_164 = arith.constant 2 : index
    %c0_165 = arith.constant 0 : index
    %c0_166 = arith.constant 0 : index
    %c0_167 = arith.constant 0 : index
    %c0_168 = arith.constant 0 : index
    %172 = vector.load %arg16[%c2_164, %c0_165, %c0_166, %c0_167, %c0_168] : memref<4x5x5x8x128xf32, #tpu.memory_space<vmem>>, vector<1x4x4x8x128xf32>
    %173 = vector.shape_cast %172 : vector<1x4x4x8x128xf32> to vector<4x4x8x128xf32>
    %174 = vector.shape_cast %173 : vector<4x4x8x128xf32> to vector<128x128xf32>
    %175 = arith.truncf %174 : vector<128x128xf32> to vector<128x128xbf16>
    %c3_169 = arith.constant 3 : index
    %c0_170 = arith.constant 0 : index
    %c0_171 = arith.constant 0 : index
    %176 = vector.load %arg6[%c3_169, %c0_170, %c0_171] : memref<9x128x128xbf16, #tpu.memory_space<vmem>>, vector<1x128x128xbf16>
    %177 = vector.shape_cast %176 : vector<1x128x128xbf16> to vector<128x128xbf16>
    %cst_172 = arith.constant dense<0.000000e+00> : vector<128x128xf32>
    %178 = tpu.matmul %175, %177, %cst_172 {dimension_numbers = #tpu.dot_dimension_numbers<[1], [0], [0], [1], [0, 0, 1, 1], [], []>} : vector<128x128xbf16>, vector<128x128xbf16>, vector<128x128xf32> -> vector<128x128xf32>
    %179 = arith.addf %171, %178 : vector<128x128xf32>
    %c3_173 = arith.constant 3 : index
    %c0_174 = arith.constant 0 : index
    %c0_175 = arith.constant 0 : index
    %c0_176 = arith.constant 0 : index
    %c0_177 = arith.constant 0 : index
    %180 = vector.load %arg16[%c3_173, %c0_174, %c0_175, %c0_176, %c0_177] : memref<4x5x5x8x128xf32, #tpu.memory_space<vmem>>, vector<1x4x4x8x128xf32>
    %181 = vector.shape_cast %180 : vector<1x4x4x8x128xf32> to vector<4x4x8x128xf32>
    %182 = vector.shape_cast %181 : vector<4x4x8x128xf32> to vector<128x128xf32>
    %183 = arith.truncf %182 : vector<128x128xf32> to vector<128x128xbf16>
    %c4_178 = arith.constant 4 : index
    %c0_179 = arith.constant 0 : index
    %c0_180 = arith.constant 0 : index
    %184 = vector.load %arg6[%c4_178, %c0_179, %c0_180] : memref<9x128x128xbf16, #tpu.memory_space<vmem>>, vector<1x128x128xbf16>
    %185 = vector.shape_cast %184 : vector<1x128x128xbf16> to vector<128x128xbf16>
    %cst_181 = arith.constant dense<0.000000e+00> : vector<128x128xf32>
    %186 = tpu.matmul %183, %185, %cst_181 {dimension_numbers = #tpu.dot_dimension_numbers<[1], [0], [0], [1], [0, 0, 1, 1], [], []>} : vector<128x128xbf16>, vector<128x128xbf16>, vector<128x128xf32> -> vector<128x128xf32>
    %187 = arith.addf %179, %186 : vector<128x128xf32>
    %c2_182 = arith.constant 2 : index
    %c0_183 = arith.constant 0 : index
    %c1_184 = arith.constant 1 : index
    %c0_185 = arith.constant 0 : index
    %c0_186 = arith.constant 0 : index
    %188 = vector.load %arg16[%c2_182, %c0_183, %c1_184, %c0_185, %c0_186] : memref<4x5x5x8x128xf32, #tpu.memory_space<vmem>>, vector<1x4x4x8x128xf32>
    %189 = vector.shape_cast %188 : vector<1x4x4x8x128xf32> to vector<4x4x8x128xf32>
    %190 = vector.shape_cast %189 : vector<4x4x8x128xf32> to vector<128x128xf32>
    %191 = arith.truncf %190 : vector<128x128xf32> to vector<128x128xbf16>
    %c5_187 = arith.constant 5 : index
    %c0_188 = arith.constant 0 : index
    %c0_189 = arith.constant 0 : index
    %192 = vector.load %arg6[%c5_187, %c0_188, %c0_189] : memref<9x128x128xbf16, #tpu.memory_space<vmem>>, vector<1x128x128xbf16>
    %193 = vector.shape_cast %192 : vector<1x128x128xbf16> to vector<128x128xbf16>
    %cst_190 = arith.constant dense<0.000000e+00> : vector<128x128xf32>
    %194 = tpu.matmul %191, %193, %cst_190 {dimension_numbers = #tpu.dot_dimension_numbers<[1], [0], [0], [1], [0, 0, 1, 1], [], []>} : vector<128x128xbf16>, vector<128x128xbf16>, vector<128x128xf32> -> vector<128x128xf32>
    %195 = arith.addf %187, %194 : vector<128x128xf32>
    %c0_191 = arith.constant 0 : index
    %c1_192 = arith.constant 1 : index
    %c0_193 = arith.constant 0 : index
    %c0_194 = arith.constant 0 : index
    %c0_195 = arith.constant 0 : index
    %196 = vector.load %arg16[%c0_191, %c1_192, %c0_193, %c0_194, %c0_195] : memref<4x5x5x8x128xf32, #tpu.memory_space<vmem>>, vector<1x4x4x8x128xf32>
    %197 = vector.shape_cast %196 : vector<1x4x4x8x128xf32> to vector<4x4x8x128xf32>
    %198 = vector.shape_cast %197 : vector<4x4x8x128xf32> to vector<128x128xf32>
    %199 = arith.truncf %198 : vector<128x128xf32> to vector<128x128xbf16>
    %c6_196 = arith.constant 6 : index
    %c0_197 = arith.constant 0 : index
    %c0_198 = arith.constant 0 : index
    %200 = vector.load %arg6[%c6_196, %c0_197, %c0_198] : memref<9x128x128xbf16, #tpu.memory_space<vmem>>, vector<1x128x128xbf16>
    %201 = vector.shape_cast %200 : vector<1x128x128xbf16> to vector<128x128xbf16>
    %cst_199 = arith.constant dense<0.000000e+00> : vector<128x128xf32>
    %202 = tpu.matmul %199, %201, %cst_199 {dimension_numbers = #tpu.dot_dimension_numbers<[1], [0], [0], [1], [0, 0, 1, 1], [], []>} : vector<128x128xbf16>, vector<128x128xbf16>, vector<128x128xf32> -> vector<128x128xf32>
    %203 = arith.addf %195, %202 : vector<128x128xf32>
    %c1_200 = arith.constant 1 : index
    %c1_201 = arith.constant 1 : index
    %c0_202 = arith.constant 0 : index
    %c0_203 = arith.constant 0 : index
    %c0_204 = arith.constant 0 : index
    %204 = vector.load %arg16[%c1_200, %c1_201, %c0_202, %c0_203, %c0_204] : memref<4x5x5x8x128xf32, #tpu.memory_space<vmem>>, vector<1x4x4x8x128xf32>
    %205 = vector.shape_cast %204 : vector<1x4x4x8x128xf32> to vector<4x4x8x128xf32>
    %206 = vector.shape_cast %205 : vector<4x4x8x128xf32> to vector<128x128xf32>
    %207 = arith.truncf %206 : vector<128x128xf32> to vector<128x128xbf16>
    %c7_205 = arith.constant 7 : index
    %c0_206 = arith.constant 0 : index
    %c0_207 = arith.constant 0 : index
    %208 = vector.load %arg6[%c7_205, %c0_206, %c0_207] : memref<9x128x128xbf16, #tpu.memory_space<vmem>>, vector<1x128x128xbf16>
    %209 = vector.shape_cast %208 : vector<1x128x128xbf16> to vector<128x128xbf16>
    %cst_208 = arith.constant dense<0.000000e+00> : vector<128x128xf32>
    %210 = tpu.matmul %207, %209, %cst_208 {dimension_numbers = #tpu.dot_dimension_numbers<[1], [0], [0], [1], [0, 0, 1, 1], [], []>} : vector<128x128xbf16>, vector<128x128xbf16>, vector<128x128xf32> -> vector<128x128xf32>
    %211 = arith.addf %203, %210 : vector<128x128xf32>
    %c0_209 = arith.constant 0 : index
    %c1_210 = arith.constant 1 : index
    %c1_211 = arith.constant 1 : index
    %c0_212 = arith.constant 0 : index
    %c0_213 = arith.constant 0 : index
    %212 = vector.load %arg16[%c0_209, %c1_210, %c1_211, %c0_212, %c0_213] : memref<4x5x5x8x128xf32, #tpu.memory_space<vmem>>, vector<1x4x4x8x128xf32>
    %213 = vector.shape_cast %212 : vector<1x4x4x8x128xf32> to vector<4x4x8x128xf32>
    %214 = vector.shape_cast %213 : vector<4x4x8x128xf32> to vector<128x128xf32>
    %215 = arith.truncf %214 : vector<128x128xf32> to vector<128x128xbf16>
    %c8_214 = arith.constant 8 : index
    %c0_215 = arith.constant 0 : index
    %c0_216 = arith.constant 0 : index
    %216 = vector.load %arg6[%c8_214, %c0_215, %c0_216] : memref<9x128x128xbf16, #tpu.memory_space<vmem>>, vector<1x128x128xbf16>
    %217 = vector.shape_cast %216 : vector<1x128x128xbf16> to vector<128x128xbf16>
    %cst_217 = arith.constant dense<0.000000e+00> : vector<128x128xf32>
    %218 = tpu.matmul %215, %217, %cst_217 {dimension_numbers = #tpu.dot_dimension_numbers<[1], [0], [0], [1], [0, 0, 1, 1], [], []>} : vector<128x128xbf16>, vector<128x128xbf16>, vector<128x128xf32> -> vector<128x128xf32>
    %219 = arith.addf %211, %218 : vector<128x128xf32>
    %c0_218 = arith.constant 0 : index
    %c0_219 = arith.constant 0 : index
    %220 = vector.load %arg7[%c0_218, %c0_219] : memref<1x128xf32, #tpu.memory_space<vmem>>, vector<1x128xf32>
    %221 = vector.broadcast %220 : vector<1x128xf32> to vector<128x128xf32>
    %222 = arith.addf %219, %221 : vector<128x128xf32>
    %cst_220 = arith.constant 0.000000e+00 : f32
    %223 = vector.broadcast %cst_220 : f32 to vector<128x128xf32>
    %224 = arith.maximumf %222, %223 : vector<128x128xf32>
    %225 = vector.shape_cast %224 : vector<128x128xf32> to vector<4x4x8x128xf32>
    %c0_221 = arith.constant 0 : index
    %c0_222 = arith.constant 0 : index
    %c0_223 = arith.constant 0 : index
    %c0_224 = arith.constant 0 : index
    %c0_225 = arith.constant 0 : index
    %226 = vector.load %arg12[%c0_221, %c0_222, %c0_223, %c0_224, %c0_225] : memref<1x4x4x8x128xf32, #tpu.memory_space<vmem>>, vector<1x4x4x8x128xf32>
    %227 = vector.shape_cast %226 : vector<1x4x4x8x128xf32> to vector<4x4x8x128xf32>
    %228 = vector.shape_cast %225 : vector<4x4x8x128xf32> to vector<1x4x4x8x128xf32>
    tpu.vector_store %arg12[%c0_221, %c0_222, %c0_223, %c0_224, %c0_225], %228 {strides = array<i32>} : memref<1x4x4x8x128xf32, #tpu.memory_space<vmem>>, vector<1x4x4x8x128xf32>,
    %229 = vector.shape_cast %225 : vector<4x4x8x128xf32> to vector<2x2x4x8x128xf32>
    %230 = vector.extract_strided_slice %229 {offsets = [0, 0, 0, 0, 0], sizes = [2, 1, 4, 8, 128], strides = [1, 1, 1, 1, 1]} : vector<2x2x4x8x128xf32> to vector<2x1x4x8x128xf32>
    %231 = vector.shape_cast %230 : vector<2x1x4x8x128xf32> to vector<2x4x8x128xf32>
    %232 = vector.extract_strided_slice %229 {offsets = [0, 1, 0, 0, 0], sizes = [2, 1, 4, 8, 128], strides = [1, 1, 1, 1, 1]} : vector<2x2x4x8x128xf32> to vector<2x1x4x8x128xf32>
    %233 = vector.shape_cast %232 : vector<2x1x4x8x128xf32> to vector<2x4x8x128xf32>
    %234 = vector.shape_cast %231 : vector<2x4x8x128xf32> to vector<2x2x2x8x128xf32>
    %235 = vector.extract_strided_slice %234 {offsets = [0, 0, 0, 0, 0], sizes = [2, 2, 1, 8, 128], strides = [1, 1, 1, 1, 1]} : vector<2x2x2x8x128xf32> to vector<2x2x1x8x128xf32>
    %236 = vector.shape_cast %235 : vector<2x2x1x8x128xf32> to vector<2x2x8x128xf32>
    %237 = vector.extract_strided_slice %234 {offsets = [0, 0, 1, 0, 0], sizes = [2, 2, 1, 8, 128], strides = [1, 1, 1, 1, 1]} : vector<2x2x2x8x128xf32> to vector<2x2x1x8x128xf32>
    %238 = vector.shape_cast %237 : vector<2x2x1x8x128xf32> to vector<2x2x8x128xf32>
    %239 = vector.shape_cast %233 : vector<2x4x8x128xf32> to vector<2x2x2x8x128xf32>
    %240 = vector.extract_strided_slice %239 {offsets = [0, 0, 0, 0, 0], sizes = [2, 2, 1, 8, 128], strides = [1, 1, 1, 1, 1]} : vector<2x2x2x8x128xf32> to vector<2x2x1x8x128xf32>
    %241 = vector.shape_cast %240 : vector<2x2x1x8x128xf32> to vector<2x2x8x128xf32>
    %242 = vector.extract_strided_slice %239 {offsets = [0, 0, 1, 0, 0], sizes = [2, 2, 1, 8, 128], strides = [1, 1, 1, 1, 1]} : vector<2x2x2x8x128xf32> to vector<2x2x1x8x128xf32>
    %243 = vector.shape_cast %242 : vector<2x2x1x8x128xf32> to vector<2x2x8x128xf32>
    %cst_226 = arith.constant 0.000000e+00 : f32
    %244 = vector.broadcast %cst_226 : f32 to vector<4x3x3x8x128xf32>
    %c0_227 = arith.constant 0 : index
    %c0_228 = arith.constant 0 : index
    %c0_229 = arith.constant 0 : index
    %c0_230 = arith.constant 0 : index
    %c0_231 = arith.constant 0 : index
    %245 = vector.load %arg17[%c0_227, %c0_228, %c0_229, %c0_230, %c0_231] : memref<4x3x3x8x128xf32, #tpu.memory_space<vmem>>, vector<4x3x3x8x128xf32>
    tpu.vector_store %arg17[%c0_227, %c0_228, %c0_229, %c0_230, %c0_231], %244 {strides = array<i32>} : memref<4x3x3x8x128xf32, #tpu.memory_space<vmem>>, vector<4x3x3x8x128xf32>,
    %c3_232 = arith.constant 3 : index
    %c0_233 = arith.constant 0 : index
    %c0_234 = arith.constant 0 : index
    %c0_235 = arith.constant 0 : index
    %c0_236 = arith.constant 0 : index
    %246 = vector.load %arg17[%c3_232, %c0_233, %c0_234, %c0_235, %c0_236] : memref<4x3x3x8x128xf32, #tpu.memory_space<vmem>>, vector<1x2x2x8x128xf32>
    %247 = vector.shape_cast %246 : vector<1x2x2x8x128xf32> to vector<2x2x8x128xf32>
    %248 = vector.shape_cast %236 : vector<2x2x8x128xf32> to vector<1x2x2x8x128xf32>
    tpu.vector_store %arg17[%c3_232, %c0_233, %c0_234, %c0_235, %c0_236], %248 {strides = array<i32>} : memref<4x3x3x8x128xf32, #tpu.memory_space<vmem>>, vector<1x2x2x8x128xf32>,
    %c2_237 = arith.constant 2 : index
    %c0_238 = arith.constant 0 : index
    %c1_239 = arith.constant 1 : index
    %c0_240 = arith.constant 0 : index
    %c0_241 = arith.constant 0 : index
    %249 = vector.load %arg17[%c2_237, %c0_238, %c1_239, %c0_240, %c0_241] : memref<4x3x3x8x128xf32, #tpu.memory_space<vmem>>, vector<1x2x2x8x128xf32>
    %250 = vector.shape_cast %249 : vector<1x2x2x8x128xf32> to vector<2x2x8x128xf32>
    %251 = vector.shape_cast %238 : vector<2x2x8x128xf32> to vector<1x2x2x8x128xf32>
    tpu.vector_store %arg17[%c2_237, %c0_238, %c1_239, %c0_240, %c0_241], %251 {strides = array<i32>} : memref<4x3x3x8x128xf32, #tpu.memory_space<vmem>>, vector<1x2x2x8x128xf32>,
    %c1_242 = arith.constant 1 : index
    %c1_243 = arith.constant 1 : index
    %c0_244 = arith.constant 0 : index
    %c0_245 = arith.constant 0 : index
    %c0_246 = arith.constant 0 : index
    %252 = vector.load %arg17[%c1_242, %c1_243, %c0_244, %c0_245, %c0_246] : memref<4x3x3x8x128xf32, #tpu.memory_space<vmem>>, vector<1x2x2x8x128xf32>
    %253 = vector.shape_cast %252 : vector<1x2x2x8x128xf32> to vector<2x2x8x128xf32>
    %254 = vector.shape_cast %241 : vector<2x2x8x128xf32> to vector<1x2x2x8x128xf32>
    tpu.vector_store %arg17[%c1_242, %c1_243, %c0_244, %c0_245, %c0_246], %254 {strides = array<i32>} : memref<4x3x3x8x128xf32, #tpu.memory_space<vmem>>, vector<1x2x2x8x128xf32>,
    %c0_247 = arith.constant 0 : index
    %c1_248 = arith.constant 1 : index
    %c1_249 = arith.constant 1 : index
    %c0_250 = arith.constant 0 : index
    %c0_251 = arith.constant 0 : index
    %255 = vector.load %arg17[%c0_247, %c1_248, %c1_249, %c0_250, %c0_251] : memref<4x3x3x8x128xf32, #tpu.memory_space<vmem>>, vector<1x2x2x8x128xf32>
    %256 = vector.shape_cast %255 : vector<1x2x2x8x128xf32> to vector<2x2x8x128xf32>
    %257 = vector.shape_cast %243 : vector<2x2x8x128xf32> to vector<1x2x2x8x128xf32>
    tpu.vector_store %arg17[%c0_247, %c1_248, %c1_249, %c0_250, %c0_251], %257 {strides = array<i32>} : memref<4x3x3x8x128xf32, #tpu.memory_space<vmem>>, vector<1x2x2x8x128xf32>,
    %cst_252 = arith.constant 0.000000e+00 : f32
    %258 = vector.broadcast %cst_252 : f32 to vector<32x128xf32>
    %c0_253 = arith.constant 0 : index
    %c0_254 = arith.constant 0 : index
    %c0_255 = arith.constant 0 : index
    %c0_256 = arith.constant 0 : index
    %c0_257 = arith.constant 0 : index
    %259 = vector.load %arg17[%c0_253, %c0_254, %c0_255, %c0_256, %c0_257] : memref<4x3x3x8x128xf32, #tpu.memory_space<vmem>>, vector<1x2x2x8x128xf32>
    %260 = vector.shape_cast %259 : vector<1x2x2x8x128xf32> to vector<2x2x8x128xf32>
    %261 = vector.shape_cast %260 : vector<2x2x8x128xf32> to vector<32x128xf32>
    %262 = arith.truncf %261 : vector<32x128xf32> to vector<32x128xbf16>
    %c0_258 = arith.constant 0 : index
    %c0_259 = arith.constant 0 : index
    %c0_260 = arith.constant 0 : index
    %263 = vector.load %arg8[%c0_258, %c0_259, %c0_260] : memref<9x128x128xbf16, #tpu.memory_space<vmem>>, vector<1x128x128xbf16>
    %264 = vector.shape_cast %263 : vector<1x128x128xbf16> to vector<128x128xbf16>
    %cst_261 = arith.constant dense<0.000000e+00> : vector<32x128xf32>
    %265 = tpu.matmul %262, %264, %cst_261 {dimension_numbers = #tpu.dot_dimension_numbers<[1], [0], [0], [1], [0, 0, 1, 1], [], []>} : vector<32x128xbf16>, vector<128x128xbf16>, vector<32x128xf32> -> vector<32x128xf32>
    %266 = arith.addf %258, %265 : vector<32x128xf32>
    %c1_262 = arith.constant 1 : index
    %c0_263 = arith.constant 0 : index
    %c0_264 = arith.constant 0 : index
    %c0_265 = arith.constant 0 : index
    %c0_266 = arith.constant 0 : index
    %267 = vector.load %arg17[%c1_262, %c0_263, %c0_264, %c0_265, %c0_266] : memref<4x3x3x8x128xf32, #tpu.memory_space<vmem>>, vector<1x2x2x8x128xf32>
    %268 = vector.shape_cast %267 : vector<1x2x2x8x128xf32> to vector<2x2x8x128xf32>
    %269 = vector.shape_cast %268 : vector<2x2x8x128xf32> to vector<32x128xf32>
    %270 = arith.truncf %269 : vector<32x128xf32> to vector<32x128xbf16>
    %c1_267 = arith.constant 1 : index
    %c0_268 = arith.constant 0 : index
    %c0_269 = arith.constant 0 : index
    %271 = vector.load %arg8[%c1_267, %c0_268, %c0_269] : memref<9x128x128xbf16, #tpu.memory_space<vmem>>, vector<1x128x128xbf16>
    %272 = vector.shape_cast %271 : vector<1x128x128xbf16> to vector<128x128xbf16>
    %cst_270 = arith.constant dense<0.000000e+00> : vector<32x128xf32>
    %273 = tpu.matmul %270, %272, %cst_270 {dimension_numbers = #tpu.dot_dimension_numbers<[1], [0], [0], [1], [0, 0, 1, 1], [], []>} : vector<32x128xbf16>, vector<128x128xbf16>, vector<32x128xf32> -> vector<32x128xf32>
    %274 = arith.addf %266, %273 : vector<32x128xf32>
    %c0_271 = arith.constant 0 : index
    %c0_272 = arith.constant 0 : index
    %c1_273 = arith.constant 1 : index
    %c0_274 = arith.constant 0 : index
    %c0_275 = arith.constant 0 : index
    %275 = vector.load %arg17[%c0_271, %c0_272, %c1_273, %c0_274, %c0_275] : memref<4x3x3x8x128xf32, #tpu.memory_space<vmem>>, vector<1x2x2x8x128xf32>
    %276 = vector.shape_cast %275 : vector<1x2x2x8x128xf32> to vector<2x2x8x128xf32>
    %277 = vector.shape_cast %276 : vector<2x2x8x128xf32> to vector<32x128xf32>
    %278 = arith.truncf %277 : vector<32x128xf32> to vector<32x128xbf16>
    %c2_276 = arith.constant 2 : index
    %c0_277 = arith.constant 0 : index
    %c0_278 = arith.constant 0 : index
    %279 = vector.load %arg8[%c2_276, %c0_277, %c0_278] : memref<9x128x128xbf16, #tpu.memory_space<vmem>>, vector<1x128x128xbf16>
    %280 = vector.shape_cast %279 : vector<1x128x128xbf16> to vector<128x128xbf16>
    %cst_279 = arith.constant dense<0.000000e+00> : vector<32x128xf32>
    %281 = tpu.matmul %278, %280, %cst_279 {dimension_numbers = #tpu.dot_dimension_numbers<[1], [0], [0], [1], [0, 0, 1, 1], [], []>} : vector<32x128xbf16>, vector<128x128xbf16>, vector<32x128xf32> -> vector<32x128xf32>
    %282 = arith.addf %274, %281 : vector<32x128xf32>
    %c2_280 = arith.constant 2 : index
    %c0_281 = arith.constant 0 : index
    %c0_282 = arith.constant 0 : index
    %c0_283 = arith.constant 0 : index
    %c0_284 = arith.constant 0 : index
    %283 = vector.load %arg17[%c2_280, %c0_281, %c0_282, %c0_283, %c0_284] : memref<4x3x3x8x128xf32, #tpu.memory_space<vmem>>, vector<1x2x2x8x128xf32>
    %284 = vector.shape_cast %283 : vector<1x2x2x8x128xf32> to vector<2x2x8x128xf32>
    %285 = vector.shape_cast %284 : vector<2x2x8x128xf32> to vector<32x128xf32>
    %286 = arith.truncf %285 : vector<32x128xf32> to vector<32x128xbf16>
    %c3_285 = arith.constant 3 : index
    %c0_286 = arith.constant 0 : index
    %c0_287 = arith.constant 0 : index
    %287 = vector.load %arg8[%c3_285, %c0_286, %c0_287] : memref<9x128x128xbf16, #tpu.memory_space<vmem>>, vector<1x128x128xbf16>
    %288 = vector.shape_cast %287 : vector<1x128x128xbf16> to vector<128x128xbf16>
    %cst_288 = arith.constant dense<0.000000e+00> : vector<32x128xf32>
    %289 = tpu.matmul %286, %288, %cst_288 {dimension_numbers = #tpu.dot_dimension_numbers<[1], [0], [0], [1], [0, 0, 1, 1], [], []>} : vector<32x128xbf16>, vector<128x128xbf16>, vector<32x128xf32> -> vector<32x128xf32>
    %290 = arith.addf %282, %289 : vector<32x128xf32>
    %c3_289 = arith.constant 3 : index
    %c0_290 = arith.constant 0 : index
    %c0_291 = arith.constant 0 : index
    %c0_292 = arith.constant 0 : index
    %c0_293 = arith.constant 0 : index
    %291 = vector.load %arg17[%c3_289, %c0_290, %c0_291, %c0_292, %c0_293] : memref<4x3x3x8x128xf32, #tpu.memory_space<vmem>>, vector<1x2x2x8x128xf32>
    %292 = vector.shape_cast %291 : vector<1x2x2x8x128xf32> to vector<2x2x8x128xf32>
    %293 = vector.shape_cast %292 : vector<2x2x8x128xf32> to vector<32x128xf32>
    %294 = arith.truncf %293 : vector<32x128xf32> to vector<32x128xbf16>
    %c4_294 = arith.constant 4 : index
    %c0_295 = arith.constant 0 : index
    %c0_296 = arith.constant 0 : index
    %295 = vector.load %arg8[%c4_294, %c0_295, %c0_296] : memref<9x128x128xbf16, #tpu.memory_space<vmem>>, vector<1x128x128xbf16>
    %296 = vector.shape_cast %295 : vector<1x128x128xbf16> to vector<128x128xbf16>
    %cst_297 = arith.constant dense<0.000000e+00> : vector<32x128xf32>
    %297 = tpu.matmul %294, %296, %cst_297 {dimension_numbers = #tpu.dot_dimension_numbers<[1], [0], [0], [1], [0, 0, 1, 1], [], []>} : vector<32x128xbf16>, vector<128x128xbf16>, vector<32x128xf32> -> vector<32x128xf32>
    %298 = arith.addf %290, %297 : vector<32x128xf32>
    %c2_298 = arith.constant 2 : index
    %c0_299 = arith.constant 0 : index
    %c1_300 = arith.constant 1 : index
    %c0_301 = arith.constant 0 : index
    %c0_302 = arith.constant 0 : index
    %299 = vector.load %arg17[%c2_298, %c0_299, %c1_300, %c0_301, %c0_302] : memref<4x3x3x8x128xf32, #tpu.memory_space<vmem>>, vector<1x2x2x8x128xf32>
    %300 = vector.shape_cast %299 : vector<1x2x2x8x128xf32> to vector<2x2x8x128xf32>
    %301 = vector.shape_cast %300 : vector<2x2x8x128xf32> to vector<32x128xf32>
    %302 = arith.truncf %301 : vector<32x128xf32> to vector<32x128xbf16>
    %c5_303 = arith.constant 5 : index
    %c0_304 = arith.constant 0 : index
    %c0_305 = arith.constant 0 : index
    %303 = vector.load %arg8[%c5_303, %c0_304, %c0_305] : memref<9x128x128xbf16, #tpu.memory_space<vmem>>, vector<1x128x128xbf16>
    %304 = vector.shape_cast %303 : vector<1x128x128xbf16> to vector<128x128xbf16>
    %cst_306 = arith.constant dense<0.000000e+00> : vector<32x128xf32>
    %305 = tpu.matmul %302, %304, %cst_306 {dimension_numbers = #tpu.dot_dimension_numbers<[1], [0], [0], [1], [0, 0, 1, 1], [], []>} : vector<32x128xbf16>, vector<128x128xbf16>, vector<32x128xf32> -> vector<32x128xf32>
    %306 = arith.addf %298, %305 : vector<32x128xf32>
    %c0_307 = arith.constant 0 : index
    %c1_308 = arith.constant 1 : index
    %c0_309 = arith.constant 0 : index
    %c0_310 = arith.constant 0 : index
    %c0_311 = arith.constant 0 : index
    %307 = vector.load %arg17[%c0_307, %c1_308, %c0_309, %c0_310, %c0_311] : memref<4x3x3x8x128xf32, #tpu.memory_space<vmem>>, vector<1x2x2x8x128xf32>
    %308 = vector.shape_cast %307 : vector<1x2x2x8x128xf32> to vector<2x2x8x128xf32>
    %309 = vector.shape_cast %308 : vector<2x2x8x128xf32> to vector<32x128xf32>
    %310 = arith.truncf %309 : vector<32x128xf32> to vector<32x128xbf16>
    %c6_312 = arith.constant 6 : index
    %c0_313 = arith.constant 0 : index
    %c0_314 = arith.constant 0 : index
    %311 = vector.load %arg8[%c6_312, %c0_313, %c0_314] : memref<9x128x128xbf16, #tpu.memory_space<vmem>>, vector<1x128x128xbf16>
    %312 = vector.shape_cast %311 : vector<1x128x128xbf16> to vector<128x128xbf16>
    %cst_315 = arith.constant dense<0.000000e+00> : vector<32x128xf32>
    %313 = tpu.matmul %310, %312, %cst_315 {dimension_numbers = #tpu.dot_dimension_numbers<[1], [0], [0], [1], [0, 0, 1, 1], [], []>} : vector<32x128xbf16>, vector<128x128xbf16>, vector<32x128xf32> -> vector<32x128xf32>
    %314 = arith.addf %306, %313 : vector<32x128xf32>
    %c1_316 = arith.constant 1 : index
    %c1_317 = arith.constant 1 : index
    %c0_318 = arith.constant 0 : index
    %c0_319 = arith.constant 0 : index
    %c0_320 = arith.constant 0 : index
    %315 = vector.load %arg17[%c1_316, %c1_317, %c0_318, %c0_319, %c0_320] : memref<4x3x3x8x128xf32, #tpu.memory_space<vmem>>, vector<1x2x2x8x128xf32>
    %316 = vector.shape_cast %315 : vector<1x2x2x8x128xf32> to vector<2x2x8x128xf32>
    %317 = vector.shape_cast %316 : vector<2x2x8x128xf32> to vector<32x128xf32>
    %318 = arith.truncf %317 : vector<32x128xf32> to vector<32x128xbf16>
    %c7_321 = arith.constant 7 : index
    %c0_322 = arith.constant 0 : index
    %c0_323 = arith.constant 0 : index
    %319 = vector.load %arg8[%c7_321, %c0_322, %c0_323] : memref<9x128x128xbf16, #tpu.memory_space<vmem>>, vector<1x128x128xbf16>
    %320 = vector.shape_cast %319 : vector<1x128x128xbf16> to vector<128x128xbf16>
    %cst_324 = arith.constant dense<0.000000e+00> : vector<32x128xf32>
    %321 = tpu.matmul %318, %320, %cst_324 {dimension_numbers = #tpu.dot_dimension_numbers<[1], [0], [0], [1], [0, 0, 1, 1], [], []>} : vector<32x128xbf16>, vector<128x128xbf16>, vector<32x128xf32> -> vector<32x128xf32>
    %322 = arith.addf %314, %321 : vector<32x128xf32>
    %c0_325 = arith.constant 0 : index
    %c1_326 = arith.constant 1 : index
    %c1_327 = arith.constant 1 : index
    %c0_328 = arith.constant 0 : index
    %c0_329 = arith.constant 0 : index
    %323 = vector.load %arg17[%c0_325, %c1_326, %c1_327, %c0_328, %c0_329] : memref<4x3x3x8x128xf32, #tpu.memory_space<vmem>>, vector<1x2x2x8x128xf32>
    %324 = vector.shape_cast %323 : vector<1x2x2x8x128xf32> to vector<2x2x8x128xf32>
    %325 = vector.shape_cast %324 : vector<2x2x8x128xf32> to vector<32x128xf32>
    %326 = arith.truncf %325 : vector<32x128xf32> to vector<32x128xbf16>
    %c8_330 = arith.constant 8 : index
    %c0_331 = arith.constant 0 : index
    %c0_332 = arith.constant 0 : index
    %327 = vector.load %arg8[%c8_330, %c0_331, %c0_332] : memref<9x128x128xbf16, #tpu.memory_space<vmem>>, vector<1x128x128xbf16>
    %328 = vector.shape_cast %327 : vector<1x128x128xbf16> to vector<128x128xbf16>
    %cst_333 = arith.constant dense<0.000000e+00> : vector<32x128xf32>
    %329 = tpu.matmul %326, %328, %cst_333 {dimension_numbers = #tpu.dot_dimension_numbers<[1], [0], [0], [1], [0, 0, 1, 1], [], []>} : vector<32x128xbf16>, vector<128x128xbf16>, vector<32x128xf32> -> vector<32x128xf32>
    %330 = arith.addf %322, %329 : vector<32x128xf32>
    %c0_334 = arith.constant 0 : index
    %c0_335 = arith.constant 0 : index
    %331 = vector.load %arg9[%c0_334, %c0_335] : memref<1x128xf32, #tpu.memory_space<vmem>>, vector<1x128xf32>
    %332 = vector.broadcast %331 : vector<1x128xf32> to vector<32x128xf32>
    %333 = arith.addf %330, %332 : vector<32x128xf32>
    %cst_336 = arith.constant 0.000000e+00 : f32
    %334 = vector.broadcast %cst_336 : f32 to vector<32x128xf32>
    %335 = arith.maximumf %333, %334 : vector<32x128xf32>
    %336 = vector.shape_cast %335 : vector<32x128xf32> to vector<2x2x8x128xf32>
    %c0_337 = arith.constant 0 : index
    %c0_338 = arith.constant 0 : index
    %c0_339 = arith.constant 0 : index
    %c0_340 = arith.constant 0 : index
    %c0_341 = arith.constant 0 : index
    %337 = vector.load %arg13[%c0_337, %c0_338, %c0_339, %c0_340, %c0_341] : memref<1x2x2x8x128xf32, #tpu.memory_space<vmem>>, vector<1x2x2x8x128xf32>
    %338 = vector.shape_cast %337 : vector<1x2x2x8x128xf32> to vector<2x2x8x128xf32>
    %339 = vector.shape_cast %336 : vector<2x2x8x128xf32> to vector<1x2x2x8x128xf32>
    tpu.vector_store %arg13[%c0_337, %c0_338, %c0_339, %c0_340, %c0_341], %339 {strides = array<i32>} : memref<1x2x2x8x128xf32, #tpu.memory_space<vmem>>, vector<1x2x2x8x128xf32>,
    %340 = vector.shape_cast %336 : vector<2x2x8x128xf32> to vector<1x2x2x8x128xf32>
    %341 = vector.extract_strided_slice %340 {offsets = [0, 0, 0, 0, 0], sizes = [1, 1, 2, 8, 128], strides = [1, 1, 1, 1, 1]} : vector<1x2x2x8x128xf32> to vector<1x1x2x8x128xf32>
    %342 = vector.shape_cast %341 : vector<1x1x2x8x128xf32> to vector<1x2x8x128xf32>
    %343 = vector.extract_strided_slice %340 {offsets = [0, 1, 0, 0, 0], sizes = [1, 1, 2, 8, 128], strides = [1, 1, 1, 1, 1]} : vector<1x2x2x8x128xf32> to vector<1x1x2x8x128xf32>
    %344 = vector.shape_cast %343 : vector<1x1x2x8x128xf32> to vector<1x2x8x128xf32>
    %345 = vector.shape_cast %342 : vector<1x2x8x128xf32> to vector<1x1x2x8x128xf32>
    %346 = vector.extract_strided_slice %345 {offsets = [0, 0, 0, 0, 0], sizes = [1, 1, 1, 8, 128], strides = [1, 1, 1, 1, 1]} : vector<1x1x2x8x128xf32> to vector<1x1x1x8x128xf32>
    %347 = vector.shape_cast %346 : vector<1x1x1x8x128xf32> to vector<1x1x8x128xf32>
    %348 = vector.extract_strided_slice %345 {offsets = [0, 0, 1, 0, 0], sizes = [1, 1, 1, 8, 128], strides = [1, 1, 1, 1, 1]} : vector<1x1x2x8x128xf32> to vector<1x1x1x8x128xf32>
    %349 = vector.shape_cast %348 : vector<1x1x1x8x128xf32> to vector<1x1x8x128xf32>
    %350 = vector.shape_cast %344 : vector<1x2x8x128xf32> to vector<1x1x2x8x128xf32>
    %351 = vector.extract_strided_slice %350 {offsets = [0, 0, 0, 0, 0], sizes = [1, 1, 1, 8, 128], strides = [1, 1, 1, 1, 1]} : vector<1x1x2x8x128xf32> to vector<1x1x1x8x128xf32>
    %352 = vector.shape_cast %351 : vector<1x1x1x8x128xf32> to vector<1x1x8x128xf32>
    %353 = vector.extract_strided_slice %350 {offsets = [0, 0, 1, 0, 0], sizes = [1, 1, 1, 8, 128], strides = [1, 1, 1, 1, 1]} : vector<1x1x2x8x128xf32> to vector<1x1x1x8x128xf32>
    %354 = vector.shape_cast %353 : vector<1x1x1x8x128xf32> to vector<1x1x8x128xf32>
    %cst_342 = arith.constant 0.000000e+00 : f32
    %355 = vector.broadcast %cst_342 : f32 to vector<4x2x2x8x128xf32>
    %c0_343 = arith.constant 0 : index
    %c0_344 = arith.constant 0 : index
    %c0_345 = arith.constant 0 : index
    %c0_346 = arith.constant 0 : index
    %c0_347 = arith.constant 0 : index
    %356 = vector.load %arg18[%c0_343, %c0_344, %c0_345, %c0_346, %c0_347] : memref<4x2x2x8x128xf32, #tpu.memory_space<vmem>>, vector<4x2x2x8x128xf32>
    tpu.vector_store %arg18[%c0_343, %c0_344, %c0_345, %c0_346, %c0_347], %355 {strides = array<i32>} : memref<4x2x2x8x128xf32, #tpu.memory_space<vmem>>, vector<4x2x2x8x128xf32>,
    %c3_348 = arith.constant 3 : index
    %c0_349 = arith.constant 0 : index
    %c0_350 = arith.constant 0 : index
    %c0_351 = arith.constant 0 : index
    %c0_352 = arith.constant 0 : index
    %357 = vector.load %arg18[%c3_348, %c0_349, %c0_350, %c0_351, %c0_352] : memref<4x2x2x8x128xf32, #tpu.memory_space<vmem>>, vector<1x1x1x8x128xf32>
    %358 = vector.shape_cast %357 : vector<1x1x1x8x128xf32> to vector<1x1x8x128xf32>
    %359 = vector.shape_cast %347 : vector<1x1x8x128xf32> to vector<1x1x1x8x128xf32>
    tpu.vector_store %arg18[%c3_348, %c0_349, %c0_350, %c0_351, %c0_352], %359 {strides = array<i32>} : memref<4x2x2x8x128xf32, #tpu.memory_space<vmem>>, vector<1x1x1x8x128xf32>,
    %c2_353 = arith.constant 2 : index
    %c0_354 = arith.constant 0 : index
    %c1_355 = arith.constant 1 : index
    %c0_356 = arith.constant 0 : index
    %c0_357 = arith.constant 0 : index
    %360 = vector.load %arg18[%c2_353, %c0_354, %c1_355, %c0_356, %c0_357] : memref<4x2x2x8x128xf32, #tpu.memory_space<vmem>>, vector<1x1x1x8x128xf32>
    %361 = vector.shape_cast %360 : vector<1x1x1x8x128xf32> to vector<1x1x8x128xf32>
    %362 = vector.shape_cast %349 : vector<1x1x8x128xf32> to vector<1x1x1x8x128xf32>
    tpu.vector_store %arg18[%c2_353, %c0_354, %c1_355, %c0_356, %c0_357], %362 {strides = array<i32>} : memref<4x2x2x8x128xf32, #tpu.memory_space<vmem>>, vector<1x1x1x8x128xf32>,
    %c1_358 = arith.constant 1 : index
    %c1_359 = arith.constant 1 : index
    %c0_360 = arith.constant 0 : index
    %c0_361 = arith.constant 0 : index
    %c0_362 = arith.constant 0 : index
    %363 = vector.load %arg18[%c1_358, %c1_359, %c0_360, %c0_361, %c0_362] : memref<4x2x2x8x128xf32, #tpu.memory_space<vmem>>, vector<1x1x1x8x128xf32>
    %364 = vector.shape_cast %363 : vector<1x1x1x8x128xf32> to vector<1x1x8x128xf32>
    %365 = vector.shape_cast %352 : vector<1x1x8x128xf32> to vector<1x1x1x8x128xf32>
    tpu.vector_store %arg18[%c1_358, %c1_359, %c0_360, %c0_361, %c0_362], %365 {strides = array<i32>} : memref<4x2x2x8x128xf32, #tpu.memory_space<vmem>>, vector<1x1x1x8x128xf32>,
    %c0_363 = arith.constant 0 : index
    %c1_364 = arith.constant 1 : index
    %c1_365 = arith.constant 1 : index
    %c0_366 = arith.constant 0 : index
    %c0_367 = arith.constant 0 : index
    %366 = vector.load %arg18[%c0_363, %c1_364, %c1_365, %c0_366, %c0_367] : memref<4x2x2x8x128xf32, #tpu.memory_space<vmem>>, vector<1x1x1x8x128xf32>
    %367 = vector.shape_cast %366 : vector<1x1x1x8x128xf32> to vector<1x1x8x128xf32>
    %368 = vector.shape_cast %354 : vector<1x1x8x128xf32> to vector<1x1x1x8x128xf32>
    tpu.vector_store %arg18[%c0_363, %c1_364, %c1_365, %c0_366, %c0_367], %368 {strides = array<i32>} : memref<4x2x2x8x128xf32, #tpu.memory_space<vmem>>, vector<1x1x1x8x128xf32>,
    %cst_368 = arith.constant 0.000000e+00 : f32
    %369 = vector.broadcast %cst_368 : f32 to vector<8x128xf32>
    %c0_369 = arith.constant 0 : index
    %c0_370 = arith.constant 0 : index
    %c0_371 = arith.constant 0 : index
    %c0_372 = arith.constant 0 : index
    %c0_373 = arith.constant 0 : index
    %370 = vector.load %arg18[%c0_369, %c0_370, %c0_371, %c0_372, %c0_373] : memref<4x2x2x8x128xf32, #tpu.memory_space<vmem>>, vector<1x1x1x8x128xf32>
    %371 = vector.shape_cast %370 : vector<1x1x1x8x128xf32> to vector<1x1x8x128xf32>
    %372 = vector.shape_cast %371 : vector<1x1x8x128xf32> to vector<8x128xf32>
    %373 = arith.truncf %372 : vector<8x128xf32> to vector<8x128xbf16>
    %c0_374 = arith.constant 0 : index
    %c0_375 = arith.constant 0 : index
    %c0_376 = arith.constant 0 : index
    %374 = vector.load %arg10[%c0_374, %c0_375, %c0_376] : memref<9x128x128xbf16, #tpu.memory_space<vmem>>, vector<1x128x128xbf16>
    %375 = vector.shape_cast %374 : vector<1x128x128xbf16> to vector<128x128xbf16>
    %cst_377 = arith.constant dense<0.000000e+00> : vector<8x128xf32>
    %376 = tpu.matmul %373, %375, %cst_377 {dimension_numbers = #tpu.dot_dimension_numbers<[1], [0], [0], [1], [0, 0, 1, 1], [], []>} : vector<8x128xbf16>, vector<128x128xbf16>, vector<8x128xf32> -> vector<8x128xf32>
    %377 = arith.addf %369, %376 : vector<8x128xf32>
    %c1_378 = arith.constant 1 : index
    %c0_379 = arith.constant 0 : index
    %c0_380 = arith.constant 0 : index
    %c0_381 = arith.constant 0 : index
    %c0_382 = arith.constant 0 : index
    %378 = vector.load %arg18[%c1_378, %c0_379, %c0_380, %c0_381, %c0_382] : memref<4x2x2x8x128xf32, #tpu.memory_space<vmem>>, vector<1x1x1x8x128xf32>
    %379 = vector.shape_cast %378 : vector<1x1x1x8x128xf32> to vector<1x1x8x128xf32>
    %380 = vector.shape_cast %379 : vector<1x1x8x128xf32> to vector<8x128xf32>
    %381 = arith.truncf %380 : vector<8x128xf32> to vector<8x128xbf16>
    %c1_383 = arith.constant 1 : index
    %c0_384 = arith.constant 0 : index
    %c0_385 = arith.constant 0 : index
    %382 = vector.load %arg10[%c1_383, %c0_384, %c0_385] : memref<9x128x128xbf16, #tpu.memory_space<vmem>>, vector<1x128x128xbf16>
    %383 = vector.shape_cast %382 : vector<1x128x128xbf16> to vector<128x128xbf16>
    %cst_386 = arith.constant dense<0.000000e+00> : vector<8x128xf32>
    %384 = tpu.matmul %381, %383, %cst_386 {dimension_numbers = #tpu.dot_dimension_numbers<[1], [0], [0], [1], [0, 0, 1, 1], [], []>} : vector<8x128xbf16>, vector<128x128xbf16>, vector<8x128xf32> -> vector<8x128xf32>
    %385 = arith.addf %377, %384 : vector<8x128xf32>
    %c0_387 = arith.constant 0 : index
    %c0_388 = arith.constant 0 : index
    %c1_389 = arith.constant 1 : index
    %c0_390 = arith.constant 0 : index
    %c0_391 = arith.constant 0 : index
    %386 = vector.load %arg18[%c0_387, %c0_388, %c1_389, %c0_390, %c0_391] : memref<4x2x2x8x128xf32, #tpu.memory_space<vmem>>, vector<1x1x1x8x128xf32>
    %387 = vector.shape_cast %386 : vector<1x1x1x8x128xf32> to vector<1x1x8x128xf32>
    %388 = vector.shape_cast %387 : vector<1x1x8x128xf32> to vector<8x128xf32>
    %389 = arith.truncf %388 : vector<8x128xf32> to vector<8x128xbf16>
    %c2_392 = arith.constant 2 : index
    %c0_393 = arith.constant 0 : index
    %c0_394 = arith.constant 0 : index
    %390 = vector.load %arg10[%c2_392, %c0_393, %c0_394] : memref<9x128x128xbf16, #tpu.memory_space<vmem>>, vector<1x128x128xbf16>
    %391 = vector.shape_cast %390 : vector<1x128x128xbf16> to vector<128x128xbf16>
    %cst_395 = arith.constant dense<0.000000e+00> : vector<8x128xf32>
    %392 = tpu.matmul %389, %391, %cst_395 {dimension_numbers = #tpu.dot_dimension_numbers<[1], [0], [0], [1], [0, 0, 1, 1], [], []>} : vector<8x128xbf16>, vector<128x128xbf16>, vector<8x128xf32> -> vector<8x128xf32>
    %393 = arith.addf %385, %392 : vector<8x128xf32>
    %c2_396 = arith.constant 2 : index
    %c0_397 = arith.constant 0 : index
    %c0_398 = arith.constant 0 : index
    %c0_399 = arith.constant 0 : index
    %c0_400 = arith.constant 0 : index
    %394 = vector.load %arg18[%c2_396, %c0_397, %c0_398, %c0_399, %c0_400] : memref<4x2x2x8x128xf32, #tpu.memory_space<vmem>>, vector<1x1x1x8x128xf32>
    %395 = vector.shape_cast %394 : vector<1x1x1x8x128xf32> to vector<1x1x8x128xf32>
    %396 = vector.shape_cast %395 : vector<1x1x8x128xf32> to vector<8x128xf32>
    %397 = arith.truncf %396 : vector<8x128xf32> to vector<8x128xbf16>
    %c3_401 = arith.constant 3 : index
    %c0_402 = arith.constant 0 : index
    %c0_403 = arith.constant 0 : index
    %398 = vector.load %arg10[%c3_401, %c0_402, %c0_403] : memref<9x128x128xbf16, #tpu.memory_space<vmem>>, vector<1x128x128xbf16>
    %399 = vector.shape_cast %398 : vector<1x128x128xbf16> to vector<128x128xbf16>
    %cst_404 = arith.constant dense<0.000000e+00> : vector<8x128xf32>
    %400 = tpu.matmul %397, %399, %cst_404 {dimension_numbers = #tpu.dot_dimension_numbers<[1], [0], [0], [1], [0, 0, 1, 1], [], []>} : vector<8x128xbf16>, vector<128x128xbf16>, vector<8x128xf32> -> vector<8x128xf32>
    %401 = arith.addf %393, %400 : vector<8x128xf32>
    %c3_405 = arith.constant 3 : index
    %c0_406 = arith.constant 0 : index
    %c0_407 = arith.constant 0 : index
    %c0_408 = arith.constant 0 : index
    %c0_409 = arith.constant 0 : index
    %402 = vector.load %arg18[%c3_405, %c0_406, %c0_407, %c0_408, %c0_409] : memref<4x2x2x8x128xf32, #tpu.memory_space<vmem>>, vector<1x1x1x8x128xf32>
    %403 = vector.shape_cast %402 : vector<1x1x1x8x128xf32> to vector<1x1x8x128xf32>
    %404 = vector.shape_cast %403 : vector<1x1x8x128xf32> to vector<8x128xf32>
    %405 = arith.truncf %404 : vector<8x128xf32> to vector<8x128xbf16>
    %c4_410 = arith.constant 4 : index
    %c0_411 = arith.constant 0 : index
    %c0_412 = arith.constant 0 : index
    %406 = vector.load %arg10[%c4_410, %c0_411, %c0_412] : memref<9x128x128xbf16, #tpu.memory_space<vmem>>, vector<1x128x128xbf16>
    %407 = vector.shape_cast %406 : vector<1x128x128xbf16> to vector<128x128xbf16>
    %cst_413 = arith.constant dense<0.000000e+00> : vector<8x128xf32>
    %408 = tpu.matmul %405, %407, %cst_413 {dimension_numbers = #tpu.dot_dimension_numbers<[1], [0], [0], [1], [0, 0, 1, 1], [], []>} : vector<8x128xbf16>, vector<128x128xbf16>, vector<8x128xf32> -> vector<8x128xf32>
    %409 = arith.addf %401, %408 : vector<8x128xf32>
    %c2_414 = arith.constant 2 : index
    %c0_415 = arith.constant 0 : index
    %c1_416 = arith.constant 1 : index
    %c0_417 = arith.constant 0 : index
    %c0_418 = arith.constant 0 : index
    %410 = vector.load %arg18[%c2_414, %c0_415, %c1_416, %c0_417, %c0_418] : memref<4x2x2x8x128xf32, #tpu.memory_space<vmem>>, vector<1x1x1x8x128xf32>
    %411 = vector.shape_cast %410 : vector<1x1x1x8x128xf32> to vector<1x1x8x128xf32>
    %412 = vector.shape_cast %411 : vector<1x1x8x128xf32> to vector<8x128xf32>
    %413 = arith.truncf %412 : vector<8x128xf32> to vector<8x128xbf16>
    %c5_419 = arith.constant 5 : index
    %c0_420 = arith.constant 0 : index
    %c0_421 = arith.constant 0 : index
    %414 = vector.load %arg10[%c5_419, %c0_420, %c0_421] : memref<9x128x128xbf16, #tpu.memory_space<vmem>>, vector<1x128x128xbf16>
    %415 = vector.shape_cast %414 : vector<1x128x128xbf16> to vector<128x128xbf16>
    %cst_422 = arith.constant dense<0.000000e+00> : vector<8x128xf32>
    %416 = tpu.matmul %413, %415, %cst_422 {dimension_numbers = #tpu.dot_dimension_numbers<[1], [0], [0], [1], [0, 0, 1, 1], [], []>} : vector<8x128xbf16>, vector<128x128xbf16>, vector<8x128xf32> -> vector<8x128xf32>
    %417 = arith.addf %409, %416 : vector<8x128xf32>
    %c0_423 = arith.constant 0 : index
    %c1_424 = arith.constant 1 : index
    %c0_425 = arith.constant 0 : index
    %c0_426 = arith.constant 0 : index
    %c0_427 = arith.constant 0 : index
    %418 = vector.load %arg18[%c0_423, %c1_424, %c0_425, %c0_426, %c0_427] : memref<4x2x2x8x128xf32, #tpu.memory_space<vmem>>, vector<1x1x1x8x128xf32>
    %419 = vector.shape_cast %418 : vector<1x1x1x8x128xf32> to vector<1x1x8x128xf32>
    %420 = vector.shape_cast %419 : vector<1x1x8x128xf32> to vector<8x128xf32>
    %421 = arith.truncf %420 : vector<8x128xf32> to vector<8x128xbf16>
    %c6_428 = arith.constant 6 : index
    %c0_429 = arith.constant 0 : index
    %c0_430 = arith.constant 0 : index
    %422 = vector.load %arg10[%c6_428, %c0_429, %c0_430] : memref<9x128x128xbf16, #tpu.memory_space<vmem>>, vector<1x128x128xbf16>
    %423 = vector.shape_cast %422 : vector<1x128x128xbf16> to vector<128x128xbf16>
    %cst_431 = arith.constant dense<0.000000e+00> : vector<8x128xf32>
    %424 = tpu.matmul %421, %423, %cst_431 {dimension_numbers = #tpu.dot_dimension_numbers<[1], [0], [0], [1], [0, 0, 1, 1], [], []>} : vector<8x128xbf16>, vector<128x128xbf16>, vector<8x128xf32> -> vector<8x128xf32>
    %425 = arith.addf %417, %424 : vector<8x128xf32>
    %c1_432 = arith.constant 1 : index
    %c1_433 = arith.constant 1 : index
    %c0_434 = arith.constant 0 : index
    %c0_435 = arith.constant 0 : index
    %c0_436 = arith.constant 0 : index
    %426 = vector.load %arg18[%c1_432, %c1_433, %c0_434, %c0_435, %c0_436] : memref<4x2x2x8x128xf32, #tpu.memory_space<vmem>>, vector<1x1x1x8x128xf32>
    %427 = vector.shape_cast %426 : vector<1x1x1x8x128xf32> to vector<1x1x8x128xf32>
    %428 = vector.shape_cast %427 : vector<1x1x8x128xf32> to vector<8x128xf32>
    %429 = arith.truncf %428 : vector<8x128xf32> to vector<8x128xbf16>
    %c7_437 = arith.constant 7 : index
    %c0_438 = arith.constant 0 : index
    %c0_439 = arith.constant 0 : index
    %430 = vector.load %arg10[%c7_437, %c0_438, %c0_439] : memref<9x128x128xbf16, #tpu.memory_space<vmem>>, vector<1x128x128xbf16>
    %431 = vector.shape_cast %430 : vector<1x128x128xbf16> to vector<128x128xbf16>
    %cst_440 = arith.constant dense<0.000000e+00> : vector<8x128xf32>
    %432 = tpu.matmul %429, %431, %cst_440 {dimension_numbers = #tpu.dot_dimension_numbers<[1], [0], [0], [1], [0, 0, 1, 1], [], []>} : vector<8x128xbf16>, vector<128x128xbf16>, vector<8x128xf32> -> vector<8x128xf32>
    %433 = arith.addf %425, %432 : vector<8x128xf32>
    %c0_441 = arith.constant 0 : index
    %c1_442 = arith.constant 1 : index
    %c1_443 = arith.constant 1 : index
    %c0_444 = arith.constant 0 : index
    %c0_445 = arith.constant 0 : index
    %434 = vector.load %arg18[%c0_441, %c1_442, %c1_443, %c0_444, %c0_445] : memref<4x2x2x8x128xf32, #tpu.memory_space<vmem>>, vector<1x1x1x8x128xf32>
    %435 = vector.shape_cast %434 : vector<1x1x1x8x128xf32> to vector<1x1x8x128xf32>
    %436 = vector.shape_cast %435 : vector<1x1x8x128xf32> to vector<8x128xf32>
    %437 = arith.truncf %436 : vector<8x128xf32> to vector<8x128xbf16>
    %c8_446 = arith.constant 8 : index
    %c0_447 = arith.constant 0 : index
    %c0_448 = arith.constant 0 : index
    %438 = vector.load %arg10[%c8_446, %c0_447, %c0_448] : memref<9x128x128xbf16, #tpu.memory_space<vmem>>, vector<1x128x128xbf16>
    %439 = vector.shape_cast %438 : vector<1x128x128xbf16> to vector<128x128xbf16>
    %cst_449 = arith.constant dense<0.000000e+00> : vector<8x128xf32>
    %440 = tpu.matmul %437, %439, %cst_449 {dimension_numbers = #tpu.dot_dimension_numbers<[1], [0], [0], [1], [0, 0, 1, 1], [], []>} : vector<8x128xbf16>, vector<128x128xbf16>, vector<8x128xf32> -> vector<8x128xf32>
    %441 = arith.addf %433, %440 : vector<8x128xf32>
    %c0_450 = arith.constant 0 : index
    %c0_451 = arith.constant 0 : index
    %442 = vector.load %arg11[%c0_450, %c0_451] : memref<1x128xf32, #tpu.memory_space<vmem>>, vector<1x128xf32>
    %443 = vector.broadcast %442 : vector<1x128xf32> to vector<8x128xf32>
    %444 = arith.addf %441, %443 : vector<8x128xf32>
    %cst_452 = arith.constant 0.000000e+00 : f32
    %445 = vector.broadcast %cst_452 : f32 to vector<8x128xf32>
    %446 = arith.maximumf %444, %445 : vector<8x128xf32>
    %447 = vector.shape_cast %446 : vector<8x128xf32> to vector<1x1x8x128xf32>
    %c0_453 = arith.constant 0 : index
    %c0_454 = arith.constant 0 : index
    %c0_455 = arith.constant 0 : index
    %c0_456 = arith.constant 0 : index
    %c0_457 = arith.constant 0 : index
    %448 = vector.load %arg14[%c0_453, %c0_454, %c0_455, %c0_456, %c0_457] : memref<1x1x1x8x128xf32, #tpu.memory_space<vmem>>, vector<1x1x1x8x128xf32>
    %449 = vector.shape_cast %448 : vector<1x1x1x8x128xf32> to vector<1x1x8x128xf32>
    %450 = vector.shape_cast %447 : vector<1x1x8x128xf32> to vector<1x1x1x8x128xf32>
    tpu.vector_store %arg14[%c0_453, %c0_454, %c0_455, %c0_456, %c0_457], %450 {strides = array<i32>} : memref<1x1x1x8x128xf32, #tpu.memory_space<vmem>>, vector<1x1x1x8x128xf32>,
    return
  }
  func.func @transform_0(%arg0: i32) -> (i32, i32, i32) {
    %c0_i32 = arith.constant 0 : i32
    %c0_i32_0 = arith.constant 0 : i32
    %c0_i32_1 = arith.constant 0 : i32
    return %arg0, %c0_i32, %c0_i32_0 : i32, i32, i32
  }
  func.func @transform_1(%arg0: i32) -> (i32, i32) {
    %c0_i32 = arith.constant 0 : i32
    %c0_i32_0 = arith.constant 0 : i32
    %c0_i32_1 = arith.constant 0 : i32
    return %c0_i32, %c0_i32_0 : i32, i32
  }
  func.func @transform_2(%arg0: i32) -> (i32, i32) {
    %c0_i32 = arith.constant 0 : i32
    %c0_i32_0 = arith.constant 0 : i32
    %c0_i32_1 = arith.constant 0 : i32
    return %c0_i32, %c0_i32_0 : i32, i32
  }
  func.func @transform_3(%arg0: i32) -> (i32, i32, i32) {
    %c0_i32 = arith.constant 0 : i32
    %c0_i32_0 = arith.constant 0 : i32
    %c0_i32_1 = arith.constant 0 : i32
    %c0_i32_2 = arith.constant 0 : i32
    return %c0_i32, %c0_i32_0, %c0_i32_1 : i32, i32, i32
  }
  func.func @transform_4(%arg0: i32) -> (i32, i32) {
    %c0_i32 = arith.constant 0 : i32
    %c0_i32_0 = arith.constant 0 : i32
    %c0_i32_1 = arith.constant 0 : i32
    return %c0_i32, %c0_i32_0 : i32, i32
  }
  func.func @transform_5(%arg0: i32) -> (i32, i32, i32) {
    %c0_i32 = arith.constant 0 : i32
    %c0_i32_0 = arith.constant 0 : i32
    %c0_i32_1 = arith.constant 0 : i32
    %c0_i32_2 = arith.constant 0 : i32
    return %c0_i32, %c0_i32_0, %c0_i32_1 : i32, i32, i32
  }
  func.func @transform_6(%arg0: i32) -> (i32, i32) {
    %c0_i32 = arith.constant 0 : i32
    %c0_i32_0 = arith.constant 0 : i32
    %c0_i32_1 = arith.constant 0 : i32
    return %c0_i32, %c0_i32_0 : i32, i32
  }
  func.func @transform_7(%arg0: i32) -> (i32, i32, i32) {
    %c0_i32 = arith.constant 0 : i32
    %c0_i32_0 = arith.constant 0 : i32
    %c0_i32_1 = arith.constant 0 : i32
    %c0_i32_2 = arith.constant 0 : i32
    return %c0_i32, %c0_i32_0, %c0_i32_1 : i32, i32, i32
  }
  func.func @transform_8(%arg0: i32) -> (i32, i32) {
    %c0_i32 = arith.constant 0 : i32
    %c0_i32_0 = arith.constant 0 : i32
    %c0_i32_1 = arith.constant 0 : i32
    return %c0_i32, %c0_i32_0 : i32, i32
  }
  func.func @transform_9(%arg0: i32) -> (i32, i32, i32) {
    %c0_i32 = arith.constant 0 : i32
    %c0_i32_0 = arith.constant 0 : i32
    %c0_i32_1 = arith.constant 0 : i32
    %c0_i32_2 = arith.constant 0 : i32
    return %c0_i32, %c0_i32_0, %c0_i32_1 : i32, i32, i32
  }
  func.func @transform_10(%arg0: i32) -> (i32, i32) {
    %c0_i32 = arith.constant 0 : i32
    %c0_i32_0 = arith.constant 0 : i32
    %c0_i32_1 = arith.constant 0 : i32
    return %c0_i32, %c0_i32_0 : i32, i32
  }
  func.func @transform_11(%arg0: i32) -> (i32, i32, i32, i32, i32) {
    %c0_i32 = arith.constant 0 : i32
    %c0_i32_0 = arith.constant 0 : i32
    %c0_i32_1 = arith.constant 0 : i32
    %c0_i32_2 = arith.constant 0 : i32
    %c0_i32_3 = arith.constant 0 : i32
    return %arg0, %c0_i32, %c0_i32_0, %c0_i32_1, %c0_i32_2 : i32, i32, i32, i32, i32
  }
  func.func @transform_12(%arg0: i32) -> (i32, i32, i32, i32, i32) {
    %c0_i32 = arith.constant 0 : i32
    %c0_i32_0 = arith.constant 0 : i32
    %c0_i32_1 = arith.constant 0 : i32
    %c0_i32_2 = arith.constant 0 : i32
    %c0_i32_3 = arith.constant 0 : i32
    return %arg0, %c0_i32, %c0_i32_0, %c0_i32_1, %c0_i32_2 : i32, i32, i32, i32, i32
  }
  func.func @transform_13(%arg0: i32) -> (i32, i32, i32, i32, i32) {
    %c0_i32 = arith.constant 0 : i32
    %c0_i32_0 = arith.constant 0 : i32
    %c0_i32_1 = arith.constant 0 : i32
    %c0_i32_2 = arith.constant 0 : i32
    %c0_i32_3 = arith.constant 0 : i32
    return %arg0, %c0_i32, %c0_i32_0, %c0_i32_1, %c0_i32_2 : i32, i32, i32, i32, i32
  }
}

</mosaic_0001>

<bundles_post_ra>
// kernel: a_call__.1
= control target key start
LH: loop header
LB: loop body
LE: loop exit
PB: predicated region body
PF: predicated region fallthrough
CT: control target
= control target key end

     0   :  { %v19344_v47 = vmov 0.0|0.0   ;;  %vm16382_vm0 = vmmov 0   ;;  %s19326_s1 = inlined_call_operand.vmem [shape: bf16[128,128], index: 1, kind: input, shape index: {}]   ;;  %s19327_s0 = inlined_call_operand.vmem [shape: bf16[1,2048,128], index: 0, kind: input, shape index: {}]   ;;  %s19328_s3 = inlined_call_operand.vmem [shape: bf16[9,128,128], index: 3, kind: input, shape index: {}]   ;;  %s19329_s2 = inlined_call_operand.vmem [shape: f32[1,128], index: 2, kind: input, shape index: {}]   ;;  %s19330_s5 = inlined_call_operand.vmem [shape: bf16[9,128,128], index: 5, kind: input, shape index: {}]   ;;  %s19331_s4 = inlined_call_operand.vmem [shape: f32[1,128], index: 4, kind: input, shape index: {}]   ;;  %s19332_s7 = inlined_call_operand.vmem [shape: bf16[9,128,128], index: 7, kind: input, shape index: {}]   ;;  %s19333_s6 = inlined_call_operand.vmem [shape: f32[1,128], index: 6, kind: input, shape index: {}]   ;;  %s19334_s11 = inlined_call_operand.vmem [shape: f32[1,4,4,8,128], index: 11, kind: output, shape index: {0}]   ;;  %s19335_s9 = inlined_call_operand.vmem [shape: bf16[9,128,128], index: 9, kind: input, shape index: {}]   ;;  %s19336_s8 = inlined_call_operand.vmem [shape: f32[1,128], index: 8, kind: input, shape index: {}]   ;;  %s19337_s12 = inlined_call_operand.vmem [shape: f32[1,2,2,8,128], index: 12, kind: output, shape index: {1}]   ;;  %s19338_s10 = inlined_call_operand.vmem [shape: f32[1,128], index: 10, kind: input, shape index: {}]   ;;  %s19339_s13 = inlined_call_operand.vmem [shape: f32[1,1,1,8,128], index: 13, kind: output, shape index: {2}]  }
   0x1   :  { %v15954_v0 = vld [vmem:[%s19326_s1] sm:$0xff]   ;;  %v15955_v1 = vld [vmem:[%s19326_s1 + $0x8] sm:$0xff]   ;;  %v15956_v2 = vld [vmem:[%s19326_s1 + $0x10] sm:$0xff]   ;;  %13927 = vmatprep.mubr.bf16.mxu1 %v19344_v47 }
   0x2   :  { %13639 = vmatprep.subr.bf16.mxu0 %v15954_v0  ;;  %v15957_v3 = vld [vmem:[%s19326_s1 + $0x18] sm:$0xff]   ;;  %v15962_v4 = vld [vmem:[%s19327_s0] sm:$0xff]   ;;  %v15959_v6 = vld [vmem:[%s19326_s1 + $0x28] sm:$0xff]  }
   0x3   :  { %13640 = vmatpush3.bf16.msra.mxu0 %v15954_v0  ;;  %13655 = vmatprep.mubr.bf16.mxu0 %v15962_v4  ;;  %v15958_v5 = vld [vmem:[%s19326_s1 + $0x20] sm:$0xff]   ;;  %v15960_v7 = vld [vmem:[%s19326_s1 + $0x30] sm:$0xff]   ;;  %v15961_v8 = vld [vmem:[%s19326_s1 + $0x38] sm:$0xff]  }
   0x4   :  { %13641 = vmatprep.subr.bf16.mxu0 %v15955_v1  ;;  %v15963_v9 = vld [vmem:[%s19327_s0 + $0x8] sm:$0xff]   ;;  %v15964_v10 = vld [vmem:[%s19327_s0 + $0x10] sm:$0xff]   ;;  %v15965_v11 = vld [vmem:[%s19327_s0 + $0x18] sm:$0xff]  }
   0x5   :  { %v15966_v12 = vld [vmem:[%s19327_s0 + $0x20] sm:$0xff]   ;;  %v15967_v13 = vld [vmem:[%s19327_s0 + $0x28] sm:$0xff]   ;;  %v15968_v14 = vld [vmem:[%s19327_s0 + $0x30] sm:$0xff]  }
   0x6   :  { %v15969_v15 = vld [vmem:[%s19327_s0 + $0x38] sm:$0xff]   ;;  %v15970_v16 = vld [vmem:[%s19327_s0 + $0x40] sm:$0xff]   ;;  %v15971_v17 = vld [vmem:[%s19327_s0 + $0x48] sm:$0xff]  }
   0x7   :  { %13642 = vmatpush3.bf16.msra.mxu0 %v15955_v1  ;;  %v15972_v18 = vld [vmem:[%s19327_s0 + $0x50] sm:$0xff]   ;;  %v15973_v19 = vld [vmem:[%s19327_s0 + $0x58] sm:$0xff]   ;;  %v15974_v20 = vld [vmem:[%s19327_s0 + $0x60] sm:$0xff]  }
   0x8   :  { %13643 = vmatprep.subr.bf16.mxu0 %v15956_v2  ;;  %v15975_v21 = vld [vmem:[%s19327_s0 + $0x68] sm:$0xff]   ;;  %v15976_v22 = vld [vmem:[%s19327_s0 + $0x70] sm:$0xff]   ;;  %v15977_v23 = vld [vmem:[%s19327_s0 + $0x78] sm:$0xff]  }
   0x9   :  { %v15978_v24 = vld [vmem:[%s19327_s0 + $0x80] sm:$0xff]   ;;  %v15979_v25 = vld [vmem:[%s19327_s0 + $0x88] sm:$0xff]   ;;  %v15980_v26 = vld [vmem:[%s19327_s0 + $0x90] sm:$0xff]  }
   0xa   :  { %v15981_v27 = vld [vmem:[%s19327_s0 + $0x98] sm:$0xff]   ;;  %v15982_v28 = vld [vmem:[%s19327_s0 + $0xa0] sm:$0xff]   ;;  %v15983_v29 = vld [vmem:[%s19327_s0 + $0xa8] sm:$0xff]  }
   0xb   :  { %13644 = vmatpush3.bf16.msra.mxu0 %v15956_v2  ;;  %v15984_v30 = vld [vmem:[%s19327_s0 + $0xb0] sm:$0xff]   ;;  %v16016_v31 = vld [vmem:[%s19328_s3 + $0x40] sm:$0xff]   ;;  %v15985_v32 = vld [vmem:[%s19327_s0 + $0xb8] sm:$0xff]  }
   0xc   :  { %13645 = vmatprep.subr.bf16.mxu0 %v15957_v3  ;;  %13911 = vmatprep.subr.bf16.mxu1 %v16016_v31  ;;  %v16017_v33 = vld [vmem:[%s19328_s3 + $0x48] sm:$0xff]   ;;  %v15986_v34 = vld [vmem:[%s19327_s0 + $0xc0] sm:$0xff]   ;;  %v16020_v35 = vld [vmem:[%s19328_s3 + $0x50] sm:$0xff]  }
   0xd   :  { %13912 = vmatpush3.bf16.msra.mxu1 %v16016_v31  ;;  %v15987_v36 = vld [vmem:[%s19327_s0 + $0xc8] sm:$0xff]   ;;  %v16021_v37 = vld [vmem:[%s19328_s3 + $0x58] sm:$0xff]   ;;  %v15988_v38 = vld [vmem:[%s19327_s0 + $0xd0] sm:$0xff]  }
   0xe   :  { %13913 = vmatprep.subr.bf16.mxu1 %v16017_v33  ;;  %v16024_v39 = vld [vmem:[%s19328_s3 + $0x60] sm:$0xff]   ;;  %v15989_v40 = vld [vmem:[%s19327_s0 + $0xd8] sm:$0xff]   ;;  %v16025_v41 = vld [vmem:[%s19328_s3 + $0x68] sm:$0xff]  }
   0xf   :  { %13646 = vmatpush3.bf16.msra.mxu0 %v15957_v3  ;;  %v15990_v42 = vld [vmem:[%s19327_s0 + $0xe0] sm:$0xff]   ;;  %v16028_v43 = vld [vmem:[%s19328_s3 + $0x70] sm:$0xff]   ;;  %v15991_v44 = vld [vmem:[%s19327_s0 + $0xe8] sm:$0xff]  }
  0x10   :  { %13647 = vmatprep.subr.bf16.mxu0 %v15958_v5  ;;  %v16029_v45 = vld [vmem:[%s19328_s3 + $0x78] sm:$0xff]   ;;  %v15992_v46 = vld [vmem:[%s19327_s0 + $0xf0] sm:$0xff]   ;;  %v15994_v49 = vld [vmem:[%s19327_s0 + $0x100] sm:$0xff]  }
  0x11   :  { %13914 = vmatpush3.bf16.msra.mxu1 %v16017_v33  ;;  %v15993_v48 = vld [vmem:[%s19327_s0 + $0xf8] sm:$0xff]   ;;  %v15995_v50 = vld [vmem:[%s19327_s0 + $0x108] sm:$0xff]   ;;  %v15996_v51 = vld [vmem:[%s19327_s0 + $0x110] sm:$0xff]  }
  0x12   :  { %13915 = vmatprep.subr.bf16.mxu1 %v16020_v35  ;;  %v15997_v52 = vld [vmem:[%s19327_s0 + $0x118] sm:$0xff]   ;;  %v15998_v53 = vld [vmem:[%s19327_s0 + $0x120] sm:$0xff]   ;;  %v15999_v54 = vld [vmem:[%s19327_s0 + $0x128] sm:$0xff]  }
  0x13   :  { %13648 = vmatpush3.bf16.msra.mxu0 %v15958_v5  ;;  %v16000_v55 = vld [vmem:[%s19327_s0 + $0x130] sm:$0xff]   ;;  %v16001_v56 = vld [vmem:[%s19327_s0 + $0x138] sm:$0xff]   ;;  %v16002_v57 = vld [vmem:[%s19327_s0 + $0x140] sm:$0xff]  }
  0x14   :  { %13649 = vmatprep.subr.bf16.mxu0 %v15959_v6  ;;  %v16003_v58 = vld [vmem:[%s19327_s0 + $0x148] sm:$0xff]   ;;  %v16004_v59 = vld [vmem:[%s19327_s0 + $0x150] sm:$0xff]   ;;  %v16005_v60 = vld [vmem:[%s19327_s0 + $0x158] sm:$0xff]  }
  0x15   :  { %13916 = vmatpush3.bf16.msra.mxu1 %v16020_v35  ;;  %v16006_v61 = vld [vmem:[%s19327_s0 + $0x160] sm:$0xff]   ;;  %v16007_v62 = vld [vmem:[%s19327_s0 + $0x168] sm:$0xff]   ;;  %v16008_v63 = vld [vmem:[%s19327_s0 + $0x170] sm:$0xff]  }
  0x16   :  { %13917 = vmatprep.subr.bf16.mxu1 %v16021_v37  ;;  %v16009_v0 = vld [vmem:[%s19327_s0 + $0x178] sm:$0xff]   ;;  %v16010_v1 = vld [vmem:[%s19327_s0 + $0x180] sm:$0xff]   ;;  %v16011_v2 = vld [vmem:[%s19327_s0 + $0x188] sm:$0xff]  }
  0x17   :  { %13650 = vmatpush3.bf16.msra.mxu0 %v15959_v6  ;;  %v16012_v3 = vld [vmem:[%s19327_s0 + $0x190] sm:$0xff]   ;;  %v16013_v4 = vld [vmem:[%s19327_s0 + $0x198] sm:$0xff]   ;;  %v16014_v5 = vld [vmem:[%s19327_s0 + $0x1a0] sm:$0xff]  }
  0x18   :  { %13651 = vmatprep.subr.bf16.mxu0 %v15960_v7  ;;  %v16015_v6 = vld [vmem:[%s19327_s0 + $0x1a8] sm:$0xff]  }
  0x19   :  { %13918 = vmatpush3.bf16.msra.mxu1 %v16021_v37 }
  0x1a   :  { %13919 = vmatprep.subr.bf16.mxu1 %v16024_v39 }
  0x1b   :  { %13652 = vmatpush3.bf16.msra.mxu0 %v15960_v7  ;;  %v16018_v7 = vld [vmem:[%s19327_s0 + $0x1b0] sm:$0xff]  }
  0x1c   :  { %13653 = vmatprep.subr.bf16.mxu0 %v15961_v8 }
  0x1d   :  { %13920 = vmatpush3.bf16.msra.mxu1 %v16024_v39 }
  0x1e   :  { %13921 = vmatprep.subr.bf16.mxu1 %v16025_v41 }
  0x1f   :  { %13654 = vmatpush3.bf16.msra.mxu0 %v15961_v8  ;;  %v16673_v8 = vld [vmem:[%s19329_s2] ss:$0 sm:$0xff] }
  0x21   :  { %13922 = vmatpush3.bf16.msra.mxu1 %v16025_v41 }
  0x22   :  { %13656 = vmatmul.mubr.bf16.vlgmr.msra.gmra.mrb[0].mxu0 %v15963_v9  ;;  %13923 = vmatprep.subr.bf16.mxu1 %v16028_v43 }
  0x23   :  { %13659 = vmatprep.mubr.bf16.mxu0 %v15964_v10 }
  0x25   :  { %13924 = vmatpush3.bf16.msra.mxu1 %v16028_v43 }
  0x26   :  { %13925 = vmatprep.subr.bf16.mxu1 %v16029_v45 }
  0x29   :  { %13926 = vmatpush3.bf16.msra.mxu1 %v16029_v45 }
  0x2a   :  { %13660 = vmatmul.mubr.bf16.gmra.mrb[4].mxu0 %v15965_v11  ;;  %v16019_v11 = vld [vmem:[%s19327_s0 + $0x1b8] sm:$0xff]  }
  0x2b   :  { %13663 = vmatprep.mubr.bf16.mxu0 %v15966_v12 }
  0x2c   :  { %13928 = vmatmul.mubr.bf16.vlgmr.msra.gmra.mrb[0].mxu1 %v19344_v47 }
  0x2d   :  { %13931 = vmatprep.mubr.bf16.mxu1 %v19344_v47 }
  0x32   :  { %13664 = vmatmul.mubr.bf16.gmra.mrb[8].mxu0 %v15967_v13 }
  0x33   :  { %13667 = vmatprep.mubr.bf16.mxu0 %v15968_v14  ;;  %v16022_v14 = vld [vmem:[%s19327_s0 + $0x1c0] sm:$0xff]  }
  0x34   :  { %13932 = vmatmul.mubr.bf16.gmra.mrb[4].mxu1 %v19344_v47 }
  0x3a   :  { %13668 = vmatmul.mubr.bf16.gmra.mrb[12].mxu0 %v15969_v15 }
  0x3b   :  { %13671 = vmatprep.mubr.bf16.mxu0 %v15970_v16 }
  0x42   :  { %13672 = vmatmul.mubr.bf16.gmra.mrb[16].mxu0 %v15971_v17 }
  0x43   :  { %13675 = vmatprep.mubr.bf16.mxu0 %v15972_v18 }
  0x4a   :  { %13676 = vmatmul.mubr.bf16.gmra.mrb[20].mxu0 %v15973_v19 }
  0x4b   :  { %13679 = vmatprep.mubr.bf16.mxu0 %v15974_v20 }
  0x52   :  { %13680 = vmatmul.mubr.bf16.gmra.mrb[24].mxu0 %v15975_v21 }
  0x53   :  { %13683 = vmatprep.mubr.bf16.mxu0 %v15976_v22 }
  0x5a   :  { %13684 = vmatmul.mubr.bf16.gmra.mrb[28].mxu0 %v15977_v23 }
  0x5b   :  { %13687 = vmatprep.mubr.bf16.mxu0 %v15978_v24 }
  0x62   :  { %13688 = vmatmul.mubr.bf16.gmra.mrb[32].mxu0 %v15979_v25 }
  0x63   :  { %13691 = vmatprep.mubr.bf16.mxu0 %v15980_v26 }
  0x6a   :  { %13692 = vmatmul.mubr.bf16.gmra.mrb[36].mxu0 %v15981_v27  ;;  %v16023_v27 = vld [vmem:[%s19327_s0 + $0x1c8] sm:$0xff]  }
  0x6b   :  { %13695 = vmatprep.mubr.bf16.mxu0 %v15982_v28 }
  0x72   :  { %13696 = vmatmul.mubr.bf16.gmra.mrb[40].mxu0 %v15983_v29 }
  0x73   :  { %13699 = vmatprep.mubr.bf16.mxu0 %v15984_v30  ;;  %v16026_v30 = vld [vmem:[%s19327_s0 + $0x1d0] sm:$0xff]  }
  0x7a   :  { %13700 = vmatmul.mubr.bf16.gmra.mrb[44].mxu0 %v15985_v32 }
  0x7b   :  { %13703 = vmatprep.mubr.bf16.mxu0 %v15986_v34 }
  0x82   :  { %13704 = vmatmul.mubr.bf16.gmra.mrb[48].mxu0 %v15987_v36 }
  0x83   :  { %13707 = vmatprep.mubr.bf16.mxu0 %v15988_v38 }
  0x8a   :  { %13708 = vmatmul.mubr.bf16.gmra.mrb[52].mxu0 %v15989_v40 }
  0x8b   :  { %13711 = vmatprep.mubr.bf16.mxu0 %v15990_v42 }
  0x92   :  { %13712 = vmatmul.mubr.bf16.gmra.mrb[56].mxu0 %v15991_v44  ;;  %v16027_v44 = vld [vmem:[%s19327_s0 + $0x1d8] sm:$0xff]  }
  0x93   :  { %13715 = vmatprep.mubr.bf16.mxu0 %v15992_v46 }
  0x9a   :  { %13716 = vmatmul.mubr.bf16.gmra.mrb[60].mxu0 %v15993_v48  ;;  %v16030_v48 = vld [vmem:[%s19327_s0 + $0x1e0] sm:$0xff]  }
  0x9b   :  { %13719 = vmatprep.mubr.bf16.mxu0 %v15994_v49 }
  0xa2   :  { %13720 = vmatmul.mubr.bf16.gmra.mrb[64].mxu0 %v15995_v50 }
  0xa3   :  { %13723 = vmatprep.mubr.bf16.mxu0 %v15996_v51 }
  0xaa   :  { %13724 = vmatmul.mubr.bf16.gmra.mrb[68].mxu0 %v15997_v52 }
  0xab   :  { %13727 = vmatprep.mubr.bf16.mxu0 %v15998_v53 }
  0xb2   :  { %13728 = vmatmul.mubr.bf16.gmra.mrb[72].mxu0 %v15999_v54 }
  0xb3   :  { %13731 = vmatprep.mubr.bf16.mxu0 %v16000_v55 }
  0xba   :  { %13732 = vmatmul.mubr.bf16.gmra.mrb[76].mxu0 %v16001_v56 }
  0xbb   :  { %13735 = vmatprep.mubr.bf16.mxu0 %v16002_v57 }
  0xc2   :  { %13736 = vmatmul.mubr.bf16.gmra.mrb[80].mxu0 %v16003_v58 }
  0xc3   :  { %13739 = vmatprep.mubr.bf16.mxu0 %v16004_v59 }
  0xca   :  { %13740 = vmatmul.mubr.bf16.gmra.mrb[84].mxu0 %v16005_v60 }
  0xcb   :  { %13743 = vmatprep.mubr.bf16.mxu0 %v16006_v61 }
  0xd2   :  { %13744 = vmatmul.mubr.bf16.gmra.mrb[88].mxu0 %v16007_v62  ;;  %v16031_v62 = vld [vmem:[%s19327_s0 + $0x1e8] sm:$0xff]  }
  0xd3   :  { %13747 = vmatprep.mubr.bf16.mxu0 %v16008_v63 }
  0xda   :  { %13748 = vmatmul.mubr.bf16.gmra.mrb[92].mxu0 %v16009_v0 }
  0xdb   :  { %13751 = vmatprep.mubr.bf16.mxu0 %v16010_v1  ;;  %v16032_v1 = vld [vmem:[%s19327_s0 + $0x1f0] sm:$0xff]  }
  0xe2   :  { %13752 = vmatmul.mubr.bf16.gmra.mrb[96].mxu0 %v16011_v2 }
  0xe3   :  { %13755 = vmatprep.mubr.bf16.mxu0 %v16012_v3 }
  0xea   :  { %13756 = vmatmul.mubr.bf16.gmra.mrb[100].mxu0 %v16013_v4 }
  0xeb   :  { %13759 = vmatprep.mubr.bf16.mxu0 %v16014_v5 }
  0xf2   :  { %13760 = vmatmul.mubr.bf16.gmra.mrb[104].mxu0 %v16015_v6 }
  0xf3   :  { %13763 = vmatprep.mubr.bf16.mxu0 %v16018_v7 }
  0xf5   :  { %v13657_v9 = vpop.f32.mrb[0].mxu0 }
  0xf6   :  { %v1171_v10 = vpop.f32.mrb[1].mxu0  ;;  %v1180_v12 = vadd.f32 %v13657_v9, %v16673_v8 }
  0xf7   :  { %v13658_v13 = vpop.f32.mrb[2].mxu0  ;;  %v1172_v15 = vadd.f32 %v16673_v8, %v1171_v10 }
  0xf8   :  { %v1174_v16 = vpop.f32.mrb[3].mxu0  ;;  %v1183_v17 = vadd.f32 %v13658_v13, %v16673_v8  ;;  %v2196_v18 = vmax.f32 %v1180_v12, 0.0 }
  0xf9   :  { %v16685_v19 = vadd.f32 %v16673_v8, %v1174_v16  ;;  %v2194_v20 = vmax.f32 %v1172_v15, 0.0  ;;  %v16033_v16 = vld [vmem:[%s19327_s0 + $0x1f8] sm:$0xff]  }
  0xfa   :  { %13764 = vmatmul.mubr.bf16.gmra.mrb[108].mxu0 %v16019_v11  ;;  %v2197_v21 = vmax.f32 %v1183_v17, 0.0 }
  0xfb   :  { %19424 = vst [vmem:[#allocation6_spill] sm:$0xff] %v16685_v19  ;;  %13767 = vmatprep.mubr.bf16.mxu0 %v16022_v14  ;;  %v19341_v22 = vmax.f32 %v16685_v19, 0.0  ;;  %v16688_v23 = vpack.c.bf16 %v2196_v18, %v2194_v20 }
  0xfd   :  { %19425 = vst [vmem:[#allocation7_spill] sm:$0xff] %v16688_v23  ;;  %v13661_v24 = vpop.f32.mrb[4].mxu0  ;;  %v16692_v25 = vpack.c.bf16 %v2197_v21, %v19341_v22 }
  0xfe   :  { %v1187_v26 = vpop.f32.mrb[5].mxu0  ;;  %v1196_v28 = vadd.f32 %v13661_v24, %v16673_v8 }
  0xff   :  { %19426 = vst [vmem:[#allocation8_spill] sm:$0xff] %v16692_v25  ;;  %v13662_v29 = vpop.f32.mrb[6].mxu0  ;;  %v1188_v31 = vadd.f32 %v16673_v8, %v1187_v26 }
 0x100   :  { %v1190_v32 = vpop.f32.mrb[7].mxu0  ;;  %v1199_v33 = vadd.f32 %v13662_v29, %v16673_v8  ;;  %v2200_v34 = vmax.f32 %v1196_v28, 0.0 }
 0x101   :  { %v1191_v35 = vadd.f32 %v16673_v8, %v1190_v32  ;;  %v2198_v36 = vmax.f32 %v1188_v31, 0.0 }
 0x102   :  { %13768 = vmatmul.mubr.bf16.gmra.mrb[112].mxu0 %v16023_v27  ;;  %v2201_v37 = vmax.f32 %v1199_v33, 0.0 }
 0x103   :  { %13771 = vmatprep.mubr.bf16.mxu0 %v16026_v30  ;;  %v2199_v38 = vmax.f32 %v1191_v35, 0.0  ;;  %v16704_v39 = vpack.c.bf16 %v2200_v34, %v2198_v36 }
 0x105   :  { %19427 = vst [vmem:[#allocation9_spill] sm:$0xff] %v16704_v39  ;;  %v13665_v40 = vpop.f32.mrb[8].mxu0  ;;  %v16706_v41 = vpack.c.bf16 %v2199_v38, %v2197_v21  ;;  %v16708_v42 = vpack.c.bf16 %v2201_v37, %v2199_v38  ;;  %v16034_v21 = vld [vmem:[%s19327_s0 + $0x200] sm:$0xff]  }
 0x106   :  { %v1203_v43 = vpop.f32.mrb[9].mxu0  ;;  %v1212_v45 = vadd.f32 %v13665_v40, %v16673_v8 }
 0x107   :  { %19428 = vst [vmem:[#allocation10_spill] sm:$0xff] %v16706_v41  ;;  %19429 = vst [vmem:[#allocation11_spill] sm:$0xff] %v16708_v42  ;;  %v13666_v46 = vpop.f32.mrb[10].mxu0  ;;  %v1204_v49 = vadd.f32 %v16673_v8, %v1203_v43  ;;  %v16036_v43 = vld [vmem:[%s19327_s0 + $0x210] sm:$0xff]  }
 0x108   :  { %v1206_v50 = vpop.f32.mrb[11].mxu0  ;;  %v1215_v51 = vadd.f32 %v13666_v46, %v16673_v8  ;;  %v2204_v52 = vmax.f32 %v1212_v45, 0.0 }
 0x109   :  { %v1207_v53 = vadd.f32 %v16673_v8, %v1206_v50  ;;  %v2202_v54 = vmax.f32 %v1204_v49, 0.0 }
 0x10a   :  { %13772 = vmatmul.mubr.bf16.gmra.mrb[116].mxu0 %v16027_v44  ;;  %v2205_v55 = vmax.f32 %v1215_v51, 0.0 }
 0x10b   :  { %13775 = vmatprep.mubr.bf16.mxu0 %v16030_v48  ;;  %v2203_v56 = vmax.f32 %v1207_v53, 0.0  ;;  %v16720_v57 = vpack.c.bf16 %v2204_v52, %v2202_v54 }
 0x10d   :  { %19430 = vst [vmem:[#allocation12_spill] sm:$0xff] %v16720_v57  ;;  %v13669_v58 = vpop.f32.mrb[12].mxu0  ;;  %v16722_v59 = vpack.c.bf16 %v2203_v56, %v2201_v37  ;;  %v16724_v60 = vpack.c.bf16 %v2205_v55, %v2203_v56  ;;  %v16035_v37 = vld [vmem:[%s19327_s0 + $0x208] sm:$0xff]  }
 0x10e   :  { %v1219_v61 = vpop.f32.mrb[13].mxu0  ;;  %v1228_v63 = vadd.f32 %v13669_v58, %v16673_v8 }
 0x10f   :  { %19431 = vst [vmem:[#allocation13_spill] sm:$0xff] %v16722_v59  ;;  %19432 = vst [vmem:[#allocation14_spill] sm:$0xff] %v16724_v60  ;;  %v13670_v0 = vpop.f32.mrb[14].mxu0  ;;  %v1220_v2 = vadd.f32 %v16673_v8, %v1219_v61  ;;  %v16037_v61 = vld [vmem:[%s19327_s0 + $0x218] sm:$0xff]  }
 0x110   :  { %v1222_v3 = vpop.f32.mrb[15].mxu0  ;;  %v2208_v4 = vmax.f32 %v1228_v63, 0.0  ;;  %v1231_v5 = vadd.f32 %v13670_v0, %v16673_v8  ;;  %v16038_v0 = vld [vmem:[%s19327_s0 + $0x220] sm:$0xff]  }
 0x111   :  { %v1223_v6 = vadd.f32 %v16673_v8, %v1222_v3  ;;  %v2206_v7 = vmax.f32 %v1220_v2, 0.0 }
 0x112   :  { %13776 = vmatmul.mubr.bf16.gmra.mrb[120].mxu0 %v16031_v62  ;;  %v2209_v9 = vmax.f32 %v1231_v5, 0.0 }
 0x113   :  { %13779 = vmatprep.mubr.bf16.mxu0 %v16032_v1  ;;  %v2207_v10 = vmax.f32 %v1223_v6, 0.0  ;;  %v16736_v11 = vpack.c.bf16 %v2208_v4, %v2206_v7 }
 0x115   :  { %19433 = vst [vmem:[#allocation15_spill] sm:$0xff] %v16736_v11  ;;  %v13673_v12 = vpop.f32.mrb[16].mxu0  ;;  %v16738_v13 = vpack.c.bf16 %v2207_v10, %v2205_v55  ;;  %v16740_v14 = vpack.c.bf16 %v2209_v9, %v2207_v10 }
 0x116   :  { %v1235_v15 = vpop.f32.mrb[17].mxu0  ;;  %v1244_v17 = vadd.f32 %v13673_v12, %v16673_v8 }
 0x117   :  { %19434 = vst [vmem:[#allocation16_spill] sm:$0xff] %v16738_v13  ;;  %19435 = vst [vmem:[#allocation17_spill] sm:$0xff] %v16740_v14  ;;  %v13674_v18 = vpop.f32.mrb[18].mxu0  ;;  %v1236_v20 = vadd.f32 %v16673_v8, %v1235_v15 }
 0x118   :  { %v1238_v24 = vpop.f32.mrb[19].mxu0  ;;  %v2212_v26 = vmax.f32 %v1244_v17, 0.0  ;;  %v1247_v27 = vadd.f32 %v13674_v18, %v16673_v8  ;;  %v16039_v18 = vld [vmem:[%s19327_s0 + $0x228] sm:$0xff]  }
 0x119   :  { %v2210_v28 = vmax.f32 %v1236_v20, 0.0  ;;  %v16752_v29 = vadd.f32 %v16673_v8, %v1238_v24  ;;  %v16040_v24 = vld [vmem:[%s19327_s0 + $0x230] sm:$0xff]  }
 0x11a   :  { %13780 = vmatmul.mubr.bf16.gmra.mrb[124].mxu0 %v16033_v16  ;;  %v2213_v30 = vmax.f32 %v1247_v27, 0.0 }
 0x11b   :  { %v16754_v31 = vpack.c.bf16 %v2212_v26, %v2210_v28  ;;  %13783 = vmatprep.mubr.bf16.mxu0 %v16034_v21  ;;  %v19343_v32 = vmax.f32 %v16752_v29, 0.0 }
 0x11d   :  { %19436 = vst [vmem:[#allocation18_spill] sm:$0xff] %v16754_v31  ;;  %v13677_v33 = vpop.f32.mrb[20].mxu0  ;;  %13935 = vmatprep.mubr.bf16.mxu1 %v16754_v31  ;;  %v16760_v34 = vpack.c.bf16 %v2213_v30, %v19343_v32 }
 0x11e   :  { %v1260_v35 = vadd.f32 %v13677_v33, %v16673_v8  ;;  %v1251_v36 = vpop.f32.mrb[21].mxu0 }
 0x11f   :  { %v1252_v38 = vadd.f32 %v16673_v8, %v1251_v36  ;;  %v13678_v40 = vpop.f32.mrb[22].mxu0 }
 0x120   :  { %v2216_v44 = vmax.f32 %v1260_v35, 0.0  ;;  %v1263_v45 = vadd.f32 %v13678_v40, %v16673_v8  ;;  %v1254_v46 = vpop.f32.mrb[23].mxu0 }
 0x121   :  { %v2214_v48 = vmax.f32 %v1252_v38, 0.0  ;;  %v1255_v49 = vadd.f32 %v16673_v8, %v1254_v46  ;;  %v16041_v46 = vld [vmem:[%s19327_s0 + $0x238] sm:$0xff]  }
 0x122   :  { %v2217_v50 = vmax.f32 %v1263_v45, 0.0  ;;  %13784 = vmatmul.mubr.bf16.gmra.mrb[128].mxu0 %v16035_v37 }
 0x123   :  { %v2215_v51 = vmax.f32 %v1255_v49, 0.0  ;;  %v16772_v52 = vpack.c.bf16 %v2216_v44, %v2214_v48  ;;  %13787 = vmatprep.mubr.bf16.mxu0 %v16036_v43 }
 0x125   :  { %19437 = vst [vmem:[#allocation19_spill] sm:$0xff] %v16772_v52  ;;  %v13681_v53 = vpop.f32.mrb[24].mxu0  ;;  %13936 = vmatmul.mubr.bf16.gmra.mrb[8].mxu1 %v16772_v52  ;;  %v16775_v54 = vpack.c.bf16 %v2215_v51, %v2213_v30  ;;  %v16777_v55 = vpack.c.bf16 %v2217_v50, %v2215_v51 }
 0x126   :  { %v1276_v56 = vadd.f32 %v13681_v53, %v16673_v8  ;;  %v1267_v58 = vpop.f32.mrb[25].mxu0 }
 0x127   :  { %v1268_v62 = vadd.f32 %v16673_v8, %v1267_v58  ;;  %v13682_v63 = vpop.f32.mrb[26].mxu0 }
 0x128   :  { %v2220_v1 = vmax.f32 %v1276_v56, 0.0  ;;  %v1279_v2 = vadd.f32 %v13682_v63, %v16673_v8  ;;  %v1270_v3 = vpop.f32.mrb[27].mxu0 }
 0x129   :  { %v2218_v4 = vmax.f32 %v1268_v62, 0.0  ;;  %v1271_v5 = vadd.f32 %v16673_v8, %v1270_v3 }
 0x12a   :  { %v2221_v6 = vmax.f32 %v1279_v2, 0.0  ;;  %13788 = vmatmul.mubr.bf16.gmra.mrb[132].mxu0 %v16037_v61 }
 0x12b   :  { %v2219_v7 = vmax.f32 %v1271_v5, 0.0  ;;  %v16789_v9 = vpack.c.bf16 %v2220_v1, %v2218_v4  ;;  %13791 = vmatprep.mubr.bf16.mxu0 %v16038_v0  ;;  %v16043_v5 = vld [vmem:[%s19327_s0 + $0x248] sm:$0xff]  }
 0x12d   :  { %19438 = vst [vmem:[#allocation20_spill] sm:$0xff] %v16789_v9  ;;  %v13685_v10 = vpop.f32.mrb[28].mxu0  ;;  %13939 = vmatprep.mubr.bf16.mxu1 %v16789_v9  ;;  %v16792_v12 = vpack.c.bf16 %v2219_v7, %v2217_v50  ;;  %v16794_v15 = vpack.c.bf16 %v2221_v6, %v2219_v7  ;;  %v16042_v50 = vld [vmem:[%s19327_s0 + $0x240] sm:$0xff]  }
 0x12e   :  { %v1292_v16 = vadd.f32 %v13685_v10, %v16673_v8  ;;  %v1283_v17 = vpop.f32.mrb[29].mxu0  ;;  %v16044_v10 = vld [vmem:[%s19327_s0 + $0x250] sm:$0xff]  }
 0x12f   :  { %v1284_v20 = vadd.f32 %v16673_v8, %v1283_v17  ;;  %v13686_v21 = vpop.f32.mrb[30].mxu0 }
 0x130   :  { %v2224_v26 = vmax.f32 %v1292_v16, 0.0  ;;  %v1295_v27 = vadd.f32 %v13686_v21, %v16673_v8  ;;  %v1286_v28 = vpop.f32.mrb[31].mxu0 }
 0x131   :  { %v2222_v30 = vmax.f32 %v1284_v20, 0.0  ;;  %v1287_v33 = vadd.f32 %v16673_v8, %v1286_v28 }
 0x132   :  { %v2225_v35 = vmax.f32 %v1295_v27, 0.0  ;;  %13792 = vmatmul.mubr.bf16.gmra.mrb[136].mxu0 %v16039_v18 }
 0x133   :  { %v2223_v36 = vmax.f32 %v1287_v33, 0.0  ;;  %v16806_v37 = vpack.c.bf16 %v2224_v26, %v2222_v30  ;;  %13795 = vmatprep.mubr.bf16.mxu0 %v16040_v24 }
 0x135   :  { %19439 = vst [vmem:[#allocation21_spill] sm:$0xff] %v16806_v37  ;;  %v13689_v38 = vpop.f32.mrb[32].mxu0  ;;  %13940 = vmatmul.mubr.bf16.gmra.mrb[12].mxu1 %v16806_v37  ;;  %v16809_v40 = vpack.c.bf16 %v2223_v36, %v2221_v6  ;;  %v16811_v43 = vpack.c.bf16 %v2225_v35, %v2223_v36 }
 0x136   :  { %v1308_v44 = vadd.f32 %v13689_v38, %v16673_v8  ;;  %v1299_v45 = vpop.f32.mrb[33].mxu0  ;;  %v16045_v38 = vld [vmem:[%s19327_s0 + $0x258] sm:$0xff]  }
 0x137   :  { %v1300_v48 = vadd.f32 %v16673_v8, %v1299_v45  ;;  %v13690_v49 = vpop.f32.mrb[34].mxu0 }
 0x138   :  { %v2228_v51 = vmax.f32 %v1308_v44, 0.0  ;;  %v1311_v53 = vadd.f32 %v13690_v49, %v16673_v8  ;;  %v1302_v56 = vpop.f32.mrb[35].mxu0 }
 0x139   :  { %v2226_v58 = vmax.f32 %v1300_v48, 0.0  ;;  %v16823_v61 = vadd.f32 %v16673_v8, %v1302_v56 }
 0x13a   :  { %v2229_v62 = vmax.f32 %v1311_v53, 0.0  ;;  %13796 = vmatmul.mubr.bf16.gmra.mrb[140].mxu0 %v16041_v46  ;;  %v16046_v46 = vld [vmem:[%s19327_s0 + $0x260] sm:$0xff]  }
 0x13b   :  { %19440 = vst [vmem:[#allocation22_spill] sm:$0xff] %v16823_v61  ;;  %v19340_v63 = vmax.f32 %v16823_v61, 0.0  ;;  %13799 = vmatprep.mubr.bf16.mxu0 %v16042_v50  ;;  %v16826_v0 = vpack.c.bf16 %v2228_v51, %v2226_v58 }
 0x13d   :  { %19441 = vst [vmem:[#allocation23_spill] sm:$0xff] %v16826_v0  ;;  %v13693_v1 = vpop.f32.mrb[36].mxu0  ;;  %v16830_v2 = vpack.c.bf16 %v2229_v62, %v19340_v63 }
 0x13e   :  { %v1324_v3 = vadd.f32 %v13693_v1, %v16673_v8  ;;  %v1315_v4 = vpop.f32.mrb[37].mxu0 }
 0x13f   :  { %19442 = vst [vmem:[#allocation24_spill] sm:$0xff] %v16830_v2  ;;  %v1316_v6 = vadd.f32 %v16673_v8, %v1315_v4  ;;  %v13694_v7 = vpop.f32.mrb[38].mxu0 }
 0x140   :  { %v2232_v16 = vmax.f32 %v1324_v3, 0.0  ;;  %v1327_v17 = vadd.f32 %v13694_v7, %v16673_v8  ;;  %v1318_v18 = vpop.f32.mrb[39].mxu0  ;;  %v16047_v7 = vld [vmem:[%s19327_s0 + $0x268] sm:$0xff]  }
 0x141   :  { %v2230_v20 = vmax.f32 %v1316_v6, 0.0  ;;  %v1319_v21 = vadd.f32 %v16673_v8, %v1318_v18 }
 0x142   :  { %v2233_v24 = vmax.f32 %v1327_v17, 0.0  ;;  %13800 = vmatmul.mubr.bf16.gmra.mrb[144].mxu0 %v16043_v5  ;;  %v16048_v17 = vld [vmem:[%s19327_s0 + $0x270] sm:$0xff]  }
 0x143   :  { %v2231_v26 = vmax.f32 %v1319_v21, 0.0  ;;  %13803 = vmatprep.mubr.bf16.mxu0 %v16044_v10  ;;  %v16842_v27 = vpack.c.bf16 %v2232_v16, %v2230_v20 }
 0x145   :  { %19443 = vst [vmem:[#allocation25_spill] sm:$0xff] %v16842_v27  ;;  %v13697_v28 = vpop.f32.mrb[40].mxu0  ;;  %v16844_v30 = vpack.c.bf16 %v2231_v26, %v2229_v62  ;;  %v16846_v33 = vpack.c.bf16 %v2233_v24, %v2231_v26 }
 0x146   :  { %v1340_v35 = vadd.f32 %v13697_v28, %v16673_v8  ;;  %v1331_v36 = vpop.f32.mrb[41].mxu0 }
 0x147   :  { %19444 = vst [vmem:[#allocation26_spill] sm:$0xff] %v16844_v30  ;;  %19445 = vst [vmem:[#allocation27_spill] sm:$0xff] %v16846_v33  ;;  %v1332_v44 = vadd.f32 %v16673_v8, %v1331_v36  ;;  %v13698_v45 = vpop.f32.mrb[42].mxu0 }
 0x148   :  { %v2236_v48 = vmax.f32 %v1340_v35, 0.0  ;;  %v1343_v49 = vadd.f32 %v13698_v45, %v16673_v8  ;;  %v1334_v50 = vpop.f32.mrb[43].mxu0 }
 0x149   :  { %v2234_v51 = vmax.f32 %v1332_v44, 0.0  ;;  %v1335_v53 = vadd.f32 %v16673_v8, %v1334_v50 }
 0x14a   :  { %v2237_v56 = vmax.f32 %v1343_v49, 0.0  ;;  %13804 = vmatmul.mubr.bf16.gmra.mrb[148].mxu0 %v16045_v38  ;;  %v16049_v49 = vld [vmem:[%s19327_s0 + $0x278] sm:$0xff]  }
 0x14b   :  { %v2235_v58 = vmax.f32 %v1335_v53, 0.0  ;;  %13807 = vmatprep.mubr.bf16.mxu0 %v16046_v46  ;;  %v16858_v62 = vpack.c.bf16 %v2236_v48, %v2234_v51  ;;  %v16050_v53 = vld [vmem:[%s19327_s0 + $0x280] sm:$0xff]  }
 0x14d   :  { %19446 = vst [vmem:[#allocation28_spill] sm:$0xff] %v16858_v62  ;;  %v13701_v1 = vpop.f32.mrb[44].mxu0  ;;  %v16860_v3 = vpack.c.bf16 %v2235_v58, %v2233_v24  ;;  %v16862_v4 = vpack.c.bf16 %v2237_v56, %v2235_v58 }
 0x14e   :  { %v1356_v5 = vadd.f32 %v13701_v1, %v16673_v8  ;;  %v1347_v6 = vpop.f32.mrb[45].mxu0 }
 0x14f   :  { %19447 = vst [vmem:[#allocation29_spill] sm:$0xff] %v16860_v3  ;;  %19448 = vst [vmem:[#allocation30_spill] sm:$0xff] %v16862_v4  ;;  %v1348_v10 = vadd.f32 %v16673_v8, %v1347_v6  ;;  %v13702_v16 = vpop.f32.mrb[46].mxu0 }
 0x150   :  { %v2240_v18 = vmax.f32 %v1356_v5, 0.0  ;;  %v1359_v20 = vadd.f32 %v13702_v16, %v16673_v8  ;;  %v1350_v21 = vpop.f32.mrb[47].mxu0 }
 0x151   :  { %v2238_v24 = vmax.f32 %v1348_v10, 0.0  ;;  %v1351_v26 = vadd.f32 %v16673_v8, %v1350_v21 }
 0x152   :  { %v2241_v28 = vmax.f32 %v1359_v20, 0.0  ;;  %13808 = vmatmul.mubr.bf16.gmra.mrb[152].mxu0 %v16047_v7 }
 0x153   :  { %v16874_v35 = vpack.c.bf16 %v2240_v18, %v2238_v24  ;;  %v2239_v36 = vmax.f32 %v1351_v26, 0.0  ;;  %13811 = vmatprep.mubr.bf16.mxu0 %v16048_v17  ;;  %v16051_v24 = vld [vmem:[%s19327_s0 + $0x288] sm:$0xff]  }
 0x155   :  { %19449 = vst [vmem:[#allocation31_spill] sm:$0xff] %v16874_v35  ;;  %v16876_v38 = vpack.c.bf16 %v2239_v36, %v2237_v56  ;;  %v16878_v44 = vpack.c.bf16 %v2241_v28, %v2239_v36  ;;  %v13705_v45 = vpop.f32.mrb[48].mxu0  ;;  %v16052_v36 = vld [vmem:[%s19327_s0 + $0x290] sm:$0xff]  }
 0x156   :  { %v1372_v46 = vadd.f32 %v13705_v45, %v16673_v8  ;;  %v1363_v48 = vpop.f32.mrb[49].mxu0 }
 0x157   :  { %19450 = vst [vmem:[#allocation32_spill] sm:$0xff] %v16876_v38  ;;  %19451 = vst [vmem:[#allocation33_spill] sm:$0xff] %v16878_v44  ;;  %v1364_v50 = vadd.f32 %v16673_v8, %v1363_v48  ;;  %v13706_v51 = vpop.f32.mrb[50].mxu0 }
 0x158   :  { %v2244_v58 = vmax.f32 %v1372_v46, 0.0  ;;  %v1375_v56 = vadd.f32 %v13706_v51, %v16673_v8  ;;  %v1366_v1 = vpop.f32.mrb[51].mxu0 }
 0x159   :  { %v2242_v5 = vmax.f32 %v1364_v50, 0.0  ;;  %v16890_v6 = vadd.f32 %v16673_v8, %v1366_v1 }
 0x15a   :  { %v2245_v7 = vmax.f32 %v1375_v56, 0.0  ;;  %13812 = vmatmul.mubr.bf16.gmra.mrb[156].mxu0 %v16049_v49 }
 0x15b   :  { %v16892_v10 = vpack.c.bf16 %v2244_v58, %v2242_v5  ;;  %v19342_v16 = vmax.f32 %v16890_v6, 0.0  ;;  %13815 = vmatprep.mubr.bf16.mxu0 %v16050_v53 }
 0x15d   :  { %19452 = vst [vmem:[#allocation34_spill] sm:$0xff] %v16892_v10  ;;  %v16897_v17 = vpack.c.bf16 %v2245_v7, %v19342_v16  ;;  %v13709_v18 = vpop.f32.mrb[52].mxu0  ;;  %13943 = vmatprep.mubr.bf16.mxu1 %v16892_v10 }
 0x15e   :  { %v1388_v20 = vadd.f32 %v13709_v18, %v16673_v8  ;;  %v1379_v21 = vpop.f32.mrb[53].mxu0 }
 0x15f   :  { %19453 = vst [vmem:[#allocation35_spill] sm:$0xff] %v16897_v17  ;;  %v1380_v26 = vadd.f32 %v16673_v8, %v1379_v21  ;;  %v13710_v28 = vpop.f32.mrb[54].mxu0  ;;  %v16053_v21 = vld [vmem:[%s19327_s0 + $0x298] sm:$0xff]  }
 0x160   :  { %v2248_v45 = vmax.f32 %v1388_v20, 0.0  ;;  %v1391_v46 = vadd.f32 %v13710_v28, %v16673_v8  ;;  %v1382_v48 = vpop.f32.mrb[55].mxu0 }
 0x161   :  { %v2246_v49 = vmax.f32 %v1380_v26, 0.0  ;;  %v1383_v50 = vadd.f32 %v16673_v8, %v1382_v48 }
 0x162   :  { %v2249_v51 = vmax.f32 %v1391_v46, 0.0  ;;  %13816 = vmatmul.mubr.bf16.gmra.mrb[160].mxu0 %v16051_v24 }
 0x163   :  { %v16910_v53 = vpack.c.bf16 %v2248_v45, %v2246_v49  ;;  %v2247_v58 = vmax.f32 %v1383_v50, 0.0  ;;  %13819 = vmatprep.mubr.bf16.mxu0 %v16052_v36 }
 0x165   :  { %19454 = vst [vmem:[#allocation36_spill] sm:$0xff] %v16910_v53  ;;  %v16912_v56 = vpack.c.bf16 %v2247_v58, %v2245_v7  ;;  %v16914_v1 = vpack.c.bf16 %v2249_v51, %v2247_v58  ;;  %v13713_v5 = vpop.f32.mrb[56].mxu0  ;;  %13944 = vmatmul.mubr.bf16.gmra.mrb[16].mxu1 %v16910_v53  ;;  %v16054_v7 = vld [vmem:[%s19327_s0 + $0x2a0] sm:$0xff]  }
 0x166   :  { %v1404_v18 = vadd.f32 %v13713_v5, %v16673_v8  ;;  %v1395_v20 = vpop.f32.mrb[57].mxu0 }
 0x167   :  { %19455 = vst [vmem:[#allocation37_spill] sm:$0xff] %v16914_v1  ;;  %v1396_v24 = vadd.f32 %v16673_v8, %v1395_v20  ;;  %v13714_v26 = vpop.f32.mrb[58].mxu0 }
 0x168   :  { %v2252_v28 = vmax.f32 %v1404_v18, 0.0  ;;  %v1407_v36 = vadd.f32 %v13714_v26, %v16673_v8  ;;  %v1398_v45 = vpop.f32.mrb[59].mxu0 }
 0x169   :  { %v2250_v46 = vmax.f32 %v1396_v24, 0.0  ;;  %v1399_v48 = vadd.f32 %v16673_v8, %v1398_v45  ;;  %v16055_v24 = vld [vmem:[%s19327_s0 + $0x2a8] sm:$0xff]  }
 0x16a   :  { %v2253_v49 = vmax.f32 %v1407_v36, 0.0  ;;  %13820 = vmatmul.mubr.bf16.gmra.mrb[164].mxu0 %v16053_v21 }
 0x16b   :  { %v16927_v50 = vpack.c.bf16 %v2252_v28, %v2250_v46  ;;  %v2251_v58 = vmax.f32 %v1399_v48, 0.0  ;;  %13823 = vmatprep.mubr.bf16.mxu0 %v16054_v7 }
 0x16d   :  { %19456 = vst [vmem:[#allocation38_spill] sm:$0xff] %v16927_v50  ;;  %v16929_v5 = vpack.c.bf16 %v2251_v58, %v2249_v51  ;;  %v16931_v20 = vpack.c.bf16 %v2253_v49, %v2251_v58  ;;  %v13717_v63 = vpop.f32.mrb[60].mxu0  ;;  %13947 = vmatprep.mubr.bf16.mxu1 %v16927_v50  ;;  %v16056_v51 = vld [vmem:[%s19327_s0 + $0x2b0] sm:$0xff]  }
 0x16e   :  { %v1420_v18 = vadd.f32 %v13717_v63, %v16673_v8  ;;  %v1411_v26 = vpop.f32.mrb[61].mxu0 }
 0x16f   :  { %19457 = vst [vmem:[#allocation39_spill] sm:$0xff] %v16931_v20  ;;  %v1412_v21 = vadd.f32 %v16673_v8, %v1411_v26  ;;  %v13718_v28 = vpop.f32.mrb[62].mxu0 }
 0x170   :  { %v2256_v7 = vmax.f32 %v1420_v18, 0.0  ;;  %v1423_v36 = vadd.f32 %v13718_v28, %v16673_v8  ;;  %v1414_v45 = vpop.f32.mrb[63].mxu0 }
 0x171   :  { %v2254_v46 = vmax.f32 %v1412_v21, 0.0  ;;  %v1415_v48 = vadd.f32 %v16673_v8, %v1414_v45  ;;  %v16057_v21 = vld [vmem:[%s19327_s0 + $0x2b8] sm:$0xff]  }
 0x172   :  { %v2257_v63 = vmax.f32 %v1423_v36, 0.0  ;;  %13824 = vmatmul.mubr.bf16.gmra.mrb[168].mxu0 %v16055_v24 }
 0x173   :  { %v16944_v58 = vpack.c.bf16 %v2256_v7, %v2254_v46  ;;  %v2255_v22 = vmax.f32 %v1415_v48, 0.0  ;;  %13827 = vmatprep.mubr.bf16.mxu0 %v16056_v51 }
 0x175   :  { %19458 = vst [vmem:[#allocation40_spill] sm:$0xff] %v16944_v58  ;;  %v16946_v16 = vpack.c.bf16 %v2255_v22, %v2253_v49  ;;  %v16948_v26 = vpack.c.bf16 %v2257_v63, %v2255_v22  ;;  %v13721_v32 = vpop.f32.mrb[64].mxu0  ;;  %13948 = vmatmul.mubr.bf16.gmra.mrb[20].mxu1 %v16944_v58  ;;  %v16058_v49 = vld [vmem:[%s19327_s0 + $0x2c0] sm:$0xff]  }
 0x176   :  { %v1436_v18 = vadd.f32 %v13721_v32, %v16673_v8  ;;  %v1427_v28 = vpop.f32.mrb[65].mxu0 }
 0x177   :  { %19459 = vst [vmem:[#allocation41_spill] sm:$0xff] %v16948_v26  ;;  %v1428_v24 = vadd.f32 %v16673_v8, %v1427_v28  ;;  %v13722_v7 = vpop.f32.mrb[66].mxu0 }
 0x178   :  { %v2260_v51 = vmax.f32 %v1436_v18, 0.0  ;;  %v1439_v22 = vadd.f32 %v13722_v7, %v16673_v8  ;;  %v1430_v36 = vpop.f32.mrb[67].mxu0 }
 0x179   :  { %v2258_v45 = vmax.f32 %v1428_v24, 0.0  ;;  %v16961_v46 = vadd.f32 %v16673_v8, %v1430_v36  ;;  %v16059_v24 = vld [vmem:[%s19327_s0 + $0x2c8] sm:$0xff]  }
 0x17a   :  { %v2261_v32 = vmax.f32 %v1439_v22, 0.0  ;;  %13828 = vmatmul.mubr.bf16.gmra.mrb[172].mxu0 %v16057_v21 }
 0x17b   :  { %19460 = vst [vmem:[#allocation42_spill] sm:$0xff] %v16961_v46  ;;  %v16963_v48 = vpack.c.bf16 %v2260_v51, %v2258_v45  ;;  %v19346_v63 = vmax.f32 %v16961_v46, 0.0  ;;  %13831 = vmatprep.mubr.bf16.mxu0 %v16058_v49  ;;  %v16060_v51 = vld [vmem:[%s19327_s0 + $0x2d0] sm:$0xff]  }
 0x17d   :  { %19461 = vst [vmem:[#allocation43_spill] sm:$0xff] %v16963_v48  ;;  %v16968_v28 = vpack.c.bf16 %v2261_v32, %v19346_v63  ;;  %v13725_v47 = vpop.f32.mrb[68].mxu0 }
 0x17e   :  { %v1452_v18 = vadd.f32 %v13725_v47, %v16673_v8  ;;  %v1443_v7 = vpop.f32.mrb[69].mxu0 }
 0x17f   :  { %19462 = vst [vmem:[#allocation44_spill] sm:$0xff] %v16968_v28  ;;  %v1444_v22 = vadd.f32 %v16673_v8, %v1443_v7  ;;  %v13726_v21 = vpop.f32.mrb[70].mxu0 }
 0x180   :  { %v2264_v49 = vmax.f32 %v1452_v18, 0.0  ;;  %v1455_v36 = vadd.f32 %v13726_v21, %v16673_v8  ;;  %v1446_v45 = vpop.f32.mrb[71].mxu0 }
 0x181   :  { %v2262_v63 = vmax.f32 %v1444_v22, 0.0  ;;  %v1447_v58 = vadd.f32 %v16673_v8, %v1446_v45  ;;  %v16061_v22 = vld [vmem:[%s19327_s0 + $0x2d8] sm:$0xff]  }
 0x182   :  { %v2265_v47 = vmax.f32 %v1455_v36, 0.0  ;;  %13832 = vmatmul.mubr.bf16.gmra.mrb[176].mxu0 %v16059_v24 }
 0x183   :  { %v16980_v50 = vpack.c.bf16 %v2264_v49, %v2262_v63  ;;  %v2263_v53 = vmax.f32 %v1447_v58, 0.0  ;;  %13835 = vmatprep.mubr.bf16.mxu0 %v16060_v51  ;;  %v16062_v58 = vld [vmem:[%s19327_s0 + $0x2e0] sm:$0xff]  }
 0x185   :  { %19463 = vst [vmem:[#allocation45_spill] sm:$0xff] %v16980_v50  ;;  %v16982_v10 = vpack.c.bf16 %v2263_v53, %v2261_v32  ;;  %v16984_v7 = vpack.c.bf16 %v2265_v47, %v2263_v53  ;;  %v13729_v37 = vpop.f32.mrb[72].mxu0 }
 0x186   :  { %v1468_v9 = vadd.f32 %v13729_v37, %v16673_v8  ;;  %v1459_v18 = vpop.f32.mrb[73].mxu0 }
 0x187   :  { %19464 = vst [vmem:[#allocation46_spill] sm:$0xff] %v16982_v10  ;;  %19465 = vst [vmem:[#allocation47_spill] sm:$0xff] %v16984_v7  ;;  %v1460_v21 = vadd.f32 %v16673_v8, %v1459_v18  ;;  %v13730_v36 = vpop.f32.mrb[74].mxu0 }
 0x188   :  { %v2268_v63 = vmax.f32 %v1468_v9, 0.0  ;;  %v1471_v32 = vadd.f32 %v13730_v36, %v16673_v8  ;;  %v1462_v53 = vpop.f32.mrb[75].mxu0 }
 0x189   :  { %v2266_v24 = vmax.f32 %v1460_v21, 0.0  ;;  %v1463_v51 = vadd.f32 %v16673_v8, %v1462_v53  ;;  %v16063_v21 = vld [vmem:[%s19327_s0 + $0x2e8] sm:$0xff]  }
 0x18a   :  { %v2269_v37 = vmax.f32 %v1471_v32, 0.0  ;;  %13836 = vmatmul.mubr.bf16.gmra.mrb[180].mxu0 %v16061_v22  ;;  %v16064_v22 = vld [vmem:[%s19327_s0 + $0x2f0] sm:$0xff]  }
 0x18b   :  { %v16996_v49 = vpack.c.bf16 %v2268_v63, %v2266_v24  ;;  %v2267_v45 = vmax.f32 %v1463_v51, 0.0  ;;  %13839 = vmatprep.mubr.bf16.mxu0 %v16062_v58 }
 0x18d   :  { %19466 = vst [vmem:[#allocation48_spill] sm:$0xff] %v16996_v49  ;;  %v16998_v52 = vpack.c.bf16 %v2267_v45, %v2265_v47  ;;  %v17000_v18 = vpack.c.bf16 %v2269_v37, %v2267_v45  ;;  %v13733_v31 = vpop.f32.mrb[76].mxu0 }
 0x18e   :  { %v1484_v7 = vadd.f32 %v13733_v31, %v16673_v8  ;;  %v1475_v9 = vpop.f32.mrb[77].mxu0 }
 0x18f   :  { %19467 = vst [vmem:[#allocation49_spill] sm:$0xff] %v16998_v52  ;;  %19468 = vst [vmem:[#allocation50_spill] sm:$0xff] %v17000_v18  ;;  %v1476_v36 = vadd.f32 %v16673_v8, %v1475_v9  ;;  %v13734_v32 = vpop.f32.mrb[78].mxu0 }
 0x190   :  { %v2272_v58 = vmax.f32 %v1484_v7, 0.0  ;;  %v1487_v47 = vadd.f32 %v13734_v32, %v16673_v8  ;;  %v1478_v63 = vpop.f32.mrb[79].mxu0 }
 0x191   :  { %v2270_v53 = vmax.f32 %v1476_v36, 0.0  ;;  %v1479_v24 = vadd.f32 %v16673_v8, %v1478_v63  ;;  %v16065_v36 = vld [vmem:[%s19327_s0 + $0x2f8] sm:$0xff]  }
 0x192   :  { %v2273_v31 = vmax.f32 %v1487_v47, 0.0  ;;  %13840 = vmatmul.mubr.bf16.gmra.mrb[184].mxu0 %v16063_v21  ;;  %v16066_v21 = vld [vmem:[%s19327_s0 + $0x300] sm:$0xff]  }
 0x193   :  { %v17012_v51 = vpack.c.bf16 %v2272_v58, %v2270_v53  ;;  %v2271_v45 = vmax.f32 %v1479_v24, 0.0  ;;  %13843 = vmatprep.mubr.bf16.mxu0 %v16064_v22 }
 0x195   :  { %19469 = vst [vmem:[#allocation51_spill] sm:$0xff] %v17012_v51  ;;  %v17014_v18 = vpack.c.bf16 %v2271_v45, %v2269_v37  ;;  %v17016_v9 = vpack.c.bf16 %v2273_v31, %v2271_v45  ;;  %v13737_v28 = vpop.f32.mrb[80].mxu0 }
 0x196   :  { %v1500_v44 = vadd.f32 %v13737_v28, %v16673_v8  ;;  %v1491_v7 = vpop.f32.mrb[81].mxu0 }
 0x197   :  { %19470 = vst [vmem:[#allocation52_spill] sm:$0xff] %v17014_v18  ;;  %19471 = vst [vmem:[#allocation53_spill] sm:$0xff] %v17016_v9  ;;  %v1492_v32 = vadd.f32 %v16673_v8, %v1491_v7  ;;  %v13738_v47 = vpop.f32.mrb[82].mxu0 }
 0x198   :  { %v2276_v22 = vmax.f32 %v1500_v44, 0.0  ;;  %v1503_v37 = vadd.f32 %v13738_v47, %v16673_v8  ;;  %v1494_v58 = vpop.f32.mrb[83].mxu0  ;;  %v16067_v47 = vld [vmem:[%s19327_s0 + $0x308] sm:$0xff]  }
 0x199   :  { %v2274_v63 = vmax.f32 %v1492_v32, 0.0  ;;  %v17028_v53 = vadd.f32 %v16673_v8, %v1494_v58 }
 0x19a   :  { %v2277_v28 = vmax.f32 %v1503_v37, 0.0  ;;  %13844 = vmatmul.mubr.bf16.gmra.mrb[188].mxu0 %v16065_v36 }
 0x19b   :  { %v17030_v24 = vpack.c.bf16 %v2276_v22, %v2274_v63  ;;  %v19355_v31 = vmax.f32 %v17028_v53, 0.0  ;;  %13847 = vmatprep.mubr.bf16.mxu0 %v16066_v21  ;;  %v16068_v21 = vld [vmem:[%s19327_s0 + $0x310] sm:$0xff]  }
 0x19d   :  { %19472 = vst [vmem:[#allocation54_spill] sm:$0xff] %v17030_v24  ;;  %v17035_v45 = vpack.c.bf16 %v2277_v28, %v19355_v31  ;;  %v13741_v7 = vpop.f32.mrb[84].mxu0  ;;  %13951 = vmatprep.mubr.bf16.mxu1 %v17030_v24 }
 0x19e   :  { %v1516_v44 = vadd.f32 %v13741_v7, %v16673_v8  ;;  %v1507_v32 = vpop.f32.mrb[85].mxu0 }
 0x19f   :  { %19473 = vst [vmem:[#allocation55_spill] sm:$0xff] %v17035_v45  ;;  %v1508_v36 = vadd.f32 %v16673_v8, %v1507_v32  ;;  %v13742_v22 = vpop.f32.mrb[86].mxu0 }
 0x1a0   :  { %v2280_v37 = vmax.f32 %v1516_v44, 0.0  ;;  %v1519_v58 = vadd.f32 %v13742_v22, %v16673_v8  ;;  %v1510_v63 = vpop.f32.mrb[87].mxu0 }
 0x1a1   :  { %v2278_v31 = vmax.f32 %v1508_v36, 0.0  ;;  %v1511_v24 = vadd.f32 %v16673_v8, %v1510_v63  ;;  %v16069_v36 = vld [vmem:[%s19327_s0 + $0x318] sm:$0xff]  }
 0x1a2   :  { %v2281_v7 = vmax.f32 %v1519_v58, 0.0  ;;  %13848 = vmatmul.mubr.bf16.gmra.mrb[192].mxu0 %v16067_v47 }
 0x1a3   :  { %v17048_v9 = vpack.c.bf16 %v2280_v37, %v2278_v31  ;;  %v2279_v4 = vmax.f32 %v1511_v24, 0.0  ;;  %13851 = vmatprep.mubr.bf16.mxu0 %v16068_v21 }
 0x1a5   :  { %19474 = vst [vmem:[#allocation56_spill] sm:$0xff] %v17048_v9  ;;  %v17050_v33 = vpack.c.bf16 %v2279_v4, %v2277_v28  ;;  %v17052_v32 = vpack.c.bf16 %v2281_v7, %v2279_v4  ;;  %v13745_v2 = vpop.f32.mrb[88].mxu0  ;;  %13952 = vmatmul.mubr.bf16.gmra.mrb[24].mxu1 %v17048_v9  ;;  %v16070_v28 = vld [vmem:[%s19327_s0 + $0x320] sm:$0xff]  }
 0x1a6   :  { %v1532_v44 = vadd.f32 %v13745_v2, %v16673_v8  ;;  %v1523_v22 = vpop.f32.mrb[89].mxu0 }
 0x1a7   :  { %19475 = vst [vmem:[#allocation57_spill] sm:$0xff] %v17052_v32  ;;  %v1524_v47 = vadd.f32 %v16673_v8, %v1523_v22  ;;  %v13746_v31 = vpop.f32.mrb[90].mxu0 }
 0x1a8   :  { %v2284_v24 = vmax.f32 %v1532_v44, 0.0  ;;  %v1535_v4 = vadd.f32 %v13746_v31, %v16673_v8  ;;  %v1526_v21 = vpop.f32.mrb[91].mxu0 }
 0x1a9   :  { %v2282_v37 = vmax.f32 %v1524_v47, 0.0  ;;  %v1527_v58 = vadd.f32 %v16673_v8, %v1526_v21  ;;  %v16071_v47 = vld [vmem:[%s19327_s0 + $0x328] sm:$0xff]  }
 0x1aa   :  { %v2285_v2 = vmax.f32 %v1535_v4, 0.0  ;;  %13852 = vmatmul.mubr.bf16.gmra.mrb[196].mxu0 %v16069_v36 }
 0x1ab   :  { %v17065_v63 = vpack.c.bf16 %v2284_v24, %v2282_v37  ;;  %v2283_v9 = vmax.f32 %v1527_v58, 0.0  ;;  %13855 = vmatprep.mubr.bf16.mxu0 %v16070_v28 }
 0x1ad   :  { %19476 = vst [vmem:[#allocation58_spill] sm:$0xff] %v17065_v63  ;;  %v17067_v14 = vpack.c.bf16 %v2283_v9, %v2281_v7  ;;  %v17069_v22 = vpack.c.bf16 %v2285_v2, %v2283_v9  ;;  %v13749_v60 = vpop.f32.mrb[92].mxu0  ;;  %13955 = vmatprep.mubr.bf16.mxu1 %v17065_v63  ;;  %v16072_v7 = vld [vmem:[%s19327_s0 + $0x330] sm:$0xff]  }
 0x1ae   :  { %v1548_v44 = vadd.f32 %v13749_v60, %v16673_v8  ;;  %v1539_v31 = vpop.f32.mrb[93].mxu0 }
 0x1af   :  { %19477 = vst [vmem:[#allocation59_spill] sm:$0xff] %v17069_v22  ;;  %v1540_v36 = vadd.f32 %v16673_v8, %v1539_v31  ;;  %v13750_v24 = vpop.f32.mrb[94].mxu0 }
 0x1b0   :  { %v2288_v28 = vmax.f32 %v1548_v44, 0.0  ;;  %v1551_v9 = vadd.f32 %v13750_v24, %v16673_v8  ;;  %v1542_v4 = vpop.f32.mrb[95].mxu0 }
 0x1b1   :  { %v2286_v21 = vmax.f32 %v1540_v36, 0.0  ;;  %v1543_v37 = vadd.f32 %v16673_v8, %v1542_v4  ;;  %v16073_v36 = vld [vmem:[%s19327_s0 + $0x338] sm:$0xff]  }
 0x1b2   :  { %v2289_v60 = vmax.f32 %v1551_v9, 0.0  ;;  %13856 = vmatmul.mubr.bf16.gmra.mrb[200].mxu0 %v16071_v47 }
 0x1b3   :  { %v17082_v58 = vpack.c.bf16 %v2288_v28, %v2286_v21  ;;  %v2287_v63 = vmax.f32 %v1543_v37, 0.0  ;;  %13859 = vmatprep.mubr.bf16.mxu0 %v16072_v7 }
 0x1b5   :  { %19478 = vst [vmem:[#allocation60_spill] sm:$0xff] %v17082_v58  ;;  %v17084_v42 = vpack.c.bf16 %v2287_v63, %v2285_v2  ;;  %v17086_v31 = vpack.c.bf16 %v2289_v60, %v2287_v63  ;;  %v13753_v25 = vpop.f32.mrb[96].mxu0  ;;  %13956 = vmatmul.mubr.bf16.gmra.mrb[28].mxu1 %v17082_v58  ;;  %v16074_v2 = vld [vmem:[%s19327_s0 + $0x340] sm:$0xff]  }
 0x1b6   :  { %v1564_v44 = vadd.f32 %v13753_v25, %v16673_v8  ;;  %v1555_v24 = vpop.f32.mrb[97].mxu0 }
 0x1b7   :  { %19479 = vst [vmem:[#allocation61_spill] sm:$0xff] %v17086_v31  ;;  %v1556_v47 = vadd.f32 %v16673_v8, %v1555_v24  ;;  %v13754_v28 = vpop.f32.mrb[98].mxu0 }
 0x1b8   :  { %v2292_v7 = vmax.f32 %v1564_v44, 0.0  ;;  %v1567_v63 = vadd.f32 %v13754_v28, %v16673_v8  ;;  %v1558_v9 = vpop.f32.mrb[99].mxu0  ;;  %v16082_v44 = vld [vmem:[%s19328_s3] sm:$0xff]  }
 0x1b9   :  { %v2290_v4 = vmax.f32 %v1556_v47, 0.0  ;;  %v17099_v21 = vadd.f32 %v16673_v8, %v1558_v9  ;;  %13991 = vmatprep.subr.bf16.mxu1 %v16082_v44 }
 0x1ba   :  { %v2293_v25 = vmax.f32 %v1567_v63, 0.0  ;;  %13860 = vmatmul.mubr.bf16.gmra.mrb[204].mxu0 %v16073_v36  ;;  %v16075_v36 = vld [vmem:[%s19327_s0 + $0x348] sm:$0xff]   ;;  %13992 = vmatpush3.bf16.msra.mxu1 %v16082_v44  ;;  %v16077_v44 = vld [vmem:[%s19327_s0 + $0x358] sm:$0xff]  }
 0x1bb   :  { %19480 = vst [vmem:[#allocation62_spill] sm:$0xff] %v17099_v21  ;;  %v17101_v37 = vpack.c.bf16 %v2292_v7, %v2290_v4  ;;  %v19360_v60 = vmax.f32 %v17099_v21, 0.0  ;;  %13863 = vmatprep.mubr.bf16.mxu0 %v16074_v2  ;;  %v16076_v2 = vld [vmem:[%s19327_s0 + $0x350] sm:$0xff]  }
 0x1bd   :  { %19481 = vst [vmem:[#allocation63_spill] sm:$0xff] %v17101_v37  ;;  %v17106_v24 = vpack.c.bf16 %v2293_v25, %v19360_v60  ;;  %v13757_v58 = vpop.f32.mrb[100].mxu0 }
 0x1be   :  { %v1580_v47 = vadd.f32 %v13757_v58, %v16673_v8  ;;  %v1571_v28 = vpop.f32.mrb[101].mxu0 }
 0x1bf   :  { %19482 = vst [vmem:[#allocation64_spill] sm:$0xff] %v17106_v24  ;;  %v1572_v7 = vadd.f32 %v16673_v8, %v1571_v28  ;;  %v13758_v63 = vpop.f32.mrb[102].mxu0 }
 0x1c0   :  { %v2296_v9 = vmax.f32 %v1580_v47, 0.0  ;;  %v1583_v4 = vadd.f32 %v13758_v63, %v16673_v8  ;;  %v1574_v60 = vpop.f32.mrb[103].mxu0 }
 0x1c1   :  { %v2294_v24 = vmax.f32 %v1572_v7, 0.0  ;;  %v1575_v58 = vadd.f32 %v16673_v8, %v1574_v60 }
 0x1c2   :  { %v2297_v37 = vmax.f32 %v1583_v4, 0.0  ;;  %13864 = vmatmul.mubr.bf16.gmra.mrb[208].mxu0 %v16075_v36 }
 0x1c3   :  { %v17121_v51 = vpack.c.bf16 %v2296_v9, %v2294_v24  ;;  %v2295_v49 = vmax.f32 %v1575_v58, 0.0  ;;  %13867 = vmatprep.mubr.bf16.mxu0 %v16076_v2  ;;  %v16078_v24 = vld [vmem:[%s19327_s0 + $0x360] sm:$0xff]  }
 0x1c5   :  { %19483 = vst [vmem:[#allocation65_spill] sm:$0xff] %v17121_v51  ;;  %v17123_v28 = vpack.c.bf16 %v2295_v49, %v2293_v25  ;;  %v17125_v50 = vpack.c.bf16 %v2297_v37, %v2295_v49  ;;  %v13761_v48 = vpop.f32.mrb[104].mxu0 }
 0x1c6   :  { %v1596_v47 = vadd.f32 %v13761_v48, %v16673_v8  ;;  %v1587_v35 = vpop.f32.mrb[105].mxu0  ;;  %v17139_v48 = vld [vmem:[%s19329_s2] ss:$0 sm:$0xff] }
 0x1c7   :  { %19484 = vst [vmem:[#allocation66_spill] sm:$0xff] %v17123_v28  ;;  %19485 = vst [vmem:[#allocation67_spill] sm:$0xff] %v17125_v50  ;;  %v1588_v60 = vadd.f32 %v16673_v8, %v1587_v35  ;;  %v13762_v7 = vpop.f32.mrb[106].mxu0 }
 0x1c8   :  { %v2300_v36 = vmax.f32 %v1596_v47, 0.0  ;;  %v1599_v25 = vadd.f32 %v13762_v7, %v16673_v8  ;;  %v1590_v49 = vpop.f32.mrb[107].mxu0 }
 0x1c9   :  { %v2298_v63 = vmax.f32 %v1588_v60, 0.0  ;;  %v1591_v2 = vadd.f32 %v17139_v48, %v1590_v49  ;;  %v16083_v60 = vld [vmem:[%s19328_s3 + $0x8] sm:$0xff]  }
 0x1ca   :  { %v2301_v9 = vmax.f32 %v1599_v25, 0.0  ;;  %13868 = vmatmul.mubr.bf16.gmra.mrb[212].mxu0 %v16077_v44  ;;  %v16079_v44 = vld [vmem:[%s19327_s0 + $0x368] sm:$0xff]   ;;  %13993 = vmatprep.subr.bf16.mxu1 %v16083_v60 }
 0x1cb   :  { %v17142_v35 = vpack.c.bf16 %v2300_v36, %v2298_v63  ;;  %v2299_v4 = vmax.f32 %v1591_v2, 0.0  ;;  %13871 = vmatprep.mubr.bf16.mxu0 %v16078_v24  ;;  %13994 = vmatpush3.bf16.msra.mxu1 %v16083_v60  ;;  %v16081_v60 = vld [vmem:[%s19327_s0 + $0x378] sm:$0xff]  }
 0x1cd   :  { %19486 = vst [vmem:[#allocation68_spill] sm:$0xff] %v17142_v35  ;;  %v17144_v58 = vpack.c.bf16 %v2299_v4, %v2297_v37  ;;  %v17146_v47 = vpack.c.bf16 %v2301_v9, %v2299_v4  ;;  %v13765_v8 = vpop.f32.mrb[108].mxu0  ;;  %v16080_v37 = vld [vmem:[%s19327_s0 + $0x370] sm:$0xff]  }
 0x1ce   :  { %v1612_v7 = vadd.f32 %v17139_v48, %v13765_v8  ;;  %v1603_v50 = vpop.f32.mrb[109].mxu0 }
 0x1cf   :  { %19487 = vst [vmem:[#allocation69_spill] sm:$0xff] %v17144_v58  ;;  %19488 = vst [vmem:[#allocation70_spill] sm:$0xff] %v17146_v47  ;;  %v1604_v36 = vadd.f32 %v17139_v48, %v1603_v50  ;;  %v13766_v25 = vpop.f32.mrb[110].mxu0 }
 0x1d0   :  { %v2304_v24 = vmax.f32 %v1612_v7, 0.0  ;;  %v1615_v49 = vadd.f32 %v17139_v48, %v13766_v25  ;;  %v1606_v63 = vpop.f32.mrb[111].mxu0 }
 0x1d1   :  { %v2302_v2 = vmax.f32 %v1604_v36, 0.0  ;;  %v1607_v4 = vadd.f32 %v17139_v48, %v1606_v63 }
 0x1d2   :  { %v2305_v8 = vmax.f32 %v1615_v49, 0.0  ;;  %13872 = vmatmul.mubr.bf16.gmra.mrb[216].mxu0 %v16079_v44 }
 0x1d3   :  { %v17161_v47 = vpack.c.bf16 %v2304_v24, %v2302_v2  ;;  %v2303_v35 = vmax.f32 %v1607_v4, 0.0  ;;  %13875 = vmatprep.mubr.bf16.mxu0 %v16080_v37  ;;  %v16084_v4 = vld [vmem:[%s19328_s3 + $0x10] sm:$0xff]  }
 0x1d4   :  { %13995 = vmatprep.subr.bf16.mxu1 %v16084_v4 }
 0x1d5   :  { %19489 = vst [vmem:[#allocation71_spill] sm:$0xff] %v17161_v47  ;;  %v17163_v50 = vpack.c.bf16 %v2303_v35, %v2301_v9  ;;  %v17165_v51 = vpack.c.bf16 %v2305_v8, %v2303_v35  ;;  %v13769_v62 = vpop.f32.mrb[112].mxu0  ;;  %13996 = vmatpush3.bf16.msra.mxu1 %v16084_v4 }
 0x1d6   :  { %v1628_v7 = vadd.f32 %v17139_v48, %v13769_v62  ;;  %v1619_v27 = vpop.f32.mrb[113].mxu0 }
 0x1d7   :  { %19490 = vst [vmem:[#allocation72_spill] sm:$0xff] %v17163_v50  ;;  %19491 = vst [vmem:[#allocation73_spill] sm:$0xff] %v17165_v51  ;;  %v1620_v36 = vadd.f32 %v17139_v48, %v1619_v27  ;;  %v13770_v25 = vpop.f32.mrb[114].mxu0 }
 0x1d8   :  { %v2308_v44 = vmax.f32 %v1628_v7, 0.0  ;;  %v1631_v24 = vadd.f32 %v17139_v48, %v13770_v25  ;;  %v1622_v49 = vpop.f32.mrb[115].mxu0 }
 0x1d9   :  { %v2306_v37 = vmax.f32 %v1620_v36, 0.0  ;;  %v17174_v9 = vadd.f32 %v17139_v48, %v1622_v49 }
 0x1da   :  { %v2309_v35 = vmax.f32 %v1631_v24, 0.0  ;;  %13876 = vmatmul.mubr.bf16.gmra.mrb[220].mxu0 %v16081_v60 }
 0x1db   :  { %v17176_v63 = vpack.c.bf16 %v2308_v44, %v2306_v37  ;;  %v19361_v62 = vmax.f32 %v17174_v9, 0.0 }
 0x1dd   :  { %19492 = vst [vmem:[#allocation74_spill] sm:$0xff] %v17176_v63  ;;  %v17181_v2 = vpack.c.bf16 %v2309_v35, %v19361_v62  ;;  %v13773_v27 = vpop.f32.mrb[116].mxu0  ;;  %13959 = vmatprep.mubr.bf16.mxu1 %v17176_v63 }
 0x1de   :  { %v1644_v8 = vadd.f32 %v17139_v48, %v13773_v27  ;;  %v1635_v7 = vpop.f32.mrb[117].mxu0 }
 0x1df   :  { %19493 = vst [vmem:[#allocation75_spill] sm:$0xff] %v17181_v2  ;;  %v1636_v60 = vadd.f32 %v17139_v48, %v1635_v7  ;;  %v13774_v36 = vpop.f32.mrb[118].mxu0 }
 0x1e0   :  { %v2312_v25 = vmax.f32 %v1644_v8, 0.0  ;;  %v1647_v44 = vadd.f32 %v17139_v48, %v13774_v36  ;;  %v1638_v24 = vpop.f32.mrb[119].mxu0 }
 0x1e1   :  { %v2310_v49 = vmax.f32 %v1636_v60, 0.0  ;;  %v1639_v37 = vadd.f32 %v17139_v48, %v1638_v24 }
 0x1e2   :  { %v2313_v62 = vmax.f32 %v1647_v44, 0.0 }
 0x1e3   :  { %v17191_v63 = vpack.c.bf16 %v2312_v25, %v2310_v49  ;;  %v2311_v51 = vmax.f32 %v1639_v37, 0.0 }
 0x1e5   :  { %19494 = vst [vmem:[#allocation76_spill] sm:$0xff] %v17191_v63  ;;  %v17193_v47 = vpack.c.bf16 %v2311_v51, %v2309_v35  ;;  %v17195_v27 = vpack.c.bf16 %v2313_v62, %v2311_v51  ;;  %v13777_v0 = vpop.f32.mrb[120].mxu0  ;;  %13960 = vmatmul.mubr.bf16.gmra.mrb[32].mxu1 %v17191_v63 }
 0x1e6   :  { %v1660_v8 = vadd.f32 %v17139_v48, %v13777_v0  ;;  %v1651_v7 = vpop.f32.mrb[121].mxu0 }
 0x1e7   :  { %19495 = vst [vmem:[#allocation77_spill] sm:$0xff] %v17195_v27  ;;  %v1652_v36 = vadd.f32 %v17139_v48, %v1651_v7  ;;  %v13778_v4 = vpop.f32.mrb[122].mxu0 }
 0x1e8   :  { %v2316_v60 = vmax.f32 %v1660_v8, 0.0  ;;  %v1663_v24 = vadd.f32 %v17139_v48, %v13778_v4  ;;  %v1654_v44 = vpop.f32.mrb[123].mxu0  ;;  %v16085_v8 = vld [vmem:[%s19328_s3 + $0x18] sm:$0xff]  }
 0x1e9   :  { %v2314_v25 = vmax.f32 %v1652_v36, 0.0  ;;  %v1655_v49 = vadd.f32 %v17139_v48, %v1654_v44  ;;  %13997 = vmatprep.subr.bf16.mxu1 %v16085_v8 }
 0x1ea   :  { %v2317_v35 = vmax.f32 %v1663_v24, 0.0  ;;  %13998 = vmatpush3.bf16.msra.mxu1 %v16085_v8 }
 0x1eb   :  { %v17202_v37 = vpack.c.bf16 %v2316_v60, %v2314_v25  ;;  %v2315_v51 = vmax.f32 %v1655_v49, 0.0 }
 0x1ed   :  { %19496 = vst [vmem:[#allocation78_spill] sm:$0xff] %v17202_v37  ;;  %v17204_v11 = vpack.c.bf16 %v2315_v51, %v2313_v62  ;;  %v17206_v63 = vpack.c.bf16 %v2317_v35, %v2315_v51  ;;  %v13781_v0 = vpop.f32.mrb[124].mxu0  ;;  %13963 = vmatprep.mubr.bf16.mxu1 %v17202_v37 }
 0x1ee   :  { %v1676_v7 = vadd.f32 %v17139_v48, %v13781_v0  ;;  %v1667_v36 = vpop.f32.mrb[125].mxu0 }
 0x1ef   :  { %19497 = vst [vmem:[#allocation79_spill] sm:$0xff] %v17206_v63  ;;  %v1668_v4 = vadd.f32 %v17139_v48, %v1667_v36  ;;  %v13782_v24 = vpop.f32.mrb[126].mxu0 }
 0x1f0   :  { %v2320_v60 = vmax.f32 %v1676_v7, 0.0  ;;  %v1679_v62 = vadd.f32 %v17139_v48, %v13782_v24  ;;  %v1670_v44 = vpop.f32.mrb[127].mxu0 }
 0x1f1   :  { %v2318_v25 = vmax.f32 %v1668_v4, 0.0  ;;  %v1671_v49 = vadd.f32 %v17139_v48, %v1670_v44 }
 0x1f2   :  { %v2321_v51 = vmax.f32 %v1679_v62, 0.0 }
 0x1f3   :  { %v17216_v37 = vpack.c.bf16 %v2320_v60, %v2318_v25  ;;  %v2319_v57 = vmax.f32 %v1671_v49, 0.0 }
 0x1f5   :  { %19498 = vst [vmem:[#allocation80_spill] sm:$0xff] %v17216_v37  ;;  %v17218_v39 = vpack.c.bf16 %v2319_v57, %v2317_v35  ;;  %v17220_v0 = vpack.c.bf16 %v2321_v51, %v2319_v57  ;;  %v13785_v23 = vpop.f32.mrb[128].mxu0  ;;  %13964 = vmatmul.mubr.bf16.gmra.mrb[36].mxu1 %v17216_v37 }
 0x1f6   :  { %v1692_v7 = vadd.f32 %v17139_v48, %v13785_v23  ;;  %v1683_v36 = vpop.f32.mrb[129].mxu0 }
 0x1f7   :  { %19499 = vst [vmem:[#allocation81_spill] sm:$0xff] %v17220_v0  ;;  %v1684_v24 = vadd.f32 %v17139_v48, %v1683_v36  ;;  %v13786_v8 = vpop.f32.mrb[130].mxu0 }
 0x1f8   :  { %v2324_v4 = vmax.f32 %v1692_v7, 0.0  ;;  %v1695_v44 = vadd.f32 %v17139_v48, %v13786_v8  ;;  %v1686_v62 = vpop.f32.mrb[131].mxu0  ;;  %v16086_v7 = vld [vmem:[%s19328_s3 + $0x20] sm:$0xff]  }
 0x1f9   :  { %v2322_v60 = vmax.f32 %v1684_v24, 0.0  ;;  %v17227_v25 = vadd.f32 %v17139_v48, %v1686_v62  ;;  %13999 = vmatprep.subr.bf16.mxu1 %v16086_v7 }
 0x1fa   :  { %v2325_v35 = vmax.f32 %v1695_v44, 0.0  ;;  %14000 = vmatpush3.bf16.msra.mxu1 %v16086_v7 }
 0x1fb   :  { %19500 = vst [vmem:[#allocation82_spill] sm:$0xff] %v17227_v25  ;;  %v17229_v57 = vpack.c.bf16 %v2324_v4, %v2322_v60  ;;  %v19366_v49 = vmax.f32 %v17227_v25, 0.0 }
 0x1fd   :  { %19501 = vst [vmem:[#allocation83_spill] sm:$0xff] %v17229_v57  ;;  %v17234_v23 = vpack.c.bf16 %v2325_v35, %v19366_v49  ;;  %v13789_v51 = vpop.f32.mrb[132].mxu0 }
 0x1fe   :  { %v1708_v36 = vadd.f32 %v17139_v48, %v13789_v51  ;;  %v1699_v24 = vpop.f32.mrb[133].mxu0 }
 0x1ff   :  { %19502 = vst [vmem:[#allocation84_spill] sm:$0xff] %v17234_v23  ;;  %v1700_v8 = vadd.f32 %v17139_v48, %v1699_v24  ;;  %v13790_v62 = vpop.f32.mrb[134].mxu0 }
 0x200   :  { %v2328_v4 = vmax.f32 %v1708_v36, 0.0  ;;  %v1711_v44 = vadd.f32 %v17139_v48, %v13790_v62  ;;  %v1702_v60 = vpop.f32.mrb[135].mxu0 }
 0x201   :  { %v2326_v37 = vmax.f32 %v1700_v8, 0.0  ;;  %v1703_v49 = vadd.f32 %v17139_v48, %v1702_v60 }
 0x202   :  { %v2329_v23 = vmax.f32 %v1711_v44, 0.0 }
 0x203   :  { %v17243_v57 = vpack.c.bf16 %v2328_v4, %v2326_v37  ;;  %v2327_v50 = vmax.f32 %v1703_v49, 0.0 }
 0x205   :  { %19503 = vst [vmem:[#allocation85_spill] sm:$0xff] %v17243_v57  ;;  %v17245_v25 = vpack.c.bf16 %v2327_v50, %v2325_v35  ;;  %v17247_v51 = vpack.c.bf16 %v2329_v23, %v2327_v50  ;;  %v13793_v58 = vpop.f32.mrb[136].mxu0 }
 0x206   :  { %v1724_v24 = vadd.f32 %v17139_v48, %v13793_v58  ;;  %v1715_v28 = vpop.f32.mrb[137].mxu0 }
 0x207   :  { %19504 = vst [vmem:[#allocation86_spill] sm:$0xff] %v17245_v25  ;;  %19505 = vst [vmem:[#allocation87_spill] sm:$0xff] %v17247_v51  ;;  %v1716_v36 = vadd.f32 %v17139_v48, %v1715_v28  ;;  %v13794_v62 = vpop.f32.mrb[138].mxu0  ;;  %v16087_v28 = vld [vmem:[%s19328_s3 + $0x28] sm:$0xff]  }
 0x208   :  { %v2332_v18 = vmax.f32 %v1724_v24, 0.0  ;;  %v1727_v7 = vadd.f32 %v17139_v48, %v13794_v62  ;;  %v1718_v8 = vpop.f32.mrb[139].mxu0  ;;  %14001 = vmatprep.subr.bf16.mxu1 %v16087_v28 }
 0x209   :  { %v2330_v60 = vmax.f32 %v1716_v36, 0.0  ;;  %v1719_v37 = vadd.f32 %v17139_v48, %v1718_v8  ;;  %14002 = vmatpush3.bf16.msra.mxu1 %v16087_v28 }
 0x20a   :  { %v2333_v4 = vmax.f32 %v1727_v7, 0.0 }
 0x20b   :  { %v17253_v49 = vpack.c.bf16 %v2332_v18, %v2330_v60  ;;  %v2331_v35 = vmax.f32 %v1719_v37, 0.0 }
 0x20d   :  { %19506 = vst [vmem:[#allocation88_spill] sm:$0xff] %v17253_v49  ;;  %v17255_v50 = vpack.c.bf16 %v2331_v35, %v2329_v23  ;;  %v17257_v44 = vpack.c.bf16 %v2333_v4, %v2331_v35  ;;  %v13797_v58 = vpop.f32.mrb[140].mxu0 }
 0x20e   :  { %v1740_v24 = vadd.f32 %v17139_v48, %v13797_v58  ;;  %v1731_v62 = vpop.f32.mrb[141].mxu0 }
 0x20f   :  { %19507 = vst [vmem:[#allocation89_spill] sm:$0xff] %v17255_v50  ;;  %19508 = vst [vmem:[#allocation90_spill] sm:$0xff] %v17257_v44  ;;  %v1732_v36 = vadd.f32 %v17139_v48, %v1731_v62  ;;  %v13798_v51 = vpop.f32.mrb[142].mxu0 }
 0x210   :  { %v2336_v7 = vmax.f32 %v1740_v24, 0.0  ;;  %v1743_v18 = vadd.f32 %v17139_v48, %v13798_v51  ;;  %v1734_v8 = vpop.f32.mrb[143].mxu0 }
 0x211   :  { %v2334_v23 = vmax.f32 %v1732_v36, 0.0  ;;  %v1735_v60 = vadd.f32 %v17139_v48, %v1734_v8 }
 0x212   :  { %v2337_v37 = vmax.f32 %v1743_v18, 0.0 }
 0x213   :  { %v17266_v35 = vpack.c.bf16 %v2336_v7, %v2334_v23  ;;  %v2335_v44 = vmax.f32 %v1735_v60, 0.0 }
 0x215   :  { %19509 = vst [vmem:[#allocation91_spill] sm:$0xff] %v17266_v35  ;;  %v17268_v49 = vpack.c.bf16 %v2335_v44, %v2333_v4  ;;  %v17270_v58 = vpack.c.bf16 %v2337_v37, %v2335_v44  ;;  %v13801_v57 = vpop.f32.mrb[144].mxu0 }
 0x216   :  { %v1756_v62 = vadd.f32 %v17139_v48, %v13801_v57  ;;  %v1747_v50 = vpop.f32.mrb[145].mxu0 }
 0x217   :  { %19510 = vst [vmem:[#allocation92_spill] sm:$0xff] %v17268_v49  ;;  %19511 = vst [vmem:[#allocation93_spill] sm:$0xff] %v17270_v58  ;;  %v1748_v24 = vadd.f32 %v17139_v48, %v1747_v50  ;;  %v13802_v51 = vpop.f32.mrb[146].mxu0  ;;  %v16088_v50 = vld [vmem:[%s19328_s3 + $0x30] sm:$0xff]  }
 0x218   :  { %v2340_v25 = vmax.f32 %v1756_v62, 0.0  ;;  %v1759_v28 = vadd.f32 %v17139_v48, %v13802_v51  ;;  %v1750_v36 = vpop.f32.mrb[147].mxu0  ;;  %14003 = vmatprep.subr.bf16.mxu1 %v16088_v50 }
 0x219   :  { %v2338_v8 = vmax.f32 %v1748_v24, 0.0  ;;  %v17276_v7 = vadd.f32 %v17139_v48, %v1750_v36  ;;  %14004 = vmatpush3.bf16.msra.mxu1 %v16088_v50 }
 0x21a   :  { %v2341_v18 = vmax.f32 %v1759_v28, 0.0 }
 0x21b   :  { %v17278_v4 = vpack.c.bf16 %v2340_v25, %v2338_v8  ;;  %v19368_v44 = vmax.f32 %v17276_v7, 0.0 }
 0x21d   :  { %19512 = vst [vmem:[#allocation94_spill] sm:$0xff] %v17278_v4  ;;  %v17283_v57 = vpack.c.bf16 %v2341_v18, %v19368_v44  ;;  %v13805_v23 = vpop.f32.mrb[148].mxu0  ;;  %13967 = vmatprep.mubr.bf16.mxu1 %v17278_v4 }
 0x21e   :  { %v1772_v60 = vadd.f32 %v17139_v48, %v13805_v23  ;;  %v1763_v37 = vpop.f32.mrb[149].mxu0 }
 0x21f   :  { %19513 = vst [vmem:[#allocation95_spill] sm:$0xff] %v17283_v57  ;;  %v1764_v62 = vadd.f32 %v17139_v48, %v1763_v37  ;;  %v13806_v25 = vpop.f32.mrb[150].mxu0 }
 0x220   :  { %v2344_v24 = vmax.f32 %v1772_v60, 0.0  ;;  %v1775_v51 = vadd.f32 %v17139_v48, %v13806_v25  ;;  %v1766_v28 = vpop.f32.mrb[151].mxu0 }
 0x221   :  { %v2342_v36 = vmax.f32 %v1764_v62, 0.0  ;;  %v1767_v8 = vadd.f32 %v17139_v48, %v1766_v28 }
 0x222   :  { %v2345_v44 = vmax.f32 %v1775_v51, 0.0 }
 0x223   :  { %v17293_v4 = vpack.c.bf16 %v2344_v24, %v2342_v36  ;;  %v2343_v58 = vmax.f32 %v1767_v8, 0.0 }
 0x225   :  { %19514 = vst [vmem:[#allocation96_spill] sm:$0xff] %v17293_v4  ;;  %v17295_v35 = vpack.c.bf16 %v2343_v58, %v2341_v18  ;;  %v17297_v23 = vpack.c.bf16 %v2345_v44, %v2343_v58  ;;  %v13809_v49 = vpop.f32.mrb[152].mxu0  ;;  %13968 = vmatmul.mubr.bf16.gmra.mrb[40].mxu1 %v17293_v4 }
 0x226   :  { %v1788_v60 = vadd.f32 %v17139_v48, %v13809_v49  ;;  %v1779_v37 = vpop.f32.mrb[153].mxu0 }
 0x227   :  { %19515 = vst [vmem:[#allocation97_spill] sm:$0xff] %v17297_v23  ;;  %v1780_v25 = vadd.f32 %v17139_v48, %v1779_v37  ;;  %v13810_v50 = vpop.f32.mrb[154].mxu0 }
 0x228   :  { %v2348_v62 = vmax.f32 %v1788_v60, 0.0  ;;  %v1791_v28 = vadd.f32 %v17139_v48, %v13810_v50  ;;  %v1782_v51 = vpop.f32.mrb[155].mxu0  ;;  %v16089_v60 = vld [vmem:[%s19328_s3 + $0x38] sm:$0xff]  }
 0x229   :  { %v2346_v24 = vmax.f32 %v1780_v25, 0.0  ;;  %v1783_v36 = vadd.f32 %v17139_v48, %v1782_v51  ;;  %14005 = vmatprep.subr.bf16.mxu1 %v16089_v60 }
 0x22a   :  { %v2349_v18 = vmax.f32 %v1791_v28, 0.0  ;;  %14006 = vmatpush3.bf16.msra.mxu1 %v16089_v60  ;;  %v17329_v60 = vld [vmem:[%s19328_s3 + $0x80] sm:$0xff]  }
 0x22b   :  { %v17304_v8 = vpack.c.bf16 %v2348_v62, %v2346_v24  ;;  %v2347_v58 = vmax.f32 %v1783_v36, 0.0  ;;  %14071 = vmatprep.subr.bf16.mxu1 %v17329_v60 }
 0x22d   :  { %19516 = vst [vmem:[#allocation98_spill] sm:$0xff] %v17304_v8  ;;  %v17306_v21 = vpack.c.bf16 %v2347_v58, %v2345_v44  ;;  %v17308_v4 = vpack.c.bf16 %v2349_v18, %v2347_v58  ;;  %v13813_v49 = vpop.f32.mrb[156].mxu0  ;;  %13971 = vmatprep.mubr.bf16.mxu1 %v17304_v8 }
 0x22e   :  { %v1804_v37 = vadd.f32 %v17139_v48, %v13813_v49  ;;  %v1795_v25 = vpop.f32.mrb[157].mxu0 }
 0x22f   :  { %19517 = vst [vmem:[#allocation99_spill] sm:$0xff] %v17308_v4  ;;  %v1796_v50 = vadd.f32 %v17139_v48, %v1795_v25  ;;  %v13814_v28 = vpop.f32.mrb[158].mxu0 }
 0x230   :  { %v2352_v62 = vmax.f32 %v1804_v37, 0.0  ;;  %v1807_v44 = vadd.f32 %v17139_v48, %v13814_v28  ;;  %v1798_v51 = vpop.f32.mrb[159].mxu0 }
 0x231   :  { %v2350_v24 = vmax.f32 %v1796_v50, 0.0  ;;  %v1799_v36 = vadd.f32 %v17139_v48, %v1798_v51 }
 0x232   :  { %v2353_v58 = vmax.f32 %v1807_v44, 0.0 }
 0x233   :  { %v17318_v8 = vpack.c.bf16 %v2352_v62, %v2350_v24  ;;  %v2351_v52 = vmax.f32 %v1799_v36, 0.0 }
 0x235   :  { %19518 = vst [vmem:[#allocation100_spill] sm:$0xff] %v17318_v8  ;;  %v17320_v10 = vpack.c.bf16 %v2351_v52, %v2349_v18  ;;  %v17322_v49 = vpack.c.bf16 %v2353_v58, %v2351_v52  ;;  %v13817_v38 = vpop.f32.mrb[160].mxu0  ;;  %13972 = vmatmul.mubr.bf16.gmra.mrb[44].mxu1 %v17318_v8 }
 0x236   :  { %v1820_v37 = vadd.f32 %v17139_v48, %v13817_v38  ;;  %v1811_v25 = vpop.f32.mrb[161].mxu0 }
 0x237   :  { %19519 = vst [vmem:[#allocation101_spill] sm:$0xff] %v17322_v49  ;;  %v1812_v50 = vadd.f32 %v17139_v48, %v1811_v25  ;;  %v13818_v28 = vpop.f32.mrb[162].mxu0 }
 0x238   :  { %v2356_v62 = vmax.f32 %v1820_v37, 0.0  ;;  %v1823_v18 = vadd.f32 %v17139_v48, %v13818_v28  ;;  %v1814_v44 = vpop.f32.mrb[163].mxu0 }
 0x239   :  { %v2354_v52 = vmax.f32 %v1812_v50, 0.0  ;;  %v17335_v51 = vadd.f32 %v17139_v48, %v1814_v44 }
 0x23a   :  { %v2357_v38 = vmax.f32 %v1823_v18, 0.0 }
 0x23b   :  { %19520 = vst [vmem:[#allocation102_spill] sm:$0xff] %v17335_v51  ;;  %v17337_v24 = vpack.c.bf16 %v2356_v62, %v2354_v52  ;;  %v19376_v36 = vmax.f32 %v17335_v51, 0.0 }
 0x23d   :  { %19521 = vst [vmem:[#allocation103_spill] sm:$0xff] %v17337_v24  ;;  %v17342_v58 = vpack.c.bf16 %v2357_v38, %v19376_v36  ;;  %v13821_v25 = vpop.f32.mrb[164].mxu0 }
 0x23e   :  { %v1836_v37 = vadd.f32 %v17139_v48, %v13821_v25  ;;  %v1827_v28 = vpop.f32.mrb[165].mxu0 }
 0x23f   :  { %19522 = vst [vmem:[#allocation104_spill] sm:$0xff] %v17342_v58  ;;  %v1828_v8 = vadd.f32 %v17139_v48, %v1827_v28  ;;  %v13822_v46 = vpop.f32.mrb[166].mxu0 }
 0x240   :  { %v2360_v50 = vmax.f32 %v1836_v37, 0.0  ;;  %v1839_v44 = vadd.f32 %v17139_v48, %v13822_v46  ;;  %v1830_v3 = vpop.f32.mrb[167].mxu0 }
 0x241   :  { %v2358_v18 = vmax.f32 %v1828_v8, 0.0  ;;  %v1831_v62 = vadd.f32 %v17139_v48, %v1830_v3 }
 0x242   :  { %v2361_v52 = vmax.f32 %v1839_v44, 0.0 }
 0x243   :  { %v17348_v24 = vpack.c.bf16 %v2360_v50, %v2358_v18  ;;  %v2359_v51 = vmax.f32 %v1831_v62, 0.0 }
 0x245   :  { %19523 = vst [vmem:[#allocation105_spill] sm:$0xff] %v17348_v24  ;;  %v17350_v36 = vpack.c.bf16 %v2359_v51, %v2357_v38  ;;  %v17352_v58 = vpack.c.bf16 %v2361_v52, %v2359_v51  ;;  %v13825_v25 = vpop.f32.mrb[168].mxu0 }
 0x246   :  { %v1852_v30 = vadd.f32 %v17139_v48, %v13825_v25  ;;  %v1843_v28 = vpop.f32.mrb[169].mxu0 }
 0x247   :  { %19524 = vst [vmem:[#allocation106_spill] sm:$0xff] %v17350_v36  ;;  %19525 = vst [vmem:[#allocation107_spill] sm:$0xff] %v17352_v58  ;;  %v1844_v37 = vadd.f32 %v17139_v48, %v1843_v28  ;;  %v13826_v13 = vpop.f32.mrb[170].mxu0 }
 0x248   :  { %v2364_v46 = vmax.f32 %v1852_v30, 0.0  ;;  %v1855_v8 = vadd.f32 %v17139_v48, %v13826_v13  ;;  %v1846_v61 = vpop.f32.mrb[171].mxu0 }
 0x249   :  { %v2362_v3 = vmax.f32 %v1844_v37, 0.0  ;;  %v1847_v50 = vadd.f32 %v17139_v48, %v1846_v61 }
 0x24a   :  { %v2365_v44 = vmax.f32 %v1855_v8, 0.0 }
 0x24b   :  { %v17358_v18 = vpack.c.bf16 %v2364_v46, %v2362_v3  ;;  %v2363_v38 = vmax.f32 %v1847_v50, 0.0 }
 0x24d   :  { %19526 = vst [vmem:[#allocation108_spill] sm:$0xff] %v17358_v18  ;;  %v17360_v51 = vpack.c.bf16 %v2363_v38, %v2361_v52  ;;  %v17362_v62 = vpack.c.bf16 %v2365_v44, %v2363_v38  ;;  %v13829_v25 = vpop.f32.mrb[172].mxu0 }
 0x24e   :  { %v1868_v58 = vadd.f32 %v17139_v48, %v13829_v25  ;;  %v1859_v28 = vpop.f32.mrb[173].mxu0 }
 0x24f   :  { %19527 = vst [vmem:[#allocation109_spill] sm:$0xff] %v17360_v51  ;;  %19528 = vst [vmem:[#allocation110_spill] sm:$0xff] %v17362_v62  ;;  %v1860_v30 = vadd.f32 %v17139_v48, %v1859_v28  ;;  %v13830_v24 = vpop.f32.mrb[174].mxu0 }
 0x250   :  { %v2368_v13 = vmax.f32 %v1868_v58, 0.0  ;;  %v1871_v37 = vadd.f32 %v17139_v48, %v13830_v24  ;;  %v1862_v36 = vpop.f32.mrb[175].mxu0 }
 0x251   :  { %v2366_v61 = vmax.f32 %v1860_v30, 0.0  ;;  %v1863_v46 = vadd.f32 %v17139_v48, %v1862_v36 }
 0x252   :  { %v2369_v8 = vmax.f32 %v1871_v37, 0.0 }
 0x253   :  { %v17368_v3 = vpack.c.bf16 %v2368_v13, %v2366_v61  ;;  %v2367_v52 = vmax.f32 %v1863_v46, 0.0 }
 0x255   :  { %19529 = vst [vmem:[#allocation111_spill] sm:$0xff] %v17368_v3  ;;  %v17370_v50 = vpack.c.bf16 %v2367_v52, %v2365_v44  ;;  %v17372_v38 = vpack.c.bf16 %v2369_v8, %v2367_v52  ;;  %v13833_v25 = vpop.f32.mrb[176].mxu0 }
 0x256   :  { %v1884_v62 = vadd.f32 %v17139_v48, %v13833_v25  ;;  %v1875_v28 = vpop.f32.mrb[177].mxu0 }
 0x257   :  { %19530 = vst [vmem:[#allocation112_spill] sm:$0xff] %v17370_v50  ;;  %19531 = vst [vmem:[#allocation113_spill] sm:$0xff] %v17372_v38  ;;  %v1876_v58 = vadd.f32 %v17139_v48, %v1875_v28  ;;  %v13834_v18 = vpop.f32.mrb[178].mxu0 }
 0x258   :  { %v2372_v24 = vmax.f32 %v1884_v62, 0.0  ;;  %v1887_v30 = vadd.f32 %v17139_v48, %v13834_v18  ;;  %v1878_v51 = vpop.f32.mrb[179].mxu0 }
 0x259   :  { %v2370_v36 = vmax.f32 %v1876_v58, 0.0  ;;  %v17378_v13 = vadd.f32 %v17139_v48, %v1878_v51 }
 0x25a   :  { %v2373_v37 = vmax.f32 %v1887_v30, 0.0 }
 0x25b   :  { %v17380_v44 = vpack.c.bf16 %v2372_v24, %v2370_v36  ;;  %v19378_v61 = vmax.f32 %v17378_v13, 0.0 }
 0x25d   :  { %19532 = vst [vmem:[#allocation114_spill] sm:$0xff] %v17380_v44  ;;  %v17385_v46 = vpack.c.bf16 %v2373_v37, %v19378_v61  ;;  %v13837_v8 = vpop.f32.mrb[180].mxu0  ;;  %13975 = vmatprep.mubr.bf16.mxu1 %v17380_v44 }
 0x25e   :  { %v1900_v62 = vadd.f32 %v17139_v48, %v13837_v8  ;;  %v1891_v18 = vpop.f32.mrb[181].mxu0 }
 0x25f   :  { %19533 = vst [vmem:[#allocation115_spill] sm:$0xff] %v17385_v46  ;;  %v1892_v52 = vadd.f32 %v17139_v48, %v1891_v18  ;;  %v13838_v25 = vpop.f32.mrb[182].mxu0 }
 0x260   :  { %v2376_v51 = vmax.f32 %v1900_v62, 0.0  ;;  %v1903_v28 = vadd.f32 %v17139_v48, %v13838_v25  ;;  %v1894_v58 = vpop.f32.mrb[183].mxu0 }
 0x261   :  { %v2374_v24 = vmax.f32 %v1892_v52, 0.0  ;;  %v1895_v30 = vadd.f32 %v17139_v48, %v1894_v58 }
 0x262   :  { %v2377_v36 = vmax.f32 %v1903_v28, 0.0 }
 0x263   :  { %v17392_v38 = vpack.c.bf16 %v2376_v51, %v2374_v24  ;;  %v2375_v61 = vmax.f32 %v1895_v30, 0.0 }
 0x265   :  { %19534 = vst [vmem:[#allocation116_spill] sm:$0xff] %v17392_v38  ;;  %v17394_v3 = vpack.c.bf16 %v2375_v61, %v2373_v37  ;;  %v17396_v44 = vpack.c.bf16 %v2377_v36, %v2375_v61  ;;  %v13841_v8 = vpop.f32.mrb[184].mxu0  ;;  %13976 = vmatmul.mubr.bf16.gmra.mrb[48].mxu1 %v17392_v38 }
 0x266   :  { %v1916_v18 = vadd.f32 %v17139_v48, %v13841_v8  ;;  %v1907_v62 = vpop.f32.mrb[185].mxu0 }
 0x267   :  { %19535 = vst [vmem:[#allocation117_spill] sm:$0xff] %v17396_v44  ;;  %v1908_v25 = vadd.f32 %v17139_v48, %v1907_v62  ;;  %v13842_v50 = vpop.f32.mrb[186].mxu0 }
 0x268   :  { %v2380_v52 = vmax.f32 %v1916_v18, 0.0  ;;  %v1919_v58 = vadd.f32 %v17139_v48, %v13842_v50  ;;  %v1910_v28 = vpop.f32.mrb[187].mxu0 }
 0x269   :  { %v2378_v51 = vmax.f32 %v1908_v25, 0.0  ;;  %v1911_v24 = vadd.f32 %v17139_v48, %v1910_v28 }
 0x26a   :  { %v2381_v37 = vmax.f32 %v1919_v58, 0.0 }
 0x26b   :  { %v17403_v30 = vpack.c.bf16 %v2380_v52, %v2378_v51  ;;  %v2379_v61 = vmax.f32 %v1911_v24, 0.0 }
 0x26d   :  { %19536 = vst [vmem:[#allocation118_spill] sm:$0xff] %v17403_v30  ;;  %v17405_v59 = vpack.c.bf16 %v2379_v61, %v2377_v36  ;;  %v17407_v38 = vpack.c.bf16 %v2381_v37, %v2379_v61  ;;  %v13845_v8 = vpop.f32.mrb[188].mxu0  ;;  %13979 = vmatprep.mubr.bf16.mxu1 %v17403_v30 }
 0x26e   :  { %v1932_v62 = vadd.f32 %v17139_v48, %v13845_v8  ;;  %v1923_v18 = vpop.f32.mrb[189].mxu0 }
 0x26f   :  { %19537 = vst [vmem:[#allocation119_spill] sm:$0xff] %v17407_v38  ;;  %v1924_v50 = vadd.f32 %v17139_v48, %v1923_v18  ;;  %v13846_v41 = vpop.f32.mrb[190].mxu0 }
 0x270   :  { %v2384_v25 = vmax.f32 %v1932_v62, 0.0  ;;  %v1935_v28 = vadd.f32 %v17139_v48, %v13846_v41  ;;  %v1926_v58 = vpop.f32.mrb[191].mxu0 }
 0x271   :  { %v2382_v52 = vmax.f32 %v1924_v50, 0.0  ;;  %v1927_v51 = vadd.f32 %v17139_v48, %v1926_v58 }
 0x272   :  { %v2385_v36 = vmax.f32 %v1935_v28, 0.0 }
 0x273   :  { %v17414_v24 = vpack.c.bf16 %v2384_v25, %v2382_v52  ;;  %v2383_v61 = vmax.f32 %v1927_v51, 0.0 }
 0x275   :  { %19538 = vst [vmem:[#allocation120_spill] sm:$0xff] %v17414_v24  ;;  %v17416_v19 = vpack.c.bf16 %v2383_v61, %v2381_v37  ;;  %v17418_v30 = vpack.c.bf16 %v2385_v36, %v2383_v61  ;;  %v13849_v8 = vpop.f32.mrb[192].mxu0  ;;  %13980 = vmatmul.mubr.bf16.gmra.mrb[52].mxu1 %v17414_v24 }
 0x276   :  { %v1948_v18 = vadd.f32 %v17139_v48, %v13849_v8  ;;  %v1939_v62 = vpop.f32.mrb[193].mxu0 }
 0x277   :  { %19539 = vst [vmem:[#allocation121_spill] sm:$0xff] %v17418_v30  ;;  %v1940_v41 = vadd.f32 %v17139_v48, %v1939_v62  ;;  %v13850_v38 = vpop.f32.mrb[194].mxu0 }
 0x278   :  { %v2388_v50 = vmax.f32 %v1948_v18, 0.0  ;;  %v1951_v58 = vadd.f32 %v17139_v48, %v13850_v38  ;;  %v1942_v28 = vpop.f32.mrb[195].mxu0 }
 0x279   :  { %v2386_v25 = vmax.f32 %v1940_v41, 0.0  ;;  %v17425_v52 = vadd.f32 %v17139_v48, %v1942_v28 }
 0x27a   :  { %v2389_v37 = vmax.f32 %v1951_v58, 0.0 }
 0x27b   :  { %19540 = vst [vmem:[#allocation122_spill] sm:$0xff] %v17425_v52  ;;  %v17427_v51 = vpack.c.bf16 %v2388_v50, %v2386_v25  ;;  %v19387_v36 = vmax.f32 %v17425_v52, 0.0 }
 0x27d   :  { %19541 = vst [vmem:[#allocation123_spill] sm:$0xff] %v17427_v51  ;;  %v17432_v61 = vpack.c.bf16 %v2389_v37, %v19387_v36  ;;  %v13853_v8 = vpop.f32.mrb[196].mxu0 }
 0x27e   :  { %v1964_v62 = vadd.f32 %v17139_v48, %v13853_v8  ;;  %v1955_v18 = vpop.f32.mrb[197].mxu0 }
 0x27f   :  { %19542 = vst [vmem:[#allocation124_spill] sm:$0xff] %v17432_v61  ;;  %v1956_v38 = vadd.f32 %v17139_v48, %v1955_v18  ;;  %v13854_v24 = vpop.f32.mrb[198].mxu0 }
 0x280   :  { %v2392_v41 = vmax.f32 %v1964_v62, 0.0  ;;  %v1967_v28 = vadd.f32 %v17139_v48, %v13854_v24  ;;  %v1958_v30 = vpop.f32.mrb[199].mxu0 }
 0x281   :  { %v2390_v58 = vmax.f32 %v1956_v38, 0.0  ;;  %v1959_v50 = vadd.f32 %v17139_v48, %v1958_v30 }
 0x282   :  { %v2393_v25 = vmax.f32 %v1967_v28, 0.0 }
 0x283   :  { %v17438_v51 = vpack.c.bf16 %v2392_v41, %v2390_v58  ;;  %v2391_v52 = vmax.f32 %v1959_v50, 0.0 }
 0x285   :  { %19543 = vst [vmem:[#allocation125_spill] sm:$0xff] %v17438_v51  ;;  %v17440_v36 = vpack.c.bf16 %v2391_v52, %v2389_v37  ;;  %v17442_v61 = vpack.c.bf16 %v2393_v25, %v2391_v52  ;;  %v13857_v8 = vpop.f32.mrb[200].mxu0 }
 0x286   :  { %v1980_v44 = vadd.f32 %v17139_v48, %v13857_v8  ;;  %v1971_v18 = vpop.f32.mrb[201].mxu0 }
 0x287   :  { %19544 = vst [vmem:[#allocation126_spill] sm:$0xff] %v17440_v36  ;;  %19545 = vst [vmem:[#allocation127_spill] sm:$0xff] %v17442_v61  ;;  %v1972_v62 = vadd.f32 %v17139_v48, %v1971_v18  ;;  %v13858_v46 = vpop.f32.mrb[202].mxu0 }
 0x288   :  { %v2396_v24 = vmax.f32 %v1980_v44, 0.0  ;;  %v1983_v38 = vadd.f32 %v17139_v48, %v13858_v46  ;;  %v1974_v49 = vpop.f32.mrb[203].mxu0 }
 0x289   :  { %v2394_v30 = vmax.f32 %v1972_v62, 0.0  ;;  %v1975_v41 = vadd.f32 %v17139_v48, %v1974_v49 }
 0x28a   :  { %v2397_v28 = vmax.f32 %v1983_v38, 0.0 }
 0x28b   :  { %v17448_v58 = vpack.c.bf16 %v2396_v24, %v2394_v30  ;;  %v2395_v37 = vmax.f32 %v1975_v41, 0.0 }
 0x28d   :  { %19546 = vst [vmem:[#allocation128_spill] sm:$0xff] %v17448_v58  ;;  %v17450_v52 = vpack.c.bf16 %v2395_v37, %v2393_v25  ;;  %v17452_v50 = vpack.c.bf16 %v2397_v28, %v2395_v37  ;;  %v13861_v8 = vpop.f32.mrb[204].mxu0 }
 0x28e   :  { %v1996_v61 = vadd.f32 %v17139_v48, %v13861_v8  ;;  %v1987_v18 = vpop.f32.mrb[205].mxu0 }
 0x28f   :  { %19547 = vst [vmem:[#allocation129_spill] sm:$0xff] %v17450_v52  ;;  %19548 = vst [vmem:[#allocation130_spill] sm:$0xff] %v17452_v50  ;;  %v1988_v44 = vadd.f32 %v17139_v48, %v1987_v18  ;;  %v13862_v51 = vpop.f32.mrb[206].mxu0 }
 0x290   :  { %v2400_v46 = vmax.f32 %v1996_v61, 0.0  ;;  %v1999_v62 = vadd.f32 %v17139_v48, %v13862_v51  ;;  %v1990_v36 = vpop.f32.mrb[207].mxu0 }
 0x291   :  { %v2398_v49 = vmax.f32 %v1988_v44, 0.0  ;;  %v1991_v24 = vadd.f32 %v17139_v48, %v1990_v36 }
 0x292   :  { %v2401_v38 = vmax.f32 %v1999_v62, 0.0 }
 0x293   :  { %v17458_v30 = vpack.c.bf16 %v2400_v46, %v2398_v49  ;;  %v2399_v25 = vmax.f32 %v1991_v24, 0.0 }
 0x295   :  { %19549 = vst [vmem:[#allocation131_spill] sm:$0xff] %v17458_v30  ;;  %v17460_v41 = vpack.c.bf16 %v2399_v25, %v2397_v28  ;;  %v17462_v37 = vpack.c.bf16 %v2401_v38, %v2399_v25  ;;  %v13865_v8 = vpop.f32.mrb[208].mxu0 }
 0x296   :  { %v2012_v50 = vadd.f32 %v17139_v48, %v13865_v8  ;;  %v2003_v18 = vpop.f32.mrb[209].mxu0 }
 0x297   :  { %19550 = vst [vmem:[#allocation132_spill] sm:$0xff] %v17460_v41  ;;  %19551 = vst [vmem:[#allocation133_spill] sm:$0xff] %v17462_v37  ;;  %v2004_v61 = vadd.f32 %v17139_v48, %v2003_v18  ;;  %v13866_v58 = vpop.f32.mrb[210].mxu0 }
 0x298   :  { %v2404_v51 = vmax.f32 %v2012_v50, 0.0  ;;  %v2015_v44 = vadd.f32 %v17139_v48, %v13866_v58  ;;  %v2006_v52 = vpop.f32.mrb[211].mxu0 }
 0x299   :  { %v2402_v36 = vmax.f32 %v2004_v61, 0.0  ;;  %v17468_v46 = vadd.f32 %v17139_v48, %v2006_v52 }
 0x29a   :  { %v2405_v62 = vmax.f32 %v2015_v44, 0.0 }
 0x29b   :  { %v17470_v28 = vpack.c.bf16 %v2404_v51, %v2402_v36  ;;  %v19391_v49 = vmax.f32 %v17468_v46, 0.0 }
 0x29d   :  { %19552 = vst [vmem:[#allocation134_spill] sm:$0xff] %v17470_v28  ;;  %v17475_v24 = vpack.c.bf16 %v2405_v62, %v19391_v49  ;;  %v13869_v38 = vpop.f32.mrb[212].mxu0  ;;  %13983 = vmatprep.mubr.bf16.mxu1 %v17470_v28 }
 0x29e   :  { %v2028_v50 = vadd.f32 %v17139_v48, %v13869_v38  ;;  %v2019_v58 = vpop.f32.mrb[213].mxu0 }
 0x29f   :  { %19553 = vst [vmem:[#allocation135_spill] sm:$0xff] %v17475_v24  ;;  %v2020_v25 = vadd.f32 %v17139_v48, %v2019_v58  ;;  %v13870_v8 = vpop.f32.mrb[214].mxu0 }
 0x2a0   :  { %v2408_v52 = vmax.f32 %v2028_v50, 0.0  ;;  %v2031_v18 = vadd.f32 %v17139_v48, %v13870_v8  ;;  %v2022_v61 = vpop.f32.mrb[215].mxu0 }
 0x2a1   :  { %v2406_v51 = vmax.f32 %v2020_v25, 0.0  ;;  %v2023_v44 = vadd.f32 %v17139_v48, %v2022_v61 }
 0x2a2   :  { %v2409_v36 = vmax.f32 %v2031_v18, 0.0 }
 0x2a3   :  { %v17482_v37 = vpack.c.bf16 %v2408_v52, %v2406_v51  ;;  %v2407_v49 = vmax.f32 %v2023_v44, 0.0 }
 0x2a5   :  { %19554 = vst [vmem:[#allocation136_spill] sm:$0xff] %v17482_v37  ;;  %v17484_v30 = vpack.c.bf16 %v2407_v49, %v2405_v62  ;;  %v17486_v28 = vpack.c.bf16 %v2409_v36, %v2407_v49  ;;  %v13873_v38 = vpop.f32.mrb[216].mxu0  ;;  %13984 = vmatmul.mubr.bf16.gmra.mrb[56].mxu1 %v17482_v37 }
 0x2a6   :  { %v2044_v58 = vadd.f32 %v17139_v48, %v13873_v38  ;;  %v2035_v50 = vpop.f32.mrb[217].mxu0 }
 0x2a7   :  { %19555 = vst [vmem:[#allocation137_spill] sm:$0xff] %v17486_v28  ;;  %v2036_v8 = vadd.f32 %v17139_v48, %v2035_v50  ;;  %v13874_v41 = vpop.f32.mrb[218].mxu0 }
 0x2a8   :  { %v2412_v25 = vmax.f32 %v2044_v58, 0.0  ;;  %v2047_v61 = vadd.f32 %v17139_v48, %v13874_v41  ;;  %v2038_v18 = vpop.f32.mrb[219].mxu0  ;;  %v16098_v41 = vld [vmem:[%s19327_s0 + $0x380] sm:$0xff]  }
 0x2a9   :  { %v2410_v52 = vmax.f32 %v2036_v8, 0.0  ;;  %v2039_v51 = vadd.f32 %v17139_v48, %v2038_v18  ;;  %v16099_v8 = vld [vmem:[%s19327_s0 + $0x388] sm:$0xff]   ;;  %13879 = vmatprep.mubr.bf16.mxu0 %v16098_v41 }
 0x2aa   :  { %v2413_v62 = vmax.f32 %v2047_v61, 0.0  ;;  %13880 = vmatmul.mubr.bf16.gmra.mrb[224].mxu0 %v16099_v8  ;;  %v16104_v41 = vld [vmem:[%s19327_s0 + $0x3a8] sm:$0xff]   ;;  %v16092_v8 = vld [vmem:[%s19328_s3 + $0x90] sm:$0xff]  }
 0x2ab   :  { %v17493_v44 = vpack.c.bf16 %v2412_v25, %v2410_v52  ;;  %v2411_v49 = vmax.f32 %v2039_v51, 0.0 }
 0x2ad   :  { %19556 = vst [vmem:[#allocation138_spill] sm:$0xff] %v17493_v44  ;;  %v17495_v28 = vpack.c.bf16 %v2411_v49, %v2409_v36  ;;  %v17497_v37 = vpack.c.bf16 %v2413_v62, %v2411_v49  ;;  %v13877_v38 = vpop.f32.mrb[220].mxu0  ;;  %13987 = vmatprep.mubr.bf16.mxu1 %v17493_v44 }
 0x2ae   :  { %v2060_v50 = vadd.f32 %v17139_v48, %v13877_v38  ;;  %v2051_v58 = vpop.f32.mrb[221].mxu0 }
 0x2af   :  { %19557 = vst [vmem:[#allocation139_spill] sm:$0xff] %v17497_v37  ;;  %v2052_v25 = vadd.f32 %v17139_v48, %v2051_v58  ;;  %v13878_v36 = vpop.f32.mrb[222].mxu0  ;;  %v19559_v58 = vmov 0.0|0.0  }
 0x2b0   :  { %v2416_v61 = vmax.f32 %v2060_v50, 0.0  ;;  %v2063_v18 = vadd.f32 %v17139_v48, %v13878_v36  ;;  %v2054_v52 = vpop.f32.mrb[223].mxu0  ;;  %v16100_v50 = vld [vmem:[%s19327_s0 + $0x390] sm:$0xff]   ;;  %v19560_v36 = vmax.f32 %v16752_v29, 0.0  ;;  %v16094_v29 = vld [vmem:[%s19328_s3 + $0xa0] sm:$0xff]  }
 0x2b1   :  { %v2414_v51 = vmax.f32 %v2052_v25, 0.0  ;;  %v2055_v49 = vadd.f32 %v17139_v48, %v2054_v52  ;;  %v16102_v48 = vld [vmem:[%s19327_s0 + $0x398] sm:$0xff]   ;;  %13883 = vmatprep.mubr.bf16.mxu0 %v16100_v50  ;;  %v19399_v25 = vmov 0.0   ;;  %v19561_v50 = vmax.f32 %v16890_v6, 0.0 }
 0x2b2   :  { %v2417_v38 = vmax.f32 %v2063_v18, 0.0  ;;  %13884 = vmatmul.mubr.bf16.gmra.mrb[228].mxu0 %v16102_v48  ;;  %v16105_v18 = vld [vmem:[%s19327_s0 + $0x3b0] sm:$0xff]   ;;  %v16107_v52 = vld [vmem:[%s19327_s0 + $0x3b8] sm:$0xff]   ;;  %v19562_v6 = vmax.f32 %v17028_v53, 0.0  ;;  %v19564_v53 = vmax.f32 %v17276_v7, 0.0  ;;  %v19566_v7 = vmax.f32 %v17468_v46, 0.0 }
 0x2b3   :  { %v17510_v44 = vpack.c.bf16 %v2416_v61, %v2414_v51  ;;  %v2415_v37 = vmax.f32 %v2055_v49, 0.0  ;;  %v17545_v61 = vpack.c.bf16 %v19560_v36, %v19399_v25  ;;  %v16095_v51 = vld [vmem:[%s19328_s3 + $0xa8] sm:$0xff]   ;;  %v16096_v49 = vld [vmem:[%s19328_s3 + $0xb0] sm:$0xff]   ;;  %v17572_v48 = vpack.c.bf16 %v19561_v50, %v19399_v25  ;;  %v17660_v50 = vld [vmem:[%s19328_s3 + $0x100] sm:$0xff]  }
 0x2b4   :  { %v16108_v46 = vld [vmem:[%s19328_s3 + $0xd0] sm:$0xff]  }
 0x2b5   :  { %v17512_v24 = vpack.c.bf16 %v2415_v37, %v2413_v62  ;;  %v17514_v4 = vpack.c.bf16 %v2417_v38, %v2415_v37  ;;  %13988 = vmatmul.mubr.bf16.gmra.mrb[60].mxu1 %v17510_v44  ;;  %v16091_v62 = vld [vmem:[%s19328_s3 + $0x88] sm:$0xff]   ;;  %v16103_v37 = vld [vmem:[%s19327_s0 + $0x3a0] sm:$0xff]   ;;  %v16097_v38 = vld [vmem:[%s19328_s3 + $0xb8] sm:$0xff]  }
 0x2b6   :  { %14007 = vmatprep.mubr.bf16.mxu1 %v19559_v58  ;;  %13887 = vmatprep.mubr.bf16.mxu0 %v16103_v37  ;;  %v17584_v37 = vpack.c.bf16 %v19562_v6, %v19399_v25  ;;  %v17678_v6 = vld [vmem:[%s19329_s2] ss:$0 sm:$0xff] }
 0x2b7   :  { %19558 = vst [vmem:[#allocation140_spill] sm:$0xff] %v17514_v4 }
 0x2ba   :  { %13888 = vmatmul.mubr.bf16.gmra.mrb[232].mxu0 %v16104_v41  ;;  %v19563_v41 = vmax.f32 %v17174_v9, 0.0  ;;  %v19565_v9 = vmax.f32 %v17378_v13, 0.0  ;;  %v16106_v13 = vld [vmem:[%s19328_s3 + $0xc8] sm:$0xff]  }
 0x2bb   :  { %13891 = vmatprep.mubr.bf16.mxu0 %v16105_v18  ;;  %v17620_v18 = vpack.c.bf16 %v19566_v7, %v19399_v25 }
 0x2bc   :  { %v17611_v36 = vpack.c.bf16 %v19565_v9, %v19399_v25 }
 0x2bd   :  { %14008 = vmatmul.mubr.bf16.vlgmr.msra.gmra.mrb[0].mxu1 %v19559_v58 }
 0x2be   :  { %14072 = vmatpush3.bf16.msra.mxu1 %v17329_v60  ;;  %14011 = vmatprep.mubr.bf16.mxu1 %v19559_v58  ;;  %v16093_v60 = vld [vmem:[%s19328_s3 + $0x98] sm:$0xff]  }
 0x2bf   :  { %14073 = vmatprep.subr.bf16.mxu1 %v16091_v62 }
 0x2c2   :  { %14074 = vmatpush3.bf16.msra.mxu1 %v16091_v62  ;;  %13892 = vmatmul.mubr.bf16.gmra.mrb[236].mxu0 %v16107_v52  ;;  %v16101_v62 = vld [vmem:[%s19328_s3 + $0xc0] sm:$0xff]   ;;  %v16109_v52 = vld [vmem:[%s19328_s3 + $0xd8] sm:$0xff]  }
 0x2c3   :  { %14075 = vmatprep.subr.bf16.mxu1 %v16092_v8 }
 0x2c5   :  { %14012 = vmatmul.mubr.bf16.gmra.mrb[4].mxu1 %v19559_v58 }
 0x2c6   :  { %14015 = vmatprep.mubr.bf16.mxu1 %v17545_v61  ;;  %14076 = vmatpush3.bf16.msra.mxu1 %v16092_v8  ;;  %v17593_v8 = vpack.c.bf16 %v19563_v41, %v19399_v25 }
 0x2c7   :  { %14077 = vmatprep.subr.bf16.mxu1 %v16093_v60 }
 0x2ca   :  { %14078 = vmatpush3.bf16.msra.mxu1 %v16093_v60  ;;  %v17602_v60 = vpack.c.bf16 %v19564_v53, %v19399_v25 }
 0x2cb   :  { %14079 = vmatprep.subr.bf16.mxu1 %v16094_v29 }
 0x2cd   :  { %14016 = vmatmul.mubr.bf16.gmra.mrb[8].mxu1 %v16775_v54 }
 0x2ce   :  { %14019 = vmatprep.mubr.bf16.mxu1 %v16792_v12  ;;  %14080 = vmatpush3.bf16.msra.mxu1 %v16094_v29  ;;  %v16110_v29 = vld [vmem:[%s19328_s3 + $0xe0] sm:$0xff]  }
 0x2cf   :  { %14081 = vmatprep.subr.bf16.mxu1 %v16095_v51 }
 0x2d2   :  { %14082 = vmatpush3.bf16.msra.mxu1 %v16095_v51  ;;  %v16111_v51 = vld [vmem:[%s19328_s3 + $0xe8] sm:$0xff]  }
 0x2d3   :  { %14083 = vmatprep.subr.bf16.mxu1 %v16096_v49 }
 0x2d5   :  { %14020 = vmatmul.mubr.bf16.gmra.mrb[12].mxu1 %v16809_v40 }
 0x2d6   :  { %14023 = vmatprep.mubr.bf16.mxu1 %v17572_v48  ;;  %14084 = vmatpush3.bf16.msra.mxu1 %v16096_v49  ;;  %v16112_v49 = vld [vmem:[%s19328_s3 + $0xf0] sm:$0xff]  }
 0x2d7   :  { %14085 = vmatprep.subr.bf16.mxu1 %v16097_v38 }
 0x2da   :  { %14086 = vmatpush3.bf16.msra.mxu1 %v16097_v38  ;;  %v16113_v38 = vld [vmem:[%s19328_s3 + $0xf8] sm:$0xff]  }
 0x2db   :  { %14151 = vmatprep.subr.bf16.mxu1 %v16101_v62 }
 0x2dd   :  { %14024 = vmatmul.mubr.bf16.gmra.mrb[16].mxu1 %v16912_v56 }
 0x2de   :  { %14027 = vmatprep.mubr.bf16.mxu1 %v16929_v5 }
 0x2e5   :  { %14028 = vmatmul.mubr.bf16.gmra.mrb[20].mxu1 %v16946_v16 }
 0x2e6   :  { %14031 = vmatprep.mubr.bf16.mxu1 %v17584_v37 }
 0x2ed   :  { %14032 = vmatmul.mubr.bf16.gmra.mrb[24].mxu1 %v17050_v33 }
 0x2ee   :  { %14035 = vmatprep.mubr.bf16.mxu1 %v17067_v14 }
 0x2f5   :  { %14036 = vmatmul.mubr.bf16.gmra.mrb[28].mxu1 %v17084_v42 }
 0x2f6   :  { %14039 = vmatprep.mubr.bf16.mxu1 %v17593_v8 }
 0x2fd   :  { %14040 = vmatmul.mubr.bf16.gmra.mrb[32].mxu1 %v17193_v47 }
 0x2fe   :  { %14043 = vmatprep.mubr.bf16.mxu1 %v17204_v11 }
 0x305   :  { %14044 = vmatmul.mubr.bf16.gmra.mrb[36].mxu1 %v17218_v39 }
 0x306   :  { %14047 = vmatprep.mubr.bf16.mxu1 %v17602_v60 }
 0x30d   :  { %14048 = vmatmul.mubr.bf16.gmra.mrb[40].mxu1 %v17295_v35 }
 0x30e   :  { %14051 = vmatprep.mubr.bf16.mxu1 %v17306_v21 }
 0x315   :  { %14052 = vmatmul.mubr.bf16.gmra.mrb[44].mxu1 %v17320_v10 }
 0x316   :  { %14055 = vmatprep.mubr.bf16.mxu1 %v17611_v36 }
 0x31d   :  { %14056 = vmatmul.mubr.bf16.gmra.mrb[48].mxu1 %v17394_v3 }
 0x31e   :  { %14059 = vmatprep.mubr.bf16.mxu1 %v17405_v59 }
 0x325   :  { %14060 = vmatmul.mubr.bf16.gmra.mrb[52].mxu1 %v17416_v19 }
 0x326   :  { %14063 = vmatprep.mubr.bf16.mxu1 %v17620_v18 }
 0x32d   :  { %14064 = vmatmul.mubr.bf16.gmra.mrb[56].mxu1 %v17484_v30 }
 0x32e   :  { %14067 = vmatprep.mubr.bf16.mxu1 %v17495_v28 }
 0x335   :  { %14068 = vmatmul.mubr.bf16.gmra.mrb[60].mxu1 %v17512_v24 }
 0x336   :  { %14087 = vmatprep.mubr.bf16.mxu1 %v19559_v58 }
 0x33d   :  { %14088 = vmatmul.mubr.bf16.vlgmr.msra.gmra.mrb[0].mxu1 %v19559_v58 }
 0x33e   :  { %14152 = vmatpush3.bf16.msra.mxu1 %v16101_v62  ;;  %14091 = vmatprep.mubr.bf16.mxu1 %v19559_v58 }
 0x33f   :  { %14153 = vmatprep.subr.bf16.mxu1 %v16106_v13 }
 0x342   :  { %14154 = vmatpush3.bf16.msra.mxu1 %v16106_v13 }
 0x343   :  { %14155 = vmatprep.subr.bf16.mxu1 %v16108_v46 }
 0x345   :  { %14092 = vmatmul.mubr.bf16.gmra.mrb[4].mxu1 %v19559_v58 }
 0x346   :  { %14095 = vmatprep.mubr.bf16.mxu1 %v16760_v34  ;;  %14156 = vmatpush3.bf16.msra.mxu1 %v16108_v46 }
 0x347   :  { %14157 = vmatprep.subr.bf16.mxu1 %v16109_v52 }
 0x34a   :  { %14158 = vmatpush3.bf16.msra.mxu1 %v16109_v52 }
 0x34b   :  { %14159 = vmatprep.subr.bf16.mxu1 %v16110_v29 }
 0x34d   :  { %14096 = vmatmul.mubr.bf16.gmra.mrb[8].mxu1 %v16777_v55 }
 0x34e   :  { %14099 = vmatprep.mubr.bf16.mxu1 %v16794_v15  ;;  %14160 = vmatpush3.bf16.msra.mxu1 %v16110_v29  ;;  %v19567_v29 = vld [vmem:[#allocation99_spill] sm:$0xff] }
 0x34f   :  { %14161 = vmatprep.subr.bf16.mxu1 %v16111_v51 }
 0x352   :  { %14162 = vmatpush3.bf16.msra.mxu1 %v16111_v51 }
 0x353   :  { %14163 = vmatprep.subr.bf16.mxu1 %v16112_v49 }
 0x355   :  { %14100 = vmatmul.mubr.bf16.gmra.mrb[12].mxu1 %v16811_v43 }
 0x356   :  { %14103 = vmatprep.mubr.bf16.mxu1 %v16897_v17  ;;  %14164 = vmatpush3.bf16.msra.mxu1 %v16112_v49 }
 0x357   :  { %14165 = vmatprep.subr.bf16.mxu1 %v16113_v38 }
 0x35a   :  { %14166 = vmatpush3.bf16.msra.mxu1 %v16113_v38 }
 0x35b   :  { %14231 = vmatprep.subr.bf16.mxu1 %v17660_v50 }
 0x35d   :  { %14104 = vmatmul.mubr.bf16.gmra.mrb[16].mxu1 %v16914_v1 }
 0x35e   :  { %14107 = vmatprep.mubr.bf16.mxu1 %v16931_v20  ;;  %v19573_v20 = vld [vmem:[#allocation135_spill] sm:$0xff] }
 0x365   :  { %14108 = vmatmul.mubr.bf16.gmra.mrb[20].mxu1 %v16948_v26 }
 0x366   :  { %14111 = vmatprep.mubr.bf16.mxu1 %v17035_v45 }
 0x36d   :  { %14112 = vmatmul.mubr.bf16.gmra.mrb[24].mxu1 %v17052_v32  ;;  %v19570_v32 = vld [vmem:[#allocation117_spill] sm:$0xff] }
 0x36e   :  { %14115 = vmatprep.mubr.bf16.mxu1 %v17069_v22 }
 0x375   :  { %14116 = vmatmul.mubr.bf16.gmra.mrb[28].mxu1 %v17086_v31 }
 0x376   :  { %14119 = vmatprep.mubr.bf16.mxu1 %v17181_v2  ;;  %v19569_v2 = vld [vmem:[#allocation115_spill] sm:$0xff] }
 0x37d   :  { %14120 = vmatmul.mubr.bf16.gmra.mrb[32].mxu1 %v17195_v27  ;;  %v13881_v62 = vpop.f32.mrb[224].mxu0 }
 0x37e   :  { %14123 = vmatprep.mubr.bf16.mxu1 %v17206_v63  ;;  %v2076_v41 = vadd.f32 %v17678_v6, %v13881_v62  ;;  %v2067_v53 = vpop.f32.mrb[225].mxu0  ;;  %v19568_v63 = vld [vmem:[#allocation101_spill] sm:$0xff] }
 0x37f   :  { %v2068_v9 = vadd.f32 %v17678_v6, %v2067_v53  ;;  %v13882_v52 = vpop.f32.mrb[226].mxu0 }
 0x380   :  { %v2420_v7 = vmax.f32 %v2076_v41, 0.0  ;;  %v2079_v51 = vadd.f32 %v17678_v6, %v13882_v52  ;;  %v2070_v49 = vpop.f32.mrb[227].mxu0 }
 0x381   :  { %v2418_v13 = vmax.f32 %v2068_v9, 0.0  ;;  %v17688_v38 = vadd.f32 %v17678_v6, %v2070_v49 }
 0x382   :  { %v2421_v62 = vmax.f32 %v2079_v51, 0.0 }
 0x383   :  { %v17682_v46 = vpack.c.bf16 %v2420_v7, %v2418_v13  ;;  %v19408_v41 = vmax.f32 %v17688_v38, 0.0 }
 0x385   :  { %14124 = vmatmul.mubr.bf16.gmra.mrb[36].mxu1 %v17220_v0  ;;  %v13885_v25 = vpop.f32.mrb[228].mxu0  ;;  %v17696_v52 = vpack.c.bf16 %v2421_v62, %v19408_v41 }
 0x386   :  { %14127 = vmatprep.mubr.bf16.mxu1 %v17283_v57  ;;  %v2092_v57 = vadd.f32 %v17678_v6, %v13885_v25  ;;  %v2083_v53 = vpop.f32.mrb[229].mxu0 }
 0x387   :  { %v2084_v9 = vadd.f32 %v17678_v6, %v2083_v53  ;;  %v13886_v7 = vpop.f32.mrb[230].mxu0 }
 0x388   :  { %v2424_v13 = vmax.f32 %v2092_v57, 0.0 }
 0x389   :  { %v2422_v49 = vmax.f32 %v2084_v9, 0.0 }
 0x38b   :  { %v17700_v25 = vpack.c.bf16 %v2424_v13, %v2422_v49 }
 0x38d   :  { %14128 = vmatmul.mubr.bf16.gmra.mrb[40].mxu1 %v17297_v23  ;;  %v2095_v23 = vadd.f32 %v17678_v6, %v13886_v7 }
 0x38e   :  { %14131 = vmatprep.mubr.bf16.mxu1 %v19567_v29  ;;  %v2086_v29 = vpop.f32.mrb[231].mxu0 }
 0x38f   :  { %v2087_v0 = vadd.f32 %v17678_v6, %v2086_v29  ;;  %v2425_v51 = vmax.f32 %v2095_v23, 0.0  ;;  %v13889_v53 = vpop.f32.mrb[232].mxu0 }
 0x390   :  { %v2108_v31 = vadd.f32 %v17678_v6, %v13889_v53  ;;  %v2099_v41 = vpop.f32.mrb[233].mxu0 }
 0x391   :  { %v2423_v27 = vmax.f32 %v2087_v0, 0.0  ;;  %v2100_v9 = vadd.f32 %v17678_v6, %v2099_v41  ;;  %v13890_v22 = vpop.f32.mrb[234].mxu0 }
 0x392   :  { %v2428_v29 = vmax.f32 %v2108_v31, 0.0  ;;  %v2111_v23 = vadd.f32 %v17678_v6, %v13890_v22 }
 0x393   :  { %v17703_v57 = vpack.c.bf16 %v2423_v27, %v2421_v62  ;;  %v17705_v7 = vpack.c.bf16 %v2425_v51, %v2423_v27  ;;  %v2426_v13 = vmax.f32 %v2100_v9, 0.0  ;;  %v19571_v27 = vld [vmem:[#allocation119_spill] sm:$0xff] }
 0x394   :  { %v2429_v49 = vmax.f32 %v2111_v23, 0.0 }
 0x395   :  { %14132 = vmatmul.mubr.bf16.gmra.mrb[44].mxu1 %v19568_v63  ;;  %v2102_v63 = vpop.f32.mrb[235].mxu0 }
 0x396   :  { %14135 = vmatprep.mubr.bf16.mxu1 %v19569_v2  ;;  %v2103_v0 = vadd.f32 %v17678_v6, %v2102_v63  ;;  %v17711_v2 = vpack.c.bf16 %v2428_v29, %v2426_v13  ;;  %v13893_v41 = vpop.f32.mrb[236].mxu0 }
 0x397   :  { %v2124_v31 = vadd.f32 %v17678_v6, %v13893_v41  ;;  %v2115_v22 = vpop.f32.mrb[237].mxu0 }
 0x398   :  { %v2427_v62 = vmax.f32 %v2103_v0, 0.0  ;;  %v2116_v9 = vadd.f32 %v17678_v6, %v2115_v22  ;;  %v13894_v26 = vpop.f32.mrb[238].mxu0  ;;  %v19574_v22 = vld [vmem:[#allocation137_spill] sm:$0xff] }
 0x399   :  { %v2432_v63 = vmax.f32 %v2124_v31, 0.0  ;;  %v2127_v29 = vadd.f32 %v17678_v6, %v13894_v26  ;;  %v2118_v23 = vpop.f32.mrb[239].mxu0  ;;  %v19575_v31 = vld [vmem:[#allocation139_spill] sm:$0xff]  ;;  %v19576_v26 = vmov 0.0  }
 0x39a   :  { %v17715_v53 = vpack.c.bf16 %v2427_v62, %v2425_v51  ;;  %v17717_v45 = vpack.c.bf16 %v2429_v49, %v2427_v62  ;;  %v2430_v13 = vmax.f32 %v2116_v9, 0.0  ;;  %v2119_v0 = vadd.f32 %v17678_v6, %v2118_v23  ;;  %v19572_v62 = vld [vmem:[#allocation121_spill] sm:$0xff]  ;;  %v19577_v9 = vld [vmem:[#allocation6_spill] sm:$0xff] }
 0x39b   :  { %v19578_v17 = vmax.f32 %v19577_v9, 0.0  ;;  %v19583_v9 = vld [vmem:[#allocation16_spill] sm:$0xff] }
 0x39c   :  { %v2431_v51 = vmax.f32 %v2119_v0, 0.0 }
 0x39d   :  { %14136 = vmatmul.mubr.bf16.gmra.mrb[48].mxu1 %v19570_v32  ;;  %v2433_v32 = vmax.f32 %v2127_v29, 0.0  ;;  %v4514_v23 = vpack.c.bf16 %v19578_v17, %v19576_v26  ;;  %v19579_v29 = vld [vmem:[#allocation10_spill] sm:$0xff]  ;;  %v16117_v17 = vld [vmem:[%s19328_s3 + $0x118] sm:$0xff]  }
 0x39e   :  { %14139 = vmatprep.mubr.bf16.mxu1 %v19571_v27  ;;  %v17723_v27 = vpack.c.bf16 %v2432_v63, %v2430_v13  ;;  %v17727_v41 = vpack.c.bf16 %v2431_v51, %v2429_v49  ;;  %v16115_v63 = vld [vmem:[%s19328_s3 + $0x108] sm:$0xff]   ;;  %v16116_v49 = vld [vmem:[%s19328_s3 + $0x110] sm:$0xff]   ;;  %v19581_v13 = vld [vmem:[#allocation22_spill] sm:$0xff] }
 0x39f   :  { %v17729_v1 = vpack.c.bf16 %v2433_v32, %v2431_v51  ;;  %v19580_v32 = vld [vmem:[#allocation13_spill] sm:$0xff]  ;;  %v19582_v0 = vmax.f32 %v19581_v13, 0.0 }
 0x3a1   :  { %v4518_v51 = vpack.c.bf16 %v19582_v0, %v19576_v26 }
 0x3a5   :  { %14140 = vmatmul.mubr.bf16.gmra.mrb[52].mxu1 %v19572_v62 }
 0x3a6   :  { %14143 = vmatprep.mubr.bf16.mxu1 %v19573_v20 }
 0x3ad   :  { %14144 = vmatmul.mubr.bf16.gmra.mrb[56].mxu1 %v19574_v22 }
 0x3ae   :  { %14147 = vmatprep.mubr.bf16.mxu1 %v19575_v31  ;;  %v19598_v31 = vld [vmem:[#allocation72_spill] sm:$0xff] }
 0x3b5   :  { %14148 = vmatmul.mubr.bf16.gmra.mrb[60].mxu1 %v17514_v4 }
 0x3b6   :  { %14167 = vmatprep.mubr.bf16.mxu1 %v4514_v23  ;;  %v16119_v23 = vld [vmem:[%s19328_s3 + $0x128] sm:$0xff]  }
 0x3bd   :  { %14168 = vmatmul.mubr.bf16.vlgmr.msra.gmra.mrb[0].mxu1 %v19579_v29  ;;  %v19585_v29 = vld [vmem:[#allocation29_spill] sm:$0xff] }
 0x3be   :  { %14232 = vmatpush3.bf16.msra.mxu1 %v17660_v50  ;;  %14171 = vmatprep.mubr.bf16.mxu1 %v19580_v32  ;;  %v16118_v50 = vld [vmem:[%s19328_s3 + $0x120] sm:$0xff]   ;;  %v16120_v32 = vld [vmem:[%s19328_s3 + $0x130] sm:$0xff]  }
 0x3bf   :  { %14233 = vmatprep.subr.bf16.mxu1 %v16115_v63 }
 0x3c2   :  { %14234 = vmatpush3.bf16.msra.mxu1 %v16115_v63  ;;  %v19584_v63 = vld [vmem:[#allocation26_spill] sm:$0xff] }
 0x3c3   :  { %14235 = vmatprep.subr.bf16.mxu1 %v16116_v49 }
 0x3c5   :  { %14172 = vmatmul.mubr.bf16.gmra.mrb[4].mxu1 %v19583_v9  ;;  %v16122_v9 = vld [vmem:[%s19328_s3 + $0x140] sm:$0xff]  }
 0x3c6   :  { %14175 = vmatprep.mubr.bf16.mxu1 %v4518_v51  ;;  %14236 = vmatpush3.bf16.msra.mxu1 %v16116_v49  ;;  %v16121_v49 = vld [vmem:[%s19328_s3 + $0x138] sm:$0xff]   ;;  %v19588_v51 = vld [vmem:[#allocation32_spill] sm:$0xff] }
 0x3c7   :  { %14237 = vmatprep.subr.bf16.mxu1 %v16117_v17 }
 0x3ca   :  { %14238 = vmatpush3.bf16.msra.mxu1 %v16117_v17  ;;  %v19586_v17 = vld [vmem:[#allocation42_spill] sm:$0xff] }
 0x3cb   :  { %14239 = vmatprep.subr.bf16.mxu1 %v16118_v50  ;;  %v19587_v13 = vmax.f32 %v19586_v17, 0.0 }
 0x3cd   :  { %14176 = vmatmul.mubr.bf16.gmra.mrb[8].mxu1 %v19584_v63  ;;  %v4522_v0 = vpack.c.bf16 %v19587_v13, %v19576_v26  ;;  %v19591_v63 = vld [vmem:[#allocation62_spill] sm:$0xff]  ;;  %v19593_v13 = vld [vmem:[#allocation52_spill] sm:$0xff] }
 0x3ce   :  { %14179 = vmatprep.mubr.bf16.mxu1 %v19585_v29  ;;  %14240 = vmatpush3.bf16.msra.mxu1 %v16118_v50  ;;  %v19589_v50 = vld [vmem:[#allocation46_spill] sm:$0xff]  ;;  %v19592_v29 = vmax.f32 %v19591_v63, 0.0 }
 0x3cf   :  { %14241 = vmatprep.subr.bf16.mxu1 %v16119_v23  ;;  %v19601_v63 = vld [vmem:[#allocation102_spill] sm:$0xff] }
 0x3d0   :  { %v4526_v17 = vpack.c.bf16 %v19592_v29, %v19576_v26  ;;  %v19602_v29 = vmax.f32 %v19601_v63, 0.0  ;;  %v19611_v63 = vmax.f32 %v17688_v38, 0.0  ;;  %v19613_v38 = vld [vmem:[#allocation7_spill] sm:$0xff] }
 0x3d2   :  { %14242 = vmatpush3.bf16.msra.mxu1 %v16119_v23  ;;  %v19590_v23 = vld [vmem:[#allocation49_spill] sm:$0xff] }
 0x3d3   :  { %14243 = vmatprep.subr.bf16.mxu1 %v16120_v32 }
 0x3d5   :  { %14180 = vmatmul.mubr.bf16.gmra.mrb[12].mxu1 %v19588_v51  ;;  %v19596_v51 = vld [vmem:[#allocation82_spill] sm:$0xff] }
 0x3d6   :  { %14183 = vmatprep.mubr.bf16.mxu1 %v4522_v0  ;;  %14244 = vmatpush3.bf16.msra.mxu1 %v16120_v32  ;;  %v19594_v0 = vld [vmem:[#allocation66_spill] sm:$0xff]  ;;  %v19595_v32 = vld [vmem:[#allocation69_spill] sm:$0xff]  ;;  %v19597_v4 = vmax.f32 %v19596_v51, 0.0 }
 0x3d7   :  { %14245 = vmatprep.subr.bf16.mxu1 %v16121_v49 }
 0x3da   :  { %14246 = vmatpush3.bf16.msra.mxu1 %v16121_v49  ;;  %v4530_v49 = vpack.c.bf16 %v19597_v4, %v19576_v26  ;;  %v19606_v4 = vld [vmem:[#allocation122_spill] sm:$0xff] }
 0x3db   :  { %14311 = vmatprep.subr.bf16.mxu1 %v16122_v9  ;;  %v19607_v51 = vmax.f32 %v19606_v4, 0.0  ;;  %v19614_v4 = vld [vmem:[#allocation9_spill] sm:$0xff] }
 0x3dd   :  { %14184 = vmatmul.mubr.bf16.gmra.mrb[16].mxu1 %v19589_v50  ;;  %v19599_v50 = vld [vmem:[#allocation86_spill] sm:$0xff] }
 0x3de   :  { %14187 = vmatprep.mubr.bf16.mxu1 %v19590_v23  ;;  %v19600_v23 = vld [vmem:[#allocation89_spill] sm:$0xff] }
 0x3e5   :  { %14188 = vmatmul.mubr.bf16.gmra.mrb[20].mxu1 %v19593_v13  ;;  %v4534_v13 = vpack.c.bf16 %v19602_v29, %v19576_v26  ;;  %v4542_v29 = vpack.c.bf16 %v19611_v63, %v19576_v26  ;;  %v16137_v63 = vld [vmem:[%s19327_s0 + $0x3f0] sm:$0xff]  }
 0x3e6   :  { %14191 = vmatprep.mubr.bf16.mxu1 %v4526_v17  ;;  %v19603_v17 = vld [vmem:[#allocation92_spill] sm:$0xff] }
 0x3ed   :  { %14192 = vmatmul.mubr.bf16.gmra.mrb[24].mxu1 %v19594_v0  ;;  %v19604_v0 = vld [vmem:[#allocation106_spill] sm:$0xff] }
 0x3ee   :  { %14195 = vmatprep.mubr.bf16.mxu1 %v19595_v32  ;;  %v19605_v32 = vld [vmem:[#allocation109_spill] sm:$0xff] }
 0x3f5   :  { %14196 = vmatmul.mubr.bf16.gmra.mrb[28].mxu1 %v19598_v31  ;;  %v4538_v31 = vpack.c.bf16 %v19607_v51, %v19576_v26  ;;  %v16135_v51 = vld [vmem:[%s19327_s0 + $0x3e0] sm:$0xff]  }
 0x3f6   :  { %14199 = vmatprep.mubr.bf16.mxu1 %v4530_v49  ;;  %v19608_v49 = vld [vmem:[#allocation112_spill] sm:$0xff] }
 0x3fd   :  { %14200 = vmatmul.mubr.bf16.gmra.mrb[32].mxu1 %v19599_v50  ;;  %v19609_v50 = vld [vmem:[#allocation126_spill] sm:$0xff] }
 0x3fe   :  { %14203 = vmatprep.mubr.bf16.mxu1 %v19600_v23  ;;  %v19610_v23 = vld [vmem:[#allocation129_spill] sm:$0xff] }
 0x405   :  { %14204 = vmatmul.mubr.bf16.gmra.mrb[36].mxu1 %v19603_v17  ;;  %v16130_v17 = vld [vmem:[%s19327_s0 + $0x3c0] sm:$0xff]  }
 0x406   :  { %14207 = vmatprep.mubr.bf16.mxu1 %v4534_v13  ;;  %v19612_v13 = vld [vmem:[#allocation132_spill] sm:$0xff]  ;;  %13895 = vmatprep.mubr.bf16.mxu0 %v16130_v17  ;;  %v16127_v17 = vld [vmem:[%s19328_s3 + $0x168] sm:$0xff]  }
 0x40d   :  { %14208 = vmatmul.mubr.bf16.gmra.mrb[40].mxu1 %v19604_v0  ;;  %v16131_v0 = vld [vmem:[%s19327_s0 + $0x3c8] sm:$0xff]  }
 0x40e   :  { %14211 = vmatprep.mubr.bf16.mxu1 %v19605_v32  ;;  %13896 = vmatmul.mubr.bf16.gmra.mrb[240].mxu0 %v16131_v0  ;;  %v16123_v32 = vld [vmem:[%s19328_s3 + $0x148] sm:$0xff]   ;;  %v19618_v0 = vld [vmem:[#allocation25_spill] sm:$0xff] }
 0x415   :  { %14212 = vmatmul.mubr.bf16.gmra.mrb[44].mxu1 %v19608_v49  ;;  %v16124_v49 = vld [vmem:[%s19328_s3 + $0x150] sm:$0xff]  }
 0x416   :  { %14215 = vmatprep.mubr.bf16.mxu1 %v4538_v31  ;;  %v16136_v31 = vld [vmem:[%s19327_s0 + $0x3e8] sm:$0xff]  }
 0x41d   :  { %14216 = vmatmul.mubr.bf16.gmra.mrb[48].mxu1 %v19609_v50  ;;  %v19616_v50 = vld [vmem:[#allocation15_spill] sm:$0xff] }
 0x41e   :  { %14219 = vmatprep.mubr.bf16.mxu1 %v19610_v23  ;;  %v19617_v23 = vld [vmem:[#allocation23_spill] sm:$0xff] }
 0x425   :  { %14220 = vmatmul.mubr.bf16.gmra.mrb[52].mxu1 %v19612_v13  ;;  %v16126_v13 = vld [vmem:[%s19328_s3 + $0x160] sm:$0xff]  }
 0x426   :  { %14223 = vmatprep.mubr.bf16.mxu1 %v4542_v29  ;;  %v16139_v29 = vld [vmem:[%s19327_s0 + $0x3f8] sm:$0xff]  }
 0x42d   :  { %14224 = vmatmul.mubr.bf16.gmra.mrb[56].mxu1 %v17703_v57  ;;  %v16132_v57 = vld [vmem:[%s19327_s0 + $0x3d0] sm:$0xff]  }
 0x42e   :  { %14227 = vmatprep.mubr.bf16.mxu1 %v17715_v53  ;;  %v16134_v53 = vld [vmem:[%s19327_s0 + $0x3d8] sm:$0xff]   ;;  %13899 = vmatprep.mubr.bf16.mxu0 %v16132_v57  ;;  %v16128_v57 = vld [vmem:[%s19328_s3 + $0x170] sm:$0xff]  }
 0x42f   :  { %13900 = vmatmul.mubr.bf16.gmra.mrb[244].mxu0 %v16134_v53  ;;  %v16129_v53 = vld [vmem:[%s19328_s3 + $0x178] sm:$0xff]  }
 0x430   :  { %13903 = vmatprep.mubr.bf16.mxu0 %v16135_v51  ;;  %v19622_v51 = vld [vmem:[#allocation45_spill] sm:$0xff] }
 0x435   :  { %14228 = vmatmul.mubr.bf16.gmra.mrb[60].mxu1 %v17727_v41  ;;  %v19615_v41 = vld [vmem:[#allocation12_spill] sm:$0xff] }
 0x436   :  { %14247 = vmatprep.mubr.bf16.mxu1 %v19613_v38  ;;  %v19619_v38 = vld [vmem:[#allocation28_spill] sm:$0xff] }
 0x437   :  { %13904 = vmatmul.mubr.bf16.gmra.mrb[248].mxu0 %v16136_v31  ;;  %v19623_v31 = vld [vmem:[#allocation48_spill] sm:$0xff] }
 0x438   :  { %13907 = vmatprep.mubr.bf16.mxu0 %v16137_v63  ;;  %v19628_v63 = vld [vmem:[#allocation71_spill] sm:$0xff] }
 0x43d   :  { %14248 = vmatmul.mubr.bf16.vlgmr.msra.gmra.mrb[0].mxu1 %v19614_v4  ;;  %v19621_v4 = vld [vmem:[#allocation43_spill] sm:$0xff] }
 0x43e   :  { %14312 = vmatpush3.bf16.msra.mxu1 %v16122_v9  ;;  %14251 = vmatprep.mubr.bf16.mxu1 %v19615_v41  ;;  %v16125_v9 = vld [vmem:[%s19328_s3 + $0x158] sm:$0xff]   ;;  %v16133_v41 = vld [vmem:[%s19328_s3 + $0x180] sm:$0xff]  }
 0x43f   :  { %14313 = vmatprep.subr.bf16.mxu1 %v16123_v32  ;;  %13908 = vmatmul.mubr.bf16.gmra.mrb[252].mxu0 %v16139_v29  ;;  %v19629_v29 = vld [vmem:[#allocation83_spill] sm:$0xff] }
 0x440   :  { %14647 = vmatprep.mubr.bf16.mxu0 %v19559_v58 }
 0x442   :  { %14314 = vmatpush3.bf16.msra.mxu1 %v16123_v32  ;;  %v19620_v32 = vld [vmem:[#allocation31_spill] sm:$0xff] }
 0x443   :  { %14315 = vmatprep.subr.bf16.mxu1 %v16124_v49 }
 0x445   :  { %14252 = vmatmul.mubr.bf16.gmra.mrb[4].mxu1 %v19616_v50  ;;  %v19626_v50 = vld [vmem:[#allocation65_spill] sm:$0xff] }
 0x446   :  { %14255 = vmatprep.mubr.bf16.mxu1 %v19617_v23  ;;  %14316 = vmatpush3.bf16.msra.mxu1 %v16124_v49  ;;  %v19624_v49 = vld [vmem:[#allocation51_spill] sm:$0xff]  ;;  %v19627_v23 = vld [vmem:[#allocation68_spill] sm:$0xff] }
 0x447   :  { %14317 = vmatprep.subr.bf16.mxu1 %v16125_v9 }
 0x44a   :  { %14318 = vmatpush3.bf16.msra.mxu1 %v16125_v9  ;;  %v19625_v9 = vld [vmem:[#allocation63_spill] sm:$0xff] }
 0x44b   :  { %14319 = vmatprep.subr.bf16.mxu1 %v16126_v13 }
 0x44d   :  { %14256 = vmatmul.mubr.bf16.gmra.mrb[8].mxu1 %v19618_v0  ;;  %v19632_v0 = vld [vmem:[#allocation91_spill] sm:$0xff] }
 0x44e   :  { %14259 = vmatprep.mubr.bf16.mxu1 %v19619_v38  ;;  %14320 = vmatpush3.bf16.msra.mxu1 %v16126_v13  ;;  %v19630_v13 = vld [vmem:[#allocation85_spill] sm:$0xff]  ;;  %v19633_v38 = vld [vmem:[#allocation103_spill] sm:$0xff] }
 0x44f   :  { %14321 = vmatprep.subr.bf16.mxu1 %v16127_v17 }
 0x452   :  { %14322 = vmatpush3.bf16.msra.mxu1 %v16127_v17  ;;  %v19631_v17 = vld [vmem:[#allocation88_spill] sm:$0xff] }
 0x453   :  { %14323 = vmatprep.subr.bf16.mxu1 %v16128_v57 }
 0x455   :  { %14260 = vmatmul.mubr.bf16.gmra.mrb[12].mxu1 %v19620_v32  ;;  %v19636_v32 = vld [vmem:[#allocation111_spill] sm:$0xff] }
 0x456   :  { %14263 = vmatprep.mubr.bf16.mxu1 %v19621_v4  ;;  %14324 = vmatpush3.bf16.msra.mxu1 %v16128_v57  ;;  %v19634_v57 = vld [vmem:[#allocation105_spill] sm:$0xff]  ;;  %v19637_v4 = vld [vmem:[#allocation123_spill] sm:$0xff] }
 0x457   :  { %14325 = vmatprep.subr.bf16.mxu1 %v16129_v53 }
 0x45a   :  { %14326 = vmatpush3.bf16.msra.mxu1 %v16129_v53  ;;  %v19635_v53 = vld [vmem:[#allocation108_spill] sm:$0xff] }
 0x45b   :  { %14391 = vmatprep.subr.bf16.mxu1 %v16133_v41 }
 0x45d   :  { %14264 = vmatmul.mubr.bf16.gmra.mrb[16].mxu1 %v19622_v51  ;;  %v19638_v51 = vld [vmem:[#allocation125_spill] sm:$0xff] }
 0x45e   :  { %14267 = vmatprep.mubr.bf16.mxu1 %v19623_v31  ;;  %v19639_v31 = vld [vmem:[#allocation128_spill] sm:$0xff] }
 0x465   :  { %14268 = vmatmul.mubr.bf16.gmra.mrb[20].mxu1 %v19624_v49  ;;  %v19640_v49 = vld [vmem:[#allocation131_spill] sm:$0xff] }
 0x466   :  { %14271 = vmatprep.mubr.bf16.mxu1 %v19625_v9  ;;  %v19641_v9 = vld [vmem:[#allocation8_spill] sm:$0xff] }
 0x46d   :  { %14272 = vmatmul.mubr.bf16.gmra.mrb[24].mxu1 %v19626_v50  ;;  %v16138_v50 = vld [vmem:[%s19328_s3 + $0x188] sm:$0xff]  }
 0x46e   :  { %14275 = vmatprep.mubr.bf16.mxu1 %v19627_v23  ;;  %v19642_v23 = vld [vmem:[#allocation11_spill] sm:$0xff] }
 0x475   :  { %14276 = vmatmul.mubr.bf16.gmra.mrb[28].mxu1 %v19628_v63  ;;  %v19643_v63 = vld [vmem:[#allocation14_spill] sm:$0xff] }
 0x476   :  { %14279 = vmatprep.mubr.bf16.mxu1 %v19629_v29  ;;  %v16143_v29 = vld [vmem:[%s19328_s3 + $0x1a8] sm:$0xff]  }
 0x47d   :  { %14280 = vmatmul.mubr.bf16.gmra.mrb[32].mxu1 %v19630_v13  ;;  %v19646_v13 = vld [vmem:[#allocation27_spill] sm:$0xff] }
 0x47e   :  { %14283 = vmatprep.mubr.bf16.mxu1 %v19631_v17  ;;  %v19647_v17 = vld [vmem:[#allocation30_spill] sm:$0xff] }
 0x485   :  { %14284 = vmatmul.mubr.bf16.gmra.mrb[36].mxu1 %v19632_v0  ;;  %v16144_v0 = vld [vmem:[%s19328_s3 + $0x1b0] sm:$0xff]  }
 0x486   :  { %14287 = vmatprep.mubr.bf16.mxu1 %v19633_v38  ;;  %v16145_v38 = vld [vmem:[%s19328_s3 + $0x1b8] sm:$0xff]  }
 0x48d   :  { %14288 = vmatmul.mubr.bf16.gmra.mrb[40].mxu1 %v19634_v57  ;;  %v19648_v57 = vld [vmem:[#allocation33_spill] sm:$0xff] }
 0x48e   :  { %14291 = vmatprep.mubr.bf16.mxu1 %v19635_v53  ;;  %v19649_v53 = vld [vmem:[#allocation44_spill] sm:$0xff] }
 0x495   :  { %14292 = vmatmul.mubr.bf16.gmra.mrb[44].mxu1 %v19636_v32  ;;  %v17921_v32 = vld [vmem:[%s19328_s3 + $0x1c0] sm:$0xff]  }
 0x496   :  { %14295 = vmatprep.mubr.bf16.mxu1 %v19637_v4  ;;  %v16148_v4 = vld [vmem:[%s19330_s5 + $0x40] sm:$0xff]  }
 0x497   :  { %14631 = vmatprep.subr.bf16.mxu0 %v16148_v4 }
 0x498   :  { %14632 = vmatpush3.bf16.msra.mxu0 %v16148_v4  ;;  %v19662_v4 = vld [vmem:[#allocation107_spill] sm:$0xff] }
 0x49d   :  { %14296 = vmatmul.mubr.bf16.gmra.mrb[48].mxu1 %v19638_v51  ;;  %v19650_v51 = vld [vmem:[#allocation47_spill] sm:$0xff] }
 0x49e   :  { %14299 = vmatprep.mubr.bf16.mxu1 %v19639_v31  ;;  %v19651_v31 = vld [vmem:[#allocation50_spill] sm:$0xff] }
 0x4a5   :  { %14300 = vmatmul.mubr.bf16.gmra.mrb[52].mxu1 %v19640_v49  ;;  %v19652_v49 = vld [vmem:[#allocation53_spill] sm:$0xff] }
 0x4a6   :  { %14303 = vmatprep.mubr.bf16.mxu1 %v17682_v46  ;;  %v16140_v46 = vld [vmem:[%s19328_s3 + $0x190] sm:$0xff]  }
 0x4ad   :  { %14304 = vmatmul.mubr.bf16.gmra.mrb[56].mxu1 %v17700_v25  ;;  %v19644_v25 = vld [vmem:[#allocation17_spill] sm:$0xff] }
 0x4ae   :  { %14307 = vmatprep.mubr.bf16.mxu1 %v17711_v2  ;;  %v16141_v2 = vld [vmem:[%s19328_s3 + $0x198] sm:$0xff]  }
 0x4b5   :  { %14308 = vmatmul.mubr.bf16.gmra.mrb[60].mxu1 %v17723_v27  ;;  %v19645_v27 = vld [vmem:[#allocation24_spill] sm:$0xff] }
 0x4b6   :  { %14327 = vmatprep.mubr.bf16.mxu1 %v19641_v9  ;;  %v19653_v9 = vld [vmem:[#allocation64_spill] sm:$0xff] }
 0x4bd   :  { %14328 = vmatmul.mubr.bf16.vlgmr.msra.gmra.mrb[0].mxu1 %v19642_v23  ;;  %v19655_v23 = vld [vmem:[#allocation70_spill] sm:$0xff] }
 0x4be   :  { %14392 = vmatpush3.bf16.msra.mxu1 %v16133_v41  ;;  %14331 = vmatprep.mubr.bf16.mxu1 %v19643_v63  ;;  %v16142_v41 = vld [vmem:[%s19328_s3 + $0x1a0] sm:$0xff]   ;;  %v19656_v63 = vld [vmem:[#allocation73_spill] sm:$0xff] }
 0x4bf   :  { %14393 = vmatprep.subr.bf16.mxu1 %v16138_v50 }
 0x4c2   :  { %14394 = vmatpush3.bf16.msra.mxu1 %v16138_v50  ;;  %v19654_v50 = vld [vmem:[#allocation67_spill] sm:$0xff] }
 0x4c3   :  { %14395 = vmatprep.subr.bf16.mxu1 %v16140_v46 }
 0x4c5   :  { %14332 = vmatmul.mubr.bf16.gmra.mrb[4].mxu1 %v19644_v25  ;;  %v19659_v25 = vld [vmem:[#allocation90_spill] sm:$0xff] }
 0x4c6   :  { %14335 = vmatprep.mubr.bf16.mxu1 %v19645_v27  ;;  %14396 = vmatpush3.bf16.msra.mxu1 %v16140_v46  ;;  %v19657_v46 = vld [vmem:[#allocation84_spill] sm:$0xff]  ;;  %v19660_v27 = vld [vmem:[#allocation93_spill] sm:$0xff] }
 0x4c7   :  { %14397 = vmatprep.subr.bf16.mxu1 %v16141_v2 }
 0x4ca   :  { %14398 = vmatpush3.bf16.msra.mxu1 %v16141_v2  ;;  %v19658_v2 = vld [vmem:[#allocation87_spill] sm:$0xff] }
 0x4cb   :  { %14399 = vmatprep.subr.bf16.mxu1 %v16142_v41 }
 0x4cd   :  { %14336 = vmatmul.mubr.bf16.gmra.mrb[8].mxu1 %v19646_v13 }
 0x4ce   :  { %14339 = vmatprep.mubr.bf16.mxu1 %v19647_v17  ;;  %14400 = vmatpush3.bf16.msra.mxu1 %v16142_v41  ;;  %v19661_v41 = vld [vmem:[#allocation104_spill] sm:$0xff] }
 0x4cf   :  { %14401 = vmatprep.subr.bf16.mxu1 %v16143_v29 }
 0x4d2   :  { %14402 = vmatpush3.bf16.msra.mxu1 %v16143_v29 }
 0x4d3   :  { %14403 = vmatprep.subr.bf16.mxu1 %v16144_v0 }
 0x4d5   :  { %14340 = vmatmul.mubr.bf16.gmra.mrb[12].mxu1 %v19648_v57 }
 0x4d6   :  { %14343 = vmatprep.mubr.bf16.mxu1 %v19649_v53  ;;  %14404 = vmatpush3.bf16.msra.mxu1 %v16144_v0 }
 0x4d7   :  { %14405 = vmatprep.subr.bf16.mxu1 %v16145_v38 }
 0x4da   :  { %14406 = vmatpush3.bf16.msra.mxu1 %v16145_v38 }
 0x4db   :  { %14471 = vmatprep.subr.bf16.mxu1 %v17921_v32 }
 0x4dd   :  { %14344 = vmatmul.mubr.bf16.gmra.mrb[16].mxu1 %v19650_v51 }
 0x4de   :  { %14347 = vmatprep.mubr.bf16.mxu1 %v19651_v31  ;;  %v19663_v31 = vld [vmem:[#allocation110_spill] sm:$0xff] }
 0x4e1   :  { %v13897_v29 = vpop.f32.mrb[240].mxu0 }
 0x4e2   :  { %v2140_v13 = vadd.f32 %v17678_v6, %v13897_v29  ;;  %v2131_v17 = vpop.f32.mrb[241].mxu0 }
 0x4e3   :  { %v2132_v0 = vadd.f32 %v17678_v6, %v2131_v17  ;;  %v13898_v51 = vpop.f32.mrb[242].mxu0 }
 0x4e4   :  { %v2436_v38 = vmax.f32 %v2140_v13, 0.0 }
 0x4e5   :  { %14348 = vmatmul.mubr.bf16.gmra.mrb[20].mxu1 %v19652_v49  ;;  %v2434_v57 = vmax.f32 %v2132_v0, 0.0  ;;  %v2143_v49 = vadd.f32 %v17678_v6, %v13898_v51  ;;  %v19665_v51 = vld [vmem:[#allocation113_spill] sm:$0xff] }
 0x4e6   :  { %14351 = vmatprep.mubr.bf16.mxu1 %v19653_v9  ;;  %v2134_v9 = vpop.f32.mrb[243].mxu0 }
 0x4e7   :  { %v17941_v53 = vpack.c.bf16 %v2436_v38, %v2434_v57 }
 0x4ed   :  { %14352 = vmatmul.mubr.bf16.gmra.mrb[24].mxu1 %v19654_v50  ;;  %v17947_v50 = vadd.f32 %v17678_v6, %v2134_v9  ;;  %v19666_v9 = vld [vmem:[#allocation124_spill] sm:$0xff] }
 0x4ee   :  { %14355 = vmatprep.mubr.bf16.mxu1 %v19655_v23 }
 0x4f5   :  { %14356 = vmatmul.mubr.bf16.gmra.mrb[28].mxu1 %v19656_v63  ;;  %v2437_v63 = vmax.f32 %v2143_v49, 0.0 }
 0x4f6   :  { %14359 = vmatprep.mubr.bf16.mxu1 %v19657_v46 }
 0x4fd   :  { %14360 = vmatmul.mubr.bf16.gmra.mrb[32].mxu1 %v19658_v2 }
 0x4fe   :  { %14363 = vmatprep.mubr.bf16.mxu1 %v19659_v25  ;;  %v19417_v25 = vmax.f32 %v17947_v50, 0.0 }
 0x500   :  { %v17955_v0 = vpack.c.bf16 %v2437_v63, %v19417_v25 }
 0x502   :  { %v13901_v23 = vpop.f32.mrb[244].mxu0  ;;  %19664 = vst [vmem:[#allocation121_spill] sm:$0xff] %v17955_v0 }
 0x503   :  { %v2156_v46 = vadd.f32 %v17678_v6, %v13901_v23  ;;  %v2147_v2 = vpop.f32.mrb[245].mxu0  ;;  %v16153_v23 = vld [vmem:[%s19330_s5 + $0x48] sm:$0xff]  }
 0x504   :  { %14633 = vmatprep.subr.bf16.mxu0 %v16153_v23 }
 0x505   :  { %14364 = vmatmul.mubr.bf16.gmra.mrb[36].mxu1 %v19660_v27  ;;  %v2148_v27 = vadd.f32 %v17678_v6, %v2147_v2  ;;  %v2440_v29 = vmax.f32 %v2156_v46, 0.0  ;;  %14634 = vmatpush3.bf16.msra.mxu0 %v16153_v23 }
 0x506   :  { %14367 = vmatprep.mubr.bf16.mxu1 %v19661_v41  ;;  %v13902_v41 = vpop.f32.mrb[246].mxu0 }
 0x507   :  { %v2159_v13 = vadd.f32 %v17678_v6, %v13902_v41  ;;  %v2150_v17 = vpop.f32.mrb[247].mxu0  ;;  %v2438_v38 = vmax.f32 %v2148_v27, 0.0 }
 0x508   :  { %v2151_v57 = vadd.f32 %v17678_v6, %v2150_v17 }
 0x50a   :  { %v2439_v49 = vmax.f32 %v2151_v57, 0.0  ;;  %v13905_v46 = vpop.f32.mrb[248].mxu0 }
 0x50b   :  { %v2172_v27 = vadd.f32 %v17678_v6, %v13905_v46  ;;  %v2163_v17 = vpop.f32.mrb[249].mxu0  ;;  %v19669_v46 = vld [vmem:[#allocation130_spill] sm:$0xff] }
 0x50c   :  { %v17965_v2 = vpack.c.bf16 %v2439_v49, %v2437_v63 }
 0x50d   :  { %14368 = vmatmul.mubr.bf16.gmra.mrb[40].mxu1 %v19662_v4  ;;  %v2441_v4 = vmax.f32 %v2159_v13, 0.0  ;;  %v2164_v13 = vadd.f32 %v17678_v6, %v2163_v17 }
 0x50e   :  { %14371 = vmatprep.mubr.bf16.mxu1 %v19663_v31  ;;  %v17959_v31 = vpack.c.bf16 %v2440_v29, %v2438_v38  ;;  %v13906_v29 = vpop.f32.mrb[250].mxu0  ;;  %v2444_v38 = vmax.f32 %v2172_v27, 0.0 }
 0x50f   :  { %v17967_v41 = vpack.c.bf16 %v2441_v4, %v2439_v49  ;;  %v2175_v57 = vadd.f32 %v17678_v6, %v13906_v29 }
 0x511   :  { %19667 = vst [vmem:[#allocation135_spill] sm:$0xff] %v17967_v41  ;;  %v2445_v0 = vmax.f32 %v2175_v57, 0.0  ;;  %v19668_v41 = vld [vmem:[#allocation127_spill] sm:$0xff] }
 0x515   :  { %14372 = vmatmul.mubr.bf16.gmra.mrb[44].mxu1 %v19665_v51  ;;  %v2166_v51 = vpop.f32.mrb[251].mxu0 }
 0x516   :  { %14375 = vmatprep.mubr.bf16.mxu1 %v19666_v9  ;;  %v2442_v9 = vmax.f32 %v2164_v13, 0.0  ;;  %v2167_v25 = vadd.f32 %v17678_v6, %v2166_v51  ;;  %v13909_v27 = vpop.f32.mrb[252].mxu0 }
 0x517   :  { %v2188_v23 = vadd.f32 %v17678_v6, %v13909_v27  ;;  %v2179_v29 = vpop.f32.mrb[253].mxu0 }
 0x518   :  { %v17973_v63 = vpack.c.bf16 %v2444_v38, %v2442_v9  ;;  %v2443_v49 = vmax.f32 %v2167_v25, 0.0  ;;  %v2180_v13 = vadd.f32 %v17678_v6, %v2179_v29  ;;  %v13910_v22 = vpop.f32.mrb[254].mxu0  ;;  %v19693_v29 = vld [vmem:[#allocation114_spill] sm:$0xff] }
 0x519   :  { %v2448_v51 = vmax.f32 %v2188_v23, 0.0  ;;  %v2191_v38 = vadd.f32 %v17678_v6, %v13910_v22  ;;  %v2182_v57 = vpop.f32.mrb[255].mxu0  ;;  %v19687_v22 = vld [vmem:[#allocation78_spill] sm:$0xff]  ;;  %v19692_v23 = vld [vmem:[#allocation100_spill] sm:$0xff] }
 0x51a   :  { %v17977_v58 = vpack.c.bf16 %v2443_v49, %v2441_v4  ;;  %v17979_v17 = vpack.c.bf16 %v2445_v0, %v2443_v49  ;;  %v2446_v25 = vmax.f32 %v2180_v13, 0.0  ;;  %v19671_v49 = vld [vmem:[#allocation133_spill] sm:$0xff]  ;;  %v19694_v13 = vld [vmem:[#allocation116_spill] sm:$0xff] }
 0x51b   :  { %v2449_v9 = vmax.f32 %v2191_v38, 0.0  ;;  %v19696_v38 = vld [vmem:[#allocation120_spill] sm:$0xff] }
 0x51c   :  { %19670 = vst [vmem:[#allocation6_spill] sm:$0xff] %v17979_v17 }
 0x51d   :  { %14376 = vmatmul.mubr.bf16.gmra.mrb[48].mxu1 %v19668_v41  ;;  %v2183_v41 = vadd.f32 %v17678_v6, %v2182_v57  ;;  %v16147_v6 = vld [vmem:[%s19328_s3 + $0x1c8] sm:$0xff]   ;;  %v19697_v57 = vld [vmem:[#allocation134_spill] sm:$0xff] }
 0x51e   :  { %14379 = vmatprep.mubr.bf16.mxu1 %v19669_v46  ;;  %v17985_v46 = vpack.c.bf16 %v2448_v51, %v2446_v25  ;;  %v19695_v51 = vld [vmem:[#allocation118_spill] sm:$0xff]  ;;  %v16167_v25 = vld [vmem:[%s19330_s5 + $0x68] sm:$0xff]  }
 0x51f   :  { %v2447_v4 = vmax.f32 %v2183_v41, 0.0  ;;  %v19698_v41 = vld [vmem:[#allocation136_spill] sm:$0xff] }
 0x521   :  { %v17989_v27 = vpack.c.bf16 %v2447_v4, %v2445_v0  ;;  %v17991_v17 = vpack.c.bf16 %v2449_v9, %v2447_v4  ;;  %v19690_v0 = vld [vmem:[#allocation96_spill] sm:$0xff]  ;;  %v19699_v9 = vld [vmem:[#allocation138_spill] sm:$0xff] }
 0x522   :  { %v16168_v4 = vld [vmem:[%s19330_s5 + $0x70] sm:$0xff]  }
 0x525   :  { %14380 = vmatmul.mubr.bf16.gmra.mrb[52].mxu1 %v19671_v49  ;;  %v19705_v49 = vld [vmem:[#allocation57_spill] sm:$0xff] }
 0x526   :  { %14383 = vmatprep.mubr.bf16.mxu1 %v17696_v52  ;;  %v16149_v52 = vld [vmem:[%s19328_s3 + $0x1d0] sm:$0xff]  }
 0x52d   :  { %14384 = vmatmul.mubr.bf16.gmra.mrb[56].mxu1 %v17705_v7  ;;  %v19686_v7 = vld [vmem:[#allocation76_spill] sm:$0xff] }
 0x52e   :  { %14387 = vmatprep.mubr.bf16.mxu1 %v17717_v45  ;;  %v16155_v45 = vld [vmem:[%s19328_s3 + $0x1f8] sm:$0xff]  }
 0x535   :  { %14388 = vmatmul.mubr.bf16.gmra.mrb[60].mxu1 %v17729_v1  ;;  %v16150_v1 = vld [vmem:[%s19328_s3 + $0x1d8] sm:$0xff]  }
 0x536   :  { %14407 = vmatprep.mubr.bf16.mxu1 %v17545_v61  ;;  %v19680_v61 = vld [vmem:[#allocation40_spill] sm:$0xff] }
 0x53d   :  { %14408 = vmatmul.mubr.bf16.vlgmr.msra.gmra.mrb[0].mxu1 %v16775_v54  ;;  %v16151_v54 = vld [vmem:[%s19328_s3 + $0x1e0] sm:$0xff]  }
 0x53e   :  { %14472 = vmatpush3.bf16.msra.mxu1 %v17921_v32  ;;  %14411 = vmatprep.mubr.bf16.mxu1 %v16792_v12  ;;  %v16152_v12 = vld [vmem:[%s19328_s3 + $0x1e8] sm:$0xff]   ;;  %v19688_v32 = vld [vmem:[#allocation80_spill] sm:$0xff] }
 0x53f   :  { %14473 = vmatprep.subr.bf16.mxu1 %v16147_v6 }
 0x542   :  { %14474 = vmatpush3.bf16.msra.mxu1 %v16147_v6  ;;  %v19711_v6 = vld [vmem:[#allocation81_spill] sm:$0xff] }
 0x543   :  { %14475 = vmatprep.subr.bf16.mxu1 %v16149_v52 }
 0x545   :  { %14412 = vmatmul.mubr.bf16.gmra.mrb[4].mxu1 %v16809_v40  ;;  %v16154_v40 = vld [vmem:[%s19328_s3 + $0x1f0] sm:$0xff]  }
 0x546   :  { %14415 = vmatprep.mubr.bf16.mxu1 %v17572_v48  ;;  %14476 = vmatpush3.bf16.msra.mxu1 %v16149_v52  ;;  %v19681_v48 = vld [vmem:[#allocation54_spill] sm:$0xff]  ;;  %v19712_v52 = vld [vmem:[#allocation95_spill] sm:$0xff] }
 0x547   :  { %14477 = vmatprep.subr.bf16.mxu1 %v16150_v1 }
 0x54a   :  { %14478 = vmatpush3.bf16.msra.mxu1 %v16150_v1  ;;  %v19713_v1 = vld [vmem:[#allocation97_spill] sm:$0xff] }
 0x54b   :  { %14479 = vmatprep.subr.bf16.mxu1 %v16151_v54 }
 0x54d   :  { %14416 = vmatmul.mubr.bf16.gmra.mrb[8].mxu1 %v16912_v56  ;;  %v16158_v56 = vld [vmem:[%s19330_s5 + $0x50] sm:$0xff]  }
 0x54e   :  { %14419 = vmatprep.mubr.bf16.mxu1 %v16929_v5  ;;  %14480 = vmatpush3.bf16.msra.mxu1 %v16151_v54  ;;  %v16156_v5 = vld [vmem:[%s19328_s3 + $0x200] sm:$0xff]   ;;  %v19714_v54 = vld [vmem:[#allocation99_spill] sm:$0xff] }
 0x54f   :  { %14481 = vmatprep.subr.bf16.mxu1 %v16152_v12  ;;  %14635 = vmatprep.subr.bf16.mxu0 %v16158_v56 }
 0x550   :  { %14636 = vmatpush3.bf16.msra.mxu0 %v16158_v56  ;;  %v19718_v56 = vld [vmem:[#allocation119_spill] sm:$0xff] }
 0x552   :  { %14482 = vmatpush3.bf16.msra.mxu1 %v16152_v12  ;;  %v19715_v12 = vld [vmem:[#allocation101_spill] sm:$0xff] }
 0x553   :  { %14483 = vmatprep.subr.bf16.mxu1 %v16154_v40 }
 0x555   :  { %14420 = vmatmul.mubr.bf16.gmra.mrb[12].mxu1 %v16946_v16  ;;  %v16160_v16 = vld [vmem:[%s19328_s3 + $0x218] sm:$0xff]  }
 0x556   :  { %14423 = vmatprep.mubr.bf16.mxu1 %v17584_v37  ;;  %14484 = vmatpush3.bf16.msra.mxu1 %v16154_v40  ;;  %v16166_v37 = vld [vmem:[%s19330_s5 + $0x60] sm:$0xff]   ;;  %v19716_v40 = vld [vmem:[#allocation115_spill] sm:$0xff] }
 0x557   :  { %14485 = vmatprep.subr.bf16.mxu1 %v16155_v45 }
 0x55a   :  { %14486 = vmatpush3.bf16.msra.mxu1 %v16155_v45  ;;  %v19717_v45 = vld [vmem:[#allocation117_spill] sm:$0xff] }
 0x55b   :  { %14551 = vmatprep.subr.bf16.mxu1 %v16156_v5 }
 0x55d   :  { %14424 = vmatmul.mubr.bf16.gmra.mrb[16].mxu1 %v17050_v33  ;;  %v19675_v33 = vld [vmem:[#allocation20_spill] sm:$0xff] }
 0x55e   :  { %14427 = vmatprep.mubr.bf16.mxu1 %v17067_v14  ;;  %v19674_v14 = vld [vmem:[#allocation19_spill] sm:$0xff] }
 0x565   :  { %14428 = vmatmul.mubr.bf16.gmra.mrb[20].mxu1 %v17084_v42  ;;  %v19672_v42 = vmax.f32 %v17947_v50, 0.0  ;;  %v19689_v50 = vld [vmem:[#allocation94_spill] sm:$0xff] }
 0x566   :  { %14431 = vmatprep.mubr.bf16.mxu1 %v17593_v8  ;;  %v19682_v8 = vld [vmem:[#allocation56_spill] sm:$0xff] }
 0x56d   :  { %14432 = vmatmul.mubr.bf16.gmra.mrb[24].mxu1 %v17193_v47  ;;  %v19677_v47 = vld [vmem:[#allocation34_spill] sm:$0xff] }
 0x56e   :  { %14435 = vmatprep.mubr.bf16.mxu1 %v17204_v11  ;;  %v6085_v11 = vpack.c.bf16 %v19672_v42, %v19576_v26  ;;  %v19720_v42 = vld [vmem:[#allocation139_spill] sm:$0xff] }
 0x575   :  { %14436 = vmatmul.mubr.bf16.gmra.mrb[28].mxu1 %v17218_v39  ;;  %v16163_v39 = vld [vmem:[%s19330_s5 + $0x58] sm:$0xff]  }
 0x576   :  { %14439 = vmatprep.mubr.bf16.mxu1 %v17602_v60  ;;  %14637 = vmatprep.subr.bf16.mxu0 %v16163_v39  ;;  %v19683_v60 = vld [vmem:[#allocation58_spill] sm:$0xff] }
 0x577   :  { %14638 = vmatpush3.bf16.msra.mxu0 %v16163_v39  ;;  %v19719_v39 = vld [vmem:[#allocation137_spill] sm:$0xff] }
 0x578   :  { %14639 = vmatprep.subr.bf16.mxu0 %v16166_v37 }
 0x57b   :  { %14640 = vmatpush3.bf16.msra.mxu0 %v16166_v37 }
 0x57c   :  { %14641 = vmatprep.subr.bf16.mxu0 %v16167_v25 }
 0x57d   :  { %14440 = vmatmul.mubr.bf16.gmra.mrb[32].mxu1 %v17295_v35  ;;  %v16161_v35 = vld [vmem:[%s19328_s3 + $0x220] sm:$0xff]  }
 0x57e   :  { %14443 = vmatprep.mubr.bf16.mxu1 %v17306_v21  ;;  %v19676_v21 = vld [vmem:[#allocation21_spill] sm:$0xff] }
 0x57f   :  { %14642 = vmatpush3.bf16.msra.mxu0 %v16167_v25 }
 0x580   :  { %14643 = vmatprep.subr.bf16.mxu0 %v16168_v4 }
 0x583   :  { %14644 = vmatpush3.bf16.msra.mxu0 %v16168_v4 }
 0x585   :  { %14444 = vmatmul.mubr.bf16.gmra.mrb[36].mxu1 %v17320_v10  ;;  %v16159_v10 = vld [vmem:[%s19328_s3 + $0x210] sm:$0xff]  }
 0x586   :  { %14447 = vmatprep.mubr.bf16.mxu1 %v17611_v36  ;;  %v19684_v36 = vld [vmem:[#allocation60_spill] sm:$0xff] }
 0x58d   :  { %14448 = vmatmul.mubr.bf16.gmra.mrb[40].mxu1 %v17394_v3  ;;  %v16162_v3 = vld [vmem:[%s19328_s3 + $0x228] sm:$0xff]  }
 0x58e   :  { %14451 = vmatprep.mubr.bf16.mxu1 %v17405_v59  ;;  %v16157_v59 = vld [vmem:[%s19328_s3 + $0x208] sm:$0xff]  }
 0x595   :  { %14452 = vmatmul.mubr.bf16.gmra.mrb[44].mxu1 %v17416_v19  ;;  %v19673_v19 = vld [vmem:[#allocation18_spill] sm:$0xff] }
 0x596   :  { %14455 = vmatprep.mubr.bf16.mxu1 %v17620_v18  ;;  %v19685_v18 = vld [vmem:[#allocation74_spill] sm:$0xff] }
 0x59d   :  { %14456 = vmatmul.mubr.bf16.gmra.mrb[48].mxu1 %v17484_v30  ;;  %v19678_v30 = vld [vmem:[#allocation36_spill] sm:$0xff] }
 0x59e   :  { %14459 = vmatprep.mubr.bf16.mxu1 %v17495_v28  ;;  %v19679_v28 = vld [vmem:[#allocation38_spill] sm:$0xff] }
 0x5a5   :  { %14460 = vmatmul.mubr.bf16.gmra.mrb[52].mxu1 %v17512_v24  ;;  %v16164_v24 = vld [vmem:[%s19328_s3 + $0x230] sm:$0xff]  }
 0x5a6   :  { %14463 = vmatprep.mubr.bf16.mxu1 %v6085_v11  ;;  %v19721_v11 = vmov 0.0|0.0  }
 0x5ad   :  { %14464 = vmatmul.mubr.bf16.gmra.mrb[56].mxu1 %v17965_v2  ;;  %v19691_v2 = vld [vmem:[#allocation98_spill] sm:$0xff] }
 0x5ae   :  { %14467 = vmatprep.mubr.bf16.mxu1 %v17977_v58  ;;  %v16165_v58 = vld [vmem:[%s19328_s3 + $0x238] sm:$0xff]  }
 0x5b5   :  { %14468 = vmatmul.mubr.bf16.gmra.mrb[60].mxu1 %v17989_v27  ;;  %v19707_v27 = vld [vmem:[#allocation61_spill] sm:$0xff] }
 0x5b6   :  { %14487 = vmatprep.mubr.bf16.mxu1 %v19673_v19  ;;  %v19722_v19 = vld [vmem:[#allocation140_spill] sm:$0xff] }
 0x5bd   :  { %14488 = vmatmul.mubr.bf16.vlgmr.msra.gmra.mrb[0].mxu1 %v19674_v14  ;;  %v19724_v14 = vld [vmem:[#allocation135_spill] sm:$0xff] }
 0x5be   :  { %14552 = vmatpush3.bf16.msra.mxu1 %v16156_v5  ;;  %14491 = vmatprep.mubr.bf16.mxu1 %v19675_v33  ;;  %v16169_v5 = vld [vmem:[%s19330_s5 + $0x78] sm:$0xff]   ;;  %v16171_v33 = vld [vmem:[%s19330_s5 + $0x8] sm:$0xff]  }
 0x5bf   :  { %14553 = vmatprep.subr.bf16.mxu1 %v16157_v59  ;;  %14645 = vmatprep.subr.bf16.mxu0 %v16169_v5 }
 0x5c0   :  { %14646 = vmatpush3.bf16.msra.mxu0 %v16169_v5 }
 0x5c2   :  { %14554 = vmatpush3.bf16.msra.mxu1 %v16157_v59  ;;  %v19723_v59 = vld [vmem:[#allocation121_spill] sm:$0xff] }
 0x5c3   :  { %14555 = vmatprep.subr.bf16.mxu1 %v16159_v10  ;;  %14648 = vmatmul.mubr.bf16.vlgmr.msra.gmra.mrb[0].mxu0 %v19721_v11 }
 0x5c5   :  { %14492 = vmatmul.mubr.bf16.gmra.mrb[4].mxu1 %v19676_v21  ;;  %v16175_v21 = vld [vmem:[%s19330_s5 + $0x28] sm:$0xff]  }
 0x5c6   :  { %14495 = vmatprep.mubr.bf16.mxu1 %v19677_v47  ;;  %14556 = vmatpush3.bf16.msra.mxu1 %v16159_v10  ;;  %v16172_v10 = vld [vmem:[%s19330_s5 + $0x10] sm:$0xff]  }
 0x5c7   :  { %14557 = vmatprep.subr.bf16.mxu1 %v16160_v16  ;;  %v16176_v47 = vld [vmem:[%s19330_s5 + $0x30] sm:$0xff]  }
 0x5ca   :  { %14558 = vmatpush3.bf16.msra.mxu1 %v16160_v16  ;;  %v16174_v16 = vld [vmem:[%s19330_s5 + $0x20] sm:$0xff]  }
 0x5cb   :  { %14559 = vmatprep.subr.bf16.mxu1 %v16161_v35 }
 0x5cd   :  { %14496 = vmatmul.mubr.bf16.gmra.mrb[8].mxu1 %v19678_v30  ;;  %v18193_v30 = vld [vmem:[%s19331_s4] ss:$0 sm:$0xff] }
 0x5ce   :  { %14499 = vmatprep.mubr.bf16.mxu1 %v19679_v28  ;;  %14560 = vmatpush3.bf16.msra.mxu1 %v16161_v35  ;;  %v16177_v35 = vld [vmem:[%s19330_s5 + $0x38] sm:$0xff]  }
 0x5cf   :  { %14561 = vmatprep.subr.bf16.mxu1 %v16162_v3 }
 0x5d2   :  { %14562 = vmatpush3.bf16.msra.mxu1 %v16162_v3  ;;  %v18187_v3 = vld [vmem:[%s19330_s5 + $0x80] sm:$0xff]  }
 0x5d3   :  { %14563 = vmatprep.subr.bf16.mxu1 %v16164_v24 }
 0x5d5   :  { %14500 = vmatmul.mubr.bf16.gmra.mrb[12].mxu1 %v19680_v61 }
 0x5d6   :  { %14503 = vmatprep.mubr.bf16.mxu1 %v19681_v48  ;;  %14564 = vmatpush3.bf16.msra.mxu1 %v16164_v24 }
 0x5d7   :  { %14565 = vmatprep.subr.bf16.mxu1 %v16165_v58 }
 0x5da   :  { %14566 = vmatpush3.bf16.msra.mxu1 %v16165_v58 }
 0x5db   :  { %15159 = vmatprep.subr.bf16.mxu1 %v19576_v26 }
 0x5dd   :  { %14504 = vmatmul.mubr.bf16.gmra.mrb[16].mxu1 %v19682_v8 }
 0x5de   :  { %14507 = vmatprep.mubr.bf16.mxu1 %v19683_v60 }
 0x5e5   :  { %14508 = vmatmul.mubr.bf16.gmra.mrb[20].mxu1 %v19684_v36 }
 0x5e6   :  { %14511 = vmatprep.mubr.bf16.mxu1 %v19685_v18 }
 0x5ed   :  { %14512 = vmatmul.mubr.bf16.gmra.mrb[24].mxu1 %v19686_v7 }
 0x5ee   :  { %14515 = vmatprep.mubr.bf16.mxu1 %v19687_v22 }
 0x5f5   :  { %14516 = vmatmul.mubr.bf16.gmra.mrb[28].mxu1 %v19688_v32 }
 0x5f6   :  { %14519 = vmatprep.mubr.bf16.mxu1 %v19689_v50 }
 0x5fd   :  { %14520 = vmatmul.mubr.bf16.gmra.mrb[32].mxu1 %v19690_v0 }
 0x5fe   :  { %14523 = vmatprep.mubr.bf16.mxu1 %v19691_v2 }
 0x605   :  { %14524 = vmatmul.mubr.bf16.gmra.mrb[36].mxu1 %v19692_v23 }
 0x606   :  { %14527 = vmatprep.mubr.bf16.mxu1 %v19693_v29 }
 0x60d   :  { %14528 = vmatmul.mubr.bf16.gmra.mrb[40].mxu1 %v19694_v13 }
 0x60e   :  { %14531 = vmatprep.mubr.bf16.mxu1 %v19695_v51 }
 0x615   :  { %14532 = vmatmul.mubr.bf16.gmra.mrb[44].mxu1 %v19696_v38 }
 0x616   :  { %14535 = vmatprep.mubr.bf16.mxu1 %v19697_v57 }
 0x61d   :  { %14536 = vmatmul.mubr.bf16.gmra.mrb[48].mxu1 %v19698_v41 }
 0x61e   :  { %14539 = vmatprep.mubr.bf16.mxu1 %v19699_v9 }
 0x625   :  { %14540 = vmatmul.mubr.bf16.gmra.mrb[52].mxu1 %v17510_v44  ;;  %v19700_v44 = vld [vmem:[#allocation35_spill] sm:$0xff] }
 0x626   :  { %14543 = vmatprep.mubr.bf16.mxu1 %v17941_v53  ;;  %v19701_v53 = vld [vmem:[#allocation37_spill] sm:$0xff] }
 0x62d   :  { %14544 = vmatmul.mubr.bf16.gmra.mrb[56].mxu1 %v17959_v31  ;;  %v19702_v31 = vld [vmem:[#allocation39_spill] sm:$0xff] }
 0x62e   :  { %14547 = vmatprep.mubr.bf16.mxu1 %v17973_v63  ;;  %v19703_v63 = vld [vmem:[#allocation41_spill] sm:$0xff] }
 0x635   :  { %14548 = vmatmul.mubr.bf16.gmra.mrb[60].mxu1 %v17985_v46  ;;  %v19704_v46 = vld [vmem:[#allocation55_spill] sm:$0xff] }
 0x636   :  { %14567 = vmatprep.mubr.bf16.mxu1 %v16760_v34  ;;  %v19706_v34 = vld [vmem:[#allocation59_spill] sm:$0xff] }
 0x63d   :  { %14568 = vmatmul.mubr.bf16.vlgmr.msra.gmra.mrb[0].mxu1 %v16777_v55  ;;  %v19708_v55 = vld [vmem:[#allocation75_spill] sm:$0xff] }
 0x63e   :  { %14571 = vmatprep.mubr.bf16.mxu1 %v16794_v15  ;;  %v19709_v15 = vld [vmem:[#allocation77_spill] sm:$0xff] }
 0x645   :  { %14572 = vmatmul.mubr.bf16.gmra.mrb[4].mxu1 %v16811_v43  ;;  %v19710_v43 = vld [vmem:[#allocation79_spill] sm:$0xff] }
 0x646   :  { %14575 = vmatprep.mubr.bf16.mxu1 %v19700_v44 }
 0x64d   :  { %14576 = vmatmul.mubr.bf16.gmra.mrb[8].mxu1 %v19701_v53 }
 0x64e   :  { %14579 = vmatprep.mubr.bf16.mxu1 %v19702_v31 }
 0x655   :  { %14580 = vmatmul.mubr.bf16.gmra.mrb[12].mxu1 %v19703_v63 }
 0x656   :  { %14583 = vmatprep.mubr.bf16.mxu1 %v19704_v46 }
 0x65d   :  { %14584 = vmatmul.mubr.bf16.gmra.mrb[16].mxu1 %v19705_v49 }
 0x65e   :  { %14587 = vmatprep.mubr.bf16.mxu1 %v19706_v34 }
 0x665   :  { %14588 = vmatmul.mubr.bf16.gmra.mrb[20].mxu1 %v19707_v27 }
 0x666   :  { %14591 = vmatprep.mubr.bf16.mxu1 %v19708_v55 }
 0x66d   :  { %14592 = vmatmul.mubr.bf16.gmra.mrb[24].mxu1 %v19709_v15 }
 0x66e   :  { %14595 = vmatprep.mubr.bf16.mxu1 %v19710_v43 }
 0x675   :  { %14596 = vmatmul.mubr.bf16.gmra.mrb[28].mxu1 %v19711_v6 }
 0x676   :  { %14599 = vmatprep.mubr.bf16.mxu1 %v19712_v52 }
 0x67d   :  { %14600 = vmatmul.mubr.bf16.gmra.mrb[32].mxu1 %v19713_v1 }
 0x67e   :  { %14603 = vmatprep.mubr.bf16.mxu1 %v19714_v54 }
 0x685   :  { %14604 = vmatmul.mubr.bf16.gmra.mrb[36].mxu1 %v19715_v12 }
 0x686   :  { %14607 = vmatprep.mubr.bf16.mxu1 %v19716_v40 }
 0x68d   :  { %14608 = vmatmul.mubr.bf16.gmra.mrb[40].mxu1 %v19717_v45 }
 0x68e   :  { %14611 = vmatprep.mubr.bf16.mxu1 %v19718_v56 }
 0x695   :  { %14612 = vmatmul.mubr.bf16.gmra.mrb[44].mxu1 %v19572_v62  ;;  %v19725_v62 = vld [vmem:[#allocation6_spill] sm:$0xff] }
 0x696   :  { %14615 = vmatprep.mubr.bf16.mxu1 %v19573_v20  ;;  %v16170_v20 = vld [vmem:[%s19330_s5] sm:$0xff]  }
 0x697   :  { %14663 = vmatprep.subr.bf16.mxu0 %v16170_v20 }
 0x698   :  { %14664 = vmatpush3.bf16.msra.mxu0 %v16170_v20 }
 0x699   :  { %14665 = vmatprep.subr.bf16.mxu0 %v16171_v33 }
 0x69c   :  { %14666 = vmatpush3.bf16.msra.mxu0 %v16171_v33 }
 0x69d   :  { %14616 = vmatmul.mubr.bf16.gmra.mrb[48].mxu1 %v19719_v39  ;;  %14667 = vmatprep.subr.bf16.mxu0 %v16172_v10 }
 0x69e   :  { %14619 = vmatprep.mubr.bf16.mxu1 %v19720_v42 }
 0x6a0   :  { %14668 = vmatpush3.bf16.msra.mxu0 %v16172_v10 }
 0x6a5   :  { %14620 = vmatmul.mubr.bf16.gmra.mrb[52].mxu1 %v19722_v19 }
 0x6a6   :  { %14623 = vmatprep.mubr.bf16.mxu1 %v19723_v59 }
 0x6ad   :  { %14624 = vmatmul.mubr.bf16.gmra.mrb[56].mxu1 %v19724_v14 }
 0x6ae   :  { %14627 = vmatprep.mubr.bf16.mxu1 %v19725_v62 }
 0x6b5   :  { %14628 = vmatmul.mubr.bf16.gmra.mrb[60].mxu1 %v17991_v17  ;;  %v16173_v17 = vld [vmem:[%s19330_s5 + $0x18] sm:$0xff]  }
 0x6b6   :  { %14669 = vmatprep.subr.bf16.mxu0 %v16173_v17  ;;  %15175 = vmatprep.mubr.msk.bf16.mxu1 %vm16382_vm0, %v19576_v26 }
 0x6b7   :  { %14670 = vmatpush3.bf16.msra.mxu0 %v16173_v17 }
 0x6b8   :  { %14671 = vmatprep.subr.bf16.mxu0 %v16174_v16 }
 0x6bb   :  { %14672 = vmatpush3.bf16.msra.mxu0 %v16174_v16 }
 0x6bc   :  { %14673 = vmatprep.subr.bf16.mxu0 %v16175_v21 }
 0x6bf   :  { %14674 = vmatpush3.bf16.msra.mxu0 %v16175_v21 }
 0x6c0   :  { %14675 = vmatprep.subr.bf16.mxu0 %v16176_v47 }
 0x6c3   :  { %14676 = vmatpush3.bf16.msra.mxu0 %v16176_v47 }
 0x6c4   :  { %14677 = vmatprep.subr.bf16.mxu0 %v16177_v35 }
 0x6c7   :  { %14678 = vmatpush3.bf16.msra.mxu0 %v16177_v35 }
 0x6c8   :  { %14695 = vmatprep.subr.bf16.mxu0 %v18187_v3 }
 0x710   :  { %v14569_v28 = vpop.f32.mrb[0].mxu1 }
 0x711   :  { %v7544_v24 = vadd.f32 %v14569_v28, %v18193_v30  ;;  %v7216_v58 = vpop.f32.mrb[1].mxu1 }
 0x712   :  { %v7542_v61 = vadd.f32 %v18193_v30, %v7216_v58  ;;  %v14570_v48 = vpop.f32.mrb[2].mxu1 }
 0x713   :  { %v7608_v37 = vmax.f32 %v7544_v24, 0.0  ;;  %v7545_v8 = vadd.f32 %v14570_v48, %v18193_v30  ;;  %v7219_v60 = vpop.f32.mrb[3].mxu1 }
 0x714   :  { %v7606_v36 = vmax.f32 %v7542_v61, 0.0  ;;  %v18199_v18 = vadd.f32 %v18193_v30, %v7219_v60 }
 0x715   :  { %v7609_v7 = vmax.f32 %v7545_v8, 0.0 }
 0x716   :  { %v18201_v22 = vpack.c.bf16 %v7608_v37, %v7606_v36  ;;  %v19423_v32 = vmax.f32 %v18199_v18, 0.0 }
 0x718   :  { %v18206_v50 = vpack.c.bf16 %v7609_v7, %v19423_v32  ;;  %v14573_v0 = vpop.f32.mrb[4].mxu1 }
 0x719   :  { %v7548_v2 = vadd.f32 %v14573_v0, %v18193_v30  ;;  %v7232_v23 = vpop.f32.mrb[5].mxu1 }
 0x71a   :  { %v7546_v29 = vadd.f32 %v18193_v30, %v7232_v23  ;;  %v14574_v13 = vpop.f32.mrb[6].mxu1 }
 0x71b   :  { %v7612_v51 = vmax.f32 %v7548_v2, 0.0  ;;  %v7549_v38 = vadd.f32 %v14574_v13, %v18193_v30  ;;  %v7235_v57 = vpop.f32.mrb[7].mxu1 }
 0x71c   :  { %v7610_v25 = vmax.f32 %v7546_v29, 0.0  ;;  %v7547_v41 = vadd.f32 %v18193_v30, %v7235_v57 }
 0x71d   :  { %v7613_v9 = vmax.f32 %v7549_v38, 0.0 }
 0x71e   :  { %v18212_v4 = vpack.c.bf16 %v7612_v51, %v7610_v25  ;;  %v7611_v44 = vmax.f32 %v7547_v41, 0.0 }
 0x720   :  { %v18214_v53 = vpack.c.bf16 %v7611_v44, %v7609_v7  ;;  %v18216_v31 = vpack.c.bf16 %v7613_v9, %v7611_v44  ;;  %v14577_v63 = vpop.f32.mrb[8].mxu1 }
 0x721   :  { %v7552_v46 = vadd.f32 %v14577_v63, %v18193_v30  ;;  %v7248_v49 = vpop.f32.mrb[9].mxu1 }
 0x722   :  { %v7550_v34 = vadd.f32 %v18193_v30, %v7248_v49  ;;  %v14578_v27 = vpop.f32.mrb[10].mxu1 }
 0x723   :  { %v7616_v55 = vmax.f32 %v7552_v46, 0.0  ;;  %v7553_v15 = vadd.f32 %v14578_v27, %v18193_v30  ;;  %v7251_v43 = vpop.f32.mrb[11].mxu1 }
 0x724   :  { %v7614_v6 = vmax.f32 %v7550_v34, 0.0  ;;  %v18222_v52 = vadd.f32 %v18193_v30, %v7251_v43 }
 0x725   :  { %v7617_v1 = vmax.f32 %v7553_v15, 0.0 }
 0x726   :  { %v18224_v54 = vpack.c.bf16 %v7616_v55, %v7614_v6  ;;  %v7615_v12 = vmax.f32 %v18222_v52, 0.0  ;;  %v16180_v52 = vld [vmem:[%s19330_s5 + $0x90] sm:$0xff]  }
 0x728   :  { %v18229_v40 = vpack.c.bf16 %v7617_v1, %v7615_v12  ;;  %v14581_v45 = vpop.f32.mrb[12].mxu1  ;;  %14651 = vmatprep.mubr.bf16.mxu0 %v18224_v54 }
 0x729   :  { %v7556_v56 = vadd.f32 %v14581_v45, %v18193_v30  ;;  %v7264_v5 = vpop.f32.mrb[13].mxu1 }
 0x72a   :  { %v7554_v39 = vadd.f32 %v18193_v30, %v7264_v5  ;;  %v14582_v42 = vpop.f32.mrb[14].mxu1 }
 0x72b   :  { %v7620_v19 = vmax.f32 %v7556_v56, 0.0  ;;  %v7557_v59 = vadd.f32 %v14582_v42, %v18193_v30  ;;  %v7267_v14 = vpop.f32.mrb[15].mxu1 }
 0x72c   :  { %v7618_v62 = vmax.f32 %v7554_v39, 0.0  ;;  %v7555_v20 = vadd.f32 %v18193_v30, %v7267_v14 }
 0x72d   :  { %v7621_v33 = vmax.f32 %v7557_v59, 0.0 }
 0x72e   :  { %v18236_v10 = vpack.c.bf16 %v7620_v19, %v7618_v62  ;;  %v7619_v17 = vmax.f32 %v7555_v20, 0.0 }
 0x730   :  { %v18238_v16 = vpack.c.bf16 %v7619_v17, %v7617_v1  ;;  %v18240_v21 = vpack.c.bf16 %v7621_v33, %v7619_v17  ;;  %v14585_v47 = vpop.f32.mrb[16].mxu1  ;;  %14652 = vmatmul.mubr.bf16.gmra.mrb[4].mxu0 %v18236_v10 }
 0x731   :  { %v7560_v35 = vadd.f32 %v14585_v47, %v18193_v30  ;;  %v7280_v28 = vpop.f32.mrb[17].mxu1 }
 0x732   :  { %v7558_v24 = vadd.f32 %v18193_v30, %v7280_v28  ;;  %v14586_v58 = vpop.f32.mrb[18].mxu1 }
 0x733   :  { %v7624_v61 = vmax.f32 %v7560_v35, 0.0  ;;  %v7561_v48 = vadd.f32 %v14586_v58, %v18193_v30  ;;  %v7283_v37 = vpop.f32.mrb[19].mxu1 }
 0x734   :  { %v7622_v8 = vmax.f32 %v7558_v24, 0.0  ;;  %v18247_v60 = vadd.f32 %v18193_v30, %v7283_v37 }
 0x735   :  { %v7625_v36 = vmax.f32 %v7561_v48, 0.0 }
 0x736   :  { %v18249_v7 = vpack.c.bf16 %v7624_v61, %v7622_v8  ;;  %v19422_v0 = vmax.f32 %v18247_v60, 0.0 }
 0x738   :  { %v18254_v2 = vpack.c.bf16 %v7625_v36, %v19422_v0  ;;  %v14589_v23 = vpop.f32.mrb[20].mxu1 }
 0x739   :  { %v7564_v29 = vadd.f32 %v14589_v23, %v18193_v30  ;;  %v7296_v13 = vpop.f32.mrb[21].mxu1 }
 0x73a   :  { %v7562_v51 = vadd.f32 %v18193_v30, %v7296_v13  ;;  %v14590_v38 = vpop.f32.mrb[22].mxu1 }
 0x73b   :  { %v7628_v57 = vmax.f32 %v7564_v29, 0.0  ;;  %v7565_v25 = vadd.f32 %v14590_v38, %v18193_v30  ;;  %v7299_v41 = vpop.f32.mrb[23].mxu1 }
 0x73c   :  { %v7626_v9 = vmax.f32 %v7562_v51, 0.0  ;;  %v7563_v44 = vadd.f32 %v18193_v30, %v7299_v41 }
 0x73d   :  { %v7629_v63 = vmax.f32 %v7565_v25, 0.0 }
 0x73e   :  { %v18260_v46 = vpack.c.bf16 %v7628_v57, %v7626_v9  ;;  %v7627_v49 = vmax.f32 %v7563_v44, 0.0 }
 0x740   :  { %v18262_v34 = vpack.c.bf16 %v7627_v49, %v7625_v36  ;;  %v18264_v27 = vpack.c.bf16 %v7629_v63, %v7627_v49  ;;  %v14593_v55 = vpop.f32.mrb[24].mxu1 }
 0x741   :  { %v7568_v15 = vadd.f32 %v14593_v55, %v18193_v30  ;;  %v7312_v43 = vpop.f32.mrb[25].mxu1 }
 0x742   :  { %v7566_v6 = vadd.f32 %v18193_v30, %v7312_v43  ;;  %v14594_v1 = vpop.f32.mrb[26].mxu1 }
 0x743   :  { %v7632_v45 = vmax.f32 %v7568_v15, 0.0  ;;  %v7569_v56 = vadd.f32 %v14594_v1, %v18193_v30  ;;  %v7315_v5 = vpop.f32.mrb[27].mxu1 }
 0x744   :  { %v7630_v39 = vmax.f32 %v7566_v6, 0.0  ;;  %v18270_v42 = vadd.f32 %v18193_v30, %v7315_v5 }
 0x745   :  { %v7633_v19 = vmax.f32 %v7569_v56, 0.0 }
 0x746   :  { %v18272_v59 = vpack.c.bf16 %v7632_v45, %v7630_v39  ;;  %v7631_v14 = vmax.f32 %v18270_v42, 0.0  ;;  %v16182_v42 = vld [vmem:[%s19330_s5 + $0xa0] sm:$0xff]  }
 0x748   :  { %v18277_v62 = vpack.c.bf16 %v7633_v19, %v7631_v14  ;;  %v14597_v20 = vpop.f32.mrb[28].mxu1  ;;  %14655 = vmatprep.mubr.bf16.mxu0 %v18272_v59 }
 0x749   :  { %v7572_v33 = vadd.f32 %v14597_v20, %v18193_v30  ;;  %v7328_v17 = vpop.f32.mrb[29].mxu1 }
 0x74a   :  { %v7570_v47 = vadd.f32 %v18193_v30, %v7328_v17  ;;  %v14598_v35 = vpop.f32.mrb[30].mxu1 }
 0x74b   :  { %v7636_v28 = vmax.f32 %v7572_v33, 0.0  ;;  %v7573_v24 = vadd.f32 %v14598_v35, %v18193_v30  ;;  %v7331_v58 = vpop.f32.mrb[31].mxu1 }
 0x74c   :  { %v7634_v61 = vmax.f32 %v7570_v47, 0.0  ;;  %v7571_v48 = vadd.f32 %v18193_v30, %v7331_v58 }
 0x74d   :  { %v7637_v37 = vmax.f32 %v7573_v24, 0.0 }
 0x74e   :  { %v18284_v8 = vpack.c.bf16 %v7636_v28, %v7634_v61  ;;  %v7635_v36 = vmax.f32 %v7571_v48, 0.0 }
 0x750   :  { %v18286_v23 = vpack.c.bf16 %v7635_v36, %v7633_v19  ;;  %v18288_v29 = vpack.c.bf16 %v7637_v37, %v7635_v36  ;;  %v14601_v13 = vpop.f32.mrb[32].mxu1  ;;  %14656 = vmatmul.mubr.bf16.gmra.mrb[8].mxu0 %v18284_v8 }
 0x751   :  { %v7576_v51 = vadd.f32 %v14601_v13, %v18193_v30  ;;  %v7344_v38 = vpop.f32.mrb[33].mxu1 }
 0x752   :  { %v7574_v57 = vadd.f32 %v18193_v30, %v7344_v38  ;;  %v14602_v25 = vpop.f32.mrb[34].mxu1 }
 0x753   :  { %v7640_v41 = vmax.f32 %v7576_v51, 0.0  ;;  %v7577_v9 = vadd.f32 %v14602_v25, %v18193_v30  ;;  %v7347_v44 = vpop.f32.mrb[35].mxu1 }
 0x754   :  { %v7638_v63 = vmax.f32 %v7574_v57, 0.0  ;;  %v18295_v49 = vadd.f32 %v18193_v30, %v7347_v44 }
 0x755   :  { %v7641_v55 = vmax.f32 %v7577_v9, 0.0 }
 0x756   :  { %v18297_v15 = vpack.c.bf16 %v7640_v41, %v7638_v63  ;;  %v19421_v43 = vmax.f32 %v18295_v49, 0.0 }
 0x758   :  { %v18302_v6 = vpack.c.bf16 %v7641_v55, %v19421_v43  ;;  %v14605_v1 = vpop.f32.mrb[36].mxu1 }
 0x759   :  { %v7580_v45 = vadd.f32 %v14605_v1, %v18193_v30  ;;  %v7360_v56 = vpop.f32.mrb[37].mxu1 }
 0x75a   :  { %v7578_v5 = vadd.f32 %v18193_v30, %v7360_v56  ;;  %v14606_v39 = vpop.f32.mrb[38].mxu1 }
 0x75b   :  { %v7644_v19 = vmax.f32 %v7580_v45, 0.0  ;;  %v7581_v20 = vadd.f32 %v14606_v39, %v18193_v30  ;;  %v7363_v33 = vpop.f32.mrb[39].mxu1 }
 0x75c   :  { %v7642_v17 = vmax.f32 %v7578_v5, 0.0  ;;  %v7579_v47 = vadd.f32 %v18193_v30, %v7363_v33 }
 0x75d   :  { %v7645_v35 = vmax.f32 %v7581_v20, 0.0 }
 0x75e   :  { %v18308_v28 = vpack.c.bf16 %v7644_v19, %v7642_v17  ;;  %v7643_v24 = vmax.f32 %v7579_v47, 0.0 }
 0x760   :  { %v18310_v58 = vpack.c.bf16 %v7643_v24, %v7641_v55  ;;  %v18312_v61 = vpack.c.bf16 %v7645_v35, %v7643_v24  ;;  %v14609_v48 = vpop.f32.mrb[40].mxu1 }
 0x761   :  { %v7584_v37 = vadd.f32 %v14609_v48, %v18193_v30  ;;  %v7376_v36 = vpop.f32.mrb[41].mxu1 }
 0x762   :  { %v7582_v13 = vadd.f32 %v18193_v30, %v7376_v36  ;;  %v14610_v51 = vpop.f32.mrb[42].mxu1 }
 0x763   :  { %v7648_v38 = vmax.f32 %v7584_v37, 0.0  ;;  %v7585_v57 = vadd.f32 %v14610_v51, %v18193_v30  ;;  %v7379_v25 = vpop.f32.mrb[43].mxu1 }
 0x764   :  { %v7646_v41 = vmax.f32 %v7582_v13, 0.0  ;;  %v18318_v9 = vadd.f32 %v18193_v30, %v7379_v25 }
 0x765   :  { %v7649_v44 = vmax.f32 %v7585_v57, 0.0 }
 0x766   :  { %v18320_v63 = vpack.c.bf16 %v7648_v38, %v7646_v41  ;;  %v7647_v55 = vmax.f32 %v18318_v9, 0.0  ;;  %v16184_v9 = vld [vmem:[%s19330_s5 + $0xb0] sm:$0xff]  }
 0x768   :  { %v18325_v1 = vpack.c.bf16 %v7649_v44, %v7647_v55  ;;  %v14613_v45 = vpop.f32.mrb[44].mxu1  ;;  %14659 = vmatprep.mubr.bf16.mxu0 %v18320_v63 }
 0x769   :  { %v7588_v56 = vadd.f32 %v14613_v45, %v18193_v30  ;;  %v7392_v5 = vpop.f32.mrb[45].mxu1 }
 0x76a   :  { %v7586_v39 = vadd.f32 %v18193_v30, %v7392_v5  ;;  %v14614_v19 = vpop.f32.mrb[46].mxu1 }
 0x76b   :  { %v7652_v20 = vmax.f32 %v7588_v56, 0.0  ;;  %v7589_v33 = vadd.f32 %v14614_v19, %v18193_v30  ;;  %v7395_v17 = vpop.f32.mrb[47].mxu1 }
 0x76c   :  { %v7650_v47 = vmax.f32 %v7586_v39, 0.0  ;;  %v7587_v35 = vadd.f32 %v18193_v30, %v7395_v17  ;;  %v16179_v17 = vld [vmem:[%s19330_s5 + $0x88] sm:$0xff]  }
 0x76d   :  { %v7653_v24 = vmax.f32 %v7589_v33, 0.0 }
 0x76e   :  { %v18332_v48 = vpack.c.bf16 %v7652_v20, %v7650_v47  ;;  %v7651_v37 = vmax.f32 %v7587_v35, 0.0  ;;  %v18355_v47 = vpack.c.bf16 %v7615_v12, %v19576_v26 }
 0x770   :  { %v18334_v36 = vpack.c.bf16 %v7651_v37, %v7649_v44  ;;  %v18336_v13 = vpack.c.bf16 %v7653_v24, %v7651_v37  ;;  %v14617_v51 = vpop.f32.mrb[48].mxu1  ;;  %14660 = vmatmul.mubr.bf16.gmra.mrb[12].mxu0 %v18332_v48 }
 0x771   :  { %v7592_v38 = vadd.f32 %v14617_v51, %v18193_v30  ;;  %v7408_v57 = vpop.f32.mrb[49].mxu1  ;;  %14679 = vmatprep.mubr.bf16.mxu0 %v19721_v11 }
 0x772   :  { %v7590_v25 = vadd.f32 %v18193_v30, %v7408_v57  ;;  %v14618_v41 = vpop.f32.mrb[50].mxu1 }
 0x773   :  { %v7656_v45 = vmax.f32 %v7592_v38, 0.0  ;;  %v7593_v56 = vadd.f32 %v14618_v41, %v18193_v30  ;;  %v7411_v5 = vpop.f32.mrb[51].mxu1 }
 0x774   :  { %v7654_v39 = vmax.f32 %v7590_v25, 0.0  ;;  %v18344_v44 = vadd.f32 %v18193_v30, %v7411_v5 }
 0x775   :  { %v7657_v19 = vmax.f32 %v7593_v56, 0.0 }
 0x776   :  { %v18346_v20 = vpack.c.bf16 %v7656_v45, %v7654_v39  ;;  %v19420_v33 = vmax.f32 %v18344_v44, 0.0 }
 0x778   :  { %v18359_v35 = vpack.c.bf16 %v7657_v19, %v19420_v33  ;;  %v14621_v24 = vpop.f32.mrb[52].mxu1  ;;  %14680 = vmatmul.mubr.bf16.vlgmr.msra.gmra.mrb[0].mxu0 %v19721_v11 }
 0x779   :  { %v7596_v37 = vadd.f32 %v14621_v24, %v18193_v30  ;;  %14696 = vmatpush3.bf16.msra.mxu0 %v18187_v3  ;;  %v7424_v51 = vpop.f32.mrb[53].mxu1  ;;  %14683 = vmatprep.mubr.bf16.mxu0 %v18355_v47  ;;  %v16181_v24 = vld [vmem:[%s19330_s5 + $0x98] sm:$0xff]  }
 0x77a   :  { %v7594_v38 = vadd.f32 %v18193_v30, %v7424_v51  ;;  %v14622_v57 = vpop.f32.mrb[54].mxu1  ;;  %14697 = vmatprep.subr.bf16.mxu0 %v16179_v17 }
 0x77b   :  { %v7660_v12 = vmax.f32 %v7596_v37, 0.0  ;;  %v7597_v25 = vadd.f32 %v14622_v57, %v18193_v30  ;;  %v7427_v41 = vpop.f32.mrb[55].mxu1  ;;  %v18379_v37 = vpack.c.bf16 %v7631_v14, %v19576_v26 }
 0x77c   :  { %v7658_v45 = vmax.f32 %v7594_v38, 0.0  ;;  %v7595_v56 = vadd.f32 %v18193_v30, %v7427_v41 }
 0x77d   :  { %v7661_v5 = vmax.f32 %v7597_v25, 0.0  ;;  %14698 = vmatpush3.bf16.msra.mxu0 %v16179_v17 }
 0x77e   :  { %v18371_v3 = vpack.c.bf16 %v7660_v12, %v7658_v45  ;;  %v7659_v39 = vmax.f32 %v7595_v56, 0.0  ;;  %14699 = vmatprep.subr.bf16.mxu0 %v16180_v52 }
 0x780   :  { %v18381_v51 = vpack.c.bf16 %v7659_v39, %v7657_v19  ;;  %v18383_v38 = vpack.c.bf16 %v7661_v5, %v7659_v39  ;;  %v14625_v57 = vpop.f32.mrb[56].mxu1  ;;  %14684 = vmatmul.mubr.bf16.gmra.mrb[4].mxu0 %v18238_v16 }
 0x781   :  { %v7600_v17 = vadd.f32 %v14625_v57, %v18193_v30  ;;  %14700 = vmatpush3.bf16.msra.mxu0 %v16180_v52  ;;  %v7440_v12 = vpop.f32.mrb[57].mxu1  ;;  %14687 = vmatprep.mubr.bf16.mxu0 %v18379_v37 }
 0x782   :  { %v7598_v25 = vadd.f32 %v18193_v30, %v7440_v12  ;;  %v14626_v41 = vpop.f32.mrb[58].mxu1  ;;  %14701 = vmatprep.subr.bf16.mxu0 %v16181_v24  ;;  %v16183_v12 = vld [vmem:[%s19330_s5 + $0xa8] sm:$0xff]  }
 0x783   :  { %v7664_v14 = vmax.f32 %v7600_v17, 0.0  ;;  %v7601_v19 = vadd.f32 %v14626_v41, %v18193_v30  ;;  %v7443_v45 = vpop.f32.mrb[59].mxu1  ;;  %v18405_v17 = vpack.c.bf16 %v7647_v55, %v19576_v26 }
 0x784   :  { %v7662_v56 = vmax.f32 %v7598_v25, 0.0  ;;  %v18394_v5 = vadd.f32 %v18193_v30, %v7443_v45 }
 0x785   :  { %v7665_v52 = vmax.f32 %v7601_v19, 0.0  ;;  %14702 = vmatpush3.bf16.msra.mxu0 %v16181_v24 }
 0x786   :  { %v18396_v39 = vpack.c.bf16 %v7664_v14, %v7662_v56  ;;  %v19419_v57 = vmax.f32 %v18394_v5, 0.0  ;;  %14703 = vmatprep.subr.bf16.mxu0 %v16182_v42 }
 0x788   :  { %v18409_v25 = vpack.c.bf16 %v7665_v52, %v19419_v57  ;;  %v14629_v41 = vpop.f32.mrb[60].mxu1  ;;  %14688 = vmatmul.mubr.bf16.gmra.mrb[8].mxu0 %v18286_v23 }
 0x789   :  { %v7604_v24 = vadd.f32 %v14629_v41, %v18193_v30  ;;  %14704 = vmatpush3.bf16.msra.mxu0 %v16182_v42  ;;  %v7456_v14 = vpop.f32.mrb[61].mxu1  ;;  %14691 = vmatprep.mubr.bf16.mxu0 %v18405_v17 }
 0x78a   :  { %19726 = vst [vmem:[#allocation10_spill] sm:$0xff] %v18409_v25  ;;  %v7602_v19 = vadd.f32 %v18193_v30, %v7456_v14  ;;  %v14630_v45 = vpop.f32.mrb[62].mxu1  ;;  %14705 = vmatprep.subr.bf16.mxu0 %v16183_v12  ;;  %v16185_v14 = vld [vmem:[%s19330_s5 + $0xb8] sm:$0xff]  }
 0x78b   :  { %v7668_v55 = vmax.f32 %v7604_v24, 0.0  ;;  %v7605_v56 = vadd.f32 %v14630_v45, %v18193_v30  ;;  %v7459_v57 = vpop.f32.mrb[63].mxu1  ;;  %v16193_v24 = vld [vmem:[%s19330_s5 + $0xf8] sm:$0xff]  }
 0x78c   :  { %v7666_v33 = vmax.f32 %v7602_v19, 0.0  ;;  %v7603_v43 = vadd.f32 %v18193_v30, %v7459_v57  ;;  %v16186_v30 = vld [vmem:[%s19330_s5 + $0xc0] sm:$0xff]   ;;  %v16191_v57 = vld [vmem:[%s19330_s5 + $0xe8] sm:$0xff]   ;;  %v19727_v19 = vmax.f32 %v18199_v18, 0.0 }
 0x78d   :  { %v7669_v41 = vmax.f32 %v7605_v56, 0.0  ;;  %14706 = vmatpush3.bf16.msra.mxu0 %v16183_v12  ;;  %v16192_v12 = vld [vmem:[%s19330_s5 + $0xf0] sm:$0xff]   ;;  %v19728_v56 = vmax.f32 %v18247_v60, 0.0 }
 0x78e   :  { %v18420_v42 = vpack.c.bf16 %v7668_v55, %v7666_v33  ;;  %v7667_v0 = vmax.f32 %v7603_v43, 0.0  ;;  %14707 = vmatprep.subr.bf16.mxu0 %v16184_v9  ;;  %v16187_v43 = vld [vmem:[%s19330_s5 + $0xc8] sm:$0xff]   ;;  %v16189_v33 = vld [vmem:[%s19330_s5 + $0xd8] sm:$0xff]   ;;  %v8430_v45 = vpack.c.bf16 %v19727_v19, %v19576_v26 }
 0x78f   :  { %v16195_v55 = vld [vmem:[%s19330_s5 + $0x108] sm:$0xff]   ;;  %v8432_v18 = vpack.c.bf16 %v19728_v56, %v19576_v26 }
 0x790   :  { %v18425_v32 = vpack.c.bf16 %v7667_v0, %v7665_v52  ;;  %v18427_v25 = vpack.c.bf16 %v7669_v41, %v7667_v0  ;;  %14692 = vmatmul.mubr.bf16.gmra.mrb[12].mxu0 %v18334_v36  ;;  %v16188_v0 = vld [vmem:[%s19330_s5 + $0xd0] sm:$0xff]   ;;  %v16190_v52 = vld [vmem:[%s19330_s5 + $0xe0] sm:$0xff]  }
 0x791   :  { %14708 = vmatpush3.bf16.msra.mxu0 %v16184_v9  ;;  %14711 = vmatprep.mubr.bf16.mxu0 %v19721_v11  ;;  %v16194_v9 = vld [vmem:[%s19330_s5 + $0x100] sm:$0xff]   ;;  %v16196_v41 = vld [vmem:[%s19330_s5 + $0x110] sm:$0xff]  }
 0x792   :  { %14709 = vmatprep.subr.bf16.mxu0 %v16185_v14 }
 0x795   :  { %14710 = vmatpush3.bf16.msra.mxu0 %v16185_v14  ;;  %v16197_v14 = vld [vmem:[%s19330_s5 + $0x118] sm:$0xff]  }
 0x796   :  { %14727 = vmatprep.subr.bf16.mxu0 %v16186_v30 }
 0x798   :  { %14712 = vmatmul.mubr.bf16.vlgmr.msra.gmra.mrb[0].mxu0 %v19721_v11 }
 0x799   :  { %14728 = vmatpush3.bf16.msra.mxu0 %v16186_v30  ;;  %14715 = vmatprep.mubr.bf16.mxu0 %v18229_v40  ;;  %v19729_v30 = vmax.f32 %v18295_v49, 0.0 }
 0x79a   :  { %14729 = vmatprep.subr.bf16.mxu0 %v16187_v43 }
 0x79b   :  { %v8434_v60 = vpack.c.bf16 %v19729_v30, %v19576_v26 }
 0x79d   :  { %14730 = vmatpush3.bf16.msra.mxu0 %v16187_v43  ;;  %v16199_v43 = vld [vmem:[%s19330_s5 + $0x128] sm:$0xff]  }
 0x79e   :  { %14731 = vmatprep.subr.bf16.mxu0 %v16188_v0 }
 0x7a0   :  { %14716 = vmatmul.mubr.bf16.gmra.mrb[4].mxu0 %v18240_v21 }
 0x7a1   :  { %14732 = vmatpush3.bf16.msra.mxu0 %v16188_v0  ;;  %14719 = vmatprep.mubr.bf16.mxu0 %v18277_v62  ;;  %v19730_v0 = vmax.f32 %v18344_v44, 0.0  ;;  %v16203_v44 = vld [vmem:[%s19330_s5 + $0x148] sm:$0xff]  }
 0x7a2   :  { %14733 = vmatprep.subr.bf16.mxu0 %v16189_v33 }
 0x7a3   :  { %v8436_v49 = vpack.c.bf16 %v19730_v0, %v19576_v26 }
 0x7a5   :  { %14734 = vmatpush3.bf16.msra.mxu0 %v16189_v33  ;;  %v16201_v33 = vld [vmem:[%s19330_s5 + $0x138] sm:$0xff]  }
 0x7a6   :  { %14735 = vmatprep.subr.bf16.mxu0 %v16190_v52 }
 0x7a8   :  { %14720 = vmatmul.mubr.bf16.gmra.mrb[8].mxu0 %v18288_v29 }
 0x7a9   :  { %14736 = vmatpush3.bf16.msra.mxu0 %v16190_v52  ;;  %14723 = vmatprep.mubr.bf16.mxu0 %v18325_v1  ;;  %v19731_v52 = vmax.f32 %v18394_v5, 0.0  ;;  %v16227_v5 = vld [vmem:[%s19330_s5 + $0x208] sm:$0xff]  }
 0x7aa   :  { %14737 = vmatprep.subr.bf16.mxu0 %v16191_v57 }
 0x7ad   :  { %14738 = vmatpush3.bf16.msra.mxu0 %v16191_v57  ;;  %v9043_v57 = vpack.c.bf16 %v19731_v52, %v19576_v26 }
 0x7ae   :  { %14739 = vmatprep.subr.bf16.mxu0 %v16192_v12 }
 0x7b0   :  { %14724 = vmatmul.mubr.bf16.gmra.mrb[12].mxu0 %v18336_v13 }
 0x7b1   :  { %14740 = vmatpush3.bf16.msra.mxu0 %v16192_v12  ;;  %14743 = vmatprep.mubr.bf16.mxu0 %v8430_v45  ;;  %v18671_v12 = vld [vmem:[%s19333_s6] ss:$0 sm:$0xff] }
 0x7b2   :  { %14741 = vmatprep.subr.bf16.mxu0 %v16193_v24 }
 0x7b5   :  { %14742 = vmatpush3.bf16.msra.mxu0 %v16193_v24 }
 0x7b6   :  { %14759 = vmatprep.subr.bf16.mxu0 %v16194_v9 }
 0x7b8   :  { %14744 = vmatmul.mubr.bf16.vlgmr.msra.gmra.mrb[0].mxu0 %v18214_v53  ;;  %v16198_v53 = vld [vmem:[%s19330_s5 + $0x120] sm:$0xff]  }
 0x7b9   :  { %14760 = vmatpush3.bf16.msra.mxu0 %v16194_v9  ;;  %14747 = vmatprep.mubr.bf16.mxu0 %v8432_v18 }
 0x7ba   :  { %14761 = vmatprep.subr.bf16.mxu0 %v16195_v55 }
 0x7bd   :  { %14762 = vmatpush3.bf16.msra.mxu0 %v16195_v55 }
 0x7be   :  { %14763 = vmatprep.subr.bf16.mxu0 %v16196_v41 }
 0x7c0   :  { %14748 = vmatmul.mubr.bf16.gmra.mrb[4].mxu0 %v18262_v34  ;;  %v16200_v34 = vld [vmem:[%s19330_s5 + $0x130] sm:$0xff]  }
 0x7c1   :  { %14764 = vmatpush3.bf16.msra.mxu0 %v16196_v41  ;;  %14751 = vmatprep.mubr.bf16.mxu0 %v8434_v60 }
 0x7c2   :  { %14765 = vmatprep.subr.bf16.mxu0 %v16197_v14 }
 0x7c5   :  { %14766 = vmatpush3.bf16.msra.mxu0 %v16197_v14 }
 0x7c6   :  { %14767 = vmatprep.subr.bf16.mxu0 %v16198_v53 }
 0x7c8   :  { %14752 = vmatmul.mubr.bf16.gmra.mrb[8].mxu0 %v18310_v58  ;;  %v16202_v58 = vld [vmem:[%s19330_s5 + $0x140] sm:$0xff]  }
 0x7c9   :  { %14768 = vmatpush3.bf16.msra.mxu0 %v16198_v53  ;;  %14755 = vmatprep.mubr.bf16.mxu0 %v8436_v49 }
 0x7ca   :  { %14769 = vmatprep.subr.bf16.mxu0 %v16199_v43 }
 0x7cd   :  { %14770 = vmatpush3.bf16.msra.mxu0 %v16199_v43 }
 0x7ce   :  { %14771 = vmatprep.subr.bf16.mxu0 %v16200_v34 }
 0x7d0   :  { %14756 = vmatmul.mubr.bf16.gmra.mrb[12].mxu0 %v18381_v51  ;;  %v16205_v51 = vld [vmem:[%s19330_s5 + $0x158] sm:$0xff]  }
 0x7d1   :  { %14772 = vmatpush3.bf16.msra.mxu0 %v16200_v34  ;;  %14775 = vmatprep.mubr.bf16.mxu0 %v18201_v22  ;;  %v16204_v22 = vld [vmem:[%s19330_s5 + $0x150] sm:$0xff]  }
 0x7d2   :  { %14773 = vmatprep.subr.bf16.mxu0 %v16201_v33 }
 0x7d5   :  { %14774 = vmatpush3.bf16.msra.mxu0 %v16201_v33 }
 0x7d6   :  { %14791 = vmatprep.subr.bf16.mxu0 %v16202_v58 }
 0x7d8   :  { %14776 = vmatmul.mubr.bf16.vlgmr.msra.gmra.mrb[0].mxu0 %v18212_v4  ;;  %v16206_v4 = vld [vmem:[%s19330_s5 + $0x160] sm:$0xff]  }
 0x7d9   :  { %14792 = vmatpush3.bf16.msra.mxu0 %v16202_v58  ;;  %14779 = vmatprep.mubr.bf16.mxu0 %v18249_v7  ;;  %v16207_v7 = vld [vmem:[%s19330_s5 + $0x168] sm:$0xff]  }
 0x7da   :  { %14793 = vmatprep.subr.bf16.mxu0 %v16203_v44 }
 0x7dd   :  { %14794 = vmatpush3.bf16.msra.mxu0 %v16203_v44 }
 0x7de   :  { %14795 = vmatprep.subr.bf16.mxu0 %v16204_v22 }
 0x7e0   :  { %14780 = vmatmul.mubr.bf16.gmra.mrb[4].mxu0 %v18260_v46  ;;  %v16208_v46 = vld [vmem:[%s19330_s5 + $0x170] sm:$0xff]  }
 0x7e1   :  { %14796 = vmatpush3.bf16.msra.mxu0 %v16204_v22  ;;  %14783 = vmatprep.mubr.bf16.mxu0 %v18297_v15  ;;  %v16209_v15 = vld [vmem:[%s19330_s5 + $0x178] sm:$0xff]  }
 0x7e2   :  { %14797 = vmatprep.subr.bf16.mxu0 %v16205_v51 }
 0x7e5   :  { %14798 = vmatpush3.bf16.msra.mxu0 %v16205_v51 }
 0x7e6   :  { %14799 = vmatprep.subr.bf16.mxu0 %v16206_v4 }
 0x7e8   :  { %14784 = vmatmul.mubr.bf16.gmra.mrb[8].mxu0 %v18308_v28  ;;  %v16210_v28 = vld [vmem:[%s19330_s5 + $0x180] sm:$0xff]  }
 0x7e9   :  { %14800 = vmatpush3.bf16.msra.mxu0 %v16206_v4  ;;  %14787 = vmatprep.mubr.bf16.mxu0 %v18346_v20  ;;  %v16211_v20 = vld [vmem:[%s19330_s5 + $0x188] sm:$0xff]  }
 0x7ea   :  { %14801 = vmatprep.subr.bf16.mxu0 %v16207_v7 }
 0x7ed   :  { %14802 = vmatpush3.bf16.msra.mxu0 %v16207_v7 }
 0x7ee   :  { %14803 = vmatprep.subr.bf16.mxu0 %v16208_v46 }
 0x7f0   :  { %14788 = vmatmul.mubr.bf16.gmra.mrb[12].mxu0 %v18371_v3  ;;  %v16212_v3 = vld [vmem:[%s19330_s5 + $0x190] sm:$0xff]  }
 0x7f1   :  { %14804 = vmatpush3.bf16.msra.mxu0 %v16208_v46  ;;  %14807 = vmatprep.mubr.bf16.mxu0 %v18206_v50  ;;  %v16213_v50 = vld [vmem:[%s19330_s5 + $0x198] sm:$0xff]  }
 0x7f2   :  { %14805 = vmatprep.subr.bf16.mxu0 %v16209_v15 }
 0x7f5   :  { %14806 = vmatpush3.bf16.msra.mxu0 %v16209_v15 }
 0x7f6   :  { %14823 = vmatprep.subr.bf16.mxu0 %v16210_v28 }
 0x7f8   :  { %14808 = vmatmul.mubr.bf16.vlgmr.msra.gmra.mrb[0].mxu0 %v18216_v31  ;;  %v16214_v31 = vld [vmem:[%s19330_s5 + $0x1a0] sm:$0xff]  }
 0x7f9   :  { %14824 = vmatpush3.bf16.msra.mxu0 %v16210_v28  ;;  %14811 = vmatprep.mubr.bf16.mxu0 %v18254_v2  ;;  %v16215_v2 = vld [vmem:[%s19330_s5 + $0x1a8] sm:$0xff]  }
 0x7fa   :  { %14825 = vmatprep.subr.bf16.mxu0 %v16211_v20 }
 0x7fd   :  { %14826 = vmatpush3.bf16.msra.mxu0 %v16211_v20 }
 0x7fe   :  { %14827 = vmatprep.subr.bf16.mxu0 %v16212_v3 }
 0x800   :  { %14812 = vmatmul.mubr.bf16.gmra.mrb[4].mxu0 %v18264_v27  ;;  %v16216_v27 = vld [vmem:[%s19330_s5 + $0x1b0] sm:$0xff]  }
 0x801   :  { %14828 = vmatpush3.bf16.msra.mxu0 %v16212_v3  ;;  %14815 = vmatprep.mubr.bf16.mxu0 %v18302_v6  ;;  %v16217_v6 = vld [vmem:[%s19330_s5 + $0x1b8] sm:$0xff]   ;;  %v16243_v3 = vld [vmem:[%s19332_s7 + $0x8] sm:$0xff]  }
 0x802   :  { %14829 = vmatprep.subr.bf16.mxu0 %v16213_v50 }
 0x805   :  { %14830 = vmatpush3.bf16.msra.mxu0 %v16213_v50 }
 0x806   :  { %14831 = vmatprep.subr.bf16.mxu0 %v16214_v31 }
 0x808   :  { %14816 = vmatmul.mubr.bf16.gmra.mrb[8].mxu0 %v18312_v61  ;;  %v16218_v61 = vld [vmem:[%s19330_s5 + $0x1c0] sm:$0xff]  }
 0x809   :  { %14832 = vmatpush3.bf16.msra.mxu0 %v16214_v31  ;;  %14819 = vmatprep.mubr.bf16.mxu0 %v18359_v35  ;;  %v16219_v35 = vld [vmem:[%s19330_s5 + $0x1c8] sm:$0xff]  }
 0x80a   :  { %14833 = vmatprep.subr.bf16.mxu0 %v16215_v2 }
 0x80d   :  { %14834 = vmatpush3.bf16.msra.mxu0 %v16215_v2 }
 0x80e   :  { %14835 = vmatprep.subr.bf16.mxu0 %v16216_v27 }
 0x810   :  { %14820 = vmatmul.mubr.bf16.gmra.mrb[12].mxu0 %v18383_v38  ;;  %v16220_v38 = vld [vmem:[%s19330_s5 + $0x1d0] sm:$0xff]  }
 0x811   :  { %14836 = vmatpush3.bf16.msra.mxu0 %v16216_v27  ;;  %14839 = vmatprep.mubr.bf16.mxu0 %v18355_v47  ;;  %v16221_v47 = vld [vmem:[%s19330_s5 + $0x1d8] sm:$0xff]  }
 0x812   :  { %14837 = vmatprep.subr.bf16.mxu0 %v16217_v6 }
 0x815   :  { %14838 = vmatpush3.bf16.msra.mxu0 %v16217_v6 }
 0x816   :  { %14855 = vmatprep.subr.bf16.mxu0 %v16218_v61 }
 0x818   :  { %14840 = vmatmul.mubr.bf16.vlgmr.msra.gmra.mrb[0].mxu0 %v18238_v16  ;;  %v16222_v16 = vld [vmem:[%s19330_s5 + $0x1e0] sm:$0xff]  }
 0x819   :  { %14856 = vmatpush3.bf16.msra.mxu0 %v16218_v61  ;;  %14843 = vmatprep.mubr.bf16.mxu0 %v18379_v37  ;;  %v16223_v37 = vld [vmem:[%s19330_s5 + $0x1e8] sm:$0xff]  }
 0x81a   :  { %14857 = vmatprep.subr.bf16.mxu0 %v16219_v35 }
 0x81d   :  { %14858 = vmatpush3.bf16.msra.mxu0 %v16219_v35  ;;  %v16244_v35 = vld [vmem:[%s19332_s7 + $0x10] sm:$0xff]  }
 0x81e   :  { %14859 = vmatprep.subr.bf16.mxu0 %v16220_v38 }
 0x820   :  { %14844 = vmatmul.mubr.bf16.gmra.mrb[4].mxu0 %v18286_v23  ;;  %v16224_v23 = vld [vmem:[%s19330_s5 + $0x1f0] sm:$0xff]  }
 0x821   :  { %14860 = vmatpush3.bf16.msra.mxu0 %v16220_v38  ;;  %14847 = vmatprep.mubr.bf16.mxu0 %v18405_v17  ;;  %v16225_v17 = vld [vmem:[%s19330_s5 + $0x1f8] sm:$0xff]  }
 0x822   :  { %14861 = vmatprep.subr.bf16.mxu0 %v16221_v47 }
 0x825   :  { %14862 = vmatpush3.bf16.msra.mxu0 %v16221_v47 }
 0x826   :  { %14863 = vmatprep.subr.bf16.mxu0 %v16222_v16 }
 0x828   :  { %14848 = vmatmul.mubr.bf16.gmra.mrb[8].mxu0 %v18334_v36  ;;  %v16226_v36 = vld [vmem:[%s19330_s5 + $0x200] sm:$0xff]  }
 0x829   :  { %14864 = vmatpush3.bf16.msra.mxu0 %v16222_v16  ;;  %14851 = vmatprep.mubr.bf16.mxu0 %v9043_v57 }
 0x82a   :  { %14865 = vmatprep.subr.bf16.mxu0 %v16223_v37 }
 0x82d   :  { %14866 = vmatpush3.bf16.msra.mxu0 %v16223_v37 }
 0x82e   :  { %14867 = vmatprep.subr.bf16.mxu0 %v16224_v23 }
 0x830   :  { %14852 = vmatmul.mubr.bf16.gmra.mrb[12].mxu0 %v18425_v32  ;;  %v16228_v32 = vld [vmem:[%s19330_s5 + $0x210] sm:$0xff]  }
 0x831   :  { %14868 = vmatpush3.bf16.msra.mxu0 %v16224_v23  ;;  %14871 = vmatprep.mubr.bf16.mxu0 %v18224_v54  ;;  %v16229_v54 = vld [vmem:[%s19330_s5 + $0x218] sm:$0xff]  }
 0x832   :  { %14869 = vmatprep.subr.bf16.mxu0 %v16225_v17 }
 0x835   :  { %14870 = vmatpush3.bf16.msra.mxu0 %v16225_v17 }
 0x836   :  { %14887 = vmatprep.subr.bf16.mxu0 %v16226_v36 }
 0x838   :  { %14872 = vmatmul.mubr.bf16.vlgmr.msra.gmra.mrb[0].mxu0 %v18236_v10  ;;  %v16230_v10 = vld [vmem:[%s19330_s5 + $0x220] sm:$0xff]  }
 0x839   :  { %14888 = vmatpush3.bf16.msra.mxu0 %v16226_v36  ;;  %14875 = vmatprep.mubr.bf16.mxu0 %v18272_v59  ;;  %v16231_v59 = vld [vmem:[%s19330_s5 + $0x228] sm:$0xff]   ;;  %v16245_v36 = vld [vmem:[%s19332_s7 + $0x18] sm:$0xff]  }
 0x83a   :  { %14889 = vmatprep.subr.bf16.mxu0 %v16227_v5 }
 0x83d   :  { %14890 = vmatpush3.bf16.msra.mxu0 %v16227_v5 }
 0x83e   :  { %14891 = vmatprep.subr.bf16.mxu0 %v16228_v32 }
 0x840   :  { %14876 = vmatmul.mubr.bf16.gmra.mrb[4].mxu0 %v18284_v8  ;;  %v16232_v8 = vld [vmem:[%s19330_s5 + $0x230] sm:$0xff]  }
 0x841   :  { %14892 = vmatpush3.bf16.msra.mxu0 %v16228_v32  ;;  %14879 = vmatprep.mubr.bf16.mxu0 %v18320_v63  ;;  %v16233_v63 = vld [vmem:[%s19330_s5 + $0x238] sm:$0xff]  }
 0x842   :  { %14893 = vmatprep.subr.bf16.mxu0 %v16229_v54 }
 0x845   :  { %14894 = vmatpush3.bf16.msra.mxu0 %v16229_v54 }
 0x846   :  { %14895 = vmatprep.subr.bf16.mxu0 %v16230_v10 }
 0x848   :  { %14880 = vmatmul.mubr.bf16.gmra.mrb[8].mxu0 %v18332_v48  ;;  %v16234_v48 = vld [vmem:[%s19332_s7 + $0x40] sm:$0xff]  }
 0x849   :  { %14896 = vmatpush3.bf16.msra.mxu0 %v16230_v10  ;;  %14883 = vmatprep.mubr.bf16.mxu0 %v18396_v39  ;;  %v16235_v39 = vld [vmem:[%s19332_s7 + $0x48] sm:$0xff]  }
 0x84a   :  { %14897 = vmatprep.subr.bf16.mxu0 %v16231_v59 }
 0x84d   :  { %14898 = vmatpush3.bf16.msra.mxu0 %v16231_v59 }
 0x84e   :  { %14899 = vmatprep.subr.bf16.mxu0 %v16232_v8 }
 0x850   :  { %14884 = vmatmul.mubr.bf16.gmra.mrb[12].mxu0 %v18420_v42  ;;  %v16237_v42 = vld [vmem:[%s19332_s7 + $0x58] sm:$0xff]  }
 0x851   :  { %14900 = vmatpush3.bf16.msra.mxu0 %v16232_v8  ;;  %14903 = vmatprep.mubr.bf16.mxu0 %v18229_v40  ;;  %v16236_v40 = vld [vmem:[%s19332_s7 + $0x50] sm:$0xff]  }
 0x852   :  { %14901 = vmatprep.subr.bf16.mxu0 %v16233_v63 }
 0x855   :  { %14902 = vmatpush3.bf16.msra.mxu0 %v16233_v63  ;;  %v16246_v63 = vld [vmem:[%s19332_s7 + $0x20] sm:$0xff]  }
 0x856   :  { %14919 = vmatprep.subr.bf16.mxu0 %v16234_v48 }
 0x858   :  { %14904 = vmatmul.mubr.bf16.vlgmr.msra.gmra.mrb[0].mxu0 %v18240_v21  ;;  %v16238_v21 = vld [vmem:[%s19332_s7 + $0x60] sm:$0xff]  }
 0x859   :  { %14907 = vmatprep.mubr.bf16.mxu0 %v18277_v62  ;;  %14920 = vmatpush3.bf16.msra.mxu0 %v16234_v48  ;;  %v19732_v62 = vld [vmem:[#allocation10_spill] sm:$0xff] }
 0x85a   :  { %14921 = vmatprep.subr.bf16.mxu0 %v16235_v39 }
 0x85d   :  { %14922 = vmatpush3.bf16.msra.mxu0 %v16235_v39 }
 0x85e   :  { %14923 = vmatprep.subr.bf16.mxu0 %v16236_v40 }
 0x860   :  { %14908 = vmatmul.mubr.bf16.gmra.mrb[4].mxu0 %v18288_v29  ;;  %v16239_v29 = vld [vmem:[%s19332_s7 + $0x68] sm:$0xff]  }
 0x861   :  { %14911 = vmatprep.mubr.bf16.mxu0 %v18325_v1  ;;  %14924 = vmatpush3.bf16.msra.mxu0 %v16236_v40  ;;  %v16240_v1 = vld [vmem:[%s19332_s7 + $0x70] sm:$0xff]  }
 0x862   :  { %14925 = vmatprep.subr.bf16.mxu0 %v16237_v42 }
 0x865   :  { %14926 = vmatpush3.bf16.msra.mxu0 %v16237_v42 }
 0x866   :  { %14927 = vmatprep.subr.bf16.mxu0 %v16238_v21 }
 0x868   :  { %14912 = vmatmul.mubr.bf16.gmra.mrb[8].mxu0 %v18336_v13  ;;  %v16241_v13 = vld [vmem:[%s19332_s7 + $0x78] sm:$0xff]  }
 0x869   :  { %14915 = vmatprep.mubr.bf16.mxu0 %v19732_v62  ;;  %14928 = vmatpush3.bf16.msra.mxu0 %v16238_v21 }
 0x86a   :  { %14929 = vmatprep.subr.bf16.mxu0 %v16239_v29 }
 0x86d   :  { %14930 = vmatpush3.bf16.msra.mxu0 %v16239_v29 }
 0x86e   :  { %14931 = vmatprep.subr.bf16.mxu0 %v16240_v1 }
 0x870   :  { %14916 = vmatmul.mubr.bf16.gmra.mrb[12].mxu0 %v18427_v25  ;;  %v16242_v25 = vld [vmem:[%s19332_s7] sm:$0xff]  }
 0x871   :  { %14935 = vmatprep.mubr.bf16.mxu0 %v19721_v11  ;;  %14932 = vmatpush3.bf16.msra.mxu0 %v16240_v1 }
 0x872   :  { %14933 = vmatprep.subr.bf16.mxu0 %v16241_v13 }
 0x875   :  { %14934 = vmatpush3.bf16.msra.mxu0 %v16241_v13  ;;  %v16247_v13 = vld [vmem:[%s19332_s7 + $0x28] sm:$0xff]  }
 0x876   :  { %14939 = vmatprep.subr.bf16.mxu0 %v16242_v25 }
 0x92b   :  { %v14905_v24 = vpop.f32.mrb[0].mxu0 }
 0x92c   :  { %v9636_v19 = vadd.f32 %v14905_v24, %v18671_v12  ;;  %v9548_v45 = vpop.f32.mrb[1].mxu0  ;;  %v16249_v24 = vld [vmem:[%s19332_s7 + $0x38] sm:$0xff]  }
 0x92d   :  { %v9634_v9 = vadd.f32 %v18671_v12, %v9548_v45  ;;  %v14906_v55 = vpop.f32.mrb[2].mxu0 }
 0x92e   :  { %v9652_v56 = vmax.f32 %v9636_v19, 0.0  ;;  %v9637_v18 = vadd.f32 %v14906_v55, %v18671_v12  ;;  %v9551_v41 = vpop.f32.mrb[3].mxu0  ;;  %v16250_v19 = vld [vmem:[%s19332_s7 + $0x80] sm:$0xff]   ;;  %v16252_v55 = vld [vmem:[%s19332_s7 + $0x90] sm:$0xff]  }
 0x92f   :  { %v9650_v14 = vmax.f32 %v9634_v9, 0.0  ;;  %v9635_v30 = vadd.f32 %v18671_v12, %v9551_v41  ;;  %v16251_v9 = vld [vmem:[%s19332_s7 + $0x88] sm:$0xff]  }
 0x930   :  { %9668 = vst [vmem:[%s19334_s11 + $0x10] sm:$0xff] %v9652_v56  ;;  %v9653_v60 = vmax.f32 %v9637_v18, 0.0  ;;  %v16254_v18 = vld [vmem:[%s19332_s7 + $0xa0] sm:$0xff]   ;;  %v16255_v41 = vld [vmem:[%s19332_s7 + $0xa8] sm:$0xff]  }
 0x931   :  { %9666 = vst [vmem:[%s19334_s11] sm:$0xff] %v9650_v14  ;;  %v18683_v53 = vpack.c.bf16 %v9652_v56, %v9650_v14  ;;  %v18685_v43 = vmax.f32 %v9635_v30, 0.0  ;;  %v16253_v56 = vld [vmem:[%s19332_s7 + $0x98] sm:$0xff]   ;;  %v16256_v14 = vld [vmem:[%s19332_s7 + $0xb0] sm:$0xff]  }
 0x932   :  { %9669 = vst [vmem:[%s19334_s11 + $0x18] sm:$0xff] %v9653_v60  ;;  %v16257_v30 = vld [vmem:[%s19332_s7 + $0xb8] sm:$0xff]  }
 0x933   :  { %9667 = vst [vmem:[%s19334_s11 + $0x8] sm:$0xff] %v18685_v43  ;;  %v14909_v0 = vpop.f32.mrb[4].mxu0  ;;  %v18695_v49 = vpack.c.bf16 %v9653_v60, %v18685_v43  ;;  %v16258_v60 = vld [vmem:[%s19332_s7 + $0xc0] sm:$0xff]  }
 0x934   :  { %v9640_v34 = vadd.f32 %v14909_v0, %v18671_v12  ;;  %v9564_v33 = vpop.f32.mrb[5].mxu0  ;;  %v16259_v0 = vld [vmem:[%s19332_s7 + $0xc8] sm:$0xff]  }
 0x935   :  { %v9638_v58 = vadd.f32 %v18671_v12, %v9564_v33  ;;  %v14910_v44 = vpop.f32.mrb[6].mxu0  ;;  %v16260_v33 = vld [vmem:[%s19332_s7 + $0xd0] sm:$0xff]  }
 0x936   :  { %v9656_v22 = vmax.f32 %v9640_v34, 0.0  ;;  %v9641_v51 = vadd.f32 %v14910_v44, %v18671_v12  ;;  %v9567_v4 = vpop.f32.mrb[7].mxu0  ;;  %v10108_v34 = vpack.c.bf16 %v18685_v43, %v19576_v26  ;;  %v16262_v43 = vld [vmem:[%s19332_s7 + $0xe0] sm:$0xff]   ;;  %v16263_v44 = vld [vmem:[%s19332_s7 + $0xe8] sm:$0xff]  }
 0x937   :  { %v9654_v7 = vmax.f32 %v9638_v58, 0.0  ;;  %v9639_v46 = vadd.f32 %v18671_v12, %v9567_v4  ;;  %v16261_v58 = vld [vmem:[%s19332_s7 + $0xd8] sm:$0xff]   ;;  %v16266_v4 = vld [vmem:[%s19332_s7 + $0x100] sm:$0xff]  }
 0x938   :  { %9672 = vst [vmem:[%s19334_s11 + $0x30] sm:$0xff] %v9656_v22  ;;  %v9657_v15 = vmax.f32 %v9641_v51, 0.0  ;;  %v16265_v51 = vld [vmem:[%s19332_s7 + $0xf8] sm:$0xff]  }
 0x939   :  { %9670 = vst [vmem:[%s19334_s11 + $0x20] sm:$0xff] %v9654_v7  ;;  %v18707_v28 = vpack.c.bf16 %v9656_v22, %v9654_v7  ;;  %v18709_v20 = vmax.f32 %v9639_v46, 0.0  ;;  %v16264_v22 = vld [vmem:[%s19332_s7 + $0xf0] sm:$0xff]   ;;  %v16267_v46 = vld [vmem:[%s19332_s7 + $0x108] sm:$0xff]  }
 0x93a   :  { %9673 = vst [vmem:[%s19334_s11 + $0x38] sm:$0xff] %v9657_v15 }
 0x93b   :  { %9671 = vst [vmem:[%s19334_s11 + $0x28] sm:$0xff] %v18709_v20  ;;  %v18722_v50 = vpack.c.bf16 %v9657_v15, %v18709_v20  ;;  %v14913_v31 = vpop.f32.mrb[8].mxu0  ;;  %14936 = vmatmul.mubr.bf16.vlgmr.msra.gmra.mrb[16].mxu0 %v18707_v28  ;;  %v18797_v45 = vpack.c.bf16 %v18709_v20, %v19576_v26  ;;  %v16268_v15 = vld [vmem:[%s19332_s7 + $0x110] sm:$0xff]   ;;  %v16269_v20 = vld [vmem:[%s19332_s7 + $0x118] sm:$0xff]  }
 0x93c   :  { %v9644_v2 = vadd.f32 %v14913_v31, %v18671_v12  ;;  %14940 = vmatpush3.bf16.msra.mxu0 %v16242_v25  ;;  %v9580_v27 = vpop.f32.mrb[9].mxu0  ;;  %14955 = vmatprep.mubr.bf16.mxu0 %v19721_v11  ;;  %v16272_v31 = vld [vmem:[%s19332_s7 + $0x130] sm:$0xff]  }
 0x93d   :  { %v9642_v6 = vadd.f32 %v18671_v12, %v9580_v27  ;;  %v14914_v61 = vpop.f32.mrb[10].mxu0  ;;  %14941 = vmatprep.subr.bf16.mxu0 %v16243_v3  ;;  %v16274_v27 = vld [vmem:[%s19332_s7 + $0x140] sm:$0xff]  }
 0x93e   :  { %v9660_v38 = vmax.f32 %v9644_v2, 0.0  ;;  %v9645_v47 = vadd.f32 %v14914_v61, %v18671_v12  ;;  %v9583_v16 = vpop.f32.mrb[11].mxu0  ;;  %v16273_v2 = vld [vmem:[%s19332_s7 + $0x138] sm:$0xff]   ;;  %v16276_v61 = vld [vmem:[%s19332_s7 + $0x150] sm:$0xff]  }
 0x93f   :  { %v9658_v37 = vmax.f32 %v9642_v6, 0.0  ;;  %v9643_v52 = vadd.f32 %v18671_v12, %v9583_v16  ;;  %v16275_v6 = vld [vmem:[%s19332_s7 + $0x148] sm:$0xff]   ;;  %v16281_v16 = vld [vmem:[%s19332_s7 + $0x178] sm:$0xff]  }
 0x940   :  { %9676 = vst [vmem:[%s19334_s11 + $0x50] sm:$0xff] %v9660_v38  ;;  %v9661_v57 = vmax.f32 %v9645_v47, 0.0  ;;  %14942 = vmatpush3.bf16.msra.mxu0 %v16243_v3  ;;  %v16270_v3 = vld [vmem:[%s19332_s7 + $0x120] sm:$0xff]   ;;  %v16280_v47 = vld [vmem:[%s19332_s7 + $0x170] sm:$0xff]  }
 0x941   :  { %9674 = vst [vmem:[%s19334_s11 + $0x40] sm:$0xff] %v9658_v37  ;;  %v18739_v23 = vpack.c.bf16 %v9660_v38, %v9658_v37  ;;  %v18741_v17 = vmax.f32 %v9643_v52, 0.0  ;;  %14943 = vmatprep.subr.bf16.mxu0 %v16244_v35  ;;  %v16278_v38 = vld [vmem:[%s19332_s7 + $0x160] sm:$0xff]   ;;  %v16283_v52 = vld [vmem:[%s19332_s7 + $0x188] sm:$0xff]  }
 0x942   :  { %9677 = vst [vmem:[%s19334_s11 + $0x58] sm:$0xff] %v9661_v57  ;;  %v16282_v37 = vld [vmem:[%s19332_s7 + $0x180] sm:$0xff]  }
 0x943   :  { %9675 = vst [vmem:[%s19334_s11 + $0x48] sm:$0xff] %v18741_v17  ;;  %v18754_v5 = vpack.c.bf16 %v9661_v57, %v18741_v17  ;;  %v14917_v32 = vpop.f32.mrb[12].mxu0  ;;  %v10109_v7 = vpack.c.bf16 %v18741_v17, %v19576_v26  ;;  %v16284_v57 = vld [vmem:[%s19332_s7 + $0x190] sm:$0xff]   ;;  %v16286_v17 = vld [vmem:[%s19332_s7 + $0x1a0] sm:$0xff]  }
 0x944   :  { %v9648_v54 = vadd.f32 %v14917_v32, %v18671_v12  ;;  %14944 = vmatpush3.bf16.msra.mxu0 %v16244_v35  ;;  %v9596_v10 = vpop.f32.mrb[13].mxu0  ;;  %v16277_v35 = vld [vmem:[%s19332_s7 + $0x158] sm:$0xff]  }
 0x945   :  { %v9646_v59 = vadd.f32 %v18671_v12, %v9596_v10  ;;  %v14918_v8 = vpop.f32.mrb[14].mxu0  ;;  %14945 = vmatprep.subr.bf16.mxu0 %v16245_v36  ;;  %v16289_v32 = vld [vmem:[%s19332_s7 + $0x1b8] sm:$0xff]   ;;  %v16321_v10 = vld [vmem:[%s19335_s9 + $0xc0] sm:$0xff]  }
 0x946   :  { %v9664_v48 = vmax.f32 %v9648_v54, 0.0  ;;  %v9649_v39 = vadd.f32 %v14918_v8, %v18671_v12  ;;  %v9599_v40 = vpop.f32.mrb[15].mxu0  ;;  %v16290_v54 = vld [vmem:[%s19332_s7 + $0x1c0] sm:$0xff]   ;;  %15160 = vmatpush3.bf16.msra.mxu1 %v16321_v10  ;;  %v16291_v8 = vld [vmem:[%s19332_s7 + $0x1c8] sm:$0xff]   ;;  %v16350_v10 = vld [vmem:[%s19335_s9 + $0x130] sm:$0xff]  }
 0x947   :  { %v9662_v42 = vmax.f32 %v9646_v59, 0.0  ;;  %v9647_v21 = vadd.f32 %v18671_v12, %v9599_v40  ;;  %v16248_v12 = vld [vmem:[%s19332_s7 + $0x30] sm:$0xff]   ;;  %15161 = vmatprep.subr.bf16.mxu1 %v19576_v26  ;;  %v16294_v40 = vld [vmem:[%s19332_s7 + $0x1e0] sm:$0xff]  }
 0x948   :  { %9680 = vst [vmem:[%s19334_s11 + $0x70] sm:$0xff] %v9664_v48  ;;  %v9665_v62 = vmax.f32 %v9649_v39, 0.0  ;;  %14946 = vmatpush3.bf16.msra.mxu0 %v16245_v36  ;;  %v16287_v36 = vld [vmem:[%s19332_s7 + $0x1a8] sm:$0xff]   ;;  %v16293_v39 = vld [vmem:[%s19332_s7 + $0x1d8] sm:$0xff]  }
 0x949   :  { %9678 = vst [vmem:[%s19334_s11 + $0x60] sm:$0xff] %v9662_v42  ;;  %v18769_v29 = vpack.c.bf16 %v9664_v48, %v9662_v42  ;;  %v18771_v1 = vmax.f32 %v9647_v21, 0.0  ;;  %14947 = vmatprep.subr.bf16.mxu0 %v16246_v63  ;;  %v16325_v48 = vld [vmem:[%s19335_s9 + $0xc8] sm:$0xff]   ;;  %v16329_v42 = vld [vmem:[%s19335_s9 + $0xd8] sm:$0xff]  }
 0x94a   :  { %9681 = vst [vmem:[%s19334_s11 + $0x78] sm:$0xff] %v9665_v62  ;;  %15162 = vmatpush3.bf16.msra.mxu1 %v16325_v48  ;;  %v16295_v21 = vld [vmem:[%s19332_s7 + $0x1e8] sm:$0xff]  }
 0x94b   :  { %9679 = vst [vmem:[%s19334_s11 + $0x68] sm:$0xff] %v18771_v1  ;;  %v18784_v25 = vpack.c.bf16 %v9665_v62, %v18771_v1  ;;  %v10482_v59 = vpack.c.bf16 %v18771_v1, %v19576_v26  ;;  %15163 = vmatprep.subr.bf16.mxu1 %v19576_v26  ;;  %v16331_v62 = vld [vmem:[%s19335_s9 + $0xe0] sm:$0xff]   ;;  %v16296_v1 = vld [vmem:[%s19332_s7 + $0x1f0] sm:$0xff]  }
 0x94c   :  { %14948 = vmatpush3.bf16.msra.mxu0 %v16246_v63  ;;  %v16292_v63 = vld [vmem:[%s19332_s7 + $0x1d0] sm:$0xff]  }
 0x94d   :  { %14949 = vmatprep.subr.bf16.mxu0 %v16247_v13 }
 0x950   :  { %14950 = vmatpush3.bf16.msra.mxu0 %v16247_v13  ;;  %v16333_v13 = vld [vmem:[%s19335_s9 + $0xe8] sm:$0xff]  }
 0x951   :  { %14951 = vmatprep.subr.bf16.mxu0 %v16248_v12 }
 0x954   :  { %14952 = vmatpush3.bf16.msra.mxu0 %v16248_v12  ;;  %v16297_v12 = vld [vmem:[%s19332_s7 + $0x1f8] sm:$0xff]  }
 0x955   :  { %14953 = vmatprep.subr.bf16.mxu0 %v16249_v24 }
 0x958   :  { %14954 = vmatpush3.bf16.msra.mxu0 %v16249_v24  ;;  %v16335_v24 = vld [vmem:[%s19335_s9 + $0xf0] sm:$0xff]  }
 0x959   :  { %14959 = vmatprep.subr.bf16.mxu0 %v16250_v19 }
 0x95b   :  { %14956 = vmatmul.mubr.bf16.vlgmr.msra.gmra.mrb[16].mxu0 %v18797_v45 }
 0x95c   :  { %14960 = vmatpush3.bf16.msra.mxu0 %v16250_v19  ;;  %14975 = vmatprep.mubr.bf16.mxu0 %v19721_v11  ;;  %v16298_v19 = vld [vmem:[%s19332_s7 + $0x200] sm:$0xff]  }
 0x95d   :  { %14961 = vmatprep.subr.bf16.mxu0 %v16251_v9 }
 0x960   :  { %14962 = vmatpush3.bf16.msra.mxu0 %v16251_v9  ;;  %v16299_v9 = vld [vmem:[%s19332_s7 + $0x208] sm:$0xff]  }
 0x961   :  { %14963 = vmatprep.subr.bf16.mxu0 %v16252_v55 }
 0x964   :  { %14964 = vmatpush3.bf16.msra.mxu0 %v16252_v55  ;;  %v16339_v55 = vld [vmem:[%s19335_s9 + $0x140] sm:$0xff]  }
 0x965   :  { %14965 = vmatprep.subr.bf16.mxu0 %v16253_v56 }
 0x968   :  { %14966 = vmatpush3.bf16.msra.mxu0 %v16253_v56  ;;  %v16300_v56 = vld [vmem:[%s19332_s7 + $0x210] sm:$0xff]  }
 0x969   :  { %14967 = vmatprep.subr.bf16.mxu0 %v16254_v18 }
 0x96c   :  { %14968 = vmatpush3.bf16.msra.mxu0 %v16254_v18  ;;  %v16343_v18 = vld [vmem:[%s19335_s9 + $0x150] sm:$0xff]  }
 0x96d   :  { %14969 = vmatprep.subr.bf16.mxu0 %v16255_v41 }
 0x970   :  { %14970 = vmatpush3.bf16.msra.mxu0 %v16255_v41  ;;  %v16302_v41 = vld [vmem:[%s19332_s7 + $0x220] sm:$0xff]  }
 0x971   :  { %14971 = vmatprep.subr.bf16.mxu0 %v16256_v14 }
 0x974   :  { %14972 = vmatpush3.bf16.msra.mxu0 %v16256_v14  ;;  %v16345_v14 = vld [vmem:[%s19335_s9 + $0x158] sm:$0xff]  }
 0x975   :  { %14973 = vmatprep.subr.bf16.mxu0 %v16257_v30 }
 0x978   :  { %14974 = vmatpush3.bf16.msra.mxu0 %v16257_v30  ;;  %v16303_v30 = vld [vmem:[%s19332_s7 + $0x228] sm:$0xff]  }
 0x979   :  { %14979 = vmatprep.subr.bf16.mxu0 %v16258_v60 }
 0x97b   :  { %14976 = vmatmul.mubr.bf16.vlgmr.msra.gmra.mrb[16].mxu0 %v18722_v50 }
 0x97c   :  { %14980 = vmatpush3.bf16.msra.mxu0 %v16258_v60  ;;  %14995 = vmatprep.mubr.bf16.mxu0 %v10108_v34  ;;  %v16347_v60 = vld [vmem:[%s19335_s9 + $0x160] sm:$0xff]   ;;  %v16349_v34 = vld [vmem:[%s19335_s9 + $0x168] sm:$0xff]  }
 0x97d   :  { %14981 = vmatprep.subr.bf16.mxu0 %v16259_v0 }
 0x980   :  { %14982 = vmatpush3.bf16.msra.mxu0 %v16259_v0  ;;  %v16304_v0 = vld [vmem:[%s19332_s7 + $0x230] sm:$0xff]  }
 0x981   :  { %14983 = vmatprep.subr.bf16.mxu0 %v16260_v33 }
 0x984   :  { %14984 = vmatpush3.bf16.msra.mxu0 %v16260_v33  ;;  %v16305_v33 = vld [vmem:[%s19332_s7 + $0x238] sm:$0xff]  }
 0x985   :  { %14985 = vmatprep.subr.bf16.mxu0 %v16261_v58 }
 0x988   :  { %14986 = vmatpush3.bf16.msra.mxu0 %v16261_v58  ;;  %v16306_v58 = vld [vmem:[%s19335_s9 + $0x40] sm:$0xff]  }
 0x989   :  { %14987 = vmatprep.subr.bf16.mxu0 %v16262_v43 }
 0x98c   :  { %14988 = vmatpush3.bf16.msra.mxu0 %v16262_v43  ;;  %v16307_v43 = vld [vmem:[%s19335_s9 + $0x48] sm:$0xff]  }
 0x98d   :  { %14989 = vmatprep.subr.bf16.mxu0 %v16263_v44 }
 0x990   :  { %14990 = vmatpush3.bf16.msra.mxu0 %v16263_v44  ;;  %v16308_v44 = vld [vmem:[%s19335_s9 + $0x50] sm:$0xff]  }
 0x991   :  { %14991 = vmatprep.subr.bf16.mxu0 %v16264_v22 }
 0x994   :  { %14992 = vmatpush3.bf16.msra.mxu0 %v16264_v22  ;;  %v16310_v22 = vld [vmem:[%s19335_s9 + $0x60] sm:$0xff]  }
 0x995   :  { %14993 = vmatprep.subr.bf16.mxu0 %v16265_v51 }
 0x998   :  { %14994 = vmatpush3.bf16.msra.mxu0 %v16265_v51  ;;  %v16311_v51 = vld [vmem:[%s19335_s9 + $0x68] sm:$0xff]  }
 0x999   :  { %14999 = vmatprep.subr.bf16.mxu0 %v16266_v4 }
 0x99b   :  { %14996 = vmatmul.mubr.bf16.vlgmr.msra.gmra.mrb[16].mxu0 %v10109_v7  ;;  %v16313_v7 = vld [vmem:[%s19335_s9 + $0x78] sm:$0xff]  }
 0x99c   :  { %15000 = vmatpush3.bf16.msra.mxu0 %v16266_v4  ;;  %15015 = vmatprep.mubr.bf16.mxu0 %v18683_v53  ;;  %v16271_v53 = vld [vmem:[%s19332_s7 + $0x128] sm:$0xff]   ;;  %v16312_v4 = vld [vmem:[%s19335_s9 + $0x70] sm:$0xff]  }
 0x99d   :  { %15001 = vmatprep.subr.bf16.mxu0 %v16267_v46 }
 0x9a0   :  { %15002 = vmatpush3.bf16.msra.mxu0 %v16267_v46  ;;  %v16314_v46 = vld [vmem:[%s19335_s9] sm:$0xff]  }
 0x9a1   :  { %15003 = vmatprep.subr.bf16.mxu0 %v16268_v15 }
 0x9a4   :  { %15004 = vmatpush3.bf16.msra.mxu0 %v16268_v15  ;;  %v16315_v15 = vld [vmem:[%s19335_s9 + $0x8] sm:$0xff]  }
 0x9a5   :  { %15005 = vmatprep.subr.bf16.mxu0 %v16269_v20 }
 0x9a8   :  { %15006 = vmatpush3.bf16.msra.mxu0 %v16269_v20  ;;  %v16316_v20 = vld [vmem:[%s19335_s9 + $0x10] sm:$0xff]  }
 0x9a9   :  { %15007 = vmatprep.subr.bf16.mxu0 %v16270_v3 }
 0x9ac   :  { %15008 = vmatpush3.bf16.msra.mxu0 %v16270_v3  ;;  %v16317_v3 = vld [vmem:[%s19335_s9 + $0x18] sm:$0xff]  }
 0x9ad   :  { %15009 = vmatprep.subr.bf16.mxu0 %v16271_v53 }
 0x9b0   :  { %15010 = vmatpush3.bf16.msra.mxu0 %v16271_v53  ;;  %v16318_v53 = vld [vmem:[%s19335_s9 + $0x20] sm:$0xff]  }
 0x9b1   :  { %15011 = vmatprep.subr.bf16.mxu0 %v16272_v31 }
 0x9b4   :  { %15012 = vmatpush3.bf16.msra.mxu0 %v16272_v31  ;;  %v16319_v31 = vld [vmem:[%s19335_s9 + $0x28] sm:$0xff]  }
 0x9b5   :  { %15013 = vmatprep.subr.bf16.mxu0 %v16273_v2 }
 0x9b8   :  { %15014 = vmatpush3.bf16.msra.mxu0 %v16273_v2  ;;  %v16320_v2 = vld [vmem:[%s19335_s9 + $0x30] sm:$0xff]  }
 0x9b9   :  { %15019 = vmatprep.subr.bf16.mxu0 %v16274_v27 }
 0x9bb   :  { %15016 = vmatmul.mubr.bf16.vlgmr.msra.gmra.mrb[16].mxu0 %v18739_v23  ;;  %v16285_v23 = vld [vmem:[%s19332_s7 + $0x198] sm:$0xff]  }
 0x9bc   :  { %15020 = vmatpush3.bf16.msra.mxu0 %v16274_v27  ;;  %15035 = vmatprep.mubr.bf16.mxu0 %v18695_v49  ;;  %v16279_v49 = vld [vmem:[%s19332_s7 + $0x168] sm:$0xff]   ;;  %v16322_v27 = vld [vmem:[%s19335_s9 + $0x38] sm:$0xff]  }
 0x9bd   :  { %15021 = vmatprep.subr.bf16.mxu0 %v16275_v6 }
 0x9c0   :  { %15022 = vmatpush3.bf16.msra.mxu0 %v16275_v6  ;;  %v16323_v6 = vld [vmem:[%s19335_s9 + $0x80] sm:$0xff]  }
 0x9c1   :  { %15023 = vmatprep.subr.bf16.mxu0 %v16276_v61 }
 0x9c4   :  { %15024 = vmatpush3.bf16.msra.mxu0 %v16276_v61  ;;  %v16324_v61 = vld [vmem:[%s19335_s9 + $0x88] sm:$0xff]  }
 0x9c5   :  { %15025 = vmatprep.subr.bf16.mxu0 %v16277_v35 }
 0x9c8   :  { %15026 = vmatpush3.bf16.msra.mxu0 %v16277_v35  ;;  %v16326_v35 = vld [vmem:[%s19335_s9 + $0x90] sm:$0xff]  }
 0x9c9   :  { %15027 = vmatprep.subr.bf16.mxu0 %v16278_v38 }
 0x9cc   :  { %15028 = vmatpush3.bf16.msra.mxu0 %v16278_v38  ;;  %v16328_v38 = vld [vmem:[%s19335_s9 + $0x98] sm:$0xff]  }
 0x9cd   :  { %15029 = vmatprep.subr.bf16.mxu0 %v16279_v49 }
 0x9d0   :  { %15030 = vmatpush3.bf16.msra.mxu0 %v16279_v49  ;;  %v16330_v49 = vld [vmem:[%s19335_s9 + $0xa0] sm:$0xff]  }
 0x9d1   :  { %15031 = vmatprep.subr.bf16.mxu0 %v16280_v47 }
 0x9d4   :  { %15032 = vmatpush3.bf16.msra.mxu0 %v16280_v47  ;;  %v16332_v47 = vld [vmem:[%s19335_s9 + $0xa8] sm:$0xff]  }
 0x9d5   :  { %15033 = vmatprep.subr.bf16.mxu0 %v16281_v16 }
 0x9d8   :  { %15034 = vmatpush3.bf16.msra.mxu0 %v16281_v16  ;;  %v16351_v16 = vld [vmem:[%s19335_s9 + $0x170] sm:$0xff]  }
 0x9d9   :  { %15039 = vmatprep.subr.bf16.mxu0 %v16282_v37 }
 0x9db   :  { %15036 = vmatmul.mubr.bf16.vlgmr.msra.gmra.mrb[16].mxu0 %v18754_v5  ;;  %v16288_v5 = vld [vmem:[%s19332_s7 + $0x1b0] sm:$0xff]  }
 0x9dc   :  { %15040 = vmatpush3.bf16.msra.mxu0 %v16282_v37  ;;  %15055 = vmatprep.mubr.bf16.mxu0 %v18797_v45  ;;  %v16337_v45 = vld [vmem:[%s19335_s9 + $0xf8] sm:$0xff]   ;;  %v16334_v37 = vld [vmem:[%s19335_s9 + $0xb0] sm:$0xff]  }
 0x9dd   :  { %15041 = vmatprep.subr.bf16.mxu0 %v16283_v52 }
 0x9e0   :  { %15042 = vmatpush3.bf16.msra.mxu0 %v16283_v52  ;;  %v16353_v52 = vld [vmem:[%s19335_s9 + $0x178] sm:$0xff]  }
 0x9e1   :  { %15043 = vmatprep.subr.bf16.mxu0 %v16284_v57 }
 0x9e4   :  { %15044 = vmatpush3.bf16.msra.mxu0 %v16284_v57  ;;  %v16336_v57 = vld [vmem:[%s19335_s9 + $0xb8] sm:$0xff]  }
 0x9e5   :  { %15045 = vmatprep.subr.bf16.mxu0 %v16285_v23 }
 0x9e8   :  { %15046 = vmatpush3.bf16.msra.mxu0 %v16285_v23  ;;  %v16338_v23 = vld [vmem:[%s19335_s9 + $0x100] sm:$0xff]  }
 0x9e9   :  { %15047 = vmatprep.subr.bf16.mxu0 %v16286_v17 }
 0x9ec   :  { %15048 = vmatpush3.bf16.msra.mxu0 %v16286_v17  ;;  %v16340_v17 = vld [vmem:[%s19335_s9 + $0x108] sm:$0xff]  }
 0x9ed   :  { %15049 = vmatprep.subr.bf16.mxu0 %v16287_v36 }
 0x9f0   :  { %15050 = vmatpush3.bf16.msra.mxu0 %v16287_v36  ;;  %v16342_v36 = vld [vmem:[%s19335_s9 + $0x110] sm:$0xff]  }
 0x9f1   :  { %15051 = vmatprep.subr.bf16.mxu0 %v16288_v5 }
 0x9f4   :  { %15052 = vmatpush3.bf16.msra.mxu0 %v16288_v5  ;;  %v16344_v5 = vld [vmem:[%s19335_s9 + $0x118] sm:$0xff]  }
 0x9f5   :  { %15053 = vmatprep.subr.bf16.mxu0 %v16289_v32 }
 0x9f8   :  { %15054 = vmatpush3.bf16.msra.mxu0 %v16289_v32  ;;  %v16346_v32 = vld [vmem:[%s19335_s9 + $0x120] sm:$0xff]  }
 0x9f9   :  { %15059 = vmatprep.subr.bf16.mxu0 %v16290_v54 }
 0x9fb   :  { %15056 = vmatmul.mubr.bf16.vlgmr.msra.gmra.mrb[16].mxu0 %v10482_v59  ;;  %v16352_v59 = vld [vmem:[%s19335_s9 + $0x138] sm:$0xff]  }
 0x9fc   :  { %15060 = vmatpush3.bf16.msra.mxu0 %v16290_v54  ;;  %15075 = vmatprep.mubr.bf16.mxu0 %v18707_v28  ;;  %v16327_v28 = vld [vmem:[%s19335_s9 + $0xd0] sm:$0xff]   ;;  %v16348_v54 = vld [vmem:[%s19335_s9 + $0x128] sm:$0xff]  }
 0x9fd   :  { %15061 = vmatprep.subr.bf16.mxu0 %v16291_v8  ;;  %15164 = vmatpush3.bf16.msra.mxu1 %v16327_v28  ;;  %v12626_v28 = vld [vmem:[%s19336_s8] ss:$0 sm:$0xff] }
 0x9fe   :  { %15165 = vmatprep.subr.bf16.mxu1 %v19576_v26 }
 0xa00   :  { %15062 = vmatpush3.bf16.msra.mxu0 %v16291_v8 }
 0xa01   :  { %15063 = vmatprep.subr.bf16.mxu0 %v16292_v63  ;;  %15166 = vmatpush3.bf16.msra.mxu1 %v16329_v42 }
 0xa02   :  { %15167 = vmatprep.subr.bf16.mxu1 %v19576_v26 }
 0xa04   :  { %15064 = vmatpush3.bf16.msra.mxu0 %v16292_v63 }
 0xa05   :  { %15065 = vmatprep.subr.bf16.mxu0 %v16293_v39  ;;  %15168 = vmatpush3.bf16.msra.mxu1 %v16331_v62 }
 0xa06   :  { %15169 = vmatprep.subr.bf16.mxu1 %v19576_v26 }
 0xa08   :  { %15066 = vmatpush3.bf16.msra.mxu0 %v16293_v39 }
 0xa09   :  { %15067 = vmatprep.subr.bf16.mxu0 %v16294_v40  ;;  %15170 = vmatpush3.bf16.msra.mxu1 %v16333_v13 }
 0xa0a   :  { %15171 = vmatprep.subr.bf16.mxu1 %v19576_v26 }
 0xa0c   :  { %15068 = vmatpush3.bf16.msra.mxu0 %v16294_v40 }
 0xa0d   :  { %15069 = vmatprep.subr.bf16.mxu0 %v16295_v21  ;;  %15172 = vmatpush3.bf16.msra.mxu1 %v16335_v24 }
 0xa0e   :  { %15173 = vmatprep.subr.bf16.mxu1 %v19576_v26 }
 0xa10   :  { %15070 = vmatpush3.bf16.msra.mxu0 %v16295_v21 }
 0xa11   :  { %15071 = vmatprep.subr.bf16.mxu0 %v16296_v1  ;;  %15174 = vmatpush3.bf16.msra.mxu1 %v16337_v45 }
 0xa12   :  { %15199 = vmatprep.subr.bf16.mxu1 %v19576_v26 }
 0xa14   :  { %15072 = vmatpush3.bf16.msra.mxu0 %v16296_v1  ;;  %15176 = vmatmul.mubr.bf16.vlgmr.msra.gmra.mrb[64].mxu1 %v19721_v11 }
 0xa15   :  { %15073 = vmatprep.subr.bf16.mxu0 %v16297_v12  ;;  %15200 = vmatpush3.bf16.msra.mxu1 %v16339_v55  ;;  %v16354_v55 = vld [vmem:[%s19335_s9 + $0x180] sm:$0xff]  }
 0xa16   :  { %15215 = vmatprep.mubr.msk.bf16.mxu1 %vm16382_vm0, %v19576_v26  ;;  %15201 = vmatprep.subr.bf16.mxu1 %v19576_v26 }
 0xa18   :  { %15074 = vmatpush3.bf16.msra.mxu0 %v16297_v12 }
 0xa19   :  { %15079 = vmatprep.subr.bf16.mxu0 %v16298_v19 }
 0xa1b   :  { %15076 = vmatmul.mubr.bf16.vlgmr.msra.gmra.mrb[16].mxu0 %v18769_v29  ;;  %v16301_v29 = vld [vmem:[%s19332_s7 + $0x218] sm:$0xff]  }
 0xa1c   :  { %15080 = vmatpush3.bf16.msra.mxu0 %v16298_v19  ;;  %15095 = vmatprep.mubr.bf16.mxu0 %v18722_v50  ;;  %v16341_v50 = vld [vmem:[%s19335_s9 + $0x148] sm:$0xff]  }
 0xa1d   :  { %15081 = vmatprep.subr.bf16.mxu0 %v16299_v9  ;;  %15202 = vmatpush3.bf16.msra.mxu1 %v16341_v50 }
 0xa1e   :  { %15203 = vmatprep.subr.bf16.mxu1 %v19576_v26 }
 0xa20   :  { %15082 = vmatpush3.bf16.msra.mxu0 %v16299_v9 }
 0xa21   :  { %15083 = vmatprep.subr.bf16.mxu0 %v16300_v56  ;;  %15204 = vmatpush3.bf16.msra.mxu1 %v16343_v18 }
 0xa22   :  { %15205 = vmatprep.subr.bf16.mxu1 %v19576_v26 }
 0xa24   :  { %15084 = vmatpush3.bf16.msra.mxu0 %v16300_v56 }
 0xa25   :  { %15085 = vmatprep.subr.bf16.mxu0 %v16301_v29  ;;  %15206 = vmatpush3.bf16.msra.mxu1 %v16345_v14  ;;  %v16357_v14 = vld [vmem:[%s19335_s9 + $0x1c8] sm:$0xff]  }
 0xa26   :  { %15207 = vmatprep.subr.bf16.mxu1 %v19576_v26 }
 0xa28   :  { %15086 = vmatpush3.bf16.msra.mxu0 %v16301_v29  ;;  %v16355_v29 = vld [vmem:[%s19335_s9 + $0x1c0] sm:$0xff]  }
 0xa29   :  { %15087 = vmatprep.subr.bf16.mxu0 %v16302_v41  ;;  %15208 = vmatpush3.bf16.msra.mxu1 %v16347_v60  ;;  %v16359_v60 = vld [vmem:[%s19335_s9 + $0x1d0] sm:$0xff]  }
 0xa2a   :  { %15209 = vmatprep.subr.bf16.mxu1 %v19576_v26 }
 0xa2c   :  { %15088 = vmatpush3.bf16.msra.mxu0 %v16302_v41  ;;  %v16356_v41 = vld [vmem:[%s19335_s9 + $0x188] sm:$0xff]  }
 0xa2d   :  { %15089 = vmatprep.subr.bf16.mxu0 %v16303_v30  ;;  %15210 = vmatpush3.bf16.msra.mxu1 %v16349_v34  ;;  %v16361_v34 = vld [vmem:[%s19335_s9 + $0x1d8] sm:$0xff]  }
 0xa2e   :  { %15211 = vmatprep.subr.bf16.mxu1 %v19576_v26 }
 0xa30   :  { %15090 = vmatpush3.bf16.msra.mxu0 %v16303_v30  ;;  %v16358_v30 = vld [vmem:[%s19335_s9 + $0x190] sm:$0xff]  }
 0xa31   :  { %15091 = vmatprep.subr.bf16.mxu0 %v16304_v0  ;;  %15212 = vmatpush3.bf16.msra.mxu1 %v16351_v16 }
 0xa32   :  { %15213 = vmatprep.subr.bf16.mxu1 %v19576_v26 }
 0xa34   :  { %15092 = vmatpush3.bf16.msra.mxu0 %v16304_v0  ;;  %v16360_v0 = vld [vmem:[%s19335_s9 + $0x198] sm:$0xff]  }
 0xa35   :  { %15093 = vmatprep.subr.bf16.mxu0 %v16305_v33  ;;  %15214 = vmatpush3.bf16.msra.mxu1 %v16353_v52 }
 0xa36   :  { %15239 = vmatprep.subr.bf16.mxu1 %v19576_v26 }
 0xa38   :  { %15094 = vmatpush3.bf16.msra.mxu0 %v16305_v33  ;;  %v16362_v33 = vld [vmem:[%s19335_s9 + $0x1a0] sm:$0xff]  }
 0xa39   :  { %15099 = vmatprep.subr.bf16.mxu0 %v19576_v26 }
 0xa3b   :  { %15096 = vmatmul.mubr.bf16.vlgmr.msra.gmra.mrb[16].mxu0 %v18784_v25  ;;  %v16309_v25 = vld [vmem:[%s19335_s9 + $0x58] sm:$0xff]  }
 0xa3c   :  { %15100 = vmatpush3.bf16.msra.mxu0 %v16306_v58  ;;  %15115 = vmatprep.mubr.msk.bf16.mxu0 %vm16382_vm0, %v19576_v26  ;;  %v16363_v58 = vld [vmem:[%s19335_s9 + $0x1e0] sm:$0xff]  }
 0xa3d   :  { %15101 = vmatprep.subr.bf16.mxu0 %v19576_v26 }
 0xa40   :  { %15102 = vmatpush3.bf16.msra.mxu0 %v16307_v43  ;;  %v16364_v43 = vld [vmem:[%s19335_s9 + $0x1a8] sm:$0xff]  }
 0xa41   :  { %15103 = vmatprep.subr.bf16.mxu0 %v19576_v26 }
 0xa44   :  { %15104 = vmatpush3.bf16.msra.mxu0 %v16308_v44  ;;  %v16365_v44 = vld [vmem:[%s19335_s9 + $0x1e8] sm:$0xff]  }
 0xa45   :  { %15105 = vmatprep.subr.bf16.mxu0 %v19576_v26 }
 0xa48   :  { %15106 = vmatpush3.bf16.msra.mxu0 %v16309_v25  ;;  %v16366_v25 = vld [vmem:[%s19335_s9 + $0x1b0] sm:$0xff]  }
 0xa49   :  { %15107 = vmatprep.subr.bf16.mxu0 %v19576_v26 }
 0xa4c   :  { %15108 = vmatpush3.bf16.msra.mxu0 %v16310_v22  ;;  %v16367_v22 = vld [vmem:[%s19335_s9 + $0x1f0] sm:$0xff]  }
 0xa4d   :  { %15109 = vmatprep.subr.bf16.mxu0 %v19576_v26 }
 0xa50   :  { %15110 = vmatpush3.bf16.msra.mxu0 %v16311_v51 }
 0xa51   :  { %15111 = vmatprep.subr.bf16.mxu0 %v19576_v26 }
 0xa54   :  { %15112 = vmatpush3.bf16.msra.mxu0 %v16312_v4  ;;  %v16368_v4 = vld [vmem:[%s19335_s9 + $0x1b8] sm:$0xff]  }
 0xa55   :  { %15113 = vmatprep.subr.bf16.mxu0 %v19576_v26 }
 0xa58   :  { %15114 = vmatpush3.bf16.msra.mxu0 %v16313_v7 }
 0xa59   :  { %15119 = vmatprep.subr.bf16.mxu0 %v19576_v26 }
 0xa5b   :  { %15116 = vmatmul.mubr.bf16.vlgmr.msra.gmra.mrb[20].mxu0 %v19721_v11 }
 0xa5c   :  { %15120 = vmatpush3.bf16.msra.mxu0 %v16314_v46  ;;  %15135 = vmatprep.mubr.msk.bf16.mxu0 %vm16382_vm0, %v19576_v26 }
 0xa5d   :  { %15121 = vmatprep.subr.bf16.mxu0 %v19576_v26 }
 0xa60   :  { %15122 = vmatpush3.bf16.msra.mxu0 %v16315_v15  ;;  %v16369_v15 = vld [vmem:[%s19335_s9 + $0x1f8] sm:$0xff]  }
 0xa61   :  { %15123 = vmatprep.subr.bf16.mxu0 %v19576_v26 }
 0xa64   :  { %15124 = vmatpush3.bf16.msra.mxu0 %v16316_v20 }
 0xa65   :  { %15125 = vmatprep.subr.bf16.mxu0 %v19576_v26 }
 0xa68   :  { %15126 = vmatpush3.bf16.msra.mxu0 %v16317_v3  ;;  %v16370_v3 = vld [vmem:[%s19335_s9 + $0x200] sm:$0xff]  }
 0xa69   :  { %15127 = vmatprep.subr.bf16.mxu0 %v19576_v26 }
 0xa6c   :  { %15128 = vmatpush3.bf16.msra.mxu0 %v16318_v53 }
 0xa6d   :  { %15129 = vmatprep.subr.bf16.mxu0 %v19576_v26 }
 0xa70   :  { %15130 = vmatpush3.bf16.msra.mxu0 %v16319_v31  ;;  %v16371_v31 = vld [vmem:[%s19335_s9 + $0x208] sm:$0xff]  }
 0xa71   :  { %15131 = vmatprep.subr.bf16.mxu0 %v19576_v26 }
 0xa74   :  { %15132 = vmatpush3.bf16.msra.mxu0 %v16320_v2  ;;  %v16372_v2 = vld [vmem:[%s19335_s9 + $0x210] sm:$0xff]  }
 0xa75   :  { %15133 = vmatprep.subr.bf16.mxu0 %v19576_v26 }
 0xa78   :  { %15134 = vmatpush3.bf16.msra.mxu0 %v16322_v27  ;;  %v16374_v27 = vld [vmem:[%s19335_s9 + $0x220] sm:$0xff]  }
 0xa79   :  { %15139 = vmatprep.subr.bf16.mxu0 %v19576_v26 }
 0xa7b   :  { %15136 = vmatmul.mubr.bf16.vlgmr.msra.gmra.mrb[24].mxu0 %v19721_v11 }
 0xa7c   :  { %15140 = vmatpush3.bf16.msra.mxu0 %v16323_v6  ;;  %15155 = vmatprep.mubr.msk.bf16.mxu0 %vm16382_vm0, %v19576_v26  ;;  %v16375_v6 = vld [vmem:[%s19335_s9 + $0x228] sm:$0xff]  }
 0xa7d   :  { %15141 = vmatprep.subr.bf16.mxu0 %v19576_v26 }
 0xa80   :  { %15142 = vmatpush3.bf16.msra.mxu0 %v16324_v61  ;;  %v16376_v61 = vld [vmem:[%s19335_s9 + $0x230] sm:$0xff]  }
 0xa81   :  { %15143 = vmatprep.subr.bf16.mxu0 %v19576_v26 }
 0xa84   :  { %15144 = vmatpush3.bf16.msra.mxu0 %v16326_v35 }
 0xa85   :  { %15145 = vmatprep.subr.bf16.mxu0 %v19576_v26 }
 0xa88   :  { %15146 = vmatpush3.bf16.msra.mxu0 %v16328_v38  ;;  %v16377_v38 = vld [vmem:[%s19335_s9 + $0x238] sm:$0xff]  }
 0xa89   :  { %15147 = vmatprep.subr.bf16.mxu0 %v19576_v26 }
 0xa8c   :  { %15148 = vmatpush3.bf16.msra.mxu0 %v16330_v49 }
 0xa8d   :  { %15149 = vmatprep.subr.bf16.mxu0 %v19576_v26 }
 0xa90   :  { %15150 = vmatpush3.bf16.msra.mxu0 %v16332_v47 }
 0xa91   :  { %15151 = vmatprep.subr.bf16.mxu0 %v19576_v26 }
 0xa94   :  { %15152 = vmatpush3.bf16.msra.mxu0 %v16334_v37 }
 0xa95   :  { %15153 = vmatprep.subr.bf16.mxu0 %v19576_v26 }
 0xa98   :  { %15154 = vmatpush3.bf16.msra.mxu0 %v16336_v57 }
 0xa99   :  { %15179 = vmatprep.subr.bf16.mxu0 %v19576_v26 }
 0xa9b   :  { %15156 = vmatmul.mubr.bf16.vlgmr.msra.gmra.mrb[28].mxu0 %v19721_v11 }
 0xa9c   :  { %15180 = vmatpush3.bf16.msra.mxu0 %v16338_v23  ;;  %15195 = vmatprep.mubr.msk.bf16.mxu0 %vm16382_vm0, %v19576_v26 }
 0xa9d   :  { %15181 = vmatprep.subr.bf16.mxu0 %v19576_v26 }
 0xaa0   :  { %15182 = vmatpush3.bf16.msra.mxu0 %v16340_v17 }
 0xaa1   :  { %15183 = vmatprep.subr.bf16.mxu0 %v19576_v26 }
 0xaa4   :  { %15184 = vmatpush3.bf16.msra.mxu0 %v16342_v36 }
 0xaa5   :  { %15185 = vmatprep.subr.bf16.mxu0 %v19576_v26 }
 0xaa8   :  { %15186 = vmatpush3.bf16.msra.mxu0 %v16344_v5 }
 0xaa9   :  { %15187 = vmatprep.subr.bf16.mxu0 %v19576_v26 }
 0xaac   :  { %15188 = vmatpush3.bf16.msra.mxu0 %v16346_v32 }
 0xaad   :  { %15189 = vmatprep.subr.bf16.mxu0 %v19576_v26 }
 0xab0   :  { %15190 = vmatpush3.bf16.msra.mxu0 %v16348_v54 }
 0xab1   :  { %15191 = vmatprep.subr.bf16.mxu0 %v19576_v26 }
 0xab4   :  { %15192 = vmatpush3.bf16.msra.mxu0 %v16350_v10 }
 0xab5   :  { %15193 = vmatprep.subr.bf16.mxu0 %v19576_v26 }
 0xab8   :  { %15194 = vmatpush3.bf16.msra.mxu0 %v16352_v59 }
 0xab9   :  { %15219 = vmatprep.subr.bf16.mxu0 %v19576_v26 }
 0xae7   :  { %v19191_v8 = vpop.f32.mrb[64].mxu1 }
 0xae8   :  { %v15177_v63 = vpop.f32.mrb[65].mxu1 }
 0xae9   :  { %v11320_v48 = vpop.f32.mrb[66].mxu1 }
 0xaea   :  { %v15178_v39 = vpop.f32.mrb[67].mxu1 }
 0xb0e   :  { %v15097_v40 = vpop.f32.mrb[16].mxu0 }
 0xb0f   :  { %v10858_v42 = vadd.f32 %v15097_v40, %v12626_v28  ;;  %v10830_v21 = vpop.f32.mrb[17].mxu0 }
 0xb10   :  { %v10856_v62 = vadd.f32 %v12626_v28, %v10830_v21  ;;  %v15098_v1 = vpop.f32.mrb[18].mxu0 }
 0xb11   :  { %v19196_v13 = vmax.f32 %v10858_v42, 0.0  ;;  %v10859_v12 = vadd.f32 %v15098_v1, %v12626_v28  ;;  %v10833_v24 = vpop.f32.mrb[19].mxu0 }
 0xb12   :  { %v10860_v19 = vmax.f32 %v10856_v62, 0.0  ;;  %v10857_v45 = vadd.f32 %v12626_v28, %v10833_v24 }
 0xb13   :  { %10866 = vst [vmem:[%s19337_s12 + $0x10] sm:$0xff] %v19196_v13  ;;  %v19202_v9 = vmax.f32 %v10859_v12, 0.0  ;;  %v11650_v53 = vpack.c.bf16 %v19196_v13, %v19196_v13 }
 0xb14   :  { %10864 = vst [vmem:[%s19337_s12] sm:$0xff] %v10860_v19  ;;  %v11325_v56 = vpack.c.bf16 %v10860_v19, %v10860_v19  ;;  %v10861_v50 = vmax.f32 %v10857_v45, 0.0 }
 0xb15   :  { %10867 = vst [vmem:[%s19337_s12 + $0x18] sm:$0xff] %v19202_v9  ;;  %v11758_v52 = vpack.c.bf16 %v19202_v9, %v19202_v9 }
 0xb16   :  { %10865 = vst [vmem:[%s19337_s12 + $0x8] sm:$0xff] %v10861_v50  ;;  %v11433_v18 = vpack.c.bf16 %v10861_v50, %v10861_v50  ;;  %15196 = vmatmul.mubr.bf16.vlgmr.msra.gmra.mrb[32].mxu0 %v11325_v56  ;;  %v12827_v56 = vld [vmem:[%s19338_s10] ss:$0 sm:$0xff] }
 0xb17   :  { %15220 = vmatpush3.bf16.msra.mxu0 %v16354_v55  ;;  %15235 = vmatprep.mubr.msk.bf16.mxu0 %vm16382_vm0, %v19576_v26 }
 0xb18   :  { %15216 = vmatmul.mubr.bf16.vlgmr.msra.gmra.mrb[68].mxu1 %v11433_v18  ;;  %15221 = vmatprep.subr.bf16.mxu0 %v19576_v26 }
 0xb19   :  { %15240 = vmatpush3.bf16.msra.mxu1 %v16355_v29  ;;  %15255 = vmatprep.mubr.msk.bf16.mxu1 %vm16382_vm0, %v19576_v26 }
 0xb1a   :  { %15241 = vmatprep.subr.bf16.mxu1 %v19576_v26 }
 0xb1b   :  { %15222 = vmatpush3.bf16.msra.mxu0 %v16356_v41 }
 0xb1c   :  { %15223 = vmatprep.subr.bf16.mxu0 %v19576_v26 }
 0xb1d   :  { %15242 = vmatpush3.bf16.msra.mxu1 %v16357_v14 }
 0xb1e   :  { %15243 = vmatprep.subr.bf16.mxu1 %v19576_v26 }
 0xb1f   :  { %15224 = vmatpush3.bf16.msra.mxu0 %v16358_v30 }
 0xb20   :  { %15225 = vmatprep.subr.bf16.mxu0 %v19576_v26 }
 0xb21   :  { %15244 = vmatpush3.bf16.msra.mxu1 %v16359_v60 }
 0xb22   :  { %15245 = vmatprep.subr.bf16.mxu1 %v19576_v26 }
 0xb23   :  { %15226 = vmatpush3.bf16.msra.mxu0 %v16360_v0 }
 0xb24   :  { %15227 = vmatprep.subr.bf16.mxu0 %v19576_v26 }
 0xb25   :  { %15246 = vmatpush3.bf16.msra.mxu1 %v16361_v34 }
 0xb26   :  { %15247 = vmatprep.subr.bf16.mxu1 %v19576_v26 }
 0xb27   :  { %15228 = vmatpush3.bf16.msra.mxu0 %v16362_v33 }
 0xb28   :  { %15229 = vmatprep.subr.bf16.mxu0 %v19576_v26 }
 0xb29   :  { %15248 = vmatpush3.bf16.msra.mxu1 %v16363_v58 }
 0xb2a   :  { %15249 = vmatprep.subr.bf16.mxu1 %v19576_v26 }
 0xb2b   :  { %15230 = vmatpush3.bf16.msra.mxu0 %v16364_v43 }
 0xb2c   :  { %15231 = vmatprep.subr.bf16.mxu0 %v19576_v26 }
 0xb2d   :  { %15250 = vmatpush3.bf16.msra.mxu1 %v16365_v44 }
 0xb2e   :  { %15251 = vmatprep.subr.bf16.mxu1 %v19576_v26  ;;  %v11012_v51 = vpop.f32.mrb[20].mxu0 }
 0xb2f   :  { %15232 = vmatpush3.bf16.msra.mxu0 %v16366_v25  ;;  %v15117_v7 = vpop.f32.mrb[21].mxu0 }
 0xb30   :  { %15233 = vmatprep.subr.bf16.mxu0 %v19576_v26  ;;  %v11015_v46 = vpop.f32.mrb[22].mxu0 }
 0xb31   :  { %15252 = vmatpush3.bf16.msra.mxu1 %v16367_v22  ;;  %v15118_v20 = vpop.f32.mrb[23].mxu0 }
 0xb32   :  { %15253 = vmatprep.subr.bf16.mxu1 %v19576_v26 }
 0xb33   :  { %15234 = vmatpush3.bf16.msra.mxu0 %v16368_v4 }
 0xb34   :  { %15259 = vmatprep.subr.bf16.mxu0 %v19576_v26 }
 0xb35   :  { %15254 = vmatpush3.bf16.msra.mxu1 %v16369_v15 }
 0xb36   :  { %15236 = vmatmul.mubr.bf16.vlgmr.msra.gmra.mrb[36].mxu0 %v19721_v11  ;;  %v16373_v11 = vld [vmem:[%s19335_s9 + $0x218] sm:$0xff]  }
 0xb37   :  { %15260 = vmatpush3.bf16.msra.mxu0 %v16370_v3  ;;  %15275 = vmatprep.mubr.msk.bf16.mxu0 %vm16382_vm0, %v19576_v26 }
 0xb38   :  { %15256 = vmatmul.mubr.bf16.vlgmr.msra.gmra.mrb[72].mxu1 %v11650_v53  ;;  %15261 = vmatprep.subr.bf16.mxu0 %v19576_v26 }
 0xb3b   :  { %15262 = vmatpush3.bf16.msra.mxu0 %v16371_v31 }
 0xb3c   :  { %15263 = vmatprep.subr.bf16.mxu0 %v19576_v26 }
 0xb3f   :  { %15264 = vmatpush3.bf16.msra.mxu0 %v16372_v2 }
 0xb40   :  { %15265 = vmatprep.subr.bf16.mxu0 %v19576_v26 }
 0xb43   :  { %15266 = vmatpush3.bf16.msra.mxu0 %v16373_v11 }
 0xb44   :  { %15267 = vmatprep.subr.bf16.mxu0 %v19576_v26 }
 0xb47   :  { %15268 = vmatpush3.bf16.msra.mxu0 %v16374_v27 }
 0xb48   :  { %15269 = vmatprep.subr.bf16.mxu0 %v19576_v26 }
 0xb4b   :  { %15270 = vmatpush3.bf16.msra.mxu0 %v16375_v6 }
 0xb4c   :  { %15271 = vmatprep.subr.bf16.mxu0 %v19576_v26 }
 0xb4e   :  { %v11100_v35 = vpop.f32.mrb[24].mxu0 }
 0xb4f   :  { %15272 = vmatpush3.bf16.msra.mxu0 %v16376_v61  ;;  %v11101_v49 = vadd.f32 %v11100_v35, %v11012_v51  ;;  %v15137_v47 = vpop.f32.mrb[25].mxu0 }
 0xb50   :  { %15273 = vmatprep.subr.bf16.mxu0 %v19576_v26  ;;  %v11103_v16 = vpop.f32.mrb[26].mxu0 }
 0xb51   :  { %v15138_v37 = vpop.f32.mrb[27].mxu0 }
 0xb53   :  { %15274 = vmatpush3.bf16.msra.mxu0 %v16377_v38 }
 0xb56   :  { %15276 = vmatmul.mubr.bf16.vlgmr.msra.gmra.mrb[40].mxu0 %v11758_v52 }
 0xb6e   :  { %v11208_v57 = vpop.f32.mrb[28].mxu0 }
 0xb6f   :  { %v11214_v23 = vadd.f32 %v11208_v57, %v11101_v49  ;;  %v15157_v17 = vpop.f32.mrb[29].mxu0 }
 0xb70   :  { %v11211_v36 = vpop.f32.mrb[30].mxu0 }
 0xb71   :  { %v11323_v5 = vadd.f32 %v19191_v8, %v11214_v23  ;;  %v15158_v32 = vpop.f32.mrb[31].mxu0 }
 0xbe9   :  { %v11425_v54 = vpop.f32.mrb[32].mxu0 }
 0xbea   :  { %v11431_v10 = vadd.f32 %v11425_v54, %v11323_v5  ;;  %v15197_v59 = vpop.f32.mrb[33].mxu0 }
 0xbeb   :  { %v11428_v63 = vpop.f32.mrb[34].mxu0  ;;  %v11533_v48 = vpop.f32.mrb[68].mxu1 }
 0xbec   :  { %v11539_v26 = vadd.f32 %v11533_v48, %v11431_v10  ;;  %v15198_v39 = vpop.f32.mrb[35].mxu0  ;;  %v15217_v28 = vpop.f32.mrb[69].mxu1 }
 0xbed   :  { %v11536_v40 = vpop.f32.mrb[70].mxu1 }
 0xbee   :  { %v15218_v42 = vpop.f32.mrb[71].mxu1 }
 0xc09   :  { %v11642_v21 = vpop.f32.mrb[36].mxu0 }
 0xc0a   :  { %v11648_v62 = vadd.f32 %v11642_v21, %v11539_v26  ;;  %v15237_v1 = vpop.f32.mrb[37].mxu0 }
 0xc0b   :  { %v11645_v13 = vpop.f32.mrb[38].mxu0  ;;  %v11750_v12 = vpop.f32.mrb[72].mxu1 }
 0xc0c   :  { %v11756_v24 = vadd.f32 %v11750_v12, %v11648_v62  ;;  %v15238_v19 = vpop.f32.mrb[39].mxu0  ;;  %v15257_v45 = vpop.f32.mrb[73].mxu1 }
 0xc0d   :  { %v11753_v8 = vpop.f32.mrb[74].mxu1 }
 0xc0e   :  { %v15258_v9 = vpop.f32.mrb[75].mxu1 }
 0xc29   :  { %v11858_v55 = vpop.f32.mrb[40].mxu0 }
 0xc2a   :  { %v11864_v50 = vadd.f32 %v11858_v55, %v11756_v24  ;;  %v15277_v29 = vpop.f32.mrb[41].mxu0 }
 0xc2b   :  { %v11861_v18 = vpop.f32.mrb[42].mxu0 }
 0xc2c   :  { %v11872_v41 = vadd.f32 %v12827_v56, %v11864_v50  ;;  %v15278_v14 = vpop.f32.mrb[43].mxu0 }
 0xc2e   :  { %v11873_v30 = vmax.f32 %v11872_v41, 0.0 }
 0xc30   :  { %11874 = vst [vmem:[%s19339_s13] sm:$0xff] %v11873_v30 }

</bundles_post_ra>
